<compile_context>
chip_gen: v7x
topology: tpu7x:2x2x1
jax: 0.10.0
libtpu: 0.0.40
codegen_flags: <defaults>
</compile_context>

<pallas_src>
import jax
import jax.numpy as jnp
from jax.experimental import pallas as pl
from jax.experimental.pallas import tpu as pltpu

LATENT_DIM = 16
HIDDEN = 512
STYLE_DIM = 256
NUM_DOMAINS = 19

# Domains per grid step: 19 padded to 20 -> 4 evenly sized steps (megacore 2/2).
DOMAIN_GROUP = 5
NUM_DOMAINS_PAD = ((NUM_DOMAINS + DOMAIN_GROUP - 1) // DOMAIN_GROUP) * DOMAIN_GROUP


# ---------------------------------------------------------------------------
# Kernel: DOMAIN_GROUP unshared branches per grid step (weights streamed bf16)
# ---------------------------------------------------------------------------
def _mapping_kernel(h_ref, uw1, ub1, uw2, ub2, uw3, ub3, uw4, ub4, o_ref):
    base = pl.program_id(0) * DOMAIN_GROUP
    h16 = h_ref[...]                        # (B, HIDDEN) bf16, VMEM resident

    # Static unroll over this step's domain group.
    for g in range(DOMAIN_GROUP):
        d = base + g                        # global domain id -> resident bias row
        x = jnp.maximum(
            jnp.dot(h16, uw1[g], preferred_element_type=jnp.float32) + ub1[d], 0.0)
        x = jnp.maximum(
            jnp.dot(x.astype(jnp.bfloat16), uw2[g],
                    preferred_element_type=jnp.float32) + ub2[d], 0.0)
        x = jnp.maximum(
            jnp.dot(x.astype(jnp.bfloat16), uw3[g],
                    preferred_element_type=jnp.float32) + ub3[d], 0.0)
        x = jnp.dot(x.astype(jnp.bfloat16), uw4[g],
                    preferred_element_type=jnp.float32) + ub4[d]  # no ReLU on style proj
        o_ref[:, g * STYLE_DIM:(g + 1) * STYLE_DIM] = x.astype(o_ref.dtype)


# ---------------------------------------------------------------------------
# BlockSpecs
# ---------------------------------------------------------------------------
def _const_spec(shape):
    return pl.BlockSpec(shape, lambda d: tuple(0 for _ in shape))


def _weight_spec(out_dim):
    # One domain-group worth of weights per step, default double-buffered.
    return pl.BlockSpec((DOMAIN_GROUP, HIDDEN, out_dim), lambda d: (d, 0, 0))


def _bias_spec(out_dim):
    # Full bias stack, VMEM resident (constant index map); indexed in-kernel.
    return pl.BlockSpec((NUM_DOMAINS_PAD, 1, out_dim), lambda d: (0, 0, 0))


# ---------------------------------------------------------------------------
# Wrapper
# ---------------------------------------------------------------------------
@jax.jit
def mapping_network_forward(z, kparams):
    (sw0, sb0, sw1, sb1, sw2, sb2, sw3, sb3,
     uw1, ub1, uw2, ub2, uw3, ub3, uw4, ub4) = kparams
    B = z.shape[0]

    # Shared trunk hoisted out of the Pallas kernel (plain XLA, f32 math).
    f32 = lambda a: a.astype(jnp.float32)
    h = jnp.maximum(z @ f32(sw0) + sb0, 0.0)
    h = jnp.maximum(h @ f32(sw1) + sb1, 0.0)
    h = jnp.maximum(h @ f32(sw2) + sb2, 0.0)
    h = jnp.maximum(h @ f32(sw3) + sb3, 0.0)
    h16 = h.astype(jnp.bfloat16)

    grid = (NUM_DOMAINS_PAD // DOMAIN_GROUP,)   # 4 steps

    in_specs = [
        _const_spec((B, HIDDEN)),                          # h (bf16, resident)
        _weight_spec(HIDDEN),    _bias_spec(HIDDEN),       # uw1, ub1
        _weight_spec(HIDDEN),    _bias_spec(HIDDEN),       # uw2, ub2
        _weight_spec(HIDDEN),    _bias_spec(HIDDEN),       # uw3, ub3
        _weight_spec(STYLE_DIM), _bias_spec(STYLE_DIM),    # uw4, ub4
    ]

    out_flat = pl.pallas_call(
        _mapping_kernel,
        out_shape=jax.ShapeDtypeStruct((B, NUM_DOMAINS_PAD * STYLE_DIM), jnp.float32),
        grid=grid,
        in_specs=in_specs,
        out_specs=pl.BlockSpec((B, DOMAIN_GROUP * STYLE_DIM), lambda d: (0, d)),
        compiler_params=pltpu.CompilerParams(
            dimension_semantics=("parallel",),
            vmem_limit_bytes=48 * 1024 * 1024),
    )(h16, uw1, ub1, uw2, ub2, uw3, ub3, uw4, ub4)

    # (B, 20*256) -> (B, 20, 256) is a metadata-only reshape; drop padded domains.
    out = out_flat.reshape(B, NUM_DOMAINS_PAD, STYLE_DIM)
    return out[:, :NUM_DOMAINS, :]


# ---------------------------------------------------------------------------
# Deterministic synthetic parameters (PyTorch nn.Linear-style uniform fan-in)
# ---------------------------------------------------------------------------
def init_params(key):
    def linear(k, fan_in, fan_out):
        kw, kb = jax.random.split(k)
        bound = 1.0 / jnp.sqrt(fan_in)
        w = jax.random.uniform(kw, (fan_in, fan_out), jnp.float32, -bound, bound)
        b = jax.random.uniform(kb, (1, fan_out), jnp.float32, -bound, bound)
        return w, b

    keys = jax.random.split(key, 8)
    sw0, sb0 = linear(keys[0], LATENT_DIM, HIDDEN)
    sw1, sb1 = linear(keys[1], HIDDEN, HIDDEN)
    sw2, sb2 = linear(keys[2], HIDDEN, HIDDEN)
    sw3, sb3 = linear(keys[3], HIDDEN, HIDDEN)

    def stacked_linear(k, fan_in, fan_out):
        ks = jax.random.split(k, NUM_DOMAINS)
        ws, bs = zip(*[linear(ki, fan_in, fan_out) for ki in ks])
        return jnp.stack(ws, 0), jnp.stack(bs, 0)   # (D,in,out), (D,1,out)

    uw1, ub1 = stacked_linear(keys[4], HIDDEN, HIDDEN)
    uw2, ub2 = stacked_linear(keys[5], HIDDEN, HIDDEN)
    uw3, ub3 = stacked_linear(keys[6], HIDDEN, HIDDEN)
    uw4, ub4 = stacked_linear(keys[7], HIDDEN, STYLE_DIM)

    return (sw0, sb0, sw1, sb1, sw2, sb2, sw3, sb3,
            uw1, ub1, uw2, ub2, uw3, ub3, uw4, ub4)


def prepare_kernel_params(params):
    """One-time weight prep: bf16 weight storage (halves streamed HBM bytes) and
    zero-padding of the domain axis to NUM_DOMAINS_PAD so the grid tiles evenly."""
    (sw0, sb0, sw1, sb1, sw2, sb2, sw3, sb3,
     uw1, ub1, uw2, ub2, uw3, ub3, uw4, ub4) = params

    def pad_d(a):
        pad = NUM_DOMAINS_PAD - a.shape[0]
        return jnp.pad(a, ((0, pad),) + ((0, 0),) * (a.ndim - 1))

    bf = lambda a: a.astype(jnp.bfloat16)
    return (bf(sw0), sb0, bf(sw1), sb1, bf(sw2), sb2, bf(sw3), sb3,
            bf(pad_d(uw1)), pad_d(ub1), bf(pad_d(uw2)), pad_d(ub2),
            bf(pad_d(uw3)), pad_d(ub3), bf(pad_d(uw4)), pad_d(ub4))


# ---------------------------------------------------------------------------
# Pure-JAX reference (f32 math over the same bf16-stored weights)
# ---------------------------------------------------------------------------
def reference_forward(z, kparams):
    (sw0, sb0, sw1, sb1, sw2, sb2, sw3, sb3,
     uw1, ub1, uw2, ub2, uw3, ub3, uw4, ub4) = kparams
    f32 = lambda a: a.astype(jnp.float32)
    h = jnp.maximum(z @ f32(sw0) + sb0, 0.0)
    h = jnp.maximum(h @ f32(sw1) + sb1, 0.0)
    h = jnp.maximum(h @ f32(sw2) + sb2, 0.0)
    h = jnp.maximum(h @ f32(sw3) + sb3, 0.0)
    outs = []
    for d in range(NUM_DOMAINS):
        x = jnp.maximum(h @ f32(uw1[d]) + ub1[d], 0.0)
        x = jnp.maximum(x @ f32(uw2[d]) + ub2[d], 0.0)
        x = jnp.maximum(x @ f32(uw3[d]) + ub3[d], 0.0)
        x = x @ f32(uw4[d]) + ub4[d]
        outs.append(x)
    return jnp.stack(outs, axis=1)   # (B, num_domains, style_dim)


if __name__ == "__main__":
    key = jax.random.PRNGKey(0)
    k_params, k_z = jax.random.split(key)

    batch = 2
    z = jax.random.normal(k_z, (batch, LATENT_DIM), jnp.float32)
    params = init_params(k_params)
    kparams = prepare_kernel_params(params)

    out = mapping_network_forward(z, kparams)
    out = jax.block_until_ready(out)
    assert out.shape == (batch, NUM_DOMAINS, STYLE_DIM), out.shape

    ref = reference_forward(z, kparams)
    max_err = float(jnp.max(jnp.abs(out - ref)))
    # bf16 activation casts inside the kernel vs the f32 reference -> loose tol.
    if not jnp.allclose(out, ref, atol=2e-2, rtol=2e-2):
        raise AssertionError(f"Pallas output does not match reference (max abs err {max_err})")

    print("KERNEL_OK")
</pallas_src>

<mosaic_0001>
module attributes {stable_mosaic.version = 11 : i64} {
  func.func @_mapping_kernel(%arg0: i32, %arg1: memref<2x512xbf16, #tpu.memory_space<vmem>>, %arg2: memref<5x512x512xbf16, #tpu.memory_space<vmem>>, %arg3: memref<20x1x512xf32, #tpu.memory_space<vmem>>, %arg4: memref<5x512x512xbf16, #tpu.memory_space<vmem>>, %arg5: memref<20x1x512xf32, #tpu.memory_space<vmem>>, %arg6: memref<5x512x512xbf16, #tpu.memory_space<vmem>>, %arg7: memref<20x1x512xf32, #tpu.memory_space<vmem>>, %arg8: memref<5x512x256xbf16, #tpu.memory_space<vmem>>, %arg9: memref<20x1x256xf32, #tpu.memory_space<vmem>>, %arg10: memref<2x1280xf32, #tpu.memory_space<vmem>>) attributes {dimension_semantics = [#tpu.dimension_semantics<parallel>], iteration_bounds = array<i64: 4>, scalar_prefetch = 0 : i64, scratch_operands = 0 : i64, tpu.core_type = #tpu.core_type<tc>, window_params = [{pipeline_mode = #tpu.pipeline_mode<synchronous>, transform_indices = @transform_0, window_bounds = array<i64: 2, 512>}, {transform_indices = @transform_1, window_bounds = array<i64: 5, 512, 512>}, {pipeline_mode = #tpu.pipeline_mode<synchronous>, transform_indices = @transform_2, window_bounds = array<i64: 20, 1, 512>}, {transform_indices = @transform_3, window_bounds = array<i64: 5, 512, 512>}, {pipeline_mode = #tpu.pipeline_mode<synchronous>, transform_indices = @transform_4, window_bounds = array<i64: 20, 1, 512>}, {transform_indices = @transform_5, window_bounds = array<i64: 5, 512, 512>}, {pipeline_mode = #tpu.pipeline_mode<synchronous>, transform_indices = @transform_6, window_bounds = array<i64: 20, 1, 512>}, {transform_indices = @transform_7, window_bounds = array<i64: 5, 512, 256>}, {pipeline_mode = #tpu.pipeline_mode<synchronous>, transform_indices = @transform_8, window_bounds = array<i64: 20, 1, 256>}, {transform_indices = @transform_9, window_bounds = array<i64: 2, 1280>}]} {
    %c5_i32 = arith.constant 5 : i32
    %0 = arith.muli %arg0, %c5_i32 : i32
    %c0 = arith.constant 0 : index
    %c0_0 = arith.constant 0 : index
    %1 = vector.load %arg1[%c0, %c0_0] : memref<2x512xbf16, #tpu.memory_space<vmem>>, vector<2x512xbf16>
    %c0_i32 = arith.constant 0 : i32
    %2 = arith.addi %0, %c0_i32 : i32
    %c0_1 = arith.constant 0 : index
    %c0_2 = arith.constant 0 : index
    %c0_3 = arith.constant 0 : index
    %3 = vector.load %arg2[%c0_1, %c0_2, %c0_3] : memref<5x512x512xbf16, #tpu.memory_space<vmem>>, vector<1x512x512xbf16>
    %4 = vector.shape_cast %3 : vector<1x512x512xbf16> to vector<512x512xbf16>
    %cst = arith.constant dense<0.000000e+00> : vector<2x512xf32>
    %5 = tpu.matmul %1, %4, %cst {dimension_numbers = #tpu.dot_dimension_numbers<[1], [0], [0], [1], [0, 0, 1, 1], [], []>} : vector<2x512xbf16>, vector<512x512xbf16>, vector<2x512xf32> -> vector<2x512xf32>
    %6 = arith.index_cast %2 : i32 to index
    %c0_4 = arith.constant 0 : index
    %c0_5 = arith.constant 0 : index
    %7 = vector.load %arg3[%6, %c0_4, %c0_5] : memref<20x1x512xf32, #tpu.memory_space<vmem>>, vector<1x1x512xf32>
    %8 = vector.shape_cast %7 : vector<1x1x512xf32> to vector<1x512xf32>
    %9 = vector.broadcast %8 : vector<1x512xf32> to vector<2x512xf32>
    %10 = arith.addf %5, %9 : vector<2x512xf32>
    %cst_6 = arith.constant 0.000000e+00 : f32
    %11 = vector.broadcast %cst_6 : f32 to vector<2x512xf32>
    %12 = arith.maximumf %10, %11 : vector<2x512xf32>
    %13 = arith.truncf %12 : vector<2x512xf32> to vector<2x512xbf16>
    %c0_7 = arith.constant 0 : index
    %c0_8 = arith.constant 0 : index
    %c0_9 = arith.constant 0 : index
    %14 = vector.load %arg4[%c0_7, %c0_8, %c0_9] : memref<5x512x512xbf16, #tpu.memory_space<vmem>>, vector<1x512x512xbf16>
    %15 = vector.shape_cast %14 : vector<1x512x512xbf16> to vector<512x512xbf16>
    %cst_10 = arith.constant dense<0.000000e+00> : vector<2x512xf32>
    %16 = tpu.matmul %13, %15, %cst_10 {dimension_numbers = #tpu.dot_dimension_numbers<[1], [0], [0], [1], [0, 0, 1, 1], [], []>} : vector<2x512xbf16>, vector<512x512xbf16>, vector<2x512xf32> -> vector<2x512xf32>
    %17 = arith.index_cast %2 : i32 to index
    %c0_11 = arith.constant 0 : index
    %c0_12 = arith.constant 0 : index
    %18 = vector.load %arg5[%17, %c0_11, %c0_12] : memref<20x1x512xf32, #tpu.memory_space<vmem>>, vector<1x1x512xf32>
    %19 = vector.shape_cast %18 : vector<1x1x512xf32> to vector<1x512xf32>
    %20 = vector.broadcast %19 : vector<1x512xf32> to vector<2x512xf32>
    %21 = arith.addf %16, %20 : vector<2x512xf32>
    %cst_13 = arith.constant 0.000000e+00 : f32
    %22 = vector.broadcast %cst_13 : f32 to vector<2x512xf32>
    %23 = arith.maximumf %21, %22 : vector<2x512xf32>
    %24 = arith.truncf %23 : vector<2x512xf32> to vector<2x512xbf16>
    %c0_14 = arith.constant 0 : index
    %c0_15 = arith.constant 0 : index
    %c0_16 = arith.constant 0 : index
    %25 = vector.load %arg6[%c0_14, %c0_15, %c0_16] : memref<5x512x512xbf16, #tpu.memory_space<vmem>>, vector<1x512x512xbf16>
    %26 = vector.shape_cast %25 : vector<1x512x512xbf16> to vector<512x512xbf16>
    %cst_17 = arith.constant dense<0.000000e+00> : vector<2x512xf32>
    %27 = tpu.matmul %24, %26, %cst_17 {dimension_numbers = #tpu.dot_dimension_numbers<[1], [0], [0], [1], [0, 0, 1, 1], [], []>} : vector<2x512xbf16>, vector<512x512xbf16>, vector<2x512xf32> -> vector<2x512xf32>
    %28 = arith.index_cast %2 : i32 to index
    %c0_18 = arith.constant 0 : index
    %c0_19 = arith.constant 0 : index
    %29 = vector.load %arg7[%28, %c0_18, %c0_19] : memref<20x1x512xf32, #tpu.memory_space<vmem>>, vector<1x1x512xf32>
    %30 = vector.shape_cast %29 : vector<1x1x512xf32> to vector<1x512xf32>
    %31 = vector.broadcast %30 : vector<1x512xf32> to vector<2x512xf32>
    %32 = arith.addf %27, %31 : vector<2x512xf32>
    %cst_20 = arith.constant 0.000000e+00 : f32
    %33 = vector.broadcast %cst_20 : f32 to vector<2x512xf32>
    %34 = arith.maximumf %32, %33 : vector<2x512xf32>
    %35 = arith.truncf %34 : vector<2x512xf32> to vector<2x512xbf16>
    %c0_21 = arith.constant 0 : index
    %c0_22 = arith.constant 0 : index
    %c0_23 = arith.constant 0 : index
    %36 = vector.load %arg8[%c0_21, %c0_22, %c0_23] : memref<5x512x256xbf16, #tpu.memory_space<vmem>>, vector<1x512x256xbf16>
    %37 = vector.shape_cast %36 : vector<1x512x256xbf16> to vector<512x256xbf16>
    %cst_24 = arith.constant dense<0.000000e+00> : vector<2x256xf32>
    %38 = tpu.matmul %35, %37, %cst_24 {dimension_numbers = #tpu.dot_dimension_numbers<[1], [0], [0], [1], [0, 0, 1, 1], [], []>} : vector<2x512xbf16>, vector<512x256xbf16>, vector<2x256xf32> -> vector<2x256xf32>
    %39 = arith.index_cast %2 : i32 to index
    %c0_25 = arith.constant 0 : index
    %c0_26 = arith.constant 0 : index
    %40 = vector.load %arg9[%39, %c0_25, %c0_26] : memref<20x1x256xf32, #tpu.memory_space<vmem>>, vector<1x1x256xf32>
    %41 = vector.shape_cast %40 : vector<1x1x256xf32> to vector<1x256xf32>
    %42 = vector.broadcast %41 : vector<1x256xf32> to vector<2x256xf32>
    %43 = arith.addf %38, %42 : vector<2x256xf32>
    %c0_27 = arith.constant 0 : index
    %c0_28 = arith.constant 0 : index
    %44 = vector.load %arg10[%c0_27, %c0_28] : memref<2x1280xf32, #tpu.memory_space<vmem>>, vector<2x256xf32>
    tpu.vector_store %arg10[%c0_27, %c0_28], %43 {strides = array<i32>} : memref<2x1280xf32, #tpu.memory_space<vmem>>, vector<2x256xf32>,
    %c1_i32 = arith.constant 1 : i32
    %45 = arith.addi %0, %c1_i32 : i32
    %c1 = arith.constant 1 : index
    %c0_29 = arith.constant 0 : index
    %c0_30 = arith.constant 0 : index
    %46 = vector.load %arg2[%c1, %c0_29, %c0_30] : memref<5x512x512xbf16, #tpu.memory_space<vmem>>, vector<1x512x512xbf16>
    %47 = vector.shape_cast %46 : vector<1x512x512xbf16> to vector<512x512xbf16>
    %cst_31 = arith.constant dense<0.000000e+00> : vector<2x512xf32>
    %48 = tpu.matmul %1, %47, %cst_31 {dimension_numbers = #tpu.dot_dimension_numbers<[1], [0], [0], [1], [0, 0, 1, 1], [], []>} : vector<2x512xbf16>, vector<512x512xbf16>, vector<2x512xf32> -> vector<2x512xf32>
    %49 = arith.index_cast %45 : i32 to index
    %c0_32 = arith.constant 0 : index
    %c0_33 = arith.constant 0 : index
    %50 = vector.load %arg3[%49, %c0_32, %c0_33] : memref<20x1x512xf32, #tpu.memory_space<vmem>>, vector<1x1x512xf32>
    %51 = vector.shape_cast %50 : vector<1x1x512xf32> to vector<1x512xf32>
    %52 = vector.broadcast %51 : vector<1x512xf32> to vector<2x512xf32>
    %53 = arith.addf %48, %52 : vector<2x512xf32>
    %cst_34 = arith.constant 0.000000e+00 : f32
    %54 = vector.broadcast %cst_34 : f32 to vector<2x512xf32>
    %55 = arith.maximumf %53, %54 : vector<2x512xf32>
    %56 = arith.truncf %55 : vector<2x512xf32> to vector<2x512xbf16>
    %c1_35 = arith.constant 1 : index
    %c0_36 = arith.constant 0 : index
    %c0_37 = arith.constant 0 : index
    %57 = vector.load %arg4[%c1_35, %c0_36, %c0_37] : memref<5x512x512xbf16, #tpu.memory_space<vmem>>, vector<1x512x512xbf16>
    %58 = vector.shape_cast %57 : vector<1x512x512xbf16> to vector<512x512xbf16>
    %cst_38 = arith.constant dense<0.000000e+00> : vector<2x512xf32>
    %59 = tpu.matmul %56, %58, %cst_38 {dimension_numbers = #tpu.dot_dimension_numbers<[1], [0], [0], [1], [0, 0, 1, 1], [], []>} : vector<2x512xbf16>, vector<512x512xbf16>, vector<2x512xf32> -> vector<2x512xf32>
    %60 = arith.index_cast %45 : i32 to index
    %c0_39 = arith.constant 0 : index
    %c0_40 = arith.constant 0 : index
    %61 = vector.load %arg5[%60, %c0_39, %c0_40] : memref<20x1x512xf32, #tpu.memory_space<vmem>>, vector<1x1x512xf32>
    %62 = vector.shape_cast %61 : vector<1x1x512xf32> to vector<1x512xf32>
    %63 = vector.broadcast %62 : vector<1x512xf32> to vector<2x512xf32>
    %64 = arith.addf %59, %63 : vector<2x512xf32>
    %cst_41 = arith.constant 0.000000e+00 : f32
    %65 = vector.broadcast %cst_41 : f32 to vector<2x512xf32>
    %66 = arith.maximumf %64, %65 : vector<2x512xf32>
    %67 = arith.truncf %66 : vector<2x512xf32> to vector<2x512xbf16>
    %c1_42 = arith.constant 1 : index
    %c0_43 = arith.constant 0 : index
    %c0_44 = arith.constant 0 : index
    %68 = vector.load %arg6[%c1_42, %c0_43, %c0_44] : memref<5x512x512xbf16, #tpu.memory_space<vmem>>, vector<1x512x512xbf16>
    %69 = vector.shape_cast %68 : vector<1x512x512xbf16> to vector<512x512xbf16>
    %cst_45 = arith.constant dense<0.000000e+00> : vector<2x512xf32>
    %70 = tpu.matmul %67, %69, %cst_45 {dimension_numbers = #tpu.dot_dimension_numbers<[1], [0], [0], [1], [0, 0, 1, 1], [], []>} : vector<2x512xbf16>, vector<512x512xbf16>, vector<2x512xf32> -> vector<2x512xf32>
    %71 = arith.index_cast %45 : i32 to index
    %c0_46 = arith.constant 0 : index
    %c0_47 = arith.constant 0 : index
    %72 = vector.load %arg7[%71, %c0_46, %c0_47] : memref<20x1x512xf32, #tpu.memory_space<vmem>>, vector<1x1x512xf32>
    %73 = vector.shape_cast %72 : vector<1x1x512xf32> to vector<1x512xf32>
    %74 = vector.broadcast %73 : vector<1x512xf32> to vector<2x512xf32>
    %75 = arith.addf %70, %74 : vector<2x512xf32>
    %cst_48 = arith.constant 0.000000e+00 : f32
    %76 = vector.broadcast %cst_48 : f32 to vector<2x512xf32>
    %77 = arith.maximumf %75, %76 : vector<2x512xf32>
    %78 = arith.truncf %77 : vector<2x512xf32> to vector<2x512xbf16>
    %c1_49 = arith.constant 1 : index
    %c0_50 = arith.constant 0 : index
    %c0_51 = arith.constant 0 : index
    %79 = vector.load %arg8[%c1_49, %c0_50, %c0_51] : memref<5x512x256xbf16, #tpu.memory_space<vmem>>, vector<1x512x256xbf16>
    %80 = vector.shape_cast %79 : vector<1x512x256xbf16> to vector<512x256xbf16>
    %cst_52 = arith.constant dense<0.000000e+00> : vector<2x256xf32>
    %81 = tpu.matmul %78, %80, %cst_52 {dimension_numbers = #tpu.dot_dimension_numbers<[1], [0], [0], [1], [0, 0, 1, 1], [], []>} : vector<2x512xbf16>, vector<512x256xbf16>, vector<2x256xf32> -> vector<2x256xf32>
    %82 = arith.index_cast %45 : i32 to index
    %c0_53 = arith.constant 0 : index
    %c0_54 = arith.constant 0 : index
    %83 = vector.load %arg9[%82, %c0_53, %c0_54] : memref<20x1x256xf32, #tpu.memory_space<vmem>>, vector<1x1x256xf32>
    %84 = vector.shape_cast %83 : vector<1x1x256xf32> to vector<1x256xf32>
    %85 = vector.broadcast %84 : vector<1x256xf32> to vector<2x256xf32>
    %86 = arith.addf %81, %85 : vector<2x256xf32>
    %c0_55 = arith.constant 0 : index
    %c256 = arith.constant 256 : index
    %87 = vector.load %arg10[%c0_55, %c256] : memref<2x1280xf32, #tpu.memory_space<vmem>>, vector<2x256xf32>
    tpu.vector_store %arg10[%c0_55, %c256], %86 {strides = array<i32>} : memref<2x1280xf32, #tpu.memory_space<vmem>>, vector<2x256xf32>,
    %c2_i32 = arith.constant 2 : i32
    %88 = arith.addi %0, %c2_i32 : i32
    %c2 = arith.constant 2 : index
    %c0_56 = arith.constant 0 : index
    %c0_57 = arith.constant 0 : index
    %89 = vector.load %arg2[%c2, %c0_56, %c0_57] : memref<5x512x512xbf16, #tpu.memory_space<vmem>>, vector<1x512x512xbf16>
    %90 = vector.shape_cast %89 : vector<1x512x512xbf16> to vector<512x512xbf16>
    %cst_58 = arith.constant dense<0.000000e+00> : vector<2x512xf32>
    %91 = tpu.matmul %1, %90, %cst_58 {dimension_numbers = #tpu.dot_dimension_numbers<[1], [0], [0], [1], [0, 0, 1, 1], [], []>} : vector<2x512xbf16>, vector<512x512xbf16>, vector<2x512xf32> -> vector<2x512xf32>
    %92 = arith.index_cast %88 : i32 to index
    %c0_59 = arith.constant 0 : index
    %c0_60 = arith.constant 0 : index
    %93 = vector.load %arg3[%92, %c0_59, %c0_60] : memref<20x1x512xf32, #tpu.memory_space<vmem>>, vector<1x1x512xf32>
    %94 = vector.shape_cast %93 : vector<1x1x512xf32> to vector<1x512xf32>
    %95 = vector.broadcast %94 : vector<1x512xf32> to vector<2x512xf32>
    %96 = arith.addf %91, %95 : vector<2x512xf32>
    %cst_61 = arith.constant 0.000000e+00 : f32
    %97 = vector.broadcast %cst_61 : f32 to vector<2x512xf32>
    %98 = arith.maximumf %96, %97 : vector<2x512xf32>
    %99 = arith.truncf %98 : vector<2x512xf32> to vector<2x512xbf16>
    %c2_62 = arith.constant 2 : index
    %c0_63 = arith.constant 0 : index
    %c0_64 = arith.constant 0 : index
    %100 = vector.load %arg4[%c2_62, %c0_63, %c0_64] : memref<5x512x512xbf16, #tpu.memory_space<vmem>>, vector<1x512x512xbf16>
    %101 = vector.shape_cast %100 : vector<1x512x512xbf16> to vector<512x512xbf16>
    %cst_65 = arith.constant dense<0.000000e+00> : vector<2x512xf32>
    %102 = tpu.matmul %99, %101, %cst_65 {dimension_numbers = #tpu.dot_dimension_numbers<[1], [0], [0], [1], [0, 0, 1, 1], [], []>} : vector<2x512xbf16>, vector<512x512xbf16>, vector<2x512xf32> -> vector<2x512xf32>
    %103 = arith.index_cast %88 : i32 to index
    %c0_66 = arith.constant 0 : index
    %c0_67 = arith.constant 0 : index
    %104 = vector.load %arg5[%103, %c0_66, %c0_67] : memref<20x1x512xf32, #tpu.memory_space<vmem>>, vector<1x1x512xf32>
    %105 = vector.shape_cast %104 : vector<1x1x512xf32> to vector<1x512xf32>
    %106 = vector.broadcast %105 : vector<1x512xf32> to vector<2x512xf32>
    %107 = arith.addf %102, %106 : vector<2x512xf32>
    %cst_68 = arith.constant 0.000000e+00 : f32
    %108 = vector.broadcast %cst_68 : f32 to vector<2x512xf32>
    %109 = arith.maximumf %107, %108 : vector<2x512xf32>
    %110 = arith.truncf %109 : vector<2x512xf32> to vector<2x512xbf16>
    %c2_69 = arith.constant 2 : index
    %c0_70 = arith.constant 0 : index
    %c0_71 = arith.constant 0 : index
    %111 = vector.load %arg6[%c2_69, %c0_70, %c0_71] : memref<5x512x512xbf16, #tpu.memory_space<vmem>>, vector<1x512x512xbf16>
    %112 = vector.shape_cast %111 : vector<1x512x512xbf16> to vector<512x512xbf16>
    %cst_72 = arith.constant dense<0.000000e+00> : vector<2x512xf32>
    %113 = tpu.matmul %110, %112, %cst_72 {dimension_numbers = #tpu.dot_dimension_numbers<[1], [0], [0], [1], [0, 0, 1, 1], [], []>} : vector<2x512xbf16>, vector<512x512xbf16>, vector<2x512xf32> -> vector<2x512xf32>
    %114 = arith.index_cast %88 : i32 to index
    %c0_73 = arith.constant 0 : index
    %c0_74 = arith.constant 0 : index
    %115 = vector.load %arg7[%114, %c0_73, %c0_74] : memref<20x1x512xf32, #tpu.memory_space<vmem>>, vector<1x1x512xf32>
    %116 = vector.shape_cast %115 : vector<1x1x512xf32> to vector<1x512xf32>
    %117 = vector.broadcast %116 : vector<1x512xf32> to vector<2x512xf32>
    %118 = arith.addf %113, %117 : vector<2x512xf32>
    %cst_75 = arith.constant 0.000000e+00 : f32
    %119 = vector.broadcast %cst_75 : f32 to vector<2x512xf32>
    %120 = arith.maximumf %118, %119 : vector<2x512xf32>
    %121 = arith.truncf %120 : vector<2x512xf32> to vector<2x512xbf16>
    %c2_76 = arith.constant 2 : index
    %c0_77 = arith.constant 0 : index
    %c0_78 = arith.constant 0 : index
    %122 = vector.load %arg8[%c2_76, %c0_77, %c0_78] : memref<5x512x256xbf16, #tpu.memory_space<vmem>>, vector<1x512x256xbf16>
    %123 = vector.shape_cast %122 : vector<1x512x256xbf16> to vector<512x256xbf16>
    %cst_79 = arith.constant dense<0.000000e+00> : vector<2x256xf32>
    %124 = tpu.matmul %121, %123, %cst_79 {dimension_numbers = #tpu.dot_dimension_numbers<[1], [0], [0], [1], [0, 0, 1, 1], [], []>} : vector<2x512xbf16>, vector<512x256xbf16>, vector<2x256xf32> -> vector<2x256xf32>
    %125 = arith.index_cast %88 : i32 to index
    %c0_80 = arith.constant 0 : index
    %c0_81 = arith.constant 0 : index
    %126 = vector.load %arg9[%125, %c0_80, %c0_81] : memref<20x1x256xf32, #tpu.memory_space<vmem>>, vector<1x1x256xf32>
    %127 = vector.shape_cast %126 : vector<1x1x256xf32> to vector<1x256xf32>
    %128 = vector.broadcast %127 : vector<1x256xf32> to vector<2x256xf32>
    %129 = arith.addf %124, %128 : vector<2x256xf32>
    %c0_82 = arith.constant 0 : index
    %c512 = arith.constant 512 : index
    %130 = vector.load %arg10[%c0_82, %c512] : memref<2x1280xf32, #tpu.memory_space<vmem>>, vector<2x256xf32>
    tpu.vector_store %arg10[%c0_82, %c512], %129 {strides = array<i32>} : memref<2x1280xf32, #tpu.memory_space<vmem>>, vector<2x256xf32>,
    %c3_i32 = arith.constant 3 : i32
    %131 = arith.addi %0, %c3_i32 : i32
    %c3 = arith.constant 3 : index
    %c0_83 = arith.constant 0 : index
    %c0_84 = arith.constant 0 : index
    %132 = vector.load %arg2[%c3, %c0_83, %c0_84] : memref<5x512x512xbf16, #tpu.memory_space<vmem>>, vector<1x512x512xbf16>
    %133 = vector.shape_cast %132 : vector<1x512x512xbf16> to vector<512x512xbf16>
    %cst_85 = arith.constant dense<0.000000e+00> : vector<2x512xf32>
    %134 = tpu.matmul %1, %133, %cst_85 {dimension_numbers = #tpu.dot_dimension_numbers<[1], [0], [0], [1], [0, 0, 1, 1], [], []>} : vector<2x512xbf16>, vector<512x512xbf16>, vector<2x512xf32> -> vector<2x512xf32>
    %135 = arith.index_cast %131 : i32 to index
    %c0_86 = arith.constant 0 : index
    %c0_87 = arith.constant 0 : index
    %136 = vector.load %arg3[%135, %c0_86, %c0_87] : memref<20x1x512xf32, #tpu.memory_space<vmem>>, vector<1x1x512xf32>
    %137 = vector.shape_cast %136 : vector<1x1x512xf32> to vector<1x512xf32>
    %138 = vector.broadcast %137 : vector<1x512xf32> to vector<2x512xf32>
    %139 = arith.addf %134, %138 : vector<2x512xf32>
    %cst_88 = arith.constant 0.000000e+00 : f32
    %140 = vector.broadcast %cst_88 : f32 to vector<2x512xf32>
    %141 = arith.maximumf %139, %140 : vector<2x512xf32>
    %142 = arith.truncf %141 : vector<2x512xf32> to vector<2x512xbf16>
    %c3_89 = arith.constant 3 : index
    %c0_90 = arith.constant 0 : index
    %c0_91 = arith.constant 0 : index
    %143 = vector.load %arg4[%c3_89, %c0_90, %c0_91] : memref<5x512x512xbf16, #tpu.memory_space<vmem>>, vector<1x512x512xbf16>
    %144 = vector.shape_cast %143 : vector<1x512x512xbf16> to vector<512x512xbf16>
    %cst_92 = arith.constant dense<0.000000e+00> : vector<2x512xf32>
    %145 = tpu.matmul %142, %144, %cst_92 {dimension_numbers = #tpu.dot_dimension_numbers<[1], [0], [0], [1], [0, 0, 1, 1], [], []>} : vector<2x512xbf16>, vector<512x512xbf16>, vector<2x512xf32> -> vector<2x512xf32>
    %146 = arith.index_cast %131 : i32 to index
    %c0_93 = arith.constant 0 : index
    %c0_94 = arith.constant 0 : index
    %147 = vector.load %arg5[%146, %c0_93, %c0_94] : memref<20x1x512xf32, #tpu.memory_space<vmem>>, vector<1x1x512xf32>
    %148 = vector.shape_cast %147 : vector<1x1x512xf32> to vector<1x512xf32>
    %149 = vector.broadcast %148 : vector<1x512xf32> to vector<2x512xf32>
    %150 = arith.addf %145, %149 : vector<2x512xf32>
    %cst_95 = arith.constant 0.000000e+00 : f32
    %151 = vector.broadcast %cst_95 : f32 to vector<2x512xf32>
    %152 = arith.maximumf %150, %151 : vector<2x512xf32>
    %153 = arith.truncf %152 : vector<2x512xf32> to vector<2x512xbf16>
    %c3_96 = arith.constant 3 : index
    %c0_97 = arith.constant 0 : index
    %c0_98 = arith.constant 0 : index
    %154 = vector.load %arg6[%c3_96, %c0_97, %c0_98] : memref<5x512x512xbf16, #tpu.memory_space<vmem>>, vector<1x512x512xbf16>
    %155 = vector.shape_cast %154 : vector<1x512x512xbf16> to vector<512x512xbf16>
    %cst_99 = arith.constant dense<0.000000e+00> : vector<2x512xf32>
    %156 = tpu.matmul %153, %155, %cst_99 {dimension_numbers = #tpu.dot_dimension_numbers<[1], [0], [0], [1], [0, 0, 1, 1], [], []>} : vector<2x512xbf16>, vector<512x512xbf16>, vector<2x512xf32> -> vector<2x512xf32>
    %157 = arith.index_cast %131 : i32 to index
    %c0_100 = arith.constant 0 : index
    %c0_101 = arith.constant 0 : index
    %158 = vector.load %arg7[%157, %c0_100, %c0_101] : memref<20x1x512xf32, #tpu.memory_space<vmem>>, vector<1x1x512xf32>
    %159 = vector.shape_cast %158 : vector<1x1x512xf32> to vector<1x512xf32>
    %160 = vector.broadcast %159 : vector<1x512xf32> to vector<2x512xf32>
    %161 = arith.addf %156, %160 : vector<2x512xf32>
    %cst_102 = arith.constant 0.000000e+00 : f32
    %162 = vector.broadcast %cst_102 : f32 to vector<2x512xf32>
    %163 = arith.maximumf %161, %162 : vector<2x512xf32>
    %164 = arith.truncf %163 : vector<2x512xf32> to vector<2x512xbf16>
    %c3_103 = arith.constant 3 : index
    %c0_104 = arith.constant 0 : index
    %c0_105 = arith.constant 0 : index
    %165 = vector.load %arg8[%c3_103, %c0_104, %c0_105] : memref<5x512x256xbf16, #tpu.memory_space<vmem>>, vector<1x512x256xbf16>
    %166 = vector.shape_cast %165 : vector<1x512x256xbf16> to vector<512x256xbf16>
    %cst_106 = arith.constant dense<0.000000e+00> : vector<2x256xf32>
    %167 = tpu.matmul %164, %166, %cst_106 {dimension_numbers = #tpu.dot_dimension_numbers<[1], [0], [0], [1], [0, 0, 1, 1], [], []>} : vector<2x512xbf16>, vector<512x256xbf16>, vector<2x256xf32> -> vector<2x256xf32>
    %168 = arith.index_cast %131 : i32 to index
    %c0_107 = arith.constant 0 : index
    %c0_108 = arith.constant 0 : index
    %169 = vector.load %arg9[%168, %c0_107, %c0_108] : memref<20x1x256xf32, #tpu.memory_space<vmem>>, vector<1x1x256xf32>
    %170 = vector.shape_cast %169 : vector<1x1x256xf32> to vector<1x256xf32>
    %171 = vector.broadcast %170 : vector<1x256xf32> to vector<2x256xf32>
    %172 = arith.addf %167, %171 : vector<2x256xf32>
    %c0_109 = arith.constant 0 : index
    %c768 = arith.constant 768 : index
    %173 = vector.load %arg10[%c0_109, %c768] : memref<2x1280xf32, #tpu.memory_space<vmem>>, vector<2x256xf32>
    tpu.vector_store %arg10[%c0_109, %c768], %172 {strides = array<i32>} : memref<2x1280xf32, #tpu.memory_space<vmem>>, vector<2x256xf32>,
    %c4_i32 = arith.constant 4 : i32
    %174 = arith.addi %0, %c4_i32 : i32
    %c4 = arith.constant 4 : index
    %c0_110 = arith.constant 0 : index
    %c0_111 = arith.constant 0 : index
    %175 = vector.load %arg2[%c4, %c0_110, %c0_111] : memref<5x512x512xbf16, #tpu.memory_space<vmem>>, vector<1x512x512xbf16>
    %176 = vector.shape_cast %175 : vector<1x512x512xbf16> to vector<512x512xbf16>
    %cst_112 = arith.constant dense<0.000000e+00> : vector<2x512xf32>
    %177 = tpu.matmul %1, %176, %cst_112 {dimension_numbers = #tpu.dot_dimension_numbers<[1], [0], [0], [1], [0, 0, 1, 1], [], []>} : vector<2x512xbf16>, vector<512x512xbf16>, vector<2x512xf32> -> vector<2x512xf32>
    %178 = arith.index_cast %174 : i32 to index
    %c0_113 = arith.constant 0 : index
    %c0_114 = arith.constant 0 : index
    %179 = vector.load %arg3[%178, %c0_113, %c0_114] : memref<20x1x512xf32, #tpu.memory_space<vmem>>, vector<1x1x512xf32>
    %180 = vector.shape_cast %179 : vector<1x1x512xf32> to vector<1x512xf32>
    %181 = vector.broadcast %180 : vector<1x512xf32> to vector<2x512xf32>
    %182 = arith.addf %177, %181 : vector<2x512xf32>
    %cst_115 = arith.constant 0.000000e+00 : f32
    %183 = vector.broadcast %cst_115 : f32 to vector<2x512xf32>
    %184 = arith.maximumf %182, %183 : vector<2x512xf32>
    %185 = arith.truncf %184 : vector<2x512xf32> to vector<2x512xbf16>
    %c4_116 = arith.constant 4 : index
    %c0_117 = arith.constant 0 : index
    %c0_118 = arith.constant 0 : index
    %186 = vector.load %arg4[%c4_116, %c0_117, %c0_118] : memref<5x512x512xbf16, #tpu.memory_space<vmem>>, vector<1x512x512xbf16>
    %187 = vector.shape_cast %186 : vector<1x512x512xbf16> to vector<512x512xbf16>
    %cst_119 = arith.constant dense<0.000000e+00> : vector<2x512xf32>
    %188 = tpu.matmul %185, %187, %cst_119 {dimension_numbers = #tpu.dot_dimension_numbers<[1], [0], [0], [1], [0, 0, 1, 1], [], []>} : vector<2x512xbf16>, vector<512x512xbf16>, vector<2x512xf32> -> vector<2x512xf32>
    %189 = arith.index_cast %174 : i32 to index
    %c0_120 = arith.constant 0 : index
    %c0_121 = arith.constant 0 : index
    %190 = vector.load %arg5[%189, %c0_120, %c0_121] : memref<20x1x512xf32, #tpu.memory_space<vmem>>, vector<1x1x512xf32>
    %191 = vector.shape_cast %190 : vector<1x1x512xf32> to vector<1x512xf32>
    %192 = vector.broadcast %191 : vector<1x512xf32> to vector<2x512xf32>
    %193 = arith.addf %188, %192 : vector<2x512xf32>
    %cst_122 = arith.constant 0.000000e+00 : f32
    %194 = vector.broadcast %cst_122 : f32 to vector<2x512xf32>
    %195 = arith.maximumf %193, %194 : vector<2x512xf32>
    %196 = arith.truncf %195 : vector<2x512xf32> to vector<2x512xbf16>
    %c4_123 = arith.constant 4 : index
    %c0_124 = arith.constant 0 : index
    %c0_125 = arith.constant 0 : index
    %197 = vector.load %arg6[%c4_123, %c0_124, %c0_125] : memref<5x512x512xbf16, #tpu.memory_space<vmem>>, vector<1x512x512xbf16>
    %198 = vector.shape_cast %197 : vector<1x512x512xbf16> to vector<512x512xbf16>
    %cst_126 = arith.constant dense<0.000000e+00> : vector<2x512xf32>
    %199 = tpu.matmul %196, %198, %cst_126 {dimension_numbers = #tpu.dot_dimension_numbers<[1], [0], [0], [1], [0, 0, 1, 1], [], []>} : vector<2x512xbf16>, vector<512x512xbf16>, vector<2x512xf32> -> vector<2x512xf32>
    %200 = arith.index_cast %174 : i32 to index
    %c0_127 = arith.constant 0 : index
    %c0_128 = arith.constant 0 : index
    %201 = vector.load %arg7[%200, %c0_127, %c0_128] : memref<20x1x512xf32, #tpu.memory_space<vmem>>, vector<1x1x512xf32>
    %202 = vector.shape_cast %201 : vector<1x1x512xf32> to vector<1x512xf32>
    %203 = vector.broadcast %202 : vector<1x512xf32> to vector<2x512xf32>
    %204 = arith.addf %199, %203 : vector<2x512xf32>
    %cst_129 = arith.constant 0.000000e+00 : f32
    %205 = vector.broadcast %cst_129 : f32 to vector<2x512xf32>
    %206 = arith.maximumf %204, %205 : vector<2x512xf32>
    %207 = arith.truncf %206 : vector<2x512xf32> to vector<2x512xbf16>
    %c4_130 = arith.constant 4 : index
    %c0_131 = arith.constant 0 : index
    %c0_132 = arith.constant 0 : index
    %208 = vector.load %arg8[%c4_130, %c0_131, %c0_132] : memref<5x512x256xbf16, #tpu.memory_space<vmem>>, vector<1x512x256xbf16>
    %209 = vector.shape_cast %208 : vector<1x512x256xbf16> to vector<512x256xbf16>
    %cst_133 = arith.constant dense<0.000000e+00> : vector<2x256xf32>
    %210 = tpu.matmul %207, %209, %cst_133 {dimension_numbers = #tpu.dot_dimension_numbers<[1], [0], [0], [1], [0, 0, 1, 1], [], []>} : vector<2x512xbf16>, vector<512x256xbf16>, vector<2x256xf32> -> vector<2x256xf32>
    %211 = arith.index_cast %174 : i32 to index
    %c0_134 = arith.constant 0 : index
    %c0_135 = arith.constant 0 : index
    %212 = vector.load %arg9[%211, %c0_134, %c0_135] : memref<20x1x256xf32, #tpu.memory_space<vmem>>, vector<1x1x256xf32>
    %213 = vector.shape_cast %212 : vector<1x1x256xf32> to vector<1x256xf32>
    %214 = vector.broadcast %213 : vector<1x256xf32> to vector<2x256xf32>
    %215 = arith.addf %210, %214 : vector<2x256xf32>
    %c0_136 = arith.constant 0 : index
    %c1024 = arith.constant 1024 : index
    %216 = vector.load %arg10[%c0_136, %c1024] : memref<2x1280xf32, #tpu.memory_space<vmem>>, vector<2x256xf32>
    tpu.vector_store %arg10[%c0_136, %c1024], %215 {strides = array<i32>} : memref<2x1280xf32, #tpu.memory_space<vmem>>, vector<2x256xf32>,
    return
  }
  func.func @transform_0(%arg0: i32) -> (i32, i32) {
    %c0_i32 = arith.constant 0 : i32
    %c0_i32_0 = arith.constant 0 : i32
    %c0_i32_1 = arith.constant 0 : i32
    return %c0_i32, %c0_i32_0 : i32, i32
  }
  func.func @transform_1(%arg0: i32) -> (i32, i32, i32) {
    %c0_i32 = arith.constant 0 : i32
    %c0_i32_0 = arith.constant 0 : i32
    %c0_i32_1 = arith.constant 0 : i32
    return %arg0, %c0_i32, %c0_i32_0 : i32, i32, i32
  }
  func.func @transform_2(%arg0: i32) -> (i32, i32, i32) {
    %c0_i32 = arith.constant 0 : i32
    %c0_i32_0 = arith.constant 0 : i32
    %c0_i32_1 = arith.constant 0 : i32
    %c0_i32_2 = arith.constant 0 : i32
    return %c0_i32, %c0_i32_0, %c0_i32_1 : i32, i32, i32
  }
  func.func @transform_3(%arg0: i32) -> (i32, i32, i32) {
    %c0_i32 = arith.constant 0 : i32
    %c0_i32_0 = arith.constant 0 : i32
    %c0_i32_1 = arith.constant 0 : i32
    return %arg0, %c0_i32, %c0_i32_0 : i32, i32, i32
  }
  func.func @transform_4(%arg0: i32) -> (i32, i32, i32) {
    %c0_i32 = arith.constant 0 : i32
    %c0_i32_0 = arith.constant 0 : i32
    %c0_i32_1 = arith.constant 0 : i32
    %c0_i32_2 = arith.constant 0 : i32
    return %c0_i32, %c0_i32_0, %c0_i32_1 : i32, i32, i32
  }
  func.func @transform_5(%arg0: i32) -> (i32, i32, i32) {
    %c0_i32 = arith.constant 0 : i32
    %c0_i32_0 = arith.constant 0 : i32
    %c0_i32_1 = arith.constant 0 : i32
    return %arg0, %c0_i32, %c0_i32_0 : i32, i32, i32
  }
  func.func @transform_6(%arg0: i32) -> (i32, i32, i32) {
    %c0_i32 = arith.constant 0 : i32
    %c0_i32_0 = arith.constant 0 : i32
    %c0_i32_1 = arith.constant 0 : i32
    %c0_i32_2 = arith.constant 0 : i32
    return %c0_i32, %c0_i32_0, %c0_i32_1 : i32, i32, i32
  }
  func.func @transform_7(%arg0: i32) -> (i32, i32, i32) {
    %c0_i32 = arith.constant 0 : i32
    %c0_i32_0 = arith.constant 0 : i32
    %c0_i32_1 = arith.constant 0 : i32
    return %arg0, %c0_i32, %c0_i32_0 : i32, i32, i32
  }
  func.func @transform_8(%arg0: i32) -> (i32, i32, i32) {
    %c0_i32 = arith.constant 0 : i32
    %c0_i32_0 = arith.constant 0 : i32
    %c0_i32_1 = arith.constant 0 : i32
    %c0_i32_2 = arith.constant 0 : i32
    return %c0_i32, %c0_i32_0, %c0_i32_1 : i32, i32, i32
  }
  func.func @transform_9(%arg0: i32) -> (i32, i32) {
    %c0_i32 = arith.constant 0 : i32
    %c0_i32_0 = arith.constant 0 : i32
    return %c0_i32, %arg0 : i32, i32
  }
}

</mosaic_0001>

<bundles_post_ra>
// kernel: mapping_network_forward.1
= control target key start
LH: loop header
LB: loop body
LE: loop exit
PB: predicated region body
PF: predicated region fallthrough
CT: control target
= control target key end

     0   :  { %s28847_s0 = inlined_call_operand.vmem [shape: bf16[2,512], index: 0, kind: input, shape index: {}]   ;;  %s28848_s1 = inlined_call_operand.hbm [shape: bf16[20,512,512], index: 1, kind: input, shape index: {}]   ;;  %s28849_s2 = inlined_call_operand.hbm [shape: f32[20,1,512], index: 2, kind: input, shape index: {}]   ;;  %s28850_s3 = inlined_call_operand.hbm [shape: bf16[20,512,512], index: 3, kind: input, shape index: {}]   ;;  %s28851_s4 = inlined_call_operand.hbm [shape: f32[20,1,512], index: 4, kind: input, shape index: {}]   ;;  %s28852_s5 = inlined_call_operand.hbm [shape: bf16[20,512,512], index: 5, kind: input, shape index: {}]   ;;  %s28853_s6 = inlined_call_operand.hbm [shape: f32[20,1,512], index: 6, kind: input, shape index: {}]   ;;  %s28854_s7 = inlined_call_operand.hbm [shape: bf16[20,512,256], index: 7, kind: input, shape index: {}]   ;;  %s28855_s8 = inlined_call_operand.hbm [shape: f32[20,1,256], index: 8, kind: input, shape index: {}]   ;;  %s28856_s9 = inlined_call_operand.vmem [shape: f32[2,5120], index: 9, kind: output, shape index: {}]  }
   0x1   :  { %28875 = sst [smem:[#allocation27_spill]] %s28847_s0 }
   0x2   :  { %28876 = sst [smem:[#allocation28_spill]] %s28848_s1 }
   0x3   :  { %28877 = sst [smem:[#allocation29_spill]] %s28849_s2 }
   0x4   :  { %28878 = sst [smem:[#allocation30_spill]] %s28853_s6 }
   0x5   :  { %28879 = sst [smem:[#allocation31_spill]] %s28855_s8 }
   0x6   :  { %28880 = sst [smem:[#allocation32_spill]] %s28856_s9 }
   0x7   :  { %14 = vsyncpa [#allocation3], 0 }
   0x8   :  { %16 = vsyncpa [#allocation3 + $0x1], 0 }
   0x9   :  { %17 = vsyncpa [#allocation5], 0 }
   0xa   :  { %18 = vsyncpa [#allocation9], 0 }
   0xb   :  { %20 = vsyncpa [#allocation9 + $0x1], 0 }
   0xc   :  { %21 = vsyncpa [#allocation12], 0 }
   0xd   :  { %23 = vsyncpa [#allocation12 + $0x1], 0  ;;  %s25888_s30 = smov 0   ;;  %s25890_s10 = smov 0  }
   0xe   :  { %s25892_s11 = smov 0   ;;  %s25894_s12 = smov 0  }
   0xf LB: > { %28881 = sst [smem:[#allocation22_spill]] %s25811_s10  ;;  %s25907_s13 = sadd.s32 4294967295, %s25819_s12   ;;  %s25819_s12 = sphi %s25894_s12, %s28919_s12   ;;  %s25815_s11 = sphi %s25892_s11, %s28923_s11   ;;  %s25811_s10 = sphi %s25890_s10, %s28922_s10   ;;  %s25807_s30 = sphi %s25888_s30, %s28920_s30  }
  0x10   : > { %28882 = sst [smem:[#allocation23_spill]] %s25907_s13  ;;  %p70_p0 = scmp.ne.s32.totalorder %s25811_s10, %s25807_s30 }
  0x11   : > { %p28857_p1 = scmp.eq.s32.totalorder %s25907_s13, 0  ;;  %p17741_p2 = scmp.ge.s32.totalorder %s25819_s12, 1 }
  0x12   : > { %p269_p3 = scmp.lt.s32.totalorder %s25819_s12, 5  ;;  %s25821_s16 = smov [#allocation4]  }
  0x13   : > { %p25915_p4 = por %p28857_p1, %p70_p0  ;;  %s284_s17 = sshll.u32 %s25821_s16, 4  ;;  %s25923_s17 = int_to_ptr.vmem [resolvable:$true] %s284_s17 }
  0x14   : > { %p25919_p5 = pnand %p17741_p2, %p269_p3  ;;  %s25822_s19 = smov [#allocation10]  }
  0x15   : > { %s28883_s14 = scalar_select %p25915_p4, 1, 0 }
  0x16   : > { %s28885_s15 = scalar_select %p25919_p5, 1, 0 }
  0x17   : > { %28884 = sst [smem:[#allocation24_spill]] %s28883_s14  ;;  %p22085_p6 = pneg %p25919_p5 }
  0x18   : > { %s310_s20 = sshll.u32 %s25822_s19, 4  ;;  %s25823_s21 = smov [#allocation13]   ;;  %s25933_s20 = int_to_ptr.vmem [resolvable:$true] %s310_s20 }
  0x19   : > { %p25929_p7 = pnand %p22085_p6, %p28857_p1  ;;  %s25935_s22 = sshll.u32 %s25823_s21, 4  ;;  %s324_s22 = int_to_ptr.vmem [resolvable:$true] %s25935_s22 }
  0x1a   : > { %s28887_s2 = sld [smem:[#allocation29_spill]] }
  0x1b   : > { %s28886_s18 = scalar_select %p25929_p7, 1, 0 }
  0x1c   : > { %p25945_p9 = pneg %p25929_p7 }
  0x1e   : > { %s28888_s28 = scalar_select %p25945_p9, 1, 0 }
  0x20   : > { %s25525_s25 = scalar_lea.hbm %s28887_s2, 1280 }
  0x21   : > { %p25526_p8 = scmp.ne.s32.totalorder %s28887_s2, %s25525_s25  ;;  %p25532_p12 = scmp.lt.u32.totalorder %s25525_s25, %s28887_s2 }
  0x23   : > { %p25528_p10 = pnand %p25945_p9, %p25526_p8 }
  0x25   : > { %p25529_p11 = pneg %p25528_p10 }
  0x27   : > { %p25534_p13 = pnand %p25532_p12, %p25529_p11 }
  0x29   : > { %25537 = shalt.err (!%p25534_p13)
}
  0x2a   : > { %s25538_s16 = scalar_lea.vmem %s25923_s17, 1280  ;;  %p25546_p6 = scmp.lt.s32.totalorder %s25923_s17, %s25923_s17 }
  0x2b   : > { %p25539_p0 = scmp.ne.s32.totalorder %s25923_s17, %s25538_s16  ;;  %p25547_p1 = scmp.lt.s32.totalorder %s25538_s16, %s25538_s16 }
  0x2d   : > { %p25541_p2 = pnand %p25539_p0, %p25945_p9  ;;  %p25548_p8 = por %p25547_p1, %p25546_p6 }
  0x2f   : > { %p25542_p3 = pneg %p25541_p2 }
  0x31   : > { %p25549_p10 = pnand %p25548_p8, %p25542_p3 }
  0x33   : > { %25552 = shalt.err (!%p25549_p10)
}
  0x34   : > { %s28861_s19 = smov 64   ;;  %s28862_s21 = smov 4  }
  0x35   : > { %22088 = dma.hbm_to_vmem [thread:$0]  (!%p25929_p7), %s28887_s2, 1280, %s25923_s17, [#allocation5], %s28861_s19, %s28861_s19, %s28862_s21  }
  0x36   : > { %s28889_s6 = sld [smem:[#allocation30_spill]] }
  0x3c   : > { %s25553_s27 = scalar_lea.hbm %s28889_s6, 1280 }
  0x3d   : > { %p25554_p1 = scmp.ne.s32.totalorder %s28889_s6, %s25553_s27  ;;  %p25560_p13 = scmp.lt.u32.totalorder %s25553_s27, %s28889_s6 }
  0x3f   : > { %p25556_p11 = pnand %p25554_p1, %p25945_p9 }
  0x41   : > { %p25557_p12 = pneg %p25556_p11 }
  0x43   : > { %p25562_p0 = pnand %p25560_p13, %p25557_p12 }
  0x45   : > { %25565 = shalt.err (!%p25562_p0)
}
  0x46   : > { %s25566_s17 = scalar_lea.vmem %s25933_s20, 1280  ;;  %p25574_p8 = scmp.lt.s32.totalorder %s25933_s20, %s25933_s20 }
  0x47   : > { %p25567_p2 = scmp.ne.s32.totalorder %s25933_s20, %s25566_s17  ;;  %p25575_p10 = scmp.lt.s32.totalorder %s25566_s17, %s25566_s17 }
  0x49   : > { %p25569_p3 = pnand %p25567_p2, %p25945_p9  ;;  %p25576_p1 = por %p25575_p10, %p25574_p8 }
  0x4b   : > { %p25570_p6 = pneg %p25569_p3 }
  0x4d   : > { %p25577_p11 = pnand %p25576_p1, %p25570_p6 }
  0x4f   : > { %25580 = shalt.err (!%p25577_p11)
}
  0x50   : > { %22094 = dma.hbm_to_vmem [thread:$0]  (!%p25929_p7), %s28889_s6, 1280, %s25933_s20, [#allocation9], %s28861_s19, %s28861_s19, %s28862_s21  }
  0x51   : > { %s28890_s8 = sld [smem:[#allocation31_spill]] }
  0x57   : > { %s25581_s26 = scalar_lea.hbm %s28890_s8, 640 }
  0x58   : > { %p25582_p12 = scmp.ne.s32.totalorder %s28890_s8, %s25581_s26  ;;  %p25588_p2 = scmp.lt.u32.totalorder %s25581_s26, %s28890_s8 }
  0x5a   : > { %p25584_p13 = pnand %p25582_p12, %p25945_p9 }
  0x5c   : > { %p25585_p0 = pneg %p25584_p13 }
  0x5e   : > { %p25590_p3 = pnand %p25588_p2, %p25585_p0 }
  0x60   : > { %25593 = shalt.err (!%p25590_p3)
}
  0x61   : > { %s25594_s17 = scalar_lea.vmem %s324_s22, 640  ;;  %p25602_p1 = scmp.lt.s32.totalorder %s324_s22, %s324_s22 }
  0x62   : > { %p25595_p6 = scmp.ne.s32.totalorder %s324_s22, %s25594_s17  ;;  %p25603_p11 = scmp.lt.s32.totalorder %s25594_s17, %s25594_s17 }
  0x64   : > { %p25597_p8 = pnand %p25595_p6, %p25945_p9  ;;  %p25604_p4 = por %p25603_p11, %p25602_p1 }
  0x66   : > { %p25598_p10 = pneg %p25597_p8 }
  0x68   : > { %p25605_p5 = pnand %p25604_p4, %p25598_p10 }
  0x6a   : > { %25608 = shalt.err (!%p25605_p5)
}
  0x6b   : > { %s25826_s20 = smov 32   ;;  %s25827_s9 = smov 2  }
  0x6c   : > { %22097 = dma.hbm_to_vmem [thread:$0]  (!%p25929_p7), %s28890_s8, 640, %s324_s22, [#allocation12], %s25826_s20, %s25826_s20, %s25827_s9  }
  0x6d   : > { %s26015_s25 = sadd.s32 1, %s25819_s12   ;;  %s57_s27 = sadd.s32 1, %s25815_s11 }
  0x6e   : > { %28891 = sst [smem:[#allocation25_spill]] %s26015_s25  ;;  %s54_s26 = ssub.s32 %s25819_s12, %s26015_s25 }
  0x6f   : > { %p55_p4 = scmp.eq.s32.totalorder %s54_s26, 0  ;;  %p64_p5 = scmp.ne.s32.totalorder %s25815_s11, %s25811_s10 }
  0x70   : > { %p65_p12 = scmp.eq.s32.totalorder %s25819_s12, 0  ;;  %p22115_p13 = scmp.lt.s32.totalorder %s25819_s12, 4 }
  0x71   : > { %s26025_s29 = scalar_select %p55_p4, %s25815_s11, %s57_s27  }
  0x72   : > { %p66_p0 = por %p65_p12, %p64_p5  ;;  %s26028_s30 = sand.u32 1, %s25819_s12  }
  0x73   : > { %28892 = sst [smem:[#allocation26_spill]] %s26025_s29  ;;  %s28860_s16 = sand.u32 1, %s25815_s11  }
  0x74   : > { %s26033_s17 = smul.u32 5120, %s28860_s16  ;;  %p26035_p2 = pnand %p22115_p13, %p66_p0 }
  0x75   : > { %s26040_s20 = smul.u32 81920, %s25819_s12  ;;  %s28894_s1 = sld [smem:[#allocation28_spill]] }
  0x76   : > { %s28893_s22 = scalar_select %p26035_p2, 1, 0 }
  0x77   : > { %s341_s26 = scalar_lea.vmem [#allocation2], %s26033_s17  ;;  %p26056_p6 = pneg %p26035_p2 }
  0x78   : > { %s349_s27 = sshll.u32 %s341_s26, 4  ;;  %s26049_s27 = int_to_ptr.vmem [resolvable:$true] %s349_s27 }
  0x7b   : > { %s26046_s24 = scalar_lea.hbm %s28894_s1, %s26040_s20  ;;  %s25614_s2 = scalar_lea.hbm %s28894_s1, 327680 }
  0x7c   : > { %s25609_s19 = scalar_lea.hbm %s26046_s24, 81920  ;;  %p25615_p1 = scmp.lt.u32.totalorder %s26046_s24, %s28894_s1 }
  0x7d   : > { %p25610_p3 = scmp.ne.s32.totalorder %s26046_s24, %s25609_s19  ;;  %p25616_p11 = scmp.lt.u32.totalorder %s25614_s2, %s25609_s19 }
  0x7e   : > { %p25618_p5 = scmp.lt.u32.totalorder %s25609_s19, %s26046_s24 }
  0x7f   : > { %p25612_p8 = pnand %p26056_p6, %p25610_p3  ;;  %p25617_p4 = por %p25616_p11, %p25615_p1 }
  0x81   : > { %p25613_p10 = pneg %p25612_p8  ;;  %p25619_p12 = por %p25618_p5, %p25617_p4 }
  0x83   : > { %p25620_p13 = pnand %p25619_p12, %p25613_p10 }
  0x85   : > { %25623 = shalt.err (!%p25620_p13)
}
  0x86   : > { %s25624_s16 = scalar_lea.vmem %s26049_s27, 81920  ;;  %s25828_s9 = smov [#allocation2]  }
  0x87   : > { %p25625_p0 = scmp.ne.s32.totalorder %s26049_s27, %s25624_s16  ;;  %s25629_s23 = sshll.u32 %s25828_s9, 4  ;;  %s25630_s23 = int_to_ptr.vmem [resolvable:$false] %s25629_s23 }
  0x88   : > { %s25631_s6 = scalar_lea.vmem %s25630_s23, 163840  ;;  %p25632_p7 = scmp.lt.s32.totalorder %s26049_s27, %s25630_s23 }
  0x89   : > { %p25627_p3 = pnand %p25625_p0, %p26056_p6  ;;  %p25633_p9 = scmp.lt.s32.totalorder %s25631_s6, %s25624_s16 }
  0x8b   : > { %p25628_p8 = pneg %p25627_p3  ;;  %p25634_p1 = por %p25633_p9, %p25632_p7 }
  0x8d   : > { %p25635_p11 = pnand %p25634_p1, %p25628_p8 }
  0x8f   : > { %25638 = shalt.err (!%p25635_p11)
}
  0x90   : > { %s25829_s2 = smov 256   ;;  %s25830_s19 = smov 16  }
  0x91   : > { %s28896_s26 = scalar_lea.sflag [#allocation3], %s26028_s30  ;;  %s25831_s9 = smov [#allocation7]  }
  0x92   : > { %22101 = dma.hbm_to_vmem [thread:$0]  (!%p26035_p2), %s26046_s24, 81920, %s26049_s27, %s28896_s26, %s25829_s2, %s25829_s2, %s25830_s19  }
  0x93   : > { %s297_s16 = sshll.u32 %s25831_s9, 4  ;;  %s26088_s1 = scalar_lea.hbm %s28850_s3, %s26040_s20  ;;  %s298_s16 = int_to_ptr.vmem [resolvable:$true] %s297_s16 }
  0x94   : > { %s363_s8 = scalar_lea.vmem [#allocation6], %s26033_s17  ;;  %s25639_s14 = scalar_lea.hbm %s28851_s4, 1280 }
  0x95   : > { %s371_s29 = sshll.u32 %s363_s8, 4  ;;  %p25640_p7 = scmp.ne.s32.totalorder %s28851_s4, %s25639_s14  ;;  %s26112_s29 = int_to_ptr.vmem [resolvable:$true] %s371_s29 }
  0x96   : > { %p28897_p9 = scmp.ne.s32.totalorder %s28888_s28, 0  ;;  %p25646_p5 = scmp.lt.u32.totalorder %s25639_s14, %s28851_s4 }
  0x98   : > { %p25642_p10 = pnand %p25640_p7, %p28897_p9 }
  0x9a   : > { %p25643_p4 = pneg %p25642_p10 }
  0x9c   : > { %p25648_p12 = pnand %p25646_p5, %p25643_p4 }
  0x9e   : > { %25651 = shalt.err (!%p25648_p12)
}
  0x9f   : > { %s25652_s26 = scalar_lea.vmem %s298_s16, 1280  ;;  %p25660_p8 = scmp.lt.s32.totalorder %s298_s16, %s298_s16 }
  0xa0   : > { %p25653_p13 = scmp.ne.s32.totalorder %s298_s16, %s25652_s26  ;;  %p25661_p1 = scmp.lt.s32.totalorder %s25652_s26, %s25652_s26 }
  0xa2   : > { %p25655_p0 = pnand %p25653_p13, %p28897_p9  ;;  %p25662_p11 = por %p25661_p1, %p25660_p8 }
  0xa4   : > { %p25656_p3 = pneg %p25655_p0 }
  0xa6   : > { %p25663_p2 = pnand %p25662_p11, %p25656_p3 }
  0xa8   : > { %25666 = shalt.err (!%p25663_p2)
}
  0xa9   : > { %p28898_p7 = scmp.ne.s32.totalorder %s28886_s18, 0  ;;  %s28899_s0 = smov 4  }
  0xaa   : > { %s28900_s8 = smov 64   ;;  %s25667_s14 = scalar_lea.hbm %s26088_s1, 81920 }
  0xab   : > { %22091 = dma.hbm_to_vmem [thread:$0]  (!%p28898_p7), %s28851_s4, 1280, %s298_s16, [#allocation5], %s28900_s8, %s28900_s8, %s28899_s0  }
  0xac   : > { %p25668_p9 = scmp.ne.s32.totalorder %s26088_s1, %s25667_s14  ;;  %s25672_s25 = scalar_lea.hbm %s28850_s3, 327680 }
  0xad   : > { %p25673_p4 = scmp.lt.u32.totalorder %s26088_s1, %s28850_s3  ;;  %p25674_p5 = scmp.lt.u32.totalorder %s25672_s25, %s25667_s14 }
  0xae   : > { %p25670_p2 = pnand %p25668_p9, %p26056_p6  ;;  %p25676_p13 = scmp.lt.u32.totalorder %s25667_s14, %s26088_s1 }
  0xaf   : > { %p25675_p12 = por %p25674_p5, %p25673_p4 }
  0xb0   : > { %p25671_p10 = pneg %p25670_p2 }
  0xb1   : > { %p25677_p0 = por %p25676_p13, %p25675_p12 }
  0xb3   : > { %p25678_p3 = pnand %p25677_p0, %p25671_p10 }
  0xb5   : > { %25681 = shalt.err (!%p25678_p3)
}
  0xb6   : > { %s25682_s16 = scalar_lea.vmem %s26112_s29, 81920  ;;  %s25832_s6 = smov [#allocation6]  }
  0xb7   : > { %p25683_p8 = scmp.ne.s32.totalorder %s26112_s29, %s25682_s16  ;;  %s25687_s24 = sshll.u32 %s25832_s6, 4  ;;  %s25688_s24 = int_to_ptr.vmem [resolvable:$false] %s25687_s24 }
  0xb8   : > { %s25689_s27 = scalar_lea.vmem %s25688_s24, 163840  ;;  %p25690_p7 = scmp.lt.s32.totalorder %s26112_s29, %s25688_s24 }
  0xb9   : > { %p25685_p1 = pnand %p25683_p8, %p26056_p6  ;;  %p25691_p9 = scmp.lt.s32.totalorder %s25689_s27, %s25682_s16 }
  0xbb   : > { %p25686_p11 = pneg %p25685_p1  ;;  %p25692_p2 = por %p25691_p9, %p25690_p7 }
  0xbd   : > { %p25693_p4 = pnand %p25692_p2, %p25686_p11 }
  0xbf   : > { %25696 = shalt.err (!%p25693_p4)
}
  0xc0   : > { %p28901_p10 = scmp.ne.s32.totalorder %s28893_s22, 0  ;;  %s28902_s26 = scalar_lea.sflag [#allocation3], %s26028_s30 }
  0xc1   : > { %s26144_s10 = scalar_lea.hbm %s28852_s5, %s26040_s20  ;;  %s385_s13 = scalar_lea.vmem [#allocation8], %s26033_s17 }
  0xc2   : > { %22104 = dma.hbm_to_vmem [thread:$0]  (!%p28901_p10), %s26088_s1, 81920, %s26112_s29, %s28902_s26, %s25829_s2, %s25829_s2, %s25830_s19  }
  0xc3   : > { %s393_s14 = sshll.u32 %s385_s13, 4  ;;  %s28903_s18 = sand.u32 1, %s25815_s11   ;;  %s26147_s14 = int_to_ptr.vmem [resolvable:$true] %s393_s14 }
  0xc4   : > { %s26151_s28 = smul.u32 2560, %s28903_s18  ;;  %s382_s25 = scalar_lea.sflag [#allocation9], %s26028_s30 }
  0xc5   : > { %s25697_s9 = scalar_lea.hbm %s26144_s10, 81920  ;;  %s25702_s20 = scalar_lea.hbm %s28852_s5, 327680 }
  0xc6   : > { %p25698_p5 = scmp.ne.s32.totalorder %s26144_s10, %s25697_s9  ;;  %p25703_p0 = scmp.lt.u32.totalorder %s26144_s10, %s28852_s5 }
  0xc7   : > { %p25704_p3 = scmp.lt.u32.totalorder %s25702_s20, %s25697_s9  ;;  %p25706_p1 = scmp.lt.u32.totalorder %s25697_s9, %s26144_s10 }
  0xc8   : > { %p25700_p12 = pnand %p25698_p5, %p26056_p6 }
  0xc9   : > { %p25705_p8 = por %p25704_p3, %p25703_p0 }
  0xca   : > { %p25701_p13 = pneg %p25700_p12 }
  0xcb   : > { %p25707_p11 = por %p25706_p1, %p25705_p8 }
  0xcd   : > { %p25708_p7 = pnand %p25707_p11, %p25701_p13 }
  0xcf   : > { %25711 = shalt.err (!%p25708_p7)
}
  0xd0   : > { %s25712_s17 = scalar_lea.vmem %s26147_s14, 81920  ;;  %s25833_s6 = smov [#allocation8]  }
  0xd1   : > { %p25713_p9 = scmp.ne.s32.totalorder %s26147_s14, %s25712_s17  ;;  %s25717_s24 = sshll.u32 %s25833_s6, 4  ;;  %s25718_s24 = int_to_ptr.vmem [resolvable:$false] %s25717_s24 }
  0xd2   : > { %s25719_s27 = scalar_lea.vmem %s25718_s24, 163840  ;;  %p25720_p5 = scmp.lt.s32.totalorder %s26147_s14, %s25718_s24 }
  0xd3   : > { %p25715_p2 = pnand %p25713_p9, %p26056_p6  ;;  %p25721_p12 = scmp.lt.s32.totalorder %s25719_s27, %s25712_s17 }
  0xd5   : > { %p25716_p4 = pneg %p25715_p2  ;;  %p25722_p0 = por %p25721_p12, %p25720_p5 }
  0xd7   : > { %p25723_p3 = pnand %p25722_p0, %p25716_p4 }
  0xd9   : > { %25726 = shalt.err (!%p25723_p3)
}
  0xda   : > { %22107 = dma.hbm_to_vmem [thread:$0]  (!%p28901_p10), %s26144_s10, 81920, %s26147_s14, %s382_s25, %s25829_s2, %s25829_s2, %s25830_s19  }
  0xdb   : > { %s21846_s26 = smul.u32 40960, %s25819_s12  ;;  %s407_s0 = scalar_lea.vmem [#allocation11], %s26151_s28 }
  0xdc   : > { %s415_s8 = sshll.u32 %s407_s0, 4  ;;  %s404_s1 = scalar_lea.sflag [#allocation12], %s26028_s30  ;;  %s26187_s8 = int_to_ptr.vmem [resolvable:$true] %s415_s8 }
  0xdd   : > { %s26185_s9 = scalar_lea.hbm %s28854_s7, %s21846_s26  ;;  %s25732_s19 = scalar_lea.hbm %s28854_s7, 163840 }
  0xde   : > { %s25727_s29 = scalar_lea.hbm %s26185_s9, 40960  ;;  %p25733_p11 = scmp.lt.u32.totalorder %s26185_s9, %s28854_s7 }
  0xdf   : > { %p25728_p13 = scmp.ne.s32.totalorder %s26185_s9, %s25727_s29  ;;  %p25734_p7 = scmp.lt.u32.totalorder %s25732_s19, %s25727_s29 }
  0xe0   : > { %p25736_p2 = scmp.lt.u32.totalorder %s25727_s29, %s26185_s9 }
  0xe1   : > { %p25730_p8 = pnand %p25728_p13, %p26056_p6  ;;  %p25735_p9 = por %p25734_p7, %p25733_p11 }
  0xe3   : > { %p25731_p1 = pneg %p25730_p8  ;;  %p25737_p4 = por %p25736_p2, %p25735_p9 }
  0xe5   : > { %p25738_p5 = pnand %p25737_p4, %p25731_p1 }
  0xe7   : > { %25741 = shalt.err (!%p25738_p5)
}
  0xe8   : > { %s25742_s28 = scalar_lea.vmem %s26187_s8, 40960  ;;  %s25834_s25 = smov [#allocation11]  }
  0xe9   : > { %p25743_p12 = scmp.ne.s32.totalorder %s26187_s8, %s25742_s28  ;;  %s25747_s20 = sshll.u32 %s25834_s25, 4  ;;  %s25748_s20 = int_to_ptr.vmem [resolvable:$false] %s25747_s20 }
  0xea   : > { %s25749_s23 = scalar_lea.vmem %s25748_s20, 81920  ;;  %p25750_p13 = scmp.lt.s32.totalorder %s26187_s8, %s25748_s20 }
  0xeb   : > { %p25745_p0 = pnand %p25743_p12, %p26056_p6  ;;  %p25751_p8 = scmp.lt.s32.totalorder %s25749_s23, %s25742_s28 }
  0xed   : > { %p25746_p3 = pneg %p25745_p0  ;;  %p25752_p11 = por %p25751_p8, %p25750_p13 }
  0xef   : > { %p25753_p7 = pnand %p25752_p11, %p25746_p3 }
  0xf1   : > { %25756 = shalt.err (!%p25753_p7)
}
  0xf2   : > { %s25835_s16 = smov 128   ;;  %s25836_s17 = smov 8  }
  0xf3   : > { %22110 = dma.hbm_to_vmem [thread:$0]  (!%p28901_p10), %s26185_s9, 40960, %s26187_s8, %s404_s1, %s25835_s16, %s25835_s16, %s25836_s17  }
  0xf4   : > { %p28904_p6 = scmp.ne.s32.totalorder %s28885_s15, 0 }
  0xf5   : > { %s28905_s21 = sld [smem:[#allocation23_spill]] (!%p28904_p6)  ;;  %s28906_s6 = sld [smem:[#allocation22_spill]] (!%p28904_p6) }
  0xf6   : > { %427 = sbr.rel (%p28904_p6) target bundleno = 5141 (0x1415), region = 56  ;;  %s28907_s24 = sld [smem:[#allocation24_spill]] (!%p28904_p6) }
  0xfb   : > { %s429_s27 = sand.u32 (!%p28904_p6), 1, %s28905_s21   ;;  %s431_s26 = sand.u32 (!%p28904_p6), 1, %s28906_s6  }
  0xfc   : > { %s22059_s0 = smul.u32 (!%p28904_p6), 5120, %s431_s26  ;;  %s430_s13 = scalar_lea.sflag (!%p28904_p6), [#allocation3], %s429_s27 }
  0xfd   : > { %p28908_p1 = scmp.ne.s32.totalorder %s28907_s24, 0 }
  0xfe   : > { %s26217_s18 = scalar_lea.vmem [#allocation2], %s22059_s0 }
  0xff   : > { %25774 = dma.done.wait (%p28908_p1), %s430_s13, 81920  }
 0x100   : > { %25776 = vsyncadd (%p28908_p1), %s430_s13, 4294885376  ;;  %p28909_p9 = scmp.eq.s32.totalorder %s28905_s21, 0 }
 0x102   : > { %25778 = dma.done.wait (%p28909_p9), [#allocation5], 1280   ;;  %p28910_p10 = pmov %p28909_p9 }
 0x103   : > { %s26227_s15 = scalar_lea.vmem [#allocation6], %s22059_s0 }
 0x104   : > { %25780 = vsyncadd (%p28910_p10), [#allocation5], 4294966016 }
 0x105   : > { %25782 = dma.done.wait (%p28908_p1), %s430_s13, 81920  }
 0x106   : > { %25784 = vsyncadd (%p28908_p1), %s430_s13, 4294885376  ;;  %p28911_p2 = pmov %p28909_p9 }
 0x108   : > { %25786 = dma.done.wait (%p28911_p2), [#allocation5], 1280   ;;  %p28912_p4 = pmov %p28911_p2 }
 0x109   : > { %s456_s30 = scalar_lea.sflag [#allocation9], %s429_s27  ;;  %s26237_s22 = scalar_lea.vmem [#allocation8], %s22059_s0 }
 0x10a   : > { %25788 = vsyncadd (%p28912_p4), [#allocation5], 4294966016 }
 0x10b   : > { %25790 = dma.done.wait (%p28908_p1), %s456_s30, 81920  }
 0x10c   : > { %25792 = vsyncadd (%p28908_p1), %s456_s30, 4294885376  ;;  %p28913_p5 = pmov %p28911_p2 }
 0x10d   : > { %p28914_p12 = pmov %p28911_p2 }
 0x10e   : > { %25794 = dma.done.wait (%p28913_p5), [#allocation9], 1280  }
 0x10f   : > { %25796 = vsyncadd (%p28914_p12), [#allocation9], 4294966016  ;;  %s22060_s8 = smul.u32 2560, %s431_s26  ;;  %s469_s9 = scalar_lea.sflag [#allocation12], %s429_s27 }
 0x111   : > { %s26247_s1 = scalar_lea.vmem [#allocation11], %s22060_s8 }
 0x112   : > { %25798 = dma.done.wait (%p28908_p1), %s469_s9, 40960  }
 0x113   : > { %25800 = vsyncadd (%p28908_p1), %s469_s9, 4294926336  ;;  %p28915_p0 = pmov %p28911_p2 }
 0x115   : > { %25802 = dma.done.wait (%p28915_p0), [#allocation12], 640   ;;  %p28916_p3 = pmov %p28915_p0 }
 0x116   : > { %v22165_v0 = vld [vmem:[%s26217_s18 + $0x4] ss:$16 sps:$4 sm:$0xff]   ;;  %v22167_v1 = vld [vmem:[%s26217_s18] ss:$16 sps:$4 sm:$0xff]   ;;  %v670_v37 = vlaneseq  ;;  %v25837_v38 = vmov 1966171168  }
 0x117   : > { %25804 = vsyncadd (%p28916_p3), [#allocation12], 4294966656  ;;  %1359 = vmatprep.subr.bf16.mxu1 %v22165_v0  ;;  %v22168_v2 = vld [vmem:[%s26217_s18 + $0x204] ss:$16 sps:$4 sm:$0xff]   ;;  %v22170_v3 = vld [vmem:[%s26217_s18 + $0x200] ss:$16 sps:$4 sm:$0xff]   ;;  %v700_v39 = vunpack.c.l.s4 %v25837_v38 }
 0x118   : > { %1360 = vmatpush1.bf16.msra.mxu1 %v22167_v1  ;;  %v22171_v4 = vld [vmem:[%s26217_s18 + $0x24] ss:$16 sps:$4 sm:$0xff]   ;;  %v22173_v5 = vld [vmem:[%s26217_s18 + $0x20] ss:$16 sps:$4 sm:$0xff]   ;;  %1400 = vmatprep.subr.bf16.mxu0 %v22168_v2  ;;  %v26298_v44 = vshrl.u32 %v670_v37, 7  ;;  %s28917_s2 = sld [smem:[#allocation27_spill]] }
 0x119   : > { %v22174_v6 = vld [vmem:[%s26217_s18 + $0x224] ss:$16 sps:$4 sm:$0xff]   ;;  %1401 = vmatpush1.bf16.msra.mxu0 %v22170_v3  ;;  %1361 = vmatprep.subr.bf16.mxu1 %v22171_v4  ;;  %v22176_v7 = vld [vmem:[%s26217_s18 + $0x220] ss:$16 sps:$4 sm:$0xff]   ;;  %v701_v45 = vunpack.c.0.s8 %v700_v39  ;;  %v22290_v37 = vld [vmem:[%s26217_s18 + $0x12c] ss:$16 sps:$4 sm:$0xff]  }
 0x11a   : > { %1402 = vmatprep.subr.bf16.mxu0 %v22174_v6  ;;  %v22177_v8 = vld [vmem:[%s26217_s18 + $0x44] ss:$16 sps:$4 sm:$0xff]   ;;  %v22179_v9 = vld [vmem:[%s26217_s18 + $0x40] ss:$16 sps:$4 sm:$0xff]   ;;  %v22288_v38 = vld [vmem:[%s26217_s18 + $0x128] ss:$16 sps:$4 sm:$0xff]  }
 0x11b   : > { %v22180_v10 = vld [vmem:[%s26217_s18 + $0x244] ss:$16 sps:$4 sm:$0xff]   ;;  %v22182_v12 = vld [vmem:[%s26217_s18 + $0x240] ss:$16 sps:$4 sm:$0xff]   ;;  %v704_v50 = vsub.s32 %v701_v45, %v26298_v44  ;;  %s26478_s19 = smul.u32 20, %s28905_s21 }
 0x11c   : > { %1362 = vmatpush1.bf16.msra.mxu1 %v22173_v5  ;;  %v22183_v11 = vld [vmem:[%s26217_s18 + $0x64] ss:$16 sps:$4 sm:$0xff]   ;;  %v22185_v14 = vld [vmem:[%s26217_s18 + $0x60] ss:$16 sps:$4 sm:$0xff]   ;;  %s530_s25 = smul.u32 10, %s28905_s21  ;;  %s28918_s21 = sld [smem:[#allocation32_spill]] }
 0x11d   : > { %1363 = vmatprep.subr.bf16.mxu1 %v22177_v8  ;;  %1403 = vmatpush1.bf16.msra.mxu0 %v22176_v7  ;;  %v22186_v13 = vld [vmem:[%s26217_s18 + $0x264] ss:$16 sps:$4 sm:$0xff]   ;;  %v22188_v16 = vld [vmem:[%s26217_s18 + $0x260] ss:$16 sps:$4 sm:$0xff]   ;;  %s26481_s10 = scalar_lea.vmem [#allocation4], %s26478_s19  ;;  %s26635_s14 = scalar_lea.vmem [#allocation7], %s26478_s19 }
 0x11e   : > { %1404 = vmatprep.subr.bf16.mxu0 %v22180_v10  ;;  %v22189_v15 = vld [vmem:[%s26217_s18 + $0x84] ss:$16 sps:$4 sm:$0xff]   ;;  %v22191_v18 = vld [vmem:[%s26217_s18 + $0x80] ss:$16 sps:$4 sm:$0xff]   ;;  %v22263_v10 = vld [vmem:[%s26217_s18 + $0xc] ss:$16 sps:$4 sm:$0xff]  }
 0x11f   : > { %v22192_v17 = vld [vmem:[%s26217_s18 + $0x284] ss:$16 sps:$4 sm:$0xff]   ;;  %v22194_v20 = vld [vmem:[%s26217_s18 + $0x280] ss:$16 sps:$4 sm:$0xff]   ;;  %s26815_s28 = scalar_lea.vmem [#allocation10], %s26478_s19  ;;  %p531_p13 = scmp.lt.s32.totalorder %s530_s25, 39 }
 0x120   : > { %1364 = vmatpush1.bf16.msra.mxu1 %v22179_v9  ;;  %v22195_v19 = vld [vmem:[%s26217_s18 + $0xa4] ss:$16 sps:$4 sm:$0xff]   ;;  %v22197_v22 = vld [vmem:[%s26217_s18 + $0xa0] ss:$16 sps:$4 sm:$0xff]   ;;  %s27047_s20 = scalar_lea.vmem [#allocation13], %s530_s25 }
 0x121   : > { %1365 = vmatprep.subr.bf16.mxu1 %v22183_v11  ;;  %1405 = vmatpush1.bf16.msra.mxu0 %v22182_v12  ;;  %v22198_v21 = vld [vmem:[%s26217_s18 + $0x2a4] ss:$16 sps:$4 sm:$0xff]   ;;  %v22200_v24 = vld [vmem:[%s26217_s18 + $0x2a0] ss:$16 sps:$4 sm:$0xff]   ;;  %v22261_v12 = vld [vmem:[%s26217_s18 + $0x8] ss:$16 sps:$4 sm:$0xff]  }
 0x122   : > { %1406 = vmatprep.subr.bf16.mxu0 %v22186_v13  ;;  %v22201_v23 = vld [vmem:[%s26217_s18 + $0xc4] ss:$16 sps:$4 sm:$0xff]   ;;  %v22203_v26 = vld [vmem:[%s26217_s18 + $0xc0] ss:$16 sps:$4 sm:$0xff]   ;;  %s28925_s25 = smov (!%p531_p13, %s530_s25), 39 }
 0x123   : > { %v22204_v25 = vld [vmem:[%s26217_s18 + $0x2c4] ss:$16 sps:$4 sm:$0xff]   ;;  %v22206_v28 = vld [vmem:[%s26217_s18 + $0x2c0] ss:$16 sps:$4 sm:$0xff]   ;;  %s17760_s23 = sshll.u32 %s28925_s25, 1 }
 0x124   : > { %1366 = vmatpush1.bf16.msra.mxu1 %v22185_v14  ;;  %v22207_v27 = vld [vmem:[%s26217_s18 + $0xe4] ss:$16 sps:$4 sm:$0xff]   ;;  %v22209_v30 = vld [vmem:[%s26217_s18 + $0xe0] ss:$16 sps:$4 sm:$0xff]   ;;  %v22266_v14 = vld [vmem:[%s26217_s18 + $0x2c] ss:$16 sps:$4 sm:$0xff]   ;;  %s27062_s6 = scalar_lea.vmem %s28918_s21, %s17760_s23 }
 0x125   : > { %1367 = vmatprep.subr.bf16.mxu1 %v22189_v15  ;;  %1407 = vmatpush1.bf16.msra.mxu0 %v22188_v16  ;;  %v22210_v29 = vld [vmem:[%s26217_s18 + $0x2e4] ss:$16 sps:$4 sm:$0xff]   ;;  %v22212_v32 = vld [vmem:[%s26217_s18 + $0x2e0] ss:$16 sps:$4 sm:$0xff]   ;;  %v22264_v15 = vld [vmem:[%s26217_s18 + $0x28] ss:$16 sps:$4 sm:$0xff]  }
 0x126   : > { %1408 = vmatprep.subr.bf16.mxu0 %v22192_v17  ;;  %v22213_v31 = vld [vmem:[%s26217_s18 + $0x104] ss:$16 sps:$4 sm:$0xff]   ;;  %v22215_v34 = vld [vmem:[%s26217_s18 + $0x100] ss:$16 sps:$4 sm:$0xff]   ;;  %v22269_v16 = vld [vmem:[%s26217_s18 + $0x4c] ss:$16 sps:$4 sm:$0xff]  }
 0x127   : > { %v22216_v33 = vld [vmem:[%s26217_s18 + $0x304] ss:$16 sps:$4 sm:$0xff]   ;;  %v22218_v36 = vld [vmem:[%s26217_s18 + $0x300] ss:$16 sps:$4 sm:$0xff]   ;;  %v22267_v17 = vld [vmem:[%s26217_s18 + $0x48] ss:$16 sps:$4 sm:$0xff]  }
 0x128   : > { %1368 = vmatpush1.bf16.msra.mxu1 %v22191_v18  ;;  %v22219_v35 = vld [vmem:[%s26217_s18 + $0x124] ss:$16 sps:$4 sm:$0xff]   ;;  %v22221_v41 = vld [vmem:[%s26217_s18 + $0x120] ss:$16 sps:$4 sm:$0xff]   ;;  %v22272_v18 = vld [vmem:[%s26217_s18 + $0x6c] ss:$16 sps:$4 sm:$0xff]  }
 0x129   : > { %1369 = vmatprep.subr.bf16.mxu1 %v22195_v19  ;;  %1409 = vmatpush1.bf16.msra.mxu0 %v22194_v20  ;;  %v22222_v40 = vld [vmem:[%s26217_s18 + $0x324] ss:$16 sps:$4 sm:$0xff]   ;;  %v22224_v43 = vld [vmem:[%s26217_s18 + $0x320] ss:$16 sps:$4 sm:$0xff]   ;;  %v22270_v19 = vld [vmem:[%s26217_s18 + $0x68] ss:$16 sps:$4 sm:$0xff]  }
 0x12a   : > { %1410 = vmatprep.subr.bf16.mxu0 %v22198_v21  ;;  %v22225_v42 = vld [vmem:[%s26217_s18 + $0x144] ss:$16 sps:$4 sm:$0xff]   ;;  %v22227_v47 = vld [vmem:[%s26217_s18 + $0x140] ss:$16 sps:$4 sm:$0xff]   ;;  %v22275_v20 = vld [vmem:[%s26217_s18 + $0x8c] ss:$16 sps:$4 sm:$0xff]  }
 0x12b   : > { %v22228_v46 = vld [vmem:[%s26217_s18 + $0x344] ss:$16 sps:$4 sm:$0xff]   ;;  %v22230_v49 = vld [vmem:[%s26217_s18 + $0x340] ss:$16 sps:$4 sm:$0xff]   ;;  %v22273_v21 = vld [vmem:[%s26217_s18 + $0x88] ss:$16 sps:$4 sm:$0xff]  }
 0x12c   : > { %1370 = vmatpush1.bf16.msra.mxu1 %v22197_v22  ;;  %v22231_v48 = vld [vmem:[%s26217_s18 + $0x164] ss:$16 sps:$4 sm:$0xff]   ;;  %v17762_v52 = vld.sshfl [vmem:[%s28917_s2] sm:$0x33 pattern:$0x75316420] }
 0x12d   : > { %1371 = vmatprep.subr.bf16.mxu1 %v22201_v23  ;;  %1411 = vmatpush1.bf16.msra.mxu0 %v22200_v24  ;;  %v22234_v51 = vld [vmem:[%s26217_s18 + $0x364] ss:$16 sps:$4 sm:$0xff]   ;;  %v22233_v53 = vld [vmem:[%s26217_s18 + $0x160] ss:$16 sps:$4 sm:$0xff]   ;;  %v698_v54 = vcombine.high %v17762_v52, %v17762_v52  ;;  %v26334_v9 = vrot.slane %v17762_v52, %v704_v50  ;;  %v22278_v22 = vld [vmem:[%s26217_s18 + $0xac] ss:$16 sps:$4 sm:$0xff]  }
 0x12e   : > { %1412 = vmatprep.subr.bf16.mxu0 %v22204_v25  ;;  %v22237_v55 = vld [vmem:[%s26217_s18 + $0x184] ss:$16 sps:$4 sm:$0xff]   ;;  %v22236_v56 = vld [vmem:[%s26217_s18 + $0x360] ss:$16 sps:$4 sm:$0xff]   ;;  %v22276_v23 = vld [vmem:[%s26217_s18 + $0xa8] ss:$16 sps:$4 sm:$0xff]  }
 0x12f   : > { %v26312_v57 = vrot.slane %v698_v54, %v704_v50  ;;  %v22240_v58 = vld [vmem:[%s26217_s18 + $0x384] ss:$16 sps:$4 sm:$0xff]   ;;  %v22239_v59 = vld [vmem:[%s26217_s18 + $0x180] ss:$16 sps:$4 sm:$0xff]   ;;  %v26341_v13 = vcombine.high %v26334_v9, %v26334_v9  ;;  %v22281_v24 = vld [vmem:[%s26217_s18 + $0xcc] ss:$16 sps:$4 sm:$0xff]  }
 0x130   : > { %1372 = vmatpush1.bf16.msra.mxu1 %v22203_v26  ;;  %v22243_v61 = vld [vmem:[%s26217_s18 + $0x1a4] ss:$16 sps:$4 sm:$0xff]   ;;  %v22242_v62 = vld [vmem:[%s26217_s18 + $0x380] ss:$16 sps:$4 sm:$0xff]   ;;  %v22279_v25 = vld [vmem:[%s26217_s18 + $0xc8] ss:$16 sps:$4 sm:$0xff]  }
 0x131   : > { %1373 = vmatprep.subr.bf16.mxu1 %v22207_v27  ;;  %1413 = vmatpush1.bf16.msra.mxu0 %v22206_v28  ;;  %v26319_v60 = vcombine.high %v26312_v57, %v26312_v57  ;;  %v22246_v63 = vld [vmem:[%s26217_s18 + $0x3a4] ss:$16 sps:$4 sm:$0xff]   ;;  %v22245_v0 = vld [vmem:[%s26217_s18 + $0x1a0] ss:$16 sps:$4 sm:$0xff]   ;;  %v22284_v28 = vld [vmem:[%s26217_s18 + $0xec] ss:$16 sps:$4 sm:$0xff]  }
 0x132   : > { %1414 = vmatprep.subr.bf16.mxu0 %v22210_v29  ;;  %1391 = vmatprep.mubr.bf16.mxu1 %v26312_v57  ;;  %v22249_v1 = vld [vmem:[%s26217_s18 + $0x1c4] ss:$16 sps:$4 sm:$0xff]   ;;  %v22248_v2 = vld [vmem:[%s26217_s18 + $0x3a0] ss:$16 sps:$4 sm:$0xff]   ;;  %v22299_v50 = vld [vmem:[%s26217_s18 + $0x18c] ss:$16 sps:$4 sm:$0xff]  }
 0x133   : > { %1432 = vmatprep.mubr.bf16.mxu0 %v26319_v60  ;;  %v22252_v3 = vld [vmem:[%s26217_s18 + $0x3c4] ss:$16 sps:$4 sm:$0xff]   ;;  %v22251_v4 = vld [vmem:[%s26217_s18 + $0x1c0] ss:$16 sps:$4 sm:$0xff]   ;;  %v22302_v54 = vld [vmem:[%s26217_s18 + $0x1ac] ss:$16 sps:$4 sm:$0xff]  }
 0x134   : > { %1374 = vmatpush1.bf16.msra.mxu1 %v22209_v30  ;;  %v22255_v5 = vld [vmem:[%s26217_s18 + $0x1e4] ss:$16 sps:$4 sm:$0xff]   ;;  %v22254_v6 = vld [vmem:[%s26217_s18 + $0x3c0] ss:$16 sps:$4 sm:$0xff]  }
 0x135   : > { %1375 = vmatprep.subr.bf16.mxu1 %v22213_v31  ;;  %1415 = vmatpush1.bf16.msra.mxu0 %v22212_v32  ;;  %v22258_v7 = vld [vmem:[%s26217_s18 + $0x3e4] ss:$16 sps:$4 sm:$0xff]   ;;  %v22257_v8 = vld [vmem:[%s26217_s18 + $0x1e0] ss:$16 sps:$4 sm:$0xff]   ;;  %v22282_v31 = vld [vmem:[%s26217_s18 + $0xe8] ss:$16 sps:$4 sm:$0xff]  }
 0x136   : > { %1416 = vmatprep.subr.bf16.mxu0 %v22216_v33  ;;  %v22260_v11 = vld [vmem:[%s26217_s18 + $0x3e0] ss:$16 sps:$4 sm:$0xff]   ;;  %v22359_v27 = vld [vmem:[%s26227_s15 + $0x4] ss:$16 sps:$4 sm:$0xff]   ;;  %v22287_v32 = vld [vmem:[%s26217_s18 + $0x10c] ss:$16 sps:$4 sm:$0xff]  }
 0x137   : > { %v22357_v26 = vld [vmem:[%s26227_s15] ss:$16 sps:$4 sm:$0xff]   ;;  %v22365_v29 = vld [vmem:[%s26227_s15 + $0x24] ss:$16 sps:$4 sm:$0xff]  }
 0x138   : > { %1376 = vmatpush1.bf16.msra.mxu1 %v22215_v34  ;;  %v22363_v30 = vld [vmem:[%s26227_s15 + $0x20] ss:$16 sps:$4 sm:$0xff]   ;;  %v22371_v33 = vld [vmem:[%s26227_s15 + $0x44] ss:$16 sps:$4 sm:$0xff]   ;;  %v22285_v34 = vld [vmem:[%s26217_s18 + $0x108] ss:$16 sps:$4 sm:$0xff]  }
 0x139   : > { %1377 = vmatprep.subr.bf16.mxu1 %v22219_v35  ;;  %1417 = vmatpush1.bf16.msra.mxu0 %v22218_v36  ;;  %v22369_v35 = vld [vmem:[%s26227_s15 + $0x40] ss:$16 sps:$4 sm:$0xff]   ;;  %v22377_v36 = vld [vmem:[%s26227_s15 + $0x64] ss:$16 sps:$4 sm:$0xff]  }
 0x13a   : > { %1418 = vmatprep.subr.bf16.mxu0 %v22222_v40  ;;  %v22375_v39 = vld [vmem:[%s26227_s15 + $0x60] ss:$16 sps:$4 sm:$0xff]   ;;  %v22383_v40 = vld [vmem:[%s26227_s15 + $0x84] ss:$16 sps:$4 sm:$0xff]  }
 0x13b   : > { %v22389_v45 = vld [vmem:[%s26227_s15 + $0xa4] ss:$16 sps:$4 sm:$0xff]   ;;  %v22393_v52 = vld [vmem:[%s26227_s15 + $0xc0] ss:$16 sps:$4 sm:$0xff]  }
 0x13c   : > { %1378 = vmatpush1.bf16.msra.mxu1 %v22221_v41  ;;  %v22293_v41 = vld [vmem:[%s26217_s18 + $0x14c] ss:$16 sps:$4 sm:$0xff]  }
 0x13d   : > { %1379 = vmatprep.subr.bf16.mxu1 %v22225_v42  ;;  %1419 = vmatpush1.bf16.msra.mxu0 %v22224_v43  ;;  %v22291_v42 = vld [vmem:[%s26217_s18 + $0x148] ss:$16 sps:$4 sm:$0xff]   ;;  %v22381_v43 = vld [vmem:[%s26227_s15 + $0x80] ss:$16 sps:$4 sm:$0xff]  }
 0x13e   : > { %1420 = vmatprep.subr.bf16.mxu0 %v22228_v46  ;;  %v22296_v46 = vld [vmem:[%s26217_s18 + $0x16c] ss:$16 sps:$4 sm:$0xff]  }
 0x140   : > { %1380 = vmatpush1.bf16.msra.mxu1 %v22227_v47  ;;  %v22294_v47 = vld [vmem:[%s26217_s18 + $0x168] ss:$16 sps:$4 sm:$0xff]  }
 0x141   : > { %1381 = vmatprep.subr.bf16.mxu1 %v22231_v48  ;;  %1421 = vmatpush1.bf16.msra.mxu0 %v22230_v49  ;;  %v22387_v48 = vld [vmem:[%s26227_s15 + $0xa0] ss:$16 sps:$4 sm:$0xff]   ;;  %v22395_v49 = vld [vmem:[%s26227_s15 + $0xc4] ss:$16 sps:$4 sm:$0xff]  }
 0x142   : > { %1422 = vmatprep.subr.bf16.mxu0 %v22234_v51  ;;  %v22297_v51 = vld [vmem:[%s26217_s18 + $0x188] ss:$16 sps:$4 sm:$0xff]  }
 0x144   : > { %1382 = vmatpush1.bf16.msra.mxu1 %v22233_v53  ;;  %v22401_v53 = vld [vmem:[%s26227_s15 + $0xe4] ss:$16 sps:$4 sm:$0xff]  }
 0x145   : > { %1383 = vmatprep.subr.bf16.mxu1 %v22237_v55  ;;  %1423 = vmatpush1.bf16.msra.mxu0 %v22236_v56  ;;  %v22300_v55 = vld [vmem:[%s26217_s18 + $0x1a8] ss:$16 sps:$4 sm:$0xff]   ;;  %v22399_v56 = vld [vmem:[%s26227_s15 + $0xe0] ss:$16 sps:$4 sm:$0xff]  }
 0x146   : > { %1424 = vmatprep.subr.bf16.mxu0 %v22240_v58  ;;  %v22407_v58 = vld [vmem:[%s26227_s15 + $0x104] ss:$16 sps:$4 sm:$0xff]  }
 0x148   : > { %1384 = vmatpush1.bf16.msra.mxu1 %v22239_v59  ;;  %v22305_v59 = vld [vmem:[%s26217_s18 + $0x1cc] ss:$16 sps:$4 sm:$0xff]  }
 0x149   : > { %1385 = vmatprep.subr.bf16.mxu1 %v22243_v61  ;;  %1425 = vmatpush1.bf16.msra.mxu0 %v22242_v62  ;;  %v22303_v61 = vld [vmem:[%s26217_s18 + $0x1c8] ss:$16 sps:$4 sm:$0xff]   ;;  %v22405_v62 = vld [vmem:[%s26227_s15 + $0x100] ss:$16 sps:$4 sm:$0xff]  }
 0x14a   : > { %1426 = vmatprep.subr.bf16.mxu0 %v22246_v63  ;;  %v22413_v63 = vld [vmem:[%s26227_s15 + $0x124] ss:$16 sps:$4 sm:$0xff]  }
 0x14c   : > { %1386 = vmatpush1.bf16.msra.mxu1 %v22245_v0  ;;  %v22308_v0 = vld [vmem:[%s26217_s18 + $0x1ec] ss:$16 sps:$4 sm:$0xff]  }
 0x14d   : > { %1387 = vmatprep.subr.bf16.mxu1 %v22249_v1  ;;  %1427 = vmatpush1.bf16.msra.mxu0 %v22248_v2  ;;  %v22306_v1 = vld [vmem:[%s26217_s18 + $0x1e8] ss:$16 sps:$4 sm:$0xff]   ;;  %v22411_v2 = vld [vmem:[%s26227_s15 + $0x120] ss:$16 sps:$4 sm:$0xff]  }
 0x14e   : > { %1428 = vmatprep.subr.bf16.mxu0 %v22252_v3  ;;  %v22311_v3 = vld [vmem:[%s26217_s18 + $0x20c] ss:$16 sps:$4 sm:$0xff]  }
 0x150   : > { %1388 = vmatpush1.bf16.msra.mxu1 %v22251_v4  ;;  %v22419_v4 = vld [vmem:[%s26227_s15 + $0x144] ss:$16 sps:$4 sm:$0xff]  }
 0x151   : > { %1389 = vmatprep.subr.bf16.mxu1 %v22255_v5  ;;  %1429 = vmatpush1.bf16.msra.mxu0 %v22254_v6  ;;  %v22417_v5 = vld [vmem:[%s26227_s15 + $0x140] ss:$16 sps:$4 sm:$0xff]   ;;  %v22309_v6 = vld [vmem:[%s26217_s18 + $0x208] ss:$16 sps:$4 sm:$0xff]  }
 0x152   : > { %1430 = vmatprep.subr.bf16.mxu0 %v22258_v7  ;;  %v22314_v7 = vld [vmem:[%s26217_s18 + $0x22c] ss:$16 sps:$4 sm:$0xff]  }
 0x154   : > { %1390 = vmatpush1.bf16.msra.mxu1 %v22257_v8  ;;  %v22425_v8 = vld [vmem:[%s26227_s15 + $0x164] ss:$16 sps:$4 sm:$0xff]  }
 0x155   : > { %1441 = vmatprep.subr.bf16.mxu1 %v22263_v10  ;;  %1431 = vmatpush1.bf16.msra.mxu0 %v22260_v11  ;;  %v22423_v10 = vld [vmem:[%s26227_s15 + $0x160] ss:$16 sps:$4 sm:$0xff]   ;;  %v22312_v11 = vld [vmem:[%s26217_s18 + $0x228] ss:$16 sps:$4 sm:$0xff]  }
 0x156   : > { %2322 = vmatprep.subr.bf16.mxu0 %v22359_v27  ;;  %v22443_v27 = vld [vmem:[%s26227_s15 + $0x1c4] ss:$16 sps:$4 sm:$0xff]  }
 0x157   : > { %1392 = vmatmul.mubr.bf16.vlgmr.msra.gmra.mrb[0].mxu1 %v26334_v9 }
 0x158   : > { %1442 = vmatpush1.bf16.msra.mxu1 %v22261_v12  ;;  %1473 = vmatprep.mubr.bf16.mxu1 %v26312_v57  ;;  %v22431_v12 = vld [vmem:[%s26227_s15 + $0x184] ss:$16 sps:$4 sm:$0xff]  }
 0x159   : > { %1433 = vmatmul.mubr.bf16.vlgmr.msra.gmra.mrb[0].mxu0 %v26341_v13  ;;  %1443 = vmatprep.subr.bf16.mxu1 %v22266_v14  ;;  %v22317_v14 = vld [vmem:[%s26217_s18 + $0x24c] ss:$16 sps:$4 sm:$0xff]  }
 0x15a   : > { %2323 = vmatpush1.bf16.msra.mxu0 %v22357_v26  ;;  %v22327_v26 = vld [vmem:[%s26217_s18 + $0x2c8] ss:$16 sps:$4 sm:$0xff]  }
 0x15b   : > { %2324 = vmatprep.subr.bf16.mxu0 %v22365_v29  ;;  %v22441_v29 = vld [vmem:[%s26227_s15 + $0x1c0] ss:$16 sps:$4 sm:$0xff]  }
 0x15c   : > { %1444 = vmatpush1.bf16.msra.mxu1 %v22264_v15  ;;  %v22429_v15 = vld [vmem:[%s26227_s15 + $0x180] ss:$16 sps:$4 sm:$0xff]  }
 0x15d   : > { %1445 = vmatprep.subr.bf16.mxu1 %v22269_v16  ;;  %v22315_v16 = vld [vmem:[%s26217_s18 + $0x248] ss:$16 sps:$4 sm:$0xff]  }
 0x15e   : > { %2325 = vmatpush1.bf16.msra.mxu0 %v22363_v30  ;;  %v22330_v30 = vld [vmem:[%s26217_s18 + $0x2e8] ss:$16 sps:$4 sm:$0xff]  }
 0x15f   : > { %2326 = vmatprep.subr.bf16.mxu0 %v22371_v33  ;;  %v22447_v33 = vld [vmem:[%s26227_s15 + $0x1e0] ss:$16 sps:$4 sm:$0xff]  }
 0x160   : > { %1446 = vmatpush1.bf16.msra.mxu1 %v22267_v17  ;;  %v22437_v17 = vld [vmem:[%s26227_s15 + $0x1a4] ss:$16 sps:$4 sm:$0xff]  }
 0x161   : > { %1447 = vmatprep.subr.bf16.mxu1 %v22272_v18  ;;  %v22320_v18 = vld [vmem:[%s26217_s18 + $0x26c] ss:$16 sps:$4 sm:$0xff]  }
 0x162   : > { %2327 = vmatpush1.bf16.msra.mxu0 %v22369_v35  ;;  %v22338_v35 = vld [vmem:[%s26217_s18 + $0x32c] ss:$16 sps:$4 sm:$0xff]  }
 0x163   : > { %2328 = vmatprep.subr.bf16.mxu0 %v22377_v36  ;;  %v22455_v36 = vld [vmem:[%s26227_s15 + $0x204] ss:$16 sps:$4 sm:$0xff]  }
 0x164   : > { %1448 = vmatpush1.bf16.msra.mxu1 %v22270_v19  ;;  %v22435_v19 = vld [vmem:[%s26227_s15 + $0x1a0] ss:$16 sps:$4 sm:$0xff]  }
 0x165   : > { %1449 = vmatprep.subr.bf16.mxu1 %v22275_v20  ;;  %v22318_v20 = vld [vmem:[%s26217_s18 + $0x268] ss:$16 sps:$4 sm:$0xff]  }
 0x166   : > { %2329 = vmatpush1.bf16.msra.mxu0 %v22375_v39  ;;  %v22339_v39 = vld [vmem:[%s26217_s18 + $0x348] ss:$16 sps:$4 sm:$0xff]  }
 0x167   : > { %2330 = vmatprep.subr.bf16.mxu0 %v22383_v40  ;;  %v22344_v40 = vld [vmem:[%s26217_s18 + $0x36c] ss:$16 sps:$4 sm:$0xff]  }
 0x168   : > { %1450 = vmatpush1.bf16.msra.mxu1 %v22273_v21  ;;  %v22323_v21 = vld [vmem:[%s26217_s18 + $0x28c] ss:$16 sps:$4 sm:$0xff]  }
 0x169   : > { %1451 = vmatprep.subr.bf16.mxu1 %v22278_v22  ;;  %v22321_v22 = vld [vmem:[%s26217_s18 + $0x288] ss:$16 sps:$4 sm:$0xff]  }
 0x16a   : > { %2331 = vmatpush1.bf16.msra.mxu0 %v22381_v43  ;;  %v22345_v43 = vld [vmem:[%s26217_s18 + $0x388] ss:$16 sps:$4 sm:$0xff]  }
 0x16b   : > { %2332 = vmatprep.subr.bf16.mxu0 %v22389_v45  ;;  %v22350_v45 = vld [vmem:[%s26217_s18 + $0x3ac] ss:$16 sps:$4 sm:$0xff]  }
 0x16c   : > { %1452 = vmatpush1.bf16.msra.mxu1 %v22276_v23  ;;  %v22326_v23 = vld [vmem:[%s26217_s18 + $0x2ac] ss:$16 sps:$4 sm:$0xff]  }
 0x16d   : > { %1453 = vmatprep.subr.bf16.mxu1 %v22281_v24  ;;  %v22324_v24 = vld [vmem:[%s26217_s18 + $0x2a8] ss:$16 sps:$4 sm:$0xff]  }
 0x16e   : > { %2333 = vmatpush1.bf16.msra.mxu0 %v22387_v48  ;;  %v22351_v48 = vld [vmem:[%s26217_s18 + $0x3c8] ss:$16 sps:$4 sm:$0xff]  }
 0x16f   : > { %2334 = vmatprep.subr.bf16.mxu0 %v22395_v49  ;;  %v22356_v49 = vld [vmem:[%s26217_s18 + $0x3ec] ss:$16 sps:$4 sm:$0xff]  }
 0x170   : > { %1454 = vmatpush1.bf16.msra.mxu1 %v22279_v25  ;;  %v22329_v25 = vld [vmem:[%s26217_s18 + $0x2cc] ss:$16 sps:$4 sm:$0xff]  }
 0x171   : > { %1455 = vmatprep.subr.bf16.mxu1 %v22284_v28  ;;  %v22332_v28 = vld [vmem:[%s26217_s18 + $0x2ec] ss:$16 sps:$4 sm:$0xff]  }
 0x172   : > { %2335 = vmatpush1.bf16.msra.mxu0 %v22393_v52  ;;  %v22360_v52 = vld [vmem:[%s26227_s15 + $0x8] ss:$16 sps:$4 sm:$0xff]  }
 0x173   : > { %2336 = vmatprep.subr.bf16.mxu0 %v22401_v53  ;;  %v22368_v53 = vld [vmem:[%s26227_s15 + $0x2c] ss:$16 sps:$4 sm:$0xff]  }
 0x174   : > { %1456 = vmatpush1.bf16.msra.mxu1 %v22282_v31  ;;  %v22449_v31 = vld [vmem:[%s26227_s15 + $0x1e4] ss:$16 sps:$4 sm:$0xff]  }
 0x175   : > { %1457 = vmatprep.subr.bf16.mxu1 %v22287_v32  ;;  %v22335_v32 = vld [vmem:[%s26217_s18 + $0x30c] ss:$16 sps:$4 sm:$0xff]  }
 0x176   : > { %2337 = vmatpush1.bf16.msra.mxu0 %v22399_v56  ;;  %v22372_v56 = vld [vmem:[%s26227_s15 + $0x48] ss:$16 sps:$4 sm:$0xff]  }
 0x177   : > { %2338 = vmatprep.subr.bf16.mxu0 %v22407_v58  ;;  %v22380_v58 = vld [vmem:[%s26227_s15 + $0x6c] ss:$16 sps:$4 sm:$0xff]  }
 0x178   : > { %1458 = vmatpush1.bf16.msra.mxu1 %v22285_v34  ;;  %v22333_v34 = vld [vmem:[%s26217_s18 + $0x308] ss:$16 sps:$4 sm:$0xff]  }
 0x179   : > { %1459 = vmatprep.subr.bf16.mxu1 %v22290_v37  ;;  %v22336_v37 = vld [vmem:[%s26217_s18 + $0x328] ss:$16 sps:$4 sm:$0xff]  }
 0x17a   : > { %2339 = vmatpush1.bf16.msra.mxu0 %v22405_v62  ;;  %v22384_v62 = vld [vmem:[%s26227_s15 + $0x88] ss:$16 sps:$4 sm:$0xff]  }
 0x17b   : > { %2340 = vmatprep.subr.bf16.mxu0 %v22413_v63  ;;  %v22392_v63 = vld [vmem:[%s26227_s15 + $0xac] ss:$16 sps:$4 sm:$0xff]  }
 0x17c   : > { %1460 = vmatpush1.bf16.msra.mxu1 %v22288_v38  ;;  %v22341_v38 = vld [vmem:[%s26217_s18 + $0x34c] ss:$16 sps:$4 sm:$0xff]  }
 0x17d   : > { %1461 = vmatprep.subr.bf16.mxu1 %v22293_v41  ;;  %v22342_v41 = vld [vmem:[%s26217_s18 + $0x368] ss:$16 sps:$4 sm:$0xff]  }
 0x17e   : > { %2341 = vmatpush1.bf16.msra.mxu0 %v22411_v2  ;;  %v22396_v2 = vld [vmem:[%s26227_s15 + $0xc8] ss:$16 sps:$4 sm:$0xff]  }
 0x17f   : > { %2342 = vmatprep.subr.bf16.mxu0 %v22419_v4  ;;  %v22402_v4 = vld [vmem:[%s26227_s15 + $0xe8] ss:$16 sps:$4 sm:$0xff]  }
 0x180   : > { %1462 = vmatpush1.bf16.msra.mxu1 %v22291_v42  ;;  %v22347_v42 = vld [vmem:[%s26217_s18 + $0x38c] ss:$16 sps:$4 sm:$0xff]  }
 0x181   : > { %1463 = vmatprep.subr.bf16.mxu1 %v22296_v46  ;;  %v22348_v46 = vld [vmem:[%s26217_s18 + $0x3a8] ss:$16 sps:$4 sm:$0xff]  }
 0x182   : > { %2343 = vmatpush1.bf16.msra.mxu0 %v22417_v5  ;;  %v22410_v5 = vld [vmem:[%s26227_s15 + $0x10c] ss:$16 sps:$4 sm:$0xff]  }
 0x183   : > { %2344 = vmatprep.subr.bf16.mxu0 %v22425_v8  ;;  %v22414_v8 = vld [vmem:[%s26227_s15 + $0x128] ss:$16 sps:$4 sm:$0xff]  }
 0x184   : > { %1464 = vmatpush1.bf16.msra.mxu1 %v22294_v47  ;;  %v22353_v47 = vld [vmem:[%s26217_s18 + $0x3cc] ss:$16 sps:$4 sm:$0xff]  }
 0x185   : > { %1465 = vmatprep.subr.bf16.mxu1 %v22299_v50  ;;  %v22354_v50 = vld [vmem:[%s26217_s18 + $0x3e8] ss:$16 sps:$4 sm:$0xff]  }
 0x186   : > { %2345 = vmatpush1.bf16.msra.mxu0 %v22423_v10  ;;  %v22422_v10 = vld [vmem:[%s26227_s15 + $0x14c] ss:$16 sps:$4 sm:$0xff]  }
 0x187   : > { %2346 = vmatprep.subr.bf16.mxu0 %v22431_v12  ;;  %v22428_v12 = vld [vmem:[%s26227_s15 + $0x16c] ss:$16 sps:$4 sm:$0xff]  }
 0x188   : > { %1466 = vmatpush1.bf16.msra.mxu1 %v22297_v51  ;;  %v22362_v51 = vld [vmem:[%s26227_s15 + $0xc] ss:$16 sps:$4 sm:$0xff]  }
 0x189   : > { %1467 = vmatprep.subr.bf16.mxu1 %v22302_v54  ;;  %v22366_v54 = vld [vmem:[%s26227_s15 + $0x28] ss:$16 sps:$4 sm:$0xff]  }
 0x18a   : > { %2347 = vmatpush1.bf16.msra.mxu0 %v22429_v15  ;;  %v22434_v15 = vld [vmem:[%s26227_s15 + $0x18c] ss:$16 sps:$4 sm:$0xff]  }
 0x18b   : > { %2348 = vmatprep.subr.bf16.mxu0 %v22437_v17  ;;  %v22440_v17 = vld [vmem:[%s26227_s15 + $0x1ac] ss:$16 sps:$4 sm:$0xff]  }
 0x18c   : > { %1468 = vmatpush1.bf16.msra.mxu1 %v22300_v55  ;;  %v22374_v55 = vld [vmem:[%s26227_s15 + $0x4c] ss:$16 sps:$4 sm:$0xff]  }
 0x18d   : > { %1469 = vmatprep.subr.bf16.mxu1 %v22305_v59  ;;  %v22378_v59 = vld [vmem:[%s26227_s15 + $0x68] ss:$16 sps:$4 sm:$0xff]  }
 0x18e   : > { %2349 = vmatpush1.bf16.msra.mxu0 %v22435_v19  ;;  %v22446_v19 = vld [vmem:[%s26227_s15 + $0x1cc] ss:$16 sps:$4 sm:$0xff]  }
 0x18f   : > { %2350 = vmatprep.subr.bf16.mxu0 %v22443_v27 }
 0x190   : > { %1470 = vmatpush1.bf16.msra.mxu1 %v22303_v61  ;;  %v22386_v61 = vld [vmem:[%s26227_s15 + $0x8c] ss:$16 sps:$4 sm:$0xff]  }
 0x191   : > { %1471 = vmatprep.subr.bf16.mxu1 %v22308_v0  ;;  %v22390_v0 = vld [vmem:[%s26227_s15 + $0xa8] ss:$16 sps:$4 sm:$0xff]  }
 0x192   : > { %2351 = vmatpush1.bf16.msra.mxu0 %v22441_v29 }
 0x193   : > { %2352 = vmatprep.subr.bf16.mxu0 %v22449_v31 }
 0x194   : > { %1472 = vmatpush1.bf16.msra.mxu1 %v22306_v1  ;;  %v22398_v1 = vld [vmem:[%s26227_s15 + $0xcc] ss:$16 sps:$4 sm:$0xff]  }
 0x195   : > { %1482 = vmatprep.subr.bf16.mxu1 %v22311_v3  ;;  %v22404_v3 = vld [vmem:[%s26227_s15 + $0xec] ss:$16 sps:$4 sm:$0xff]  }
 0x196   : > { %2353 = vmatpush1.bf16.msra.mxu0 %v22447_v33 }
 0x197   : > { %1474 = vmatmul.mubr.bf16.vlgmr.msra.gmra.mrb[4].mxu1 %v26334_v9  ;;  %2363 = vmatprep.subr.bf16.mxu0 %v22455_v36 }
 0x198   : > { %1483 = vmatpush1.bf16.msra.mxu1 %v22309_v6  ;;  %1514 = vmatprep.mubr.bf16.mxu1 %v26319_v60  ;;  %v22408_v6 = vld [vmem:[%s26227_s15 + $0x108] ss:$16 sps:$4 sm:$0xff]  }
 0x199   : > { %1484 = vmatprep.subr.bf16.mxu1 %v22314_v7  ;;  %v22416_v7 = vld [vmem:[%s26227_s15 + $0x12c] ss:$16 sps:$4 sm:$0xff]  }
 0x19c   : > { %1485 = vmatpush1.bf16.msra.mxu1 %v22312_v11  ;;  %v22420_v11 = vld [vmem:[%s26227_s15 + $0x148] ss:$16 sps:$4 sm:$0xff]  }
 0x19d   : > { %1486 = vmatprep.subr.bf16.mxu1 %v22317_v14  ;;  %v22426_v14 = vld [vmem:[%s26227_s15 + $0x168] ss:$16 sps:$4 sm:$0xff]  }
 0x1a0   : > { %1487 = vmatpush1.bf16.msra.mxu1 %v22315_v16  ;;  %v22432_v16 = vld [vmem:[%s26227_s15 + $0x188] ss:$16 sps:$4 sm:$0xff]  }
 0x1a1   : > { %1488 = vmatprep.subr.bf16.mxu1 %v22320_v18  ;;  %v22438_v18 = vld [vmem:[%s26227_s15 + $0x1a8] ss:$16 sps:$4 sm:$0xff]  }
 0x1a4   : > { %1489 = vmatpush1.bf16.msra.mxu1 %v22318_v20  ;;  %v22444_v20 = vld [vmem:[%s26227_s15 + $0x1c8] ss:$16 sps:$4 sm:$0xff]  }
 0x1a5   : > { %1490 = vmatprep.subr.bf16.mxu1 %v22323_v21  ;;  %v22452_v21 = vld [vmem:[%s26227_s15 + $0x1ec] ss:$16 sps:$4 sm:$0xff]  }
 0x1a8   : > { %1491 = vmatpush1.bf16.msra.mxu1 %v22321_v22  ;;  %v22450_v22 = vld [vmem:[%s26227_s15 + $0x1e8] ss:$16 sps:$4 sm:$0xff]  }
 0x1a9   : > { %1492 = vmatprep.subr.bf16.mxu1 %v22326_v23  ;;  %v22458_v23 = vld [vmem:[%s26227_s15 + $0x20c] ss:$16 sps:$4 sm:$0xff]  }
 0x1ac   : > { %1493 = vmatpush1.bf16.msra.mxu1 %v22324_v24  ;;  %v26484_v24 = vld [vmem:[%s26481_s10] sm:$0xf] }
 0x1ad   : > { %1494 = vmatprep.subr.bf16.mxu1 %v22329_v25  ;;  %v26487_v25 = vsub.s32 0, %v26298_v44 }
 0x1af   : > { %v673_v27 = vrot.slane %v26484_v24, %v26487_v25 }
 0x1b0   : > { %1495 = vmatpush1.bf16.msra.mxu1 %v22327_v26  ;;  %v26490_v26 = vsub.s32 1, %v26298_v44 }
 0x1b1   : > { %1496 = vmatprep.subr.bf16.mxu1 %v22332_v28 }
 0x1b2   : > { %v677_v28 = vrot.slane %v26484_v24, %v26490_v26 }
 0x1b4   : > { %1497 = vmatpush1.bf16.msra.mxu1 %v22330_v30 }
 0x1b5   : > { %1498 = vmatprep.subr.bf16.mxu1 %v22335_v32 }
 0x1b8   : > { %1499 = vmatpush1.bf16.msra.mxu1 %v22333_v34 }
 0x1b9   : > { %1500 = vmatprep.subr.bf16.mxu1 %v22338_v35 }
 0x1bc   : > { %1501 = vmatpush1.bf16.msra.mxu1 %v22336_v37 }
 0x1bd   : > { %1502 = vmatprep.subr.bf16.mxu1 %v22341_v38 }
 0x1c0   : > { %1503 = vmatpush1.bf16.msra.mxu1 %v22339_v39 }
 0x1c1   : > { %1504 = vmatprep.subr.bf16.mxu1 %v22344_v40 }
 0x1c4   : > { %1505 = vmatpush1.bf16.msra.mxu1 %v22342_v41 }
 0x1c5   : > { %1506 = vmatprep.subr.bf16.mxu1 %v22347_v42 }
 0x1c8   : > { %1507 = vmatpush1.bf16.msra.mxu1 %v22345_v43  ;;  %v22453_v43 = vld [vmem:[%s26227_s15 + $0x200] ss:$16 sps:$4 sm:$0xff]  }
 0x1c9   : > { %1508 = vmatprep.subr.bf16.mxu1 %v22350_v45  ;;  %v22456_v45 = vld [vmem:[%s26227_s15 + $0x208] ss:$16 sps:$4 sm:$0xff]  }
 0x1cc   : > { %1509 = vmatpush1.bf16.msra.mxu1 %v22348_v46 }
 0x1cd   : > { %1510 = vmatprep.subr.bf16.mxu1 %v22353_v47 }
 0x1d0   : > { %1511 = vmatpush1.bf16.msra.mxu1 %v22351_v48  ;;  %v22461_v48 = vld [vmem:[%s26227_s15 + $0x224] ss:$16 sps:$4 sm:$0xff]  }
 0x1d1   : > { %1512 = vmatprep.subr.bf16.mxu1 %v22356_v49  ;;  %v22464_v49 = vld [vmem:[%s26227_s15 + $0x22c] ss:$16 sps:$4 sm:$0xff]  }
 0x1d4   : > { %1513 = vmatpush1.bf16.msra.mxu1 %v22354_v50  ;;  %v22459_v50 = vld [vmem:[%s26227_s15 + $0x220] ss:$16 sps:$4 sm:$0xff]  }
 0x1d5   : > { %2404 = vmatprep.subr.bf16.mxu1 %v22362_v51  ;;  %v22462_v51 = vld [vmem:[%s26227_s15 + $0x228] ss:$16 sps:$4 sm:$0xff]  }
 0x1d7   : > { %1515 = vmatmul.mubr.bf16.vlgmr.msra.gmra.mrb[4].mxu1 %v26341_v13 }
 0x1d8   : > { %2405 = vmatpush1.bf16.msra.mxu1 %v22360_v52  ;;  %v22467_v52 = vld [vmem:[%s26227_s15 + $0x244] ss:$16 sps:$4 sm:$0xff]  }
 0x1d9   : > { %2406 = vmatprep.subr.bf16.mxu1 %v22368_v53  ;;  %v22470_v53 = vld [vmem:[%s26227_s15 + $0x24c] ss:$16 sps:$4 sm:$0xff]  }
 0x1dc   : > { %2407 = vmatpush1.bf16.msra.mxu1 %v22366_v54  ;;  %v22465_v54 = vld [vmem:[%s26227_s15 + $0x240] ss:$16 sps:$4 sm:$0xff]  }
 0x1dd   : > { %2408 = vmatprep.subr.bf16.mxu1 %v22374_v55  ;;  %v22468_v55 = vld [vmem:[%s26227_s15 + $0x248] ss:$16 sps:$4 sm:$0xff]  }
 0x1e0   : > { %2409 = vmatpush1.bf16.msra.mxu1 %v22372_v56  ;;  %v22473_v56 = vld [vmem:[%s26227_s15 + $0x264] ss:$16 sps:$4 sm:$0xff]  }
 0x1e1   : > { %2410 = vmatprep.subr.bf16.mxu1 %v22380_v58  ;;  %v22476_v58 = vld [vmem:[%s26227_s15 + $0x26c] ss:$16 sps:$4 sm:$0xff]  }
 0x1e4   : > { %2411 = vmatpush1.bf16.msra.mxu1 %v22378_v59  ;;  %v22471_v59 = vld [vmem:[%s26227_s15 + $0x260] ss:$16 sps:$4 sm:$0xff]  }
 0x1e5   : > { %2412 = vmatprep.subr.bf16.mxu1 %v22386_v61  ;;  %v22474_v61 = vld [vmem:[%s26227_s15 + $0x268] ss:$16 sps:$4 sm:$0xff]  }
 0x1e8   : > { %2413 = vmatpush1.bf16.msra.mxu1 %v22384_v62  ;;  %v22479_v62 = vld [vmem:[%s26227_s15 + $0x284] ss:$16 sps:$4 sm:$0xff]  }
 0x1e9   : > { %2414 = vmatprep.subr.bf16.mxu1 %v22392_v63  ;;  %v22482_v63 = vld [vmem:[%s26227_s15 + $0x28c] ss:$16 sps:$4 sm:$0xff]  }
 0x1ec   : > { %2415 = vmatpush1.bf16.msra.mxu1 %v22390_v0  ;;  %v22477_v0 = vld [vmem:[%s26227_s15 + $0x280] ss:$16 sps:$4 sm:$0xff]  }
 0x1ed   : > { %2416 = vmatprep.subr.bf16.mxu1 %v22398_v1  ;;  %v22480_v1 = vld [vmem:[%s26227_s15 + $0x288] ss:$16 sps:$4 sm:$0xff]  }
 0x1f0   : > { %2417 = vmatpush1.bf16.msra.mxu1 %v22396_v2  ;;  %v22485_v2 = vld [vmem:[%s26227_s15 + $0x2a4] ss:$16 sps:$4 sm:$0xff]  }
 0x1f1   : > { %2418 = vmatprep.subr.bf16.mxu1 %v22404_v3  ;;  %v22488_v3 = vld [vmem:[%s26227_s15 + $0x2ac] ss:$16 sps:$4 sm:$0xff]  }
 0x1f4   : > { %2419 = vmatpush1.bf16.msra.mxu1 %v22402_v4  ;;  %v22483_v4 = vld [vmem:[%s26227_s15 + $0x2a0] ss:$16 sps:$4 sm:$0xff]  }
 0x1f5   : > { %2420 = vmatprep.subr.bf16.mxu1 %v22410_v5  ;;  %v22486_v5 = vld [vmem:[%s26227_s15 + $0x2a8] ss:$16 sps:$4 sm:$0xff]  }
 0x1f8   : > { %2421 = vmatpush1.bf16.msra.mxu1 %v22408_v6  ;;  %v22491_v6 = vld [vmem:[%s26227_s15 + $0x2c4] ss:$16 sps:$4 sm:$0xff]  }
 0x1f9   : > { %2422 = vmatprep.subr.bf16.mxu1 %v22416_v7  ;;  %v22494_v7 = vld [vmem:[%s26227_s15 + $0x2cc] ss:$16 sps:$4 sm:$0xff]  }
 0x1fc   : > { %2423 = vmatpush1.bf16.msra.mxu1 %v22414_v8  ;;  %v22489_v8 = vld [vmem:[%s26227_s15 + $0x2c0] ss:$16 sps:$4 sm:$0xff]  }
 0x1fd   : > { %2424 = vmatprep.subr.bf16.mxu1 %v22422_v10  ;;  %v22492_v10 = vld [vmem:[%s26227_s15 + $0x2c8] ss:$16 sps:$4 sm:$0xff]  }
 0x200   : > { %2425 = vmatpush1.bf16.msra.mxu1 %v22420_v11  ;;  %v22497_v11 = vld [vmem:[%s26227_s15 + $0x2e4] ss:$16 sps:$4 sm:$0xff]  }
 0x201   : > { %2426 = vmatprep.subr.bf16.mxu1 %v22428_v12  ;;  %v22500_v12 = vld [vmem:[%s26227_s15 + $0x2ec] ss:$16 sps:$4 sm:$0xff]  }
 0x204   : > { %2427 = vmatpush1.bf16.msra.mxu1 %v22426_v14  ;;  %v22495_v14 = vld [vmem:[%s26227_s15 + $0x2e0] ss:$16 sps:$4 sm:$0xff]  }
 0x205   : > { %2428 = vmatprep.subr.bf16.mxu1 %v22434_v15  ;;  %v22498_v15 = vld [vmem:[%s26227_s15 + $0x2e8] ss:$16 sps:$4 sm:$0xff]  }
 0x208   : > { %2429 = vmatpush1.bf16.msra.mxu1 %v22432_v16  ;;  %v22503_v16 = vld [vmem:[%s26227_s15 + $0x304] ss:$16 sps:$4 sm:$0xff]  }
 0x209   : > { %2430 = vmatprep.subr.bf16.mxu1 %v22440_v17  ;;  %v22506_v17 = vld [vmem:[%s26227_s15 + $0x30c] ss:$16 sps:$4 sm:$0xff]  }
 0x20c   : > { %2431 = vmatpush1.bf16.msra.mxu1 %v22438_v18  ;;  %v22501_v18 = vld [vmem:[%s26227_s15 + $0x300] ss:$16 sps:$4 sm:$0xff]  }
 0x20d   : > { %2432 = vmatprep.subr.bf16.mxu1 %v22446_v19  ;;  %v22504_v19 = vld [vmem:[%s26227_s15 + $0x308] ss:$16 sps:$4 sm:$0xff]  }
 0x210   : > { %2433 = vmatpush1.bf16.msra.mxu1 %v22444_v20  ;;  %v22509_v20 = vld [vmem:[%s26227_s15 + $0x324] ss:$16 sps:$4 sm:$0xff]  }
 0x211   : > { %2434 = vmatprep.subr.bf16.mxu1 %v22452_v21  ;;  %v22512_v21 = vld [vmem:[%s26227_s15 + $0x32c] ss:$16 sps:$4 sm:$0xff]  }
 0x214   : > { %2435 = vmatpush1.bf16.msra.mxu1 %v22450_v22  ;;  %v22507_v22 = vld [vmem:[%s26227_s15 + $0x320] ss:$16 sps:$4 sm:$0xff]  }
 0x215   : > { %2445 = vmatprep.subr.bf16.mxu1 %v22458_v23  ;;  %v22510_v23 = vld [vmem:[%s26227_s15 + $0x328] ss:$16 sps:$4 sm:$0xff]  }
 0x22a   : > { %v1393_v29 = vpop.f32.mrb[0].mxu1 }
 0x22b   : > { %v1394_v30 = vadd.f32 %v1393_v29, %v673_v27  ;;  %v1395_v31 = vpop.f32.mrb[1].mxu1  ;;  %v22515_v27 = vld [vmem:[%s26227_s15 + $0x344] ss:$16 sps:$4 sm:$0xff]   ;;  %v22513_v29 = vld [vmem:[%s26227_s15 + $0x340] ss:$16 sps:$4 sm:$0xff]  }
 0x22c   : > { %v1396_v32 = vadd.f32 %v1395_v31, %v677_v28  ;;  %v1397_v33 = vpop.f32.mrb[2].mxu1  ;;  %v1434_v34 = vpop.f32.mrb[0].mxu0  ;;  %v22518_v28 = vld [vmem:[%s26227_s15 + $0x34c] ss:$16 sps:$4 sm:$0xff]   ;;  %v22521_v31 = vld [vmem:[%s26227_s15 + $0x364] ss:$16 sps:$4 sm:$0xff]  }
 0x22d   : > { %v1435_v35 = vadd.f32 %v1434_v34, %v1394_v30  ;;  %v1398_v36 = vpop.f32.mrb[3].mxu1  ;;  %v1436_v37 = vpop.f32.mrb[1].mxu0  ;;  %v22516_v30 = vld [vmem:[%s26227_s15 + $0x348] ss:$16 sps:$4 sm:$0xff]   ;;  %v22519_v33 = vld [vmem:[%s26227_s15 + $0x360] ss:$16 sps:$4 sm:$0xff]  }
 0x22e   : > { %v1437_v38 = vadd.f32 %v1436_v37, %v1396_v32  ;;  %v1438_v39 = vpop.f32.mrb[2].mxu0  ;;  %v22524_v32 = vld [vmem:[%s26227_s15 + $0x36c] ss:$16 sps:$4 sm:$0xff]   ;;  %v22522_v34 = vld [vmem:[%s26227_s15 + $0x368] ss:$16 sps:$4 sm:$0xff]  }
 0x22f   : > { %v1523_v40 = vmax.f32 %v1435_v35, 0.0  ;;  %v1439_v41 = vpop.f32.mrb[3].mxu0  ;;  %v22527_v35 = vld [vmem:[%s26227_s15 + $0x384] ss:$16 sps:$4 sm:$0xff]   ;;  %v22530_v36 = vld [vmem:[%s26227_s15 + $0x38c] ss:$16 sps:$4 sm:$0xff]  }
 0x230   : > { %v1524_v42 = vmax.f32 %v1437_v38, 0.0  ;;  %v22525_v37 = vld [vmem:[%s26227_s15 + $0x380] ss:$16 sps:$4 sm:$0xff]   ;;  %v22528_v38 = vld [vmem:[%s26227_s15 + $0x388] ss:$16 sps:$4 sm:$0xff]  }
 0x231   : > { %v1527_v46 = vpack.c.bf16 %v1523_v40, %v1523_v40  ;;  %v22533_v39 = vld [vmem:[%s26227_s15 + $0x3a4] ss:$16 sps:$4 sm:$0xff]   ;;  %v22536_v40 = vld [vmem:[%s26227_s15 + $0x3ac] ss:$16 sps:$4 sm:$0xff]   ;;  %v22531_v41 = vld [vmem:[%s26227_s15 + $0x3a0] ss:$16 sps:$4 sm:$0xff]  }
 0x232   : > { %v1528_v47 = vpack.c.bf16 %v1524_v42, %v1524_v42  ;;  %v22534_v42 = vld [vmem:[%s26227_s15 + $0x3a8] ss:$16 sps:$4 sm:$0xff]  }
 0x234   : > { %2354 = vmatprep.mubr.bf16.mxu0 %v1528_v47  ;;  %2436 = vmatprep.mubr.bf16.mxu1 %v1528_v47  ;;  %v22540_v47 = vld [vmem:[%s26227_s15 + $0x3c8] ss:$16 sps:$4 sm:$0xff]  }
 0x235   : > { %2355 = vmatmul.mubr.bf16.vlgmr.msra.gmra.mrb[4].mxu0 %v1527_v46  ;;  %2437 = vmatmul.mubr.bf16.vlgmr.msra.gmra.mrb[8].mxu1 %v1527_v46  ;;  %v22537_v46 = vld [vmem:[%s26227_s15 + $0x3c0] ss:$16 sps:$4 sm:$0xff]  }
 0x236   : > { %2364 = vmatpush1.bf16.msra.mxu0 %v22453_v43  ;;  %2446 = vmatpush1.bf16.msra.mxu1 %v22456_v45  ;;  %v22539_v43 = vld [vmem:[%s26227_s15 + $0x3c4] ss:$16 sps:$4 sm:$0xff]   ;;  %v22542_v45 = vld [vmem:[%s26227_s15 + $0x3cc] ss:$16 sps:$4 sm:$0xff]  }
 0x237   : > { %2365 = vmatprep.subr.bf16.mxu0 %v22461_v48  ;;  %2447 = vmatprep.subr.bf16.mxu1 %v22464_v49  ;;  %v22545_v48 = vld [vmem:[%s26227_s15 + $0x3e4] ss:$16 sps:$4 sm:$0xff]   ;;  %v22548_v49 = vld [vmem:[%s26227_s15 + $0x3ec] ss:$16 sps:$4 sm:$0xff]  }
 0x23a   : > { %2366 = vmatpush1.bf16.msra.mxu0 %v22459_v50  ;;  %2448 = vmatpush1.bf16.msra.mxu1 %v22462_v51  ;;  %v22543_v50 = vld [vmem:[%s26227_s15 + $0x3e0] ss:$16 sps:$4 sm:$0xff]   ;;  %v22546_v51 = vld [vmem:[%s26227_s15 + $0x3e8] ss:$16 sps:$4 sm:$0xff]  }
 0x23b   : > { %2367 = vmatprep.subr.bf16.mxu0 %v22467_v52  ;;  %2449 = vmatprep.subr.bf16.mxu1 %v22470_v53  ;;  %v22551_v52 = vld [vmem:[%s26237_s22 + $0x4] ss:$16 sps:$4 sm:$0xff]   ;;  %v22554_v53 = vld [vmem:[%s26237_s22 + $0xc] ss:$16 sps:$4 sm:$0xff]  }
 0x23e   : > { %2368 = vmatpush1.bf16.msra.mxu0 %v22465_v54  ;;  %2450 = vmatpush1.bf16.msra.mxu1 %v22468_v55  ;;  %v26561_v54 = vsub.s32 2, %v26298_v44  ;;  %v26564_v55 = vsub.s32 3, %v26298_v44  ;;  %v22549_v44 = vld [vmem:[%s26237_s22] ss:$16 sps:$4 sm:$0xff]  }
 0x23f   : > { %2369 = vmatprep.subr.bf16.mxu0 %v22473_v56  ;;  %2451 = vmatprep.subr.bf16.mxu1 %v22476_v58 }
 0x240   : > { %v681_v56 = vrot.slane %v26484_v24, %v26561_v54  ;;  %v685_v58 = vrot.slane %v26484_v24, %v26564_v55 }
 0x242   : > { %2370 = vmatpush1.bf16.msra.mxu0 %v22471_v59  ;;  %2452 = vmatpush1.bf16.msra.mxu1 %v22474_v61 }
 0x243   : > { %2371 = vmatprep.subr.bf16.mxu0 %v22479_v62  ;;  %2453 = vmatprep.subr.bf16.mxu1 %v22482_v63 }
 0x246   : > { %2372 = vmatpush1.bf16.msra.mxu0 %v22477_v0  ;;  %2454 = vmatpush1.bf16.msra.mxu1 %v22480_v1 }
 0x247   : > { %2373 = vmatprep.subr.bf16.mxu0 %v22485_v2  ;;  %2455 = vmatprep.subr.bf16.mxu1 %v22488_v3 }
 0x24a   : > { %2374 = vmatpush1.bf16.msra.mxu0 %v22483_v4  ;;  %2456 = vmatpush1.bf16.msra.mxu1 %v22486_v5  ;;  %v22552_v4 = vld [vmem:[%s26237_s22 + $0x8] ss:$16 sps:$4 sm:$0xff]   ;;  %v22557_v5 = vld [vmem:[%s26237_s22 + $0x24] ss:$16 sps:$4 sm:$0xff]  }
 0x24b   : > { %2375 = vmatprep.subr.bf16.mxu0 %v22491_v6  ;;  %2457 = vmatprep.subr.bf16.mxu1 %v22494_v7  ;;  %v22560_v6 = vld [vmem:[%s26237_s22 + $0x2c] ss:$16 sps:$4 sm:$0xff]  }
 0x24e   : > { %2376 = vmatpush1.bf16.msra.mxu0 %v22489_v8  ;;  %2458 = vmatpush1.bf16.msra.mxu1 %v22492_v10  ;;  %v22555_v8 = vld [vmem:[%s26237_s22 + $0x20] ss:$16 sps:$4 sm:$0xff]   ;;  %v22558_v10 = vld [vmem:[%s26237_s22 + $0x28] ss:$16 sps:$4 sm:$0xff]  }
 0x24f   : > { %2377 = vmatprep.subr.bf16.mxu0 %v22497_v11  ;;  %2459 = vmatprep.subr.bf16.mxu1 %v22500_v12  ;;  %v22563_v11 = vld [vmem:[%s26237_s22 + $0x44] ss:$16 sps:$4 sm:$0xff]   ;;  %v22566_v12 = vld [vmem:[%s26237_s22 + $0x4c] ss:$16 sps:$4 sm:$0xff]  }
 0x252   : > { %2378 = vmatpush1.bf16.msra.mxu0 %v22495_v14  ;;  %2460 = vmatpush1.bf16.msra.mxu1 %v22498_v15  ;;  %v22561_v14 = vld [vmem:[%s26237_s22 + $0x40] ss:$16 sps:$4 sm:$0xff]   ;;  %v22564_v15 = vld [vmem:[%s26237_s22 + $0x48] ss:$16 sps:$4 sm:$0xff]  }
 0x253   : > { %2379 = vmatprep.subr.bf16.mxu0 %v22503_v16  ;;  %2461 = vmatprep.subr.bf16.mxu1 %v22506_v17  ;;  %v22569_v16 = vld [vmem:[%s26237_s22 + $0x64] ss:$16 sps:$4 sm:$0xff]   ;;  %v22572_v17 = vld [vmem:[%s26237_s22 + $0x6c] ss:$16 sps:$4 sm:$0xff]  }
 0x256   : > { %2380 = vmatpush1.bf16.msra.mxu0 %v22501_v18  ;;  %2462 = vmatpush1.bf16.msra.mxu1 %v22504_v19  ;;  %v22567_v18 = vld [vmem:[%s26237_s22 + $0x60] ss:$16 sps:$4 sm:$0xff]   ;;  %v22570_v19 = vld [vmem:[%s26237_s22 + $0x68] ss:$16 sps:$4 sm:$0xff]  }
 0x257   : > { %2381 = vmatprep.subr.bf16.mxu0 %v22509_v20  ;;  %2463 = vmatprep.subr.bf16.mxu1 %v22512_v21  ;;  %v22575_v20 = vld [vmem:[%s26237_s22 + $0x84] ss:$16 sps:$4 sm:$0xff]   ;;  %v22578_v21 = vld [vmem:[%s26237_s22 + $0x8c] ss:$16 sps:$4 sm:$0xff]  }
 0x25a   : > { %2382 = vmatpush1.bf16.msra.mxu0 %v22507_v22  ;;  %2464 = vmatpush1.bf16.msra.mxu1 %v22510_v23  ;;  %v22573_v22 = vld [vmem:[%s26237_s22 + $0x80] ss:$16 sps:$4 sm:$0xff]   ;;  %v22576_v23 = vld [vmem:[%s26237_s22 + $0x88] ss:$16 sps:$4 sm:$0xff]  }
 0x25b   : > { %2383 = vmatprep.subr.bf16.mxu0 %v22515_v27  ;;  %2465 = vmatprep.subr.bf16.mxu1 %v22518_v28  ;;  %v22581_v27 = vld [vmem:[%s26237_s22 + $0xa4] ss:$16 sps:$4 sm:$0xff]   ;;  %v22584_v28 = vld [vmem:[%s26237_s22 + $0xac] ss:$16 sps:$4 sm:$0xff]  }
 0x25e   : > { %2384 = vmatpush1.bf16.msra.mxu0 %v22513_v29  ;;  %2466 = vmatpush1.bf16.msra.mxu1 %v22516_v30  ;;  %v22579_v29 = vld [vmem:[%s26237_s22 + $0xa0] ss:$16 sps:$4 sm:$0xff]   ;;  %v22582_v30 = vld [vmem:[%s26237_s22 + $0xa8] ss:$16 sps:$4 sm:$0xff]  }
 0x25f   : > { %2385 = vmatprep.subr.bf16.mxu0 %v22521_v31  ;;  %2467 = vmatprep.subr.bf16.mxu1 %v22524_v32  ;;  %v22587_v31 = vld [vmem:[%s26237_s22 + $0xc4] ss:$16 sps:$4 sm:$0xff]   ;;  %v22590_v32 = vld [vmem:[%s26237_s22 + $0xcc] ss:$16 sps:$4 sm:$0xff]  }
 0x262   : > { %2386 = vmatpush1.bf16.msra.mxu0 %v22519_v33  ;;  %2468 = vmatpush1.bf16.msra.mxu1 %v22522_v34  ;;  %v22585_v33 = vld [vmem:[%s26237_s22 + $0xc0] ss:$16 sps:$4 sm:$0xff]   ;;  %v22588_v34 = vld [vmem:[%s26237_s22 + $0xc8] ss:$16 sps:$4 sm:$0xff]  }
 0x263   : > { %2387 = vmatprep.subr.bf16.mxu0 %v22527_v35  ;;  %2469 = vmatprep.subr.bf16.mxu1 %v22530_v36  ;;  %v22593_v35 = vld [vmem:[%s26237_s22 + $0xe4] ss:$16 sps:$4 sm:$0xff]   ;;  %v22596_v36 = vld [vmem:[%s26237_s22 + $0xec] ss:$16 sps:$4 sm:$0xff]  }
 0x266   : > { %2388 = vmatpush1.bf16.msra.mxu0 %v22525_v37  ;;  %2470 = vmatpush1.bf16.msra.mxu1 %v22528_v38  ;;  %v22591_v37 = vld [vmem:[%s26237_s22 + $0xe0] ss:$16 sps:$4 sm:$0xff]   ;;  %v22594_v38 = vld [vmem:[%s26237_s22 + $0xe8] ss:$16 sps:$4 sm:$0xff]  }
 0x267   : > { %2389 = vmatprep.subr.bf16.mxu0 %v22533_v39  ;;  %2471 = vmatprep.subr.bf16.mxu1 %v22536_v40  ;;  %v22599_v39 = vld [vmem:[%s26237_s22 + $0x104] ss:$16 sps:$4 sm:$0xff]   ;;  %v22602_v40 = vld [vmem:[%s26237_s22 + $0x10c] ss:$16 sps:$4 sm:$0xff]  }
 0x26a   : > { %2390 = vmatpush1.bf16.msra.mxu0 %v22531_v41  ;;  %2472 = vmatpush1.bf16.msra.mxu1 %v22534_v42  ;;  %v22597_v41 = vld [vmem:[%s26237_s22 + $0x100] ss:$16 sps:$4 sm:$0xff]   ;;  %v22600_v42 = vld [vmem:[%s26237_s22 + $0x108] ss:$16 sps:$4 sm:$0xff]  }
 0x26b   : > { %2391 = vmatprep.subr.bf16.mxu0 %v22539_v43  ;;  %2473 = vmatprep.subr.bf16.mxu1 %v22542_v45  ;;  %v22605_v43 = vld [vmem:[%s26237_s22 + $0x124] ss:$16 sps:$4 sm:$0xff]   ;;  %v22608_v45 = vld [vmem:[%s26237_s22 + $0x12c] ss:$16 sps:$4 sm:$0xff]  }
 0x26e   : > { %2392 = vmatpush1.bf16.msra.mxu0 %v22537_v46  ;;  %2474 = vmatpush1.bf16.msra.mxu1 %v22540_v47  ;;  %v22603_v46 = vld [vmem:[%s26237_s22 + $0x120] ss:$16 sps:$4 sm:$0xff]   ;;  %v22606_v47 = vld [vmem:[%s26237_s22 + $0x128] ss:$16 sps:$4 sm:$0xff]  }
 0x26f   : > { %2393 = vmatprep.subr.bf16.mxu0 %v22545_v48  ;;  %2475 = vmatprep.subr.bf16.mxu1 %v22548_v49  ;;  %v22611_v48 = vld [vmem:[%s26237_s22 + $0x144] ss:$16 sps:$4 sm:$0xff]   ;;  %v22614_v49 = vld [vmem:[%s26237_s22 + $0x14c] ss:$16 sps:$4 sm:$0xff]  }
 0x272   : > { %2394 = vmatpush1.bf16.msra.mxu0 %v22543_v50  ;;  %2476 = vmatpush1.bf16.msra.mxu1 %v22546_v51  ;;  %v22609_v50 = vld [vmem:[%s26237_s22 + $0x140] ss:$16 sps:$4 sm:$0xff]   ;;  %v22612_v51 = vld [vmem:[%s26237_s22 + $0x148] ss:$16 sps:$4 sm:$0xff]  }
 0x273   : > { %3285 = vmatprep.subr.bf16.mxu0 %v22551_v52  ;;  %3367 = vmatprep.subr.bf16.mxu1 %v22554_v53  ;;  %v22617_v52 = vld [vmem:[%s26237_s22 + $0x164] ss:$16 sps:$4 sm:$0xff]   ;;  %v22620_v53 = vld [vmem:[%s26237_s22 + $0x16c] ss:$16 sps:$4 sm:$0xff]  }
 0x2aa   : > { %v1516_v59 = vpop.f32.mrb[4].mxu1 }
 0x2ab   : > { %v21851_v61 = vadd.f32 %v1516_v59, %v681_v56  ;;  %v1518_v62 = vpop.f32.mrb[5].mxu1  ;;  %v22615_v56 = vld [vmem:[%s26237_s22 + $0x160] ss:$16 sps:$4 sm:$0xff]   ;;  %v22623_v59 = vld [vmem:[%s26237_s22 + $0x184] ss:$16 sps:$4 sm:$0xff]  }
 0x2ac   : > { %v21852_v63 = vadd.f32 %v1518_v62, %v685_v58  ;;  %v1520_v0 = vpop.f32.mrb[6].mxu1  ;;  %v22618_v58 = vld [vmem:[%s26237_s22 + $0x168] ss:$16 sps:$4 sm:$0xff]   ;;  %v22621_v62 = vld [vmem:[%s26237_s22 + $0x180] ss:$16 sps:$4 sm:$0xff]  }
 0x2ad   : > { %v1525_v1 = vmax.f32 %v21851_v61, 0.0  ;;  %v1521_v2 = vpop.f32.mrb[7].mxu1  ;;  %v22626_v61 = vld [vmem:[%s26237_s22 + $0x18c] ss:$16 sps:$4 sm:$0xff]   ;;  %v22629_v0 = vld [vmem:[%s26237_s22 + $0x1a4] ss:$16 sps:$4 sm:$0xff]  }
 0x2ae   : > { %v1526_v3 = vmax.f32 %v21852_v63, 0.0  ;;  %v22624_v63 = vld [vmem:[%s26237_s22 + $0x188] ss:$16 sps:$4 sm:$0xff]   ;;  %v22627_v2 = vld [vmem:[%s26237_s22 + $0x1a0] ss:$16 sps:$4 sm:$0xff]  }
 0x2af   : > { %v1529_v24 = vpack.c.bf16 %v1525_v1, %v1525_v1  ;;  %v22632_v1 = vld [vmem:[%s26237_s22 + $0x1ac] ss:$16 sps:$4 sm:$0xff]  }
 0x2b0   : > { %v1530_v7 = vpack.c.bf16 %v1526_v3, %v1526_v3  ;;  %v22630_v3 = vld [vmem:[%s26237_s22 + $0x1a8] ss:$16 sps:$4 sm:$0xff]  }
 0x2b2   : > { %2395 = vmatprep.mubr.bf16.mxu0 %v1530_v7  ;;  %2477 = vmatprep.mubr.bf16.mxu1 %v1530_v7  ;;  %v22641_v7 = vld [vmem:[%s26237_s22 + $0x1e4] ss:$16 sps:$4 sm:$0xff]  }
 0x2b3   : > { %2396 = vmatmul.mubr.bf16.vlgmr.msra.gmra.mrb[4].mxu0 %v1529_v24  ;;  %2478 = vmatmul.mubr.bf16.vlgmr.msra.gmra.mrb[8].mxu1 %v1529_v24  ;;  %v22644_v24 = vld [vmem:[%s26237_s22 + $0x1ec] ss:$16 sps:$4 sm:$0xff]  }
 0x2b4   : > { %3286 = vmatpush1.bf16.msra.mxu0 %v22549_v44  ;;  %3368 = vmatpush1.bf16.msra.mxu1 %v22552_v4  ;;  %v22635_v44 = vld [vmem:[%s26237_s22 + $0x1c4] ss:$16 sps:$4 sm:$0xff]   ;;  %v22638_v4 = vld [vmem:[%s26237_s22 + $0x1cc] ss:$16 sps:$4 sm:$0xff]  }
 0x2b5   : > { %3287 = vmatprep.subr.bf16.mxu0 %v22557_v5  ;;  %3369 = vmatprep.subr.bf16.mxu1 %v22560_v6  ;;  %v22633_v5 = vld [vmem:[%s26237_s22 + $0x1c0] ss:$16 sps:$4 sm:$0xff]   ;;  %v22636_v6 = vld [vmem:[%s26237_s22 + $0x1c8] ss:$16 sps:$4 sm:$0xff]  }
 0x2b8   : > { %3288 = vmatpush1.bf16.msra.mxu0 %v22555_v8  ;;  %3370 = vmatpush1.bf16.msra.mxu1 %v22558_v10  ;;  %v22639_v8 = vld [vmem:[%s26237_s22 + $0x1e0] ss:$16 sps:$4 sm:$0xff]   ;;  %v22642_v10 = vld [vmem:[%s26237_s22 + $0x1e8] ss:$16 sps:$4 sm:$0xff]  }
 0x2b9   : > { %3289 = vmatprep.subr.bf16.mxu0 %v22563_v11  ;;  %3371 = vmatprep.subr.bf16.mxu1 %v22566_v12  ;;  %v22647_v11 = vld [vmem:[%s26237_s22 + $0x204] ss:$16 sps:$4 sm:$0xff]   ;;  %v22650_v12 = vld [vmem:[%s26237_s22 + $0x20c] ss:$16 sps:$4 sm:$0xff]  }
 0x2bc   : > { %3290 = vmatpush1.bf16.msra.mxu0 %v22561_v14  ;;  %3372 = vmatpush1.bf16.msra.mxu1 %v22564_v15  ;;  %v26638_v14 = vld [vmem:[%s26635_s14] sm:$0xf] }
 0x2bd   : > { %3291 = vmatprep.subr.bf16.mxu0 %v22569_v16  ;;  %3373 = vmatprep.subr.bf16.mxu1 %v22572_v17  ;;  %v1665_v15 = vrot.slane %v26638_v14, %v26487_v25  ;;  %v1669_v16 = vrot.slane %v26638_v14, %v26490_v26  ;;  %v1677_v17 = vrot.slane %v26638_v14, %v26564_v55 }
 0x2c0   : > { %3292 = vmatpush1.bf16.msra.mxu0 %v22567_v18  ;;  %3374 = vmatpush1.bf16.msra.mxu1 %v22570_v19 }
 0x2c1   : > { %3293 = vmatprep.subr.bf16.mxu0 %v22575_v20  ;;  %3375 = vmatprep.subr.bf16.mxu1 %v22578_v21 }
 0x2c4   : > { %3294 = vmatpush1.bf16.msra.mxu0 %v22573_v22  ;;  %3376 = vmatpush1.bf16.msra.mxu1 %v22576_v23 }
 0x2c5   : > { %3295 = vmatprep.subr.bf16.mxu0 %v22581_v27  ;;  %3377 = vmatprep.subr.bf16.mxu1 %v22584_v28 }
 0x2c8   : > { %3296 = vmatpush1.bf16.msra.mxu0 %v22579_v29  ;;  %3378 = vmatpush1.bf16.msra.mxu1 %v22582_v30 }
 0x2c9   : > { %3297 = vmatprep.subr.bf16.mxu0 %v22587_v31  ;;  %3379 = vmatprep.subr.bf16.mxu1 %v22590_v32 }
 0x2cc   : > { %3298 = vmatpush1.bf16.msra.mxu0 %v22585_v33  ;;  %3380 = vmatpush1.bf16.msra.mxu1 %v22588_v34  ;;  %v22645_v34 = vld [vmem:[%s26237_s22 + $0x200] ss:$16 sps:$4 sm:$0xff]  }
 0x2cd   : > { %3299 = vmatprep.subr.bf16.mxu0 %v22593_v35  ;;  %3381 = vmatprep.subr.bf16.mxu1 %v22596_v36  ;;  %v22648_v35 = vld [vmem:[%s26237_s22 + $0x208] ss:$16 sps:$4 sm:$0xff]  }
 0x2d0   : > { %3300 = vmatpush1.bf16.msra.mxu0 %v22591_v37  ;;  %3382 = vmatpush1.bf16.msra.mxu1 %v22594_v38  ;;  %v22653_v38 = vld [vmem:[%s26237_s22 + $0x224] ss:$16 sps:$4 sm:$0xff]  }
 0x2d1   : > { %3301 = vmatprep.subr.bf16.mxu0 %v22599_v39  ;;  %3383 = vmatprep.subr.bf16.mxu1 %v22602_v40  ;;  %v22656_v39 = vld [vmem:[%s26237_s22 + $0x22c] ss:$16 sps:$4 sm:$0xff]  }
 0x2d4   : > { %3302 = vmatpush1.bf16.msra.mxu0 %v22597_v41  ;;  %3384 = vmatpush1.bf16.msra.mxu1 %v22600_v42  ;;  %v22651_v41 = vld [vmem:[%s26237_s22 + $0x220] ss:$16 sps:$4 sm:$0xff]   ;;  %v22654_v42 = vld [vmem:[%s26237_s22 + $0x228] ss:$16 sps:$4 sm:$0xff]  }
 0x2d5   : > { %3303 = vmatprep.subr.bf16.mxu0 %v22605_v43  ;;  %3385 = vmatprep.subr.bf16.mxu1 %v22608_v45  ;;  %v22659_v45 = vld [vmem:[%s26237_s22 + $0x244] ss:$16 sps:$4 sm:$0xff]  }
 0x2d8   : > { %3304 = vmatpush1.bf16.msra.mxu0 %v22603_v46  ;;  %3386 = vmatpush1.bf16.msra.mxu1 %v22606_v47  ;;  %v22662_v46 = vld [vmem:[%s26237_s22 + $0x24c] ss:$16 sps:$4 sm:$0xff]   ;;  %v22657_v47 = vld [vmem:[%s26237_s22 + $0x240] ss:$16 sps:$4 sm:$0xff]  }
 0x2d9   : > { %3305 = vmatprep.subr.bf16.mxu0 %v22611_v48  ;;  %3387 = vmatprep.subr.bf16.mxu1 %v22614_v49  ;;  %v22660_v48 = vld [vmem:[%s26237_s22 + $0x248] ss:$16 sps:$4 sm:$0xff]   ;;  %v22665_v49 = vld [vmem:[%s26237_s22 + $0x264] ss:$16 sps:$4 sm:$0xff]  }
 0x2dc   : > { %3306 = vmatpush1.bf16.msra.mxu0 %v22609_v50  ;;  %3388 = vmatpush1.bf16.msra.mxu1 %v22612_v51  ;;  %v22668_v50 = vld [vmem:[%s26237_s22 + $0x26c] ss:$16 sps:$4 sm:$0xff]   ;;  %v22663_v51 = vld [vmem:[%s26237_s22 + $0x260] ss:$16 sps:$4 sm:$0xff]  }
 0x2dd   : > { %3307 = vmatprep.subr.bf16.mxu0 %v22617_v52  ;;  %3389 = vmatprep.subr.bf16.mxu1 %v22620_v53  ;;  %v22666_v52 = vld [vmem:[%s26237_s22 + $0x268] ss:$16 sps:$4 sm:$0xff]   ;;  %v22671_v53 = vld [vmem:[%s26237_s22 + $0x284] ss:$16 sps:$4 sm:$0xff]  }
 0x2e0   : > { %3308 = vmatpush1.bf16.msra.mxu0 %v22615_v56  ;;  %3390 = vmatpush1.bf16.msra.mxu1 %v22618_v58  ;;  %v22674_v56 = vld [vmem:[%s26237_s22 + $0x28c] ss:$16 sps:$4 sm:$0xff]   ;;  %v22669_v58 = vld [vmem:[%s26237_s22 + $0x280] ss:$16 sps:$4 sm:$0xff]  }
 0x2e1   : > { %3309 = vmatprep.subr.bf16.mxu0 %v22623_v59  ;;  %3391 = vmatprep.subr.bf16.mxu1 %v22626_v61  ;;  %v22672_v59 = vld [vmem:[%s26237_s22 + $0x288] ss:$16 sps:$4 sm:$0xff]   ;;  %v22677_v61 = vld [vmem:[%s26237_s22 + $0x2a4] ss:$16 sps:$4 sm:$0xff]  }
 0x2e4   : > { %3310 = vmatpush1.bf16.msra.mxu0 %v22621_v62  ;;  %3392 = vmatpush1.bf16.msra.mxu1 %v22624_v63  ;;  %v22680_v62 = vld [vmem:[%s26237_s22 + $0x2ac] ss:$16 sps:$4 sm:$0xff]   ;;  %v22675_v63 = vld [vmem:[%s26237_s22 + $0x2a0] ss:$16 sps:$4 sm:$0xff]  }
 0x2e5   : > { %3311 = vmatprep.subr.bf16.mxu0 %v22629_v0  ;;  %3393 = vmatprep.subr.bf16.mxu1 %v22632_v1  ;;  %v22678_v0 = vld [vmem:[%s26237_s22 + $0x2a8] ss:$16 sps:$4 sm:$0xff]   ;;  %v22683_v1 = vld [vmem:[%s26237_s22 + $0x2c4] ss:$16 sps:$4 sm:$0xff]  }
 0x2e8   : > { %3312 = vmatpush1.bf16.msra.mxu0 %v22627_v2  ;;  %3394 = vmatpush1.bf16.msra.mxu1 %v22630_v3  ;;  %v22686_v2 = vld [vmem:[%s26237_s22 + $0x2cc] ss:$16 sps:$4 sm:$0xff]   ;;  %v22681_v3 = vld [vmem:[%s26237_s22 + $0x2c0] ss:$16 sps:$4 sm:$0xff]  }
 0x2e9   : > { %3313 = vmatprep.subr.bf16.mxu0 %v22635_v44  ;;  %3395 = vmatprep.subr.bf16.mxu1 %v22638_v4  ;;  %v22684_v44 = vld [vmem:[%s26237_s22 + $0x2c8] ss:$16 sps:$4 sm:$0xff]   ;;  %v22689_v4 = vld [vmem:[%s26237_s22 + $0x2e4] ss:$16 sps:$4 sm:$0xff]  }
 0x2ec   : > { %3314 = vmatpush1.bf16.msra.mxu0 %v22633_v5  ;;  %3396 = vmatpush1.bf16.msra.mxu1 %v22636_v6  ;;  %v22692_v5 = vld [vmem:[%s26237_s22 + $0x2ec] ss:$16 sps:$4 sm:$0xff]   ;;  %v22687_v6 = vld [vmem:[%s26237_s22 + $0x2e0] ss:$16 sps:$4 sm:$0xff]  }
 0x2ed   : > { %3315 = vmatprep.subr.bf16.mxu0 %v22641_v7  ;;  %3397 = vmatprep.subr.bf16.mxu1 %v22644_v24  ;;  %v22690_v7 = vld [vmem:[%s26237_s22 + $0x2e8] ss:$16 sps:$4 sm:$0xff]   ;;  %v22695_v24 = vld [vmem:[%s26237_s22 + $0x304] ss:$16 sps:$4 sm:$0xff]  }
 0x2f0   : > { %3316 = vmatpush1.bf16.msra.mxu0 %v22639_v8  ;;  %3398 = vmatpush1.bf16.msra.mxu1 %v22642_v10  ;;  %v22698_v8 = vld [vmem:[%s26237_s22 + $0x30c] ss:$16 sps:$4 sm:$0xff]   ;;  %v22693_v10 = vld [vmem:[%s26237_s22 + $0x300] ss:$16 sps:$4 sm:$0xff]  }
 0x2f1   : > { %3326 = vmatprep.subr.bf16.mxu0 %v22647_v11  ;;  %3408 = vmatprep.subr.bf16.mxu1 %v22650_v12  ;;  %v22696_v11 = vld [vmem:[%s26237_s22 + $0x308] ss:$16 sps:$4 sm:$0xff]   ;;  %v22701_v12 = vld [vmem:[%s26237_s22 + $0x324] ss:$16 sps:$4 sm:$0xff]  }
 0x386   : > { %v2397_v18 = vpop.f32.mrb[4].mxu0  ;;  %v26646_v19 = vpop.f32.mrb[8].mxu1 }
 0x387   : > { %v21853_v20 = vadd.f32 %v2397_v18, %v1665_v15  ;;  %v2399_v21 = vpop.f32.mrb[5].mxu0  ;;  %v2481_v22 = vpop.f32.mrb[9].mxu1  ;;  %v22704_v15 = vld [vmem:[%s26237_s22 + $0x32c] ss:$16 sps:$4 sm:$0xff]   ;;  %v22707_v18 = vld [vmem:[%s26237_s22 + $0x344] ss:$16 sps:$4 sm:$0xff]  }
 0x388   : > { %v21854_v23 = vadd.f32 %v2399_v21, %v1669_v16  ;;  %v21856_v27 = vadd.f32 %v2481_v22, %v1677_v17  ;;  %v2401_v28 = vpop.f32.mrb[6].mxu0  ;;  %v2483_v29 = vpop.f32.mrb[10].mxu1  ;;  %v22699_v16 = vld [vmem:[%s26237_s22 + $0x320] ss:$16 sps:$4 sm:$0xff]   ;;  %v22702_v17 = vld [vmem:[%s26237_s22 + $0x328] ss:$16 sps:$4 sm:$0xff]  }
 0x389   : > { %v2486_v30 = vmax.f32 %v21853_v20, 0.0  ;;  %v2402_v31 = vpop.f32.mrb[7].mxu0  ;;  %v2484_v32 = vpop.f32.mrb[11].mxu1  ;;  %v22710_v20 = vld [vmem:[%s26237_s22 + $0x34c] ss:$16 sps:$4 sm:$0xff]  }
 0x38a   : > { %v2487_v33 = vmax.f32 %v21854_v23, 0.0  ;;  %v2489_v36 = vmax.f32 %v21856_v27, 0.0  ;;  %v22705_v21 = vld [vmem:[%s26237_s22 + $0x340] ss:$16 sps:$4 sm:$0xff]   ;;  %v22708_v22 = vld [vmem:[%s26237_s22 + $0x348] ss:$16 sps:$4 sm:$0xff]  }
 0x38b   : > { %v2490_v40 = vpack.c.bf16 %v2486_v30, %v2486_v30  ;;  %v22713_v23 = vld [vmem:[%s26237_s22 + $0x364] ss:$16 sps:$4 sm:$0xff]   ;;  %v22716_v27 = vld [vmem:[%s26237_s22 + $0x36c] ss:$16 sps:$4 sm:$0xff]   ;;  %v22711_v28 = vld [vmem:[%s26237_s22 + $0x360] ss:$16 sps:$4 sm:$0xff]  }
 0x38c   : > { %v2491_v37 = vpack.c.bf16 %v2487_v33, %v2487_v33  ;;  %v2493_v43 = vpack.c.bf16 %v2489_v36, %v2489_v36  ;;  %v22714_v29 = vld [vmem:[%s26237_s22 + $0x368] ss:$16 sps:$4 sm:$0xff]   ;;  %v22719_v30 = vld [vmem:[%s26237_s22 + $0x384] ss:$16 sps:$4 sm:$0xff]   ;;  %v22722_v31 = vld [vmem:[%s26237_s22 + $0x38c] ss:$16 sps:$4 sm:$0xff]  }
 0x38d   : > { %v22717_v32 = vld [vmem:[%s26237_s22 + $0x380] ss:$16 sps:$4 sm:$0xff]   ;;  %v22720_v33 = vld [vmem:[%s26237_s22 + $0x388] ss:$16 sps:$4 sm:$0xff]  }
 0x38e   : > { %3317 = vmatprep.mubr.bf16.mxu0 %v2491_v37  ;;  %3399 = vmatprep.mubr.bf16.mxu1 %v2491_v37  ;;  %v22723_v36 = vld [vmem:[%s26237_s22 + $0x3a0] ss:$16 sps:$4 sm:$0xff]   ;;  %v22726_v37 = vld [vmem:[%s26237_s22 + $0x3a8] ss:$16 sps:$4 sm:$0xff]  }
 0x38f   : > { %3318 = vmatmul.mubr.bf16.vlgmr.msra.gmra.mrb[8].mxu0 %v2490_v40  ;;  %3400 = vmatmul.mubr.bf16.vlgmr.msra.gmra.mrb[12].mxu1 %v2490_v40  ;;  %v1673_v40 = vrot.slane %v26638_v14, %v26561_v54  ;;  %v22746_v14 = vld [vmem:[%s26247_s1 + $0x4] ss:$8 sps:$4 sm:$0xff]  }
 0x390   : > { %3327 = vmatpush1.bf16.msra.mxu0 %v22645_v34  ;;  %3409 = vmatpush1.bf16.msra.mxu1 %v22648_v35  ;;  %v22725_v34 = vld [vmem:[%s26237_s22 + $0x3a4] ss:$16 sps:$4 sm:$0xff]   ;;  %v22728_v35 = vld [vmem:[%s26237_s22 + $0x3ac] ss:$16 sps:$4 sm:$0xff]  }
 0x391   : > { %3358 = vmatprep.mubr.bf16.mxu0 %v2493_v43  ;;  %3440 = vmatprep.mubr.bf16.mxu1 %v2493_v43  ;;  %v22737_v43 = vld [vmem:[%s26237_s22 + $0x3e4] ss:$16 sps:$4 sm:$0xff]  }
 0x392   : > { %3328 = vmatprep.subr.bf16.mxu0 %v22653_v38  ;;  %3410 = vmatprep.subr.bf16.mxu1 %v22656_v39  ;;  %v22731_v38 = vld [vmem:[%s26237_s22 + $0x3c4] ss:$16 sps:$4 sm:$0xff]   ;;  %v22734_v39 = vld [vmem:[%s26237_s22 + $0x3cc] ss:$16 sps:$4 sm:$0xff]  }
 0x394   : > { %3329 = vmatpush1.bf16.msra.mxu0 %v22651_v41  ;;  %3411 = vmatpush1.bf16.msra.mxu1 %v22654_v42  ;;  %v22729_v41 = vld [vmem:[%s26237_s22 + $0x3c0] ss:$16 sps:$4 sm:$0xff]   ;;  %v22732_v42 = vld [vmem:[%s26237_s22 + $0x3c8] ss:$16 sps:$4 sm:$0xff]  }
 0x395   : > { %3330 = vmatprep.subr.bf16.mxu0 %v22659_v45  ;;  %3412 = vmatprep.subr.bf16.mxu1 %v22662_v46  ;;  %v22740_v45 = vld [vmem:[%s26237_s22 + $0x3ec] ss:$16 sps:$4 sm:$0xff]   ;;  %v21855_v46 = vadd.f32 %v26646_v19, %v1673_v40  ;;  %v22807_v40 = vld [vmem:[%s26217_s18 + $0x560] ss:$16 sps:$4 sm:$0xff]  }
 0x398   : > { %3331 = vmatpush1.bf16.msra.mxu0 %v22657_v47  ;;  %3413 = vmatpush1.bf16.msra.mxu1 %v22660_v48  ;;  %v22735_v47 = vld [vmem:[%s26237_s22 + $0x3e0] ss:$16 sps:$4 sm:$0xff]   ;;  %v22738_v48 = vld [vmem:[%s26237_s22 + $0x3e8] ss:$16 sps:$4 sm:$0xff]  }
 0x399   : > { %3332 = vmatprep.subr.bf16.mxu0 %v22665_v49  ;;  %3414 = vmatprep.subr.bf16.mxu1 %v22668_v50  ;;  %v22743_v49 = vld [vmem:[%s26217_s18 + $0x404] ss:$16 sps:$4 sm:$0xff]   ;;  %v2488_v50 = vmax.f32 %v21855_v46, 0.0  ;;  %v22816_v46 = vld [vmem:[%s26247_s1 + $0xc0] ss:$8 sps:$4 sm:$0xff]  }
 0x39b   : > { %v2492_v19 = vpack.c.bf16 %v2488_v50, %v2488_v50  ;;  %v22827_v50 = vld [vmem:[%s26217_s18 + $0x5c4] ss:$16 sps:$4 sm:$0xff]  }
 0x39c   : > { %3333 = vmatpush1.bf16.msra.mxu0 %v22663_v51  ;;  %3415 = vmatpush1.bf16.msra.mxu1 %v22666_v52  ;;  %v22741_v51 = vld [vmem:[%s26217_s18 + $0x400] ss:$16 sps:$4 sm:$0xff]  }
 0x39d   : > { %3334 = vmatprep.subr.bf16.mxu0 %v22671_v53  ;;  %3416 = vmatprep.subr.bf16.mxu1 %v22674_v56  ;;  %v22744_v52 = vld [vmem:[%s26247_s1] ss:$8 sps:$4 sm:$0xff]   ;;  %v22749_v53 = vld [vmem:[%s26217_s18 + $0x424] ss:$16 sps:$4 sm:$0xff]  }
 0x39e   : > { %v22752_v56 = vld [vmem:[%s26247_s1 + $0x14] ss:$8 sps:$4 sm:$0xff]  }
 0x3a0   : > { %3335 = vmatpush1.bf16.msra.mxu0 %v22669_v58  ;;  %3417 = vmatpush1.bf16.msra.mxu1 %v22672_v59  ;;  %v22747_v58 = vld [vmem:[%s26217_s18 + $0x420] ss:$16 sps:$4 sm:$0xff]  }
 0x3a1   : > { %3336 = vmatprep.subr.bf16.mxu0 %v22677_v61  ;;  %3418 = vmatprep.subr.bf16.mxu1 %v22680_v62  ;;  %v22750_v59 = vld [vmem:[%s26247_s1 + $0x10] ss:$8 sps:$4 sm:$0xff]   ;;  %v22755_v61 = vld [vmem:[%s26217_s18 + $0x444] ss:$16 sps:$4 sm:$0xff]  }
 0x3a2   : > { %v22758_v62 = vld [vmem:[%s26247_s1 + $0x24] ss:$8 sps:$4 sm:$0xff]  }
 0x3a4   : > { %3337 = vmatpush1.bf16.msra.mxu0 %v22675_v63  ;;  %3419 = vmatpush1.bf16.msra.mxu1 %v22678_v0  ;;  %v22753_v63 = vld [vmem:[%s26217_s18 + $0x440] ss:$16 sps:$4 sm:$0xff]  }
 0x3a5   : > { %3338 = vmatprep.subr.bf16.mxu0 %v22683_v1  ;;  %3420 = vmatprep.subr.bf16.mxu1 %v22686_v2  ;;  %v22756_v0 = vld [vmem:[%s26247_s1 + $0x20] ss:$8 sps:$4 sm:$0xff]   ;;  %v22761_v1 = vld [vmem:[%s26217_s18 + $0x464] ss:$16 sps:$4 sm:$0xff]  }
 0x3a6   : > { %v22764_v2 = vld [vmem:[%s26247_s1 + $0x34] ss:$8 sps:$4 sm:$0xff]  }
 0x3a8   : > { %3339 = vmatpush1.bf16.msra.mxu0 %v22681_v3  ;;  %3421 = vmatpush1.bf16.msra.mxu1 %v22684_v44  ;;  %v22759_v3 = vld [vmem:[%s26217_s18 + $0x460] ss:$16 sps:$4 sm:$0xff]  }
 0x3a9   : > { %3340 = vmatprep.subr.bf16.mxu0 %v22689_v4  ;;  %3422 = vmatprep.subr.bf16.mxu1 %v22692_v5  ;;  %v22762_v44 = vld [vmem:[%s26247_s1 + $0x30] ss:$8 sps:$4 sm:$0xff]   ;;  %v22767_v4 = vld [vmem:[%s26217_s18 + $0x484] ss:$16 sps:$4 sm:$0xff]  }
 0x3aa   : > { %v22770_v5 = vld [vmem:[%s26247_s1 + $0x44] ss:$8 sps:$4 sm:$0xff]  }
 0x3ac   : > { %3341 = vmatpush1.bf16.msra.mxu0 %v22687_v6  ;;  %3423 = vmatpush1.bf16.msra.mxu1 %v22690_v7  ;;  %v22765_v6 = vld [vmem:[%s26217_s18 + $0x480] ss:$16 sps:$4 sm:$0xff]  }
 0x3ad   : > { %3342 = vmatprep.subr.bf16.mxu0 %v22695_v24  ;;  %3424 = vmatprep.subr.bf16.mxu1 %v22698_v8  ;;  %v22768_v7 = vld [vmem:[%s26247_s1 + $0x40] ss:$8 sps:$4 sm:$0xff]   ;;  %v22773_v24 = vld [vmem:[%s26217_s18 + $0x4a4] ss:$16 sps:$4 sm:$0xff]  }
 0x3ae   : > { %v22776_v8 = vld [vmem:[%s26247_s1 + $0x54] ss:$8 sps:$4 sm:$0xff]  }
 0x3b0   : > { %3343 = vmatpush1.bf16.msra.mxu0 %v22693_v10  ;;  %3425 = vmatpush1.bf16.msra.mxu1 %v22696_v11  ;;  %v22771_v10 = vld [vmem:[%s26217_s18 + $0x4a0] ss:$16 sps:$4 sm:$0xff]  }
 0x3b1   : > { %3344 = vmatprep.subr.bf16.mxu0 %v22701_v12  ;;  %3426 = vmatprep.subr.bf16.mxu1 %v22704_v15  ;;  %v22774_v11 = vld [vmem:[%s26247_s1 + $0x50] ss:$8 sps:$4 sm:$0xff]   ;;  %v22779_v12 = vld [vmem:[%s26217_s18 + $0x4c4] ss:$16 sps:$4 sm:$0xff]  }
 0x3b2   : > { %v22782_v15 = vld [vmem:[%s26247_s1 + $0x64] ss:$8 sps:$4 sm:$0xff]  }
 0x3b4   : > { %3345 = vmatpush1.bf16.msra.mxu0 %v22699_v16  ;;  %3427 = vmatpush1.bf16.msra.mxu1 %v22702_v17  ;;  %v22777_v16 = vld [vmem:[%s26217_s18 + $0x4c0] ss:$16 sps:$4 sm:$0xff]  }
 0x3b5   : > { %3346 = vmatprep.subr.bf16.mxu0 %v22707_v18  ;;  %3428 = vmatprep.subr.bf16.mxu1 %v22710_v20  ;;  %v22780_v17 = vld [vmem:[%s26247_s1 + $0x60] ss:$8 sps:$4 sm:$0xff]   ;;  %v22785_v18 = vld [vmem:[%s26217_s18 + $0x4e4] ss:$16 sps:$4 sm:$0xff]  }
 0x3b6   : > { %v22788_v20 = vld [vmem:[%s26247_s1 + $0x74] ss:$8 sps:$4 sm:$0xff]  }
 0x3b8   : > { %3347 = vmatpush1.bf16.msra.mxu0 %v22705_v21  ;;  %3429 = vmatpush1.bf16.msra.mxu1 %v22708_v22  ;;  %v22783_v21 = vld [vmem:[%s26217_s18 + $0x4e0] ss:$16 sps:$4 sm:$0xff]  }
 0x3b9   : > { %3348 = vmatprep.subr.bf16.mxu0 %v22713_v23  ;;  %3430 = vmatprep.subr.bf16.mxu1 %v22716_v27  ;;  %v22786_v22 = vld [vmem:[%s26247_s1 + $0x70] ss:$8 sps:$4 sm:$0xff]   ;;  %v22791_v23 = vld [vmem:[%s26217_s18 + $0x504] ss:$16 sps:$4 sm:$0xff]  }
 0x3ba   : > { %v22794_v27 = vld [vmem:[%s26247_s1 + $0x84] ss:$8 sps:$4 sm:$0xff]  }
 0x3bc   : > { %3349 = vmatpush1.bf16.msra.mxu0 %v22711_v28  ;;  %3431 = vmatpush1.bf16.msra.mxu1 %v22714_v29  ;;  %v22789_v28 = vld [vmem:[%s26217_s18 + $0x500] ss:$16 sps:$4 sm:$0xff]  }
 0x3bd   : > { %3350 = vmatprep.subr.bf16.mxu0 %v22719_v30  ;;  %3432 = vmatprep.subr.bf16.mxu1 %v22722_v31  ;;  %v22792_v29 = vld [vmem:[%s26247_s1 + $0x80] ss:$8 sps:$4 sm:$0xff]   ;;  %v22797_v30 = vld [vmem:[%s26217_s18 + $0x524] ss:$16 sps:$4 sm:$0xff]  }
 0x3be   : > { %v22800_v31 = vld [vmem:[%s26247_s1 + $0x94] ss:$8 sps:$4 sm:$0xff]  }
 0x3c0   : > { %3351 = vmatpush1.bf16.msra.mxu0 %v22717_v32  ;;  %3433 = vmatpush1.bf16.msra.mxu1 %v22720_v33  ;;  %v22795_v32 = vld [vmem:[%s26217_s18 + $0x520] ss:$16 sps:$4 sm:$0xff]  }
 0x3c1   : > { %3352 = vmatprep.subr.bf16.mxu0 %v22725_v34  ;;  %3434 = vmatprep.subr.bf16.mxu1 %v22728_v35  ;;  %v22798_v33 = vld [vmem:[%s26247_s1 + $0x90] ss:$8 sps:$4 sm:$0xff]   ;;  %v22803_v34 = vld [vmem:[%s26217_s18 + $0x544] ss:$16 sps:$4 sm:$0xff]  }
 0x3c2   : > { %v22806_v35 = vld [vmem:[%s26247_s1 + $0xa4] ss:$8 sps:$4 sm:$0xff]  }
 0x3c4   : > { %3353 = vmatpush1.bf16.msra.mxu0 %v22723_v36  ;;  %3435 = vmatpush1.bf16.msra.mxu1 %v22726_v37  ;;  %v22801_v36 = vld [vmem:[%s26217_s18 + $0x540] ss:$16 sps:$4 sm:$0xff]  }
 0x3c5   : > { %3354 = vmatprep.subr.bf16.mxu0 %v22731_v38  ;;  %3436 = vmatprep.subr.bf16.mxu1 %v22734_v39  ;;  %v22804_v37 = vld [vmem:[%s26247_s1 + $0xa0] ss:$8 sps:$4 sm:$0xff]   ;;  %v22809_v38 = vld [vmem:[%s26217_s18 + $0x564] ss:$16 sps:$4 sm:$0xff]  }
 0x3c6   : > { %v22812_v39 = vld [vmem:[%s26247_s1 + $0xb4] ss:$8 sps:$4 sm:$0xff]  }
 0x3c8   : > { %3355 = vmatpush1.bf16.msra.mxu0 %v22729_v41  ;;  %3437 = vmatpush1.bf16.msra.mxu1 %v22732_v42  ;;  %v22810_v41 = vld [vmem:[%s26247_s1 + $0xb0] ss:$8 sps:$4 sm:$0xff]   ;;  %v22815_v42 = vld [vmem:[%s26217_s18 + $0x584] ss:$16 sps:$4 sm:$0xff]  }
 0x3c9   : > { %3356 = vmatprep.subr.bf16.mxu0 %v22737_v43  ;;  %3438 = vmatprep.subr.bf16.mxu1 %v22740_v45  ;;  %v22818_v43 = vld [vmem:[%s26247_s1 + $0xc4] ss:$8 sps:$4 sm:$0xff]   ;;  %v22813_v45 = vld [vmem:[%s26217_s18 + $0x580] ss:$16 sps:$4 sm:$0xff]  }
 0x3cc   : > { %3357 = vmatpush1.bf16.msra.mxu0 %v22735_v47  ;;  %3439 = vmatpush1.bf16.msra.mxu1 %v22738_v48  ;;  %v22821_v47 = vld [vmem:[%s26217_s18 + $0x5a4] ss:$16 sps:$4 sm:$0xff]  }
 0x3cd   : > { %4743 = vmatprep.subr.bf16.mxu1 %v22743_v49  ;;  %3855 = vmatprep.subr.bf16.mxu0 %v22746_v14  ;;  %v22824_v48 = vld [vmem:[%s26247_s1 + $0xd4] ss:$8 sps:$4 sm:$0xff]   ;;  %v22819_v49 = vld [vmem:[%s26217_s18 + $0x5a0] ss:$16 sps:$4 sm:$0xff]  }
 0x3ce   : > { %v22822_v14 = vld [vmem:[%s26247_s1 + $0xd0] ss:$8 sps:$4 sm:$0xff]  }
 0x3cf   : > { %3359 = vmatmul.mubr.bf16.vlgmr.msra.gmra.mrb[8].mxu0 %v2492_v19  ;;  %3441 = vmatmul.mubr.bf16.vlgmr.msra.gmra.mrb[12].mxu1 %v2492_v19  ;;  %v22831_v19 = vld [vmem:[%s26217_s18 + $0x5e0] ss:$16 sps:$4 sm:$0xff]  }
 0x3d0   : > { %4744 = vmatpush1.bf16.msra.mxu1 %v22741_v51  ;;  %3856 = vmatpush1.bf16.msra.mxu0 %v22744_v52  ;;  %v22825_v51 = vld [vmem:[%s26217_s18 + $0x5c0] ss:$16 sps:$4 sm:$0xff]   ;;  %v22830_v52 = vld [vmem:[%s26247_s1 + $0xe4] ss:$8 sps:$4 sm:$0xff]  }
 0x3d1   : > { %4745 = vmatprep.subr.bf16.mxu1 %v22749_v53  ;;  %3857 = vmatprep.subr.bf16.mxu0 %v22752_v56  ;;  %v22828_v53 = vld [vmem:[%s26247_s1 + $0xe0] ss:$8 sps:$4 sm:$0xff]   ;;  %v22833_v56 = vld [vmem:[%s26217_s18 + $0x5e4] ss:$16 sps:$4 sm:$0xff]  }
 0x3d2   : > { %4775 = vmatprep.mubr.bf16.mxu1 %v26312_v57 }
 0x3d4   : > { %4746 = vmatpush1.bf16.msra.mxu1 %v22747_v58  ;;  %3858 = vmatpush1.bf16.msra.mxu0 %v22750_v59  ;;  %v22836_v58 = vld [vmem:[%s26247_s1 + $0xf4] ss:$8 sps:$4 sm:$0xff]   ;;  %v22834_v59 = vld [vmem:[%s26247_s1 + $0xf0] ss:$8 sps:$4 sm:$0xff]  }
 0x3d5   : > { %4747 = vmatprep.subr.bf16.mxu1 %v22755_v61  ;;  %3859 = vmatprep.subr.bf16.mxu0 %v22758_v62  ;;  %v22839_v61 = vld [vmem:[%s26217_s18 + $0x604] ss:$16 sps:$4 sm:$0xff]   ;;  %v22837_v62 = vld [vmem:[%s26217_s18 + $0x600] ss:$16 sps:$4 sm:$0xff]  }
 0x3d8   : > { %4748 = vmatpush1.bf16.msra.mxu1 %v22753_v63  ;;  %3860 = vmatpush1.bf16.msra.mxu0 %v22756_v0  ;;  %v22842_v63 = vld [vmem:[%s26247_s1 + $0x104] ss:$8 sps:$4 sm:$0xff]   ;;  %v22843_v0 = vld [vmem:[%s26217_s18 + $0x620] ss:$16 sps:$4 sm:$0xff]  }
 0x3d9   : > { %4749 = vmatprep.subr.bf16.mxu1 %v22761_v1  ;;  %3861 = vmatprep.subr.bf16.mxu0 %v22764_v2  ;;  %v22845_v1 = vld [vmem:[%s26217_s18 + $0x624] ss:$16 sps:$4 sm:$0xff]   ;;  %v22849_v2 = vld [vmem:[%s26217_s18 + $0x640] ss:$16 sps:$4 sm:$0xff]  }
 0x3dc   : > { %4750 = vmatpush1.bf16.msra.mxu1 %v22759_v3  ;;  %3862 = vmatpush1.bf16.msra.mxu0 %v22762_v44  ;;  %v22851_v3 = vld [vmem:[%s26217_s18 + $0x644] ss:$16 sps:$4 sm:$0xff]   ;;  %v22855_v44 = vld [vmem:[%s26217_s18 + $0x660] ss:$16 sps:$4 sm:$0xff]  }
 0x3dd   : > { %4751 = vmatprep.subr.bf16.mxu1 %v22767_v4  ;;  %3863 = vmatprep.subr.bf16.mxu0 %v22770_v5  ;;  %v22857_v4 = vld [vmem:[%s26217_s18 + $0x664] ss:$16 sps:$4 sm:$0xff]   ;;  %v22861_v5 = vld [vmem:[%s26217_s18 + $0x680] ss:$16 sps:$4 sm:$0xff]  }
 0x3e0   : > { %4752 = vmatpush1.bf16.msra.mxu1 %v22765_v6  ;;  %3864 = vmatpush1.bf16.msra.mxu0 %v22768_v7  ;;  %v22863_v6 = vld [vmem:[%s26217_s18 + $0x684] ss:$16 sps:$4 sm:$0xff]   ;;  %v22867_v7 = vld [vmem:[%s26217_s18 + $0x6a0] ss:$16 sps:$4 sm:$0xff]  }
 0x3e1   : > { %4753 = vmatprep.subr.bf16.mxu1 %v22773_v24  ;;  %3865 = vmatprep.subr.bf16.mxu0 %v22776_v8  ;;  %v22869_v24 = vld [vmem:[%s26217_s18 + $0x6a4] ss:$16 sps:$4 sm:$0xff]   ;;  %v22873_v8 = vld [vmem:[%s26217_s18 + $0x6c0] ss:$16 sps:$4 sm:$0xff]  }
 0x3e4   : > { %4754 = vmatpush1.bf16.msra.mxu1 %v22771_v10  ;;  %3866 = vmatpush1.bf16.msra.mxu0 %v22774_v11  ;;  %v22875_v10 = vld [vmem:[%s26217_s18 + $0x6c4] ss:$16 sps:$4 sm:$0xff]   ;;  %v22879_v11 = vld [vmem:[%s26217_s18 + $0x6e0] ss:$16 sps:$4 sm:$0xff]  }
 0x3e5   : > { %4755 = vmatprep.subr.bf16.mxu1 %v22779_v12  ;;  %3867 = vmatprep.subr.bf16.mxu0 %v22782_v15  ;;  %v22881_v12 = vld [vmem:[%s26217_s18 + $0x6e4] ss:$16 sps:$4 sm:$0xff]   ;;  %v22885_v15 = vld [vmem:[%s26217_s18 + $0x700] ss:$16 sps:$4 sm:$0xff]  }
 0x3e8   : > { %4756 = vmatpush1.bf16.msra.mxu1 %v22777_v16  ;;  %3868 = vmatpush1.bf16.msra.mxu0 %v22780_v17  ;;  %v22887_v16 = vld [vmem:[%s26217_s18 + $0x704] ss:$16 sps:$4 sm:$0xff]   ;;  %v22891_v17 = vld [vmem:[%s26217_s18 + $0x720] ss:$16 sps:$4 sm:$0xff]  }
 0x3e9   : > { %4757 = vmatprep.subr.bf16.mxu1 %v22785_v18  ;;  %3869 = vmatprep.subr.bf16.mxu0 %v22788_v20  ;;  %v22893_v18 = vld [vmem:[%s26217_s18 + $0x724] ss:$16 sps:$4 sm:$0xff]   ;;  %v22897_v20 = vld [vmem:[%s26217_s18 + $0x740] ss:$16 sps:$4 sm:$0xff]  }
 0x3ec   : > { %4758 = vmatpush1.bf16.msra.mxu1 %v22783_v21  ;;  %3870 = vmatpush1.bf16.msra.mxu0 %v22786_v22  ;;  %v22899_v21 = vld [vmem:[%s26217_s18 + $0x744] ss:$16 sps:$4 sm:$0xff]   ;;  %v22903_v22 = vld [vmem:[%s26217_s18 + $0x760] ss:$16 sps:$4 sm:$0xff]  }
 0x3ed   : > { %4759 = vmatprep.subr.bf16.mxu1 %v22791_v23  ;;  %3871 = vmatprep.subr.bf16.mxu0 %v22794_v27  ;;  %v22905_v23 = vld [vmem:[%s26217_s18 + $0x764] ss:$16 sps:$4 sm:$0xff]   ;;  %v22909_v27 = vld [vmem:[%s26217_s18 + $0x780] ss:$16 sps:$4 sm:$0xff]  }
 0x3f0   : > { %4760 = vmatpush1.bf16.msra.mxu1 %v22789_v28  ;;  %3872 = vmatpush1.bf16.msra.mxu0 %v22792_v29  ;;  %v22911_v28 = vld [vmem:[%s26217_s18 + $0x784] ss:$16 sps:$4 sm:$0xff]   ;;  %v22915_v29 = vld [vmem:[%s26217_s18 + $0x7a0] ss:$16 sps:$4 sm:$0xff]  }
 0x3f1   : > { %4761 = vmatprep.subr.bf16.mxu1 %v22797_v30  ;;  %3873 = vmatprep.subr.bf16.mxu0 %v22800_v31  ;;  %v22917_v30 = vld [vmem:[%s26217_s18 + $0x7a4] ss:$16 sps:$4 sm:$0xff]   ;;  %v22921_v31 = vld [vmem:[%s26217_s18 + $0x7c0] ss:$16 sps:$4 sm:$0xff]  }
 0x3f4   : > { %4762 = vmatpush1.bf16.msra.mxu1 %v22795_v32  ;;  %3874 = vmatpush1.bf16.msra.mxu0 %v22798_v33  ;;  %v22923_v32 = vld [vmem:[%s26217_s18 + $0x7c4] ss:$16 sps:$4 sm:$0xff]   ;;  %v22927_v33 = vld [vmem:[%s26217_s18 + $0x7e0] ss:$16 sps:$4 sm:$0xff]  }
 0x3f5   : > { %4763 = vmatprep.subr.bf16.mxu1 %v22803_v34  ;;  %3875 = vmatprep.subr.bf16.mxu0 %v22806_v35  ;;  %v22929_v34 = vld [vmem:[%s26217_s18 + $0x7e4] ss:$16 sps:$4 sm:$0xff]   ;;  %v26818_v35 = vld [vmem:[%s26815_s28] sm:$0xf] }
 0x3f8   : > { %4764 = vmatpush1.bf16.msra.mxu1 %v22801_v36  ;;  %3876 = vmatpush1.bf16.msra.mxu0 %v22804_v37  ;;  %v2628_v36 = vrot.slane %v26818_v35, %v26487_v25  ;;  %v2632_v37 = vrot.slane %v26818_v35, %v26490_v26 }
 0x3f9   : > { %4765 = vmatprep.subr.bf16.mxu1 %v22809_v38  ;;  %3877 = vmatprep.subr.bf16.mxu0 %v22812_v39  ;;  %v2640_v38 = vrot.slane %v26818_v35, %v26564_v55 }
 0x3fc   : > { %4766 = vmatpush1.bf16.msra.mxu1 %v22807_v40  ;;  %3878 = vmatpush1.bf16.msra.mxu0 %v22810_v41 }
 0x3fd   : > { %4767 = vmatprep.subr.bf16.mxu1 %v22815_v42  ;;  %3879 = vmatprep.subr.bf16.mxu0 %v22818_v43 }
 0x400   : > { %4768 = vmatpush1.bf16.msra.mxu1 %v22813_v45  ;;  %3880 = vmatpush1.bf16.msra.mxu0 %v22816_v46 }
 0x401   : > { %4769 = vmatprep.subr.bf16.mxu1 %v22821_v47  ;;  %3881 = vmatprep.subr.bf16.mxu0 %v22824_v48 }
 0x404   : > { %4770 = vmatpush1.bf16.msra.mxu1 %v22819_v49  ;;  %3882 = vmatpush1.bf16.msra.mxu0 %v22822_v14 }
 0x405   : > { %4771 = vmatprep.subr.bf16.mxu1 %v22827_v50  ;;  %3883 = vmatprep.subr.bf16.mxu0 %v22830_v52 }
 0x408   : > { %4772 = vmatpush1.bf16.msra.mxu1 %v22825_v51  ;;  %3884 = vmatpush1.bf16.msra.mxu0 %v22828_v53 }
 0x409   : > { %4773 = vmatprep.subr.bf16.mxu1 %v22833_v56  ;;  %3885 = vmatprep.subr.bf16.mxu0 %v22836_v58  ;;  %v22840_v56 = vld [vmem:[%s26247_s1 + $0x100] ss:$8 sps:$4 sm:$0xff]  }
 0x40c   : > { %4774 = vmatpush1.bf16.msra.mxu1 %v22831_v19  ;;  %3886 = vmatpush1.bf16.msra.mxu0 %v22834_v59  ;;  %v22848_v19 = vld [vmem:[%s26247_s1 + $0x114] ss:$8 sps:$4 sm:$0xff]  }
 0x40d   : > { %4784 = vmatprep.subr.bf16.mxu1 %v22839_v61  ;;  %3896 = vmatprep.subr.bf16.mxu0 %v22842_v63  ;;  %v22846_v61 = vld [vmem:[%s26247_s1 + $0x110] ss:$8 sps:$4 sm:$0xff]   ;;  %v22852_v63 = vld [vmem:[%s26247_s1 + $0x120] ss:$8 sps:$4 sm:$0xff]  }
 0x40f   : > { %4776 = vmatmul.mubr.bf16.vlgmr.msra.gmra.mrb[16].mxu1 %v26334_v9 }
 0x410   : > { %4785 = vmatpush1.bf16.msra.mxu1 %v22837_v62  ;;  %4816 = vmatprep.mubr.bf16.mxu1 %v26319_v60  ;;  %v22854_v62 = vld [vmem:[%s26247_s1 + $0x124] ss:$8 sps:$4 sm:$0xff]  }
 0x411   : > { %4786 = vmatprep.subr.bf16.mxu1 %v22845_v1  ;;  %v22858_v1 = vld [vmem:[%s26247_s1 + $0x130] ss:$8 sps:$4 sm:$0xff]  }
 0x414   : > { %4787 = vmatpush1.bf16.msra.mxu1 %v22843_v0  ;;  %v22860_v0 = vld [vmem:[%s26247_s1 + $0x134] ss:$8 sps:$4 sm:$0xff]  }
 0x415   : > { %4788 = vmatprep.subr.bf16.mxu1 %v22851_v3  ;;  %v22864_v3 = vld [vmem:[%s26247_s1 + $0x140] ss:$8 sps:$4 sm:$0xff]  }
 0x418   : > { %4789 = vmatpush1.bf16.msra.mxu1 %v22849_v2  ;;  %v22866_v2 = vld [vmem:[%s26247_s1 + $0x144] ss:$8 sps:$4 sm:$0xff]  }
 0x419   : > { %4790 = vmatprep.subr.bf16.mxu1 %v22857_v4  ;;  %v22870_v4 = vld [vmem:[%s26247_s1 + $0x150] ss:$8 sps:$4 sm:$0xff]  }
 0x41c   : > { %4791 = vmatpush1.bf16.msra.mxu1 %v22855_v44  ;;  %v22872_v44 = vld [vmem:[%s26247_s1 + $0x154] ss:$8 sps:$4 sm:$0xff]  }
 0x41d   : > { %4792 = vmatprep.subr.bf16.mxu1 %v22863_v6  ;;  %v22876_v6 = vld [vmem:[%s26247_s1 + $0x160] ss:$8 sps:$4 sm:$0xff]  }
 0x420   : > { %4793 = vmatpush1.bf16.msra.mxu1 %v22861_v5  ;;  %v22878_v5 = vld [vmem:[%s26247_s1 + $0x164] ss:$8 sps:$4 sm:$0xff]  }
 0x421   : > { %4794 = vmatprep.subr.bf16.mxu1 %v22869_v24  ;;  %v22882_v24 = vld [vmem:[%s26247_s1 + $0x170] ss:$8 sps:$4 sm:$0xff]  }
 0x424   : > { %4795 = vmatpush1.bf16.msra.mxu1 %v22867_v7  ;;  %v22884_v7 = vld [vmem:[%s26247_s1 + $0x174] ss:$8 sps:$4 sm:$0xff]  }
 0x425   : > { %4796 = vmatprep.subr.bf16.mxu1 %v22875_v10  ;;  %v22888_v10 = vld [vmem:[%s26247_s1 + $0x180] ss:$8 sps:$4 sm:$0xff]  }
 0x428   : > { %4797 = vmatpush1.bf16.msra.mxu1 %v22873_v8  ;;  %v22890_v8 = vld [vmem:[%s26247_s1 + $0x184] ss:$8 sps:$4 sm:$0xff]  }
 0x429   : > { %4798 = vmatprep.subr.bf16.mxu1 %v22881_v12  ;;  %v22894_v12 = vld [vmem:[%s26247_s1 + $0x190] ss:$8 sps:$4 sm:$0xff]  }
 0x42c   : > { %4799 = vmatpush1.bf16.msra.mxu1 %v22879_v11  ;;  %v22896_v11 = vld [vmem:[%s26247_s1 + $0x194] ss:$8 sps:$4 sm:$0xff]  }
 0x42d   : > { %4800 = vmatprep.subr.bf16.mxu1 %v22887_v16  ;;  %v22900_v16 = vld [vmem:[%s26247_s1 + $0x1a0] ss:$8 sps:$4 sm:$0xff]  }
 0x430   : > { %4801 = vmatpush1.bf16.msra.mxu1 %v22885_v15  ;;  %v22902_v15 = vld [vmem:[%s26247_s1 + $0x1a4] ss:$8 sps:$4 sm:$0xff]  }
 0x431   : > { %4802 = vmatprep.subr.bf16.mxu1 %v22893_v18  ;;  %v22906_v18 = vld [vmem:[%s26247_s1 + $0x1b0] ss:$8 sps:$4 sm:$0xff]  }
 0x434   : > { %4803 = vmatpush1.bf16.msra.mxu1 %v22891_v17  ;;  %v22908_v17 = vld [vmem:[%s26247_s1 + $0x1b4] ss:$8 sps:$4 sm:$0xff]  }
 0x435   : > { %4804 = vmatprep.subr.bf16.mxu1 %v22899_v21  ;;  %v22912_v21 = vld [vmem:[%s26247_s1 + $0x1c0] ss:$8 sps:$4 sm:$0xff]  }
 0x438   : > { %4805 = vmatpush1.bf16.msra.mxu1 %v22897_v20  ;;  %v22914_v20 = vld [vmem:[%s26247_s1 + $0x1c4] ss:$8 sps:$4 sm:$0xff]  }
 0x439   : > { %4806 = vmatprep.subr.bf16.mxu1 %v22905_v23  ;;  %v22918_v23 = vld [vmem:[%s26247_s1 + $0x1d0] ss:$8 sps:$4 sm:$0xff]  }
 0x43c   : > { %4807 = vmatpush1.bf16.msra.mxu1 %v22903_v22  ;;  %v22920_v22 = vld [vmem:[%s26247_s1 + $0x1d4] ss:$8 sps:$4 sm:$0xff]  }
 0x43d   : > { %4808 = vmatprep.subr.bf16.mxu1 %v22911_v28  ;;  %v22926_v28 = vld [vmem:[%s26247_s1 + $0x1e4] ss:$8 sps:$4 sm:$0xff]  }
 0x440   : > { %4809 = vmatpush1.bf16.msra.mxu1 %v22909_v27  ;;  %v2636_v27 = vrot.slane %v26818_v35, %v26561_v54  ;;  %v22933_v35 = vld [vmem:[%s26217_s18 + $0x408] ss:$16 sps:$4 sm:$0xff]  }
 0x441   : > { %4810 = vmatprep.subr.bf16.mxu1 %v22917_v30 }
 0x444   : > { %4811 = vmatpush1.bf16.msra.mxu1 %v22915_v29  ;;  %v22924_v29 = vld [vmem:[%s26247_s1 + $0x1e0] ss:$8 sps:$4 sm:$0xff]  }
 0x445   : > { %4812 = vmatprep.subr.bf16.mxu1 %v22923_v32  ;;  %v22930_v32 = vld [vmem:[%s26247_s1 + $0x1f0] ss:$8 sps:$4 sm:$0xff]  }
 0x448   : > { %4813 = vmatpush1.bf16.msra.mxu1 %v22921_v31  ;;  %v22932_v31 = vld [vmem:[%s26247_s1 + $0x1f4] ss:$8 sps:$4 sm:$0xff]  }
 0x449   : > { %4814 = vmatprep.subr.bf16.mxu1 %v22929_v34  ;;  %v22935_v34 = vld [vmem:[%s26217_s18 + $0x40c] ss:$16 sps:$4 sm:$0xff]  }
 0x44c   : > { %4815 = vmatpush1.bf16.msra.mxu1 %v22927_v33 }
 0x44f   : > { %4817 = vmatmul.mubr.bf16.vlgmr.msra.gmra.mrb[16].mxu1 %v26341_v13 }
 0x4a2   : > { %v3360_v39 = vpop.f32.mrb[8].mxu0  ;;  %v26826_v40 = vpop.f32.mrb[12].mxu1 }
 0x4a3   : > { %v21857_v41 = vadd.f32 %v3360_v39, %v2628_v36  ;;  %v3362_v42 = vpop.f32.mrb[9].mxu0  ;;  %v3444_v43 = vpop.f32.mrb[13].mxu1  ;;  %v21859_v30 = vadd.f32 %v26826_v40, %v2636_v27  ;;  %v23031_v39 = vld [vmem:[%s26227_s15 + $0x404] ss:$16 sps:$4 sm:$0xff]   ;;  %v22936_v40 = vld [vmem:[%s26217_s18 + $0x428] ss:$16 sps:$4 sm:$0xff]  }
 0x4a4   : > { %v21858_v45 = vadd.f32 %v3362_v42, %v2632_v37  ;;  %v21860_v46 = vadd.f32 %v3444_v43, %v2640_v38  ;;  %v3364_v47 = vpop.f32.mrb[10].mxu0  ;;  %v3446_v48 = vpop.f32.mrb[14].mxu1  ;;  %v22938_v37 = vld [vmem:[%s26217_s18 + $0x42c] ss:$16 sps:$4 sm:$0xff]   ;;  %v23029_v38 = vld [vmem:[%s26227_s15 + $0x400] ss:$16 sps:$4 sm:$0xff]   ;;  %5707 = vmatprep.subr.bf16.mxu1 %v23031_v39 }
 0x4a5   : > { %v3449_v49 = vmax.f32 %v21857_v41, 0.0  ;;  %v3365_v14 = vpop.f32.mrb[11].mxu0  ;;  %v3447_v50 = vpop.f32.mrb[15].mxu1  ;;  %v3451_v33 = vmax.f32 %v21859_v30, 0.0  ;;  %v23037_v41 = vld [vmem:[%s26227_s15 + $0x424] ss:$16 sps:$4 sm:$0xff]   ;;  %5708 = vmatpush1.bf16.msra.mxu1 %v23029_v38 }
 0x4a6   : > { %v3450_v51 = vmax.f32 %v21858_v45, 0.0  ;;  %v3452_v52 = vmax.f32 %v21860_v46, 0.0  ;;  %v22941_v42 = vld [vmem:[%s26217_s18 + $0x44c] ss:$16 sps:$4 sm:$0xff]   ;;  %v23035_v43 = vld [vmem:[%s26227_s15 + $0x420] ss:$16 sps:$4 sm:$0xff]   ;;  %5709 = vmatprep.subr.bf16.mxu1 %v23037_v41 }
 0x4a7   : > { %v3453_v58 = vpack.c.bf16 %v3449_v49, %v3449_v49  ;;  %v3455_v36 = vpack.c.bf16 %v3451_v33, %v3451_v33  ;;  %v22939_v45 = vld [vmem:[%s26217_s18 + $0x448] ss:$16 sps:$4 sm:$0xff]   ;;  %v23043_v46 = vld [vmem:[%s26227_s15 + $0x444] ss:$16 sps:$4 sm:$0xff]   ;;  %v22944_v47 = vld [vmem:[%s26217_s18 + $0x46c] ss:$16 sps:$4 sm:$0xff]  }
 0x4a8   : > { %v3454_v53 = vpack.c.bf16 %v3450_v51, %v3450_v51  ;;  %v3456_v59 = vpack.c.bf16 %v3452_v52, %v3452_v52  ;;  %v23041_v48 = vld [vmem:[%s26227_s15 + $0x440] ss:$16 sps:$4 sm:$0xff]   ;;  %v22942_v49 = vld [vmem:[%s26217_s18 + $0x468] ss:$16 sps:$4 sm:$0xff]   ;;  %v23049_v14 = vld [vmem:[%s26227_s15 + $0x464] ss:$16 sps:$4 sm:$0xff]  }
 0x4a9   : > { %5710 = vmatpush1.bf16.msra.mxu1 %v23035_v43  ;;  %v22947_v50 = vld [vmem:[%s26217_s18 + $0x48c] ss:$16 sps:$4 sm:$0xff]   ;;  %v23047_v51 = vld [vmem:[%s26227_s15 + $0x460] ss:$16 sps:$4 sm:$0xff]   ;;  %v22945_v52 = vld [vmem:[%s26217_s18 + $0x488] ss:$16 sps:$4 sm:$0xff]  }
 0x4aa   : > { %3887 = vmatprep.mubr.bf16.mxu0 %v3454_v53  ;;  %5711 = vmatprep.subr.bf16.mxu1 %v23043_v46  ;;  %v23055_v53 = vld [vmem:[%s26227_s15 + $0x484] ss:$16 sps:$4 sm:$0xff]   ;;  %v23095_v27 = vld [vmem:[%s26227_s15 + $0x560] ss:$16 sps:$4 sm:$0xff]   ;;  %v22974_v30 = vld [vmem:[%s26217_s18 + $0x5ac] ss:$16 sps:$4 sm:$0xff]  }
 0x4ab   : > { %3888 = vmatmul.mubr.bf16.vlgmr.msra.gmra.mrb[12].mxu0 %v3453_v58  ;;  %v22948_v58 = vld [vmem:[%s26217_s18 + $0x4a8] ss:$16 sps:$4 sm:$0xff]   ;;  %v23109_v33 = vld [vmem:[%s26227_s15 + $0x5a4] ss:$16 sps:$4 sm:$0xff]   ;;  %v22983_v39 = vld [vmem:[%s26217_s18 + $0x60c] ss:$16 sps:$4 sm:$0xff]  }
 0x4ac   : > { %3897 = vmatpush1.bf16.msra.mxu0 %v22840_v56  ;;  %3928 = vmatprep.mubr.bf16.mxu0 %v3456_v59  ;;  %v22950_v56 = vld [vmem:[%s26217_s18 + $0x4ac] ss:$16 sps:$4 sm:$0xff]   ;;  %v23061_v59 = vld [vmem:[%s26227_s15 + $0x4a4] ss:$16 sps:$4 sm:$0xff]   ;;  %v22978_v38 = vld [vmem:[%s26217_s18 + $0x5e8] ss:$16 sps:$4 sm:$0xff]  }
 0x4ad   : > { %3898 = vmatprep.subr.bf16.mxu0 %v22848_v19  ;;  %5712 = vmatpush1.bf16.msra.mxu1 %v23041_v48  ;;  %v23053_v19 = vld [vmem:[%s26227_s15 + $0x480] ss:$16 sps:$4 sm:$0xff]   ;;  %v22986_v41 = vld [vmem:[%s26217_s18 + $0x62c] ss:$16 sps:$4 sm:$0xff]  }
 0x4ae   : > { %5713 = vmatprep.subr.bf16.mxu1 %v23049_v14  ;;  %v22989_v43 = vld [vmem:[%s26217_s18 + $0x64c] ss:$16 sps:$4 sm:$0xff]   ;;  %v22993_v14 = vld [vmem:[%s26217_s18 + $0x688] ss:$16 sps:$4 sm:$0xff]  }
 0x4af   : > { %v22992_v46 = vld [vmem:[%s26217_s18 + $0x66c] ss:$16 sps:$4 sm:$0xff]  }
 0x4b0   : > { %3899 = vmatpush1.bf16.msra.mxu0 %v22846_v61  ;;  %v22953_v61 = vld [vmem:[%s26217_s18 + $0x4cc] ss:$16 sps:$4 sm:$0xff]  }
 0x4b1   : > { %3900 = vmatprep.subr.bf16.mxu0 %v22854_v62  ;;  %5714 = vmatpush1.bf16.msra.mxu1 %v23047_v51  ;;  %v23059_v62 = vld [vmem:[%s26227_s15 + $0x4a0] ss:$16 sps:$4 sm:$0xff]   ;;  %v22995_v48 = vld [vmem:[%s26217_s18 + $0x68c] ss:$16 sps:$4 sm:$0xff]  }
 0x4b2   : > { %5715 = vmatprep.subr.bf16.mxu1 %v23055_v53  ;;  %v23001_v53 = vld [vmem:[%s26217_s18 + $0x6cc] ss:$16 sps:$4 sm:$0xff]  }
 0x4b4   : > { %3901 = vmatpush1.bf16.msra.mxu0 %v22852_v63  ;;  %v22951_v63 = vld [vmem:[%s26217_s18 + $0x4c8] ss:$16 sps:$4 sm:$0xff]  }
 0x4b5   : > { %3902 = vmatprep.subr.bf16.mxu0 %v22860_v0  ;;  %5716 = vmatpush1.bf16.msra.mxu1 %v23053_v19  ;;  %v23067_v0 = vld [vmem:[%s26227_s15 + $0x4c4] ss:$16 sps:$4 sm:$0xff]  }
 0x4b6   : > { %5717 = vmatprep.subr.bf16.mxu1 %v23061_v59  ;;  %v23115_v19 = vld [vmem:[%s26227_s15 + $0x5c4] ss:$16 sps:$4 sm:$0xff]  }
 0x4b8   : > { %3903 = vmatpush1.bf16.msra.mxu0 %v22858_v1  ;;  %v22956_v1 = vld [vmem:[%s26217_s18 + $0x4ec] ss:$16 sps:$4 sm:$0xff]  }
 0x4b9   : > { %3904 = vmatprep.subr.bf16.mxu0 %v22866_v2  ;;  %5718 = vmatpush1.bf16.msra.mxu1 %v23059_v62  ;;  %v23065_v2 = vld [vmem:[%s26227_s15 + $0x4c0] ss:$16 sps:$4 sm:$0xff]  }
 0x4ba   : > { %5719 = vmatprep.subr.bf16.mxu1 %v23067_v0  ;;  %v23113_v62 = vld [vmem:[%s26227_s15 + $0x5c0] ss:$16 sps:$4 sm:$0xff]   ;;  %v22999_v0 = vld [vmem:[%s26217_s18 + $0x6c8] ss:$16 sps:$4 sm:$0xff]  }
 0x4bc   : > { %3905 = vmatpush1.bf16.msra.mxu0 %v22864_v3  ;;  %v22954_v3 = vld [vmem:[%s26217_s18 + $0x4e8] ss:$16 sps:$4 sm:$0xff]  }
 0x4bd   : > { %3906 = vmatprep.subr.bf16.mxu0 %v22872_v44  ;;  %v23073_v44 = vld [vmem:[%s26227_s15 + $0x4e4] ss:$16 sps:$4 sm:$0xff]   ;;  %5720 = vmatpush1.bf16.msra.mxu1 %v23065_v2 }
 0x4be   : > { %5721 = vmatprep.subr.bf16.mxu1 %v23073_v44  ;;  %v23004_v44 = vld [vmem:[%s26217_s18 + $0x6ec] ss:$16 sps:$4 sm:$0xff]  }
 0x4c0   : > { %3907 = vmatpush1.bf16.msra.mxu0 %v22870_v4  ;;  %v22959_v4 = vld [vmem:[%s26217_s18 + $0x50c] ss:$16 sps:$4 sm:$0xff]  }
 0x4c1   : > { %3908 = vmatprep.subr.bf16.mxu0 %v22878_v5  ;;  %v23071_v5 = vld [vmem:[%s26227_s15 + $0x4e0] ss:$16 sps:$4 sm:$0xff]  }
 0x4c2   : > { %5722 = vmatpush1.bf16.msra.mxu1 %v23071_v5 }
 0x4c4   : > { %3909 = vmatpush1.bf16.msra.mxu0 %v22876_v6  ;;  %v22957_v6 = vld [vmem:[%s26217_s18 + $0x508] ss:$16 sps:$4 sm:$0xff]  }
 0x4c5   : > { %3910 = vmatprep.subr.bf16.mxu0 %v22884_v7  ;;  %v23079_v7 = vld [vmem:[%s26227_s15 + $0x504] ss:$16 sps:$4 sm:$0xff]  }
 0x4c6   : > { %5723 = vmatprep.subr.bf16.mxu1 %v23079_v7 }
 0x4c8   : > { %3911 = vmatpush1.bf16.msra.mxu0 %v22882_v24  ;;  %v22962_v24 = vld [vmem:[%s26217_s18 + $0x52c] ss:$16 sps:$4 sm:$0xff]  }
 0x4c9   : > { %3912 = vmatprep.subr.bf16.mxu0 %v22890_v8  ;;  %v23077_v8 = vld [vmem:[%s26227_s15 + $0x500] ss:$16 sps:$4 sm:$0xff]  }
 0x4ca   : > { %5724 = vmatpush1.bf16.msra.mxu1 %v23077_v8 }
 0x4cc   : > { %3913 = vmatpush1.bf16.msra.mxu0 %v22888_v10  ;;  %v22960_v10 = vld [vmem:[%s26217_s18 + $0x528] ss:$16 sps:$4 sm:$0xff]  }
 0x4cd   : > { %3914 = vmatprep.subr.bf16.mxu0 %v22896_v11  ;;  %v23085_v11 = vld [vmem:[%s26227_s15 + $0x524] ss:$16 sps:$4 sm:$0xff]  }
 0x4ce   : > { %5725 = vmatprep.subr.bf16.mxu1 %v23085_v11  ;;  %v23127_v11 = vld [vmem:[%s26227_s15 + $0x604] ss:$16 sps:$4 sm:$0xff]  }
 0x4d0   : > { %3915 = vmatpush1.bf16.msra.mxu0 %v22894_v12  ;;  %v22965_v12 = vld [vmem:[%s26217_s18 + $0x54c] ss:$16 sps:$4 sm:$0xff]  }
 0x4d1   : > { %3916 = vmatprep.subr.bf16.mxu0 %v22902_v15  ;;  %v23083_v15 = vld [vmem:[%s26227_s15 + $0x520] ss:$16 sps:$4 sm:$0xff]  }
 0x4d2   : > { %5726 = vmatpush1.bf16.msra.mxu1 %v23083_v15  ;;  %v23133_v15 = vld [vmem:[%s26227_s15 + $0x624] ss:$16 sps:$4 sm:$0xff]  }
 0x4d4   : > { %3917 = vmatpush1.bf16.msra.mxu0 %v22900_v16  ;;  %v22963_v16 = vld [vmem:[%s26217_s18 + $0x548] ss:$16 sps:$4 sm:$0xff]  }
 0x4d5   : > { %3918 = vmatprep.subr.bf16.mxu0 %v22908_v17  ;;  %v23091_v17 = vld [vmem:[%s26227_s15 + $0x544] ss:$16 sps:$4 sm:$0xff]  }
 0x4d6   : > { %5727 = vmatprep.subr.bf16.mxu1 %v23091_v17  ;;  %v23131_v17 = vld [vmem:[%s26227_s15 + $0x620] ss:$16 sps:$4 sm:$0xff]  }
 0x4d8   : > { %3919 = vmatpush1.bf16.msra.mxu0 %v22906_v18  ;;  %v22968_v18 = vld [vmem:[%s26217_s18 + $0x56c] ss:$16 sps:$4 sm:$0xff]  }
 0x4d9   : > { %3920 = vmatprep.subr.bf16.mxu0 %v22914_v20  ;;  %v23089_v20 = vld [vmem:[%s26227_s15 + $0x540] ss:$16 sps:$4 sm:$0xff]  }
 0x4da   : > { %5728 = vmatpush1.bf16.msra.mxu1 %v23089_v20  ;;  %v23139_v20 = vld [vmem:[%s26227_s15 + $0x644] ss:$16 sps:$4 sm:$0xff]  }
 0x4dc   : > { %3921 = vmatpush1.bf16.msra.mxu0 %v22912_v21  ;;  %v22966_v21 = vld [vmem:[%s26217_s18 + $0x568] ss:$16 sps:$4 sm:$0xff]  }
 0x4dd   : > { %3922 = vmatprep.subr.bf16.mxu0 %v22920_v22  ;;  %v23097_v22 = vld [vmem:[%s26227_s15 + $0x564] ss:$16 sps:$4 sm:$0xff]  }
 0x4de   : > { %5729 = vmatprep.subr.bf16.mxu1 %v23097_v22  ;;  %v23137_v22 = vld [vmem:[%s26227_s15 + $0x640] ss:$16 sps:$4 sm:$0xff]  }
 0x4df   : > { %5730 = vmatpush1.bf16.msra.mxu1 %v23095_v27  ;;  %v23145_v27 = vld [vmem:[%s26227_s15 + $0x664] ss:$16 sps:$4 sm:$0xff]  }
 0x4e0   : > { %3923 = vmatpush1.bf16.msra.mxu0 %v22918_v23  ;;  %v22971_v23 = vld [vmem:[%s26217_s18 + $0x58c] ss:$16 sps:$4 sm:$0xff]  }
 0x4e1   : > { %3924 = vmatprep.subr.bf16.mxu0 %v22926_v28  ;;  %v22969_v28 = vld [vmem:[%s26217_s18 + $0x588] ss:$16 sps:$4 sm:$0xff]  }
 0x4e4   : > { %3925 = vmatpush1.bf16.msra.mxu0 %v22924_v29  ;;  %v23103_v29 = vld [vmem:[%s26227_s15 + $0x584] ss:$16 sps:$4 sm:$0xff]  }
 0x4e5   : > { %3926 = vmatprep.subr.bf16.mxu0 %v22932_v31  ;;  %v23101_v31 = vld [vmem:[%s26227_s15 + $0x580] ss:$16 sps:$4 sm:$0xff]   ;;  %5731 = vmatprep.subr.bf16.mxu1 %v23103_v29 }
 0x4e6   : > { %5732 = vmatpush1.bf16.msra.mxu1 %v23101_v31  ;;  %v23143_v29 = vld [vmem:[%s26227_s15 + $0x660] ss:$16 sps:$4 sm:$0xff]   ;;  %v23151_v31 = vld [vmem:[%s26227_s15 + $0x684] ss:$16 sps:$4 sm:$0xff]  }
 0x4e7   : > { %5733 = vmatprep.subr.bf16.mxu1 %v23109_v33  ;;  %v23149_v33 = vld [vmem:[%s26227_s15 + $0x680] ss:$16 sps:$4 sm:$0xff]  }
 0x4e8   : > { %3927 = vmatpush1.bf16.msra.mxu0 %v22930_v32  ;;  %v22972_v32 = vld [vmem:[%s26217_s18 + $0x5a8] ss:$16 sps:$4 sm:$0xff]  }
 0x4e9   : > { %4825 = vmatprep.subr.bf16.mxu0 %v22935_v34  ;;  %v22977_v34 = vld [vmem:[%s26217_s18 + $0x5cc] ss:$16 sps:$4 sm:$0xff]  }
 0x4eb   : > { %3929 = vmatmul.mubr.bf16.vlgmr.msra.gmra.mrb[12].mxu0 %v3455_v36  ;;  %v22975_v36 = vld [vmem:[%s26217_s18 + $0x5c8] ss:$16 sps:$4 sm:$0xff]  }
 0x4ec   : > { %4826 = vmatpush1.bf16.msra.mxu0 %v22933_v35  ;;  %4857 = vmatprep.mubr.bf16.mxu0 %v26312_v57  ;;  %v23107_v35 = vld [vmem:[%s26227_s15 + $0x5a0] ss:$16 sps:$4 sm:$0xff]  }
 0x4ed   : > { %4827 = vmatprep.subr.bf16.mxu0 %v22938_v37  ;;  %v22980_v37 = vld [vmem:[%s26217_s18 + $0x5ec] ss:$16 sps:$4 sm:$0xff]   ;;  %5734 = vmatpush1.bf16.msra.mxu1 %v23107_v35  ;;  %v23157_v35 = vld [vmem:[%s26227_s15 + $0x6a4] ss:$16 sps:$4 sm:$0xff]  }
 0x4ee   : > { %5735 = vmatprep.subr.bf16.mxu1 %v23115_v19  ;;  %v23179_v19 = vld [vmem:[%s26227_s15 + $0x720] ss:$16 sps:$4 sm:$0xff]  }
 0x4f0   : > { %4828 = vmatpush1.bf16.msra.mxu0 %v22936_v40  ;;  %v22981_v40 = vld [vmem:[%s26217_s18 + $0x608] ss:$16 sps:$4 sm:$0xff]  }
 0x4f1   : > { %4829 = vmatprep.subr.bf16.mxu0 %v22941_v42  ;;  %v22984_v42 = vld [vmem:[%s26217_s18 + $0x628] ss:$16 sps:$4 sm:$0xff]   ;;  %5736 = vmatpush1.bf16.msra.mxu1 %v23113_v62  ;;  %v23185_v62 = vld [vmem:[%s26227_s15 + $0x740] ss:$16 sps:$4 sm:$0xff]  }
 0x4f4   : > { %4830 = vmatpush1.bf16.msra.mxu0 %v22939_v45  ;;  %v22987_v45 = vld [vmem:[%s26217_s18 + $0x648] ss:$16 sps:$4 sm:$0xff]  }
 0x4f5   : > { %4831 = vmatprep.subr.bf16.mxu0 %v22944_v47  ;;  %v22990_v47 = vld [vmem:[%s26217_s18 + $0x668] ss:$16 sps:$4 sm:$0xff]  }
 0x4f8   : > { %4832 = vmatpush1.bf16.msra.mxu0 %v22942_v49  ;;  %v26935_v49 = vld [vmem:[%s26481_s10 + $0x4] sm:$0xf] }
 0x4f9   : > { %4833 = vmatprep.subr.bf16.mxu0 %v22947_v50  ;;  %v22998_v50 = vld [vmem:[%s26217_s18 + $0x6ac] ss:$16 sps:$4 sm:$0xff]   ;;  %v4086_v51 = vrot.slane %v26935_v49, %v26487_v25  ;;  %v4090_v59 = vrot.slane %v26935_v49, %v26490_v26 }
 0x4fc   : > { %4834 = vmatpush1.bf16.msra.mxu0 %v22945_v52  ;;  %v22996_v52 = vld [vmem:[%s26217_s18 + $0x6a8] ss:$16 sps:$4 sm:$0xff]  }
 0x4fd   : > { %4835 = vmatprep.subr.bf16.mxu0 %v22950_v56 }
 0x500   : > { %4836 = vmatpush1.bf16.msra.mxu0 %v22948_v58 }
 0x501   : > { %4837 = vmatprep.subr.bf16.mxu0 %v22953_v61 }
 0x504   : > { %4838 = vmatpush1.bf16.msra.mxu0 %v22951_v63 }
 0x505   : > { %4839 = vmatprep.subr.bf16.mxu0 %v22956_v1 }
 0x508   : > { %4840 = vmatpush1.bf16.msra.mxu0 %v22954_v3 }
 0x509   : > { %4841 = vmatprep.subr.bf16.mxu0 %v22959_v4  ;;  %v23121_v4 = vld [vmem:[%s26227_s15 + $0x5e4] ss:$16 sps:$4 sm:$0xff]  }
 0x50a   : > { %5737 = vmatprep.subr.bf16.mxu1 %v23121_v4  ;;  %v23058_v4 = vld [vmem:[%s26227_s15 + $0x48c] ss:$16 sps:$4 sm:$0xff]  }
 0x50c   : > { %4842 = vmatpush1.bf16.msra.mxu0 %v22957_v6  ;;  %v23119_v6 = vld [vmem:[%s26227_s15 + $0x5e0] ss:$16 sps:$4 sm:$0xff]  }
 0x50d   : > { %4843 = vmatprep.subr.bf16.mxu0 %v22962_v24  ;;  %v23002_v24 = vld [vmem:[%s26217_s18 + $0x6e8] ss:$16 sps:$4 sm:$0xff]   ;;  %5738 = vmatpush1.bf16.msra.mxu1 %v23119_v6  ;;  %v23205_v6 = vld [vmem:[%s26227_s15 + $0x7a4] ss:$16 sps:$4 sm:$0xff]  }
 0x50e   : > { %5748 = vmatprep.subr.bf16.mxu1 %v23127_v11  ;;  %v23062_v11 = vld [vmem:[%s26227_s15 + $0x4a8] ss:$16 sps:$4 sm:$0xff]  }
 0x510   : > { %4844 = vmatpush1.bf16.msra.mxu0 %v22960_v10  ;;  %v23125_v10 = vld [vmem:[%s26227_s15 + $0x600] ss:$16 sps:$4 sm:$0xff]  }
 0x511   : > { %4845 = vmatprep.subr.bf16.mxu0 %v22965_v12  ;;  %v23007_v12 = vld [vmem:[%s26217_s18 + $0x70c] ss:$16 sps:$4 sm:$0xff]  }
 0x514   : > { %4846 = vmatpush1.bf16.msra.mxu0 %v22963_v16  ;;  %v23005_v16 = vld [vmem:[%s26217_s18 + $0x708] ss:$16 sps:$4 sm:$0xff]  }
 0x515   : > { %4847 = vmatprep.subr.bf16.mxu0 %v22968_v18  ;;  %v23010_v18 = vld [vmem:[%s26217_s18 + $0x72c] ss:$16 sps:$4 sm:$0xff]  }
 0x518   : > { %4848 = vmatpush1.bf16.msra.mxu0 %v22966_v21  ;;  %v23008_v21 = vld [vmem:[%s26217_s18 + $0x728] ss:$16 sps:$4 sm:$0xff]  }
 0x519   : > { %4849 = vmatprep.subr.bf16.mxu0 %v22971_v23  ;;  %v23013_v23 = vld [vmem:[%s26217_s18 + $0x74c] ss:$16 sps:$4 sm:$0xff]  }
 0x51c   : > { %4850 = vmatpush1.bf16.msra.mxu0 %v22969_v28  ;;  %v23011_v28 = vld [vmem:[%s26217_s18 + $0x748] ss:$16 sps:$4 sm:$0xff]  }
 0x51d   : > { %4851 = vmatprep.subr.bf16.mxu0 %v22974_v30  ;;  %v23016_v30 = vld [vmem:[%s26217_s18 + $0x76c] ss:$16 sps:$4 sm:$0xff]  }
 0x520   : > { %4852 = vmatpush1.bf16.msra.mxu0 %v22972_v32  ;;  %v23014_v32 = vld [vmem:[%s26217_s18 + $0x768] ss:$16 sps:$4 sm:$0xff]  }
 0x521   : > { %4853 = vmatprep.subr.bf16.mxu0 %v22977_v34  ;;  %v23019_v34 = vld [vmem:[%s26217_s18 + $0x78c] ss:$16 sps:$4 sm:$0xff]  }
 0x522   : > { %v4818_v56 = vpop.f32.mrb[16].mxu1 }
 0x523   : > { %v21863_v58 = vadd.f32 %v4818_v56, %v4086_v51  ;;  %v4820_v61 = vpop.f32.mrb[17].mxu1  ;;  %v23034_v51 = vld [vmem:[%s26227_s15 + $0x40c] ss:$16 sps:$4 sm:$0xff]  }
 0x524   : > { %4854 = vmatpush1.bf16.msra.mxu0 %v22975_v36  ;;  %v4822_v63 = vpop.f32.mrb[18].mxu1  ;;  %v21864_v2 = vadd.f32 %v4820_v61, %v4090_v59  ;;  %v23017_v36 = vld [vmem:[%s26217_s18 + $0x788] ss:$16 sps:$4 sm:$0xff]   ;;  %v23040_v56 = vld [vmem:[%s26227_s15 + $0x42c] ss:$16 sps:$4 sm:$0xff]  }
 0x525   : > { %4855 = vmatprep.subr.bf16.mxu0 %v22980_v37  ;;  %v4907_v1 = vmax.f32 %v21863_v58, 0.0  ;;  %v4823_v3 = vpop.f32.mrb[19].mxu1  ;;  %v23155_v37 = vld [vmem:[%s26227_s15 + $0x6a0] ss:$16 sps:$4 sm:$0xff]   ;;  %v23187_v58 = vld [vmem:[%s26227_s15 + $0x744] ss:$16 sps:$4 sm:$0xff]  }
 0x526   : > { %v4908_v5 = vmax.f32 %v21864_v2, 0.0  ;;  %v23038_v59 = vld [vmem:[%s26227_s15 + $0x428] ss:$16 sps:$4 sm:$0xff]   ;;  %v23046_v61 = vld [vmem:[%s26227_s15 + $0x44c] ss:$16 sps:$4 sm:$0xff]  }
 0x527   : > { %v26951_v7 = vpack.c.bf16 %v4907_v1, %v4907_v1  ;;  %v23193_v63 = vld [vmem:[%s26227_s15 + $0x764] ss:$16 sps:$4 sm:$0xff]   ;;  %v23052_v1 = vld [vmem:[%s26227_s15 + $0x46c] ss:$16 sps:$4 sm:$0xff]   ;;  %v23191_v2 = vld [vmem:[%s26227_s15 + $0x760] ss:$16 sps:$4 sm:$0xff]  }
 0x528   : > { %4856 = vmatpush1.bf16.msra.mxu0 %v22978_v38  ;;  %v26954_v8 = vpack.c.bf16 %v4908_v5, %v4908_v5  ;;  %v23022_v38 = vld [vmem:[%s26217_s18 + $0x7ac] ss:$16 sps:$4 sm:$0xff]   ;;  %v23199_v3 = vld [vmem:[%s26227_s15 + $0x784] ss:$16 sps:$4 sm:$0xff]   ;;  %v23197_v5 = vld [vmem:[%s26227_s15 + $0x780] ss:$16 sps:$4 sm:$0xff]  }
 0x529   : > { %4866 = vmatprep.subr.bf16.mxu0 %v22983_v39  ;;  %v23163_v39 = vld [vmem:[%s26227_s15 + $0x6c4] ss:$16 sps:$4 sm:$0xff]  }
 0x52a   : > { %5739 = vmatprep.mubr.bf16.mxu1 %v26954_v8 }
 0x52b   : > { %4858 = vmatmul.mubr.bf16.vlgmr.msra.gmra.mrb[16].mxu0 %v26334_v9  ;;  %5740 = vmatmul.mubr.bf16.vlgmr.msra.gmra.mrb[20].mxu1 %v26951_v7 }
 0x52c   : > { %4867 = vmatpush1.bf16.msra.mxu0 %v22981_v40  ;;  %4898 = vmatprep.mubr.bf16.mxu0 %v26319_v60  ;;  %v23020_v40 = vld [vmem:[%s26217_s18 + $0x7a8] ss:$16 sps:$4 sm:$0xff]  }
 0x52d   : > { %4868 = vmatprep.subr.bf16.mxu0 %v22986_v41  ;;  %5749 = vmatpush1.bf16.msra.mxu1 %v23125_v10  ;;  %v23161_v41 = vld [vmem:[%s26227_s15 + $0x6c0] ss:$16 sps:$4 sm:$0xff]  }
 0x52e   : > { %5750 = vmatprep.subr.bf16.mxu1 %v23133_v15  ;;  %v23203_v10 = vld [vmem:[%s26227_s15 + $0x7a0] ss:$16 sps:$4 sm:$0xff]   ;;  %v23068_v15 = vld [vmem:[%s26227_s15 + $0x4c8] ss:$16 sps:$4 sm:$0xff]  }
 0x530   : > { %4869 = vmatpush1.bf16.msra.mxu0 %v22984_v42  ;;  %v23025_v42 = vld [vmem:[%s26217_s18 + $0x7cc] ss:$16 sps:$4 sm:$0xff]  }
 0x531   : > { %4870 = vmatprep.subr.bf16.mxu0 %v22989_v43  ;;  %5751 = vmatpush1.bf16.msra.mxu1 %v23131_v17  ;;  %v23169_v43 = vld [vmem:[%s26227_s15 + $0x6e4] ss:$16 sps:$4 sm:$0xff]   ;;  %v23074_v17 = vld [vmem:[%s26227_s15 + $0x4e8] ss:$16 sps:$4 sm:$0xff]  }
 0x532   : > { %5752 = vmatprep.subr.bf16.mxu1 %v23139_v20  ;;  %v23080_v20 = vld [vmem:[%s26227_s15 + $0x508] ss:$16 sps:$4 sm:$0xff]  }
 0x534   : > { %4871 = vmatpush1.bf16.msra.mxu0 %v22987_v45  ;;  %v23023_v45 = vld [vmem:[%s26217_s18 + $0x7c8] ss:$16 sps:$4 sm:$0xff]  }
 0x535   : > { %4872 = vmatprep.subr.bf16.mxu0 %v22992_v46  ;;  %5753 = vmatpush1.bf16.msra.mxu1 %v23137_v22  ;;  %v23167_v46 = vld [vmem:[%s26227_s15 + $0x6e0] ss:$16 sps:$4 sm:$0xff]   ;;  %v23086_v22 = vld [vmem:[%s26227_s15 + $0x528] ss:$16 sps:$4 sm:$0xff]  }
 0x536   : > { %5754 = vmatprep.subr.bf16.mxu1 %v23145_v27  ;;  %v23092_v27 = vld [vmem:[%s26227_s15 + $0x548] ss:$16 sps:$4 sm:$0xff]  }
 0x538   : > { %4873 = vmatpush1.bf16.msra.mxu0 %v22990_v47  ;;  %v23028_v47 = vld [vmem:[%s26217_s18 + $0x7ec] ss:$16 sps:$4 sm:$0xff]  }
 0x539   : > { %4874 = vmatprep.subr.bf16.mxu0 %v22995_v48  ;;  %5755 = vmatpush1.bf16.msra.mxu1 %v23143_v29  ;;  %v23175_v48 = vld [vmem:[%s26227_s15 + $0x704] ss:$16 sps:$4 sm:$0xff]   ;;  %v23098_v29 = vld [vmem:[%s26227_s15 + $0x568] ss:$16 sps:$4 sm:$0xff]  }
 0x53a   : > { %5756 = vmatprep.subr.bf16.mxu1 %v23151_v31  ;;  %v23104_v31 = vld [vmem:[%s26227_s15 + $0x588] ss:$16 sps:$4 sm:$0xff]  }
 0x53c   : > { %4875 = vmatpush1.bf16.msra.mxu0 %v22993_v14  ;;  %v23026_v14 = vld [vmem:[%s26217_s18 + $0x7e8] ss:$16 sps:$4 sm:$0xff]  }
 0x53d   : > { %4876 = vmatprep.subr.bf16.mxu0 %v22998_v50  ;;  %5757 = vmatpush1.bf16.msra.mxu1 %v23149_v33  ;;  %v23173_v50 = vld [vmem:[%s26227_s15 + $0x700] ss:$16 sps:$4 sm:$0xff]   ;;  %v23110_v33 = vld [vmem:[%s26227_s15 + $0x5a8] ss:$16 sps:$4 sm:$0xff]  }
 0x53e   : > { %5758 = vmatprep.subr.bf16.mxu1 %v23157_v35  ;;  %v23116_v35 = vld [vmem:[%s26227_s15 + $0x5c8] ss:$16 sps:$4 sm:$0xff]  }
 0x540   : > { %4877 = vmatpush1.bf16.msra.mxu0 %v22996_v52  ;;  %v23181_v52 = vld [vmem:[%s26227_s15 + $0x724] ss:$16 sps:$4 sm:$0xff]  }
 0x541   : > { %4878 = vmatprep.subr.bf16.mxu0 %v23001_v53  ;;  %5759 = vmatpush1.bf16.msra.mxu1 %v23155_v37  ;;  %v23032_v53 = vld [vmem:[%s26227_s15 + $0x408] ss:$16 sps:$4 sm:$0xff]  }
 0x542   : > { %5760 = vmatprep.subr.bf16.mxu1 %v23163_v39  ;;  %v23122_v37 = vld [vmem:[%s26227_s15 + $0x5e8] ss:$16 sps:$4 sm:$0xff]  }
 0x543   : > { %v23128_v39 = vld [vmem:[%s26227_s15 + $0x608] ss:$16 sps:$4 sm:$0xff]  }
 0x544   : > { %4879 = vmatpush1.bf16.msra.mxu0 %v22999_v0  ;;  %v23044_v0 = vld [vmem:[%s26227_s15 + $0x448] ss:$16 sps:$4 sm:$0xff]  }
 0x545   : > { %4880 = vmatprep.subr.bf16.mxu0 %v23004_v44  ;;  %5761 = vmatpush1.bf16.msra.mxu1 %v23161_v41  ;;  %v23050_v44 = vld [vmem:[%s26227_s15 + $0x468] ss:$16 sps:$4 sm:$0xff]  }
 0x546   : > { %5762 = vmatprep.subr.bf16.mxu1 %v23169_v43  ;;  %v23134_v41 = vld [vmem:[%s26227_s15 + $0x628] ss:$16 sps:$4 sm:$0xff]  }
 0x547   : > { %v23140_v43 = vld [vmem:[%s26227_s15 + $0x648] ss:$16 sps:$4 sm:$0xff]  }
 0x548   : > { %4881 = vmatpush1.bf16.msra.mxu0 %v23002_v24  ;;  %v23056_v24 = vld [vmem:[%s26227_s15 + $0x488] ss:$16 sps:$4 sm:$0xff]  }
 0x549   : > { %4882 = vmatprep.subr.bf16.mxu0 %v23007_v12  ;;  %5763 = vmatpush1.bf16.msra.mxu1 %v23167_v46  ;;  %v23070_v12 = vld [vmem:[%s26227_s15 + $0x4cc] ss:$16 sps:$4 sm:$0xff]   ;;  %v23146_v46 = vld [vmem:[%s26227_s15 + $0x668] ss:$16 sps:$4 sm:$0xff]  }
 0x54a   : > { %5764 = vmatprep.subr.bf16.mxu1 %v23175_v48  ;;  %v23152_v48 = vld [vmem:[%s26227_s15 + $0x688] ss:$16 sps:$4 sm:$0xff]  }
 0x54c   : > { %4883 = vmatpush1.bf16.msra.mxu0 %v23005_v16  ;;  %v23076_v16 = vld [vmem:[%s26227_s15 + $0x4ec] ss:$16 sps:$4 sm:$0xff]  }
 0x54d   : > { %4884 = vmatprep.subr.bf16.mxu0 %v23010_v18  ;;  %5765 = vmatpush1.bf16.msra.mxu1 %v23173_v50  ;;  %v23082_v18 = vld [vmem:[%s26227_s15 + $0x50c] ss:$16 sps:$4 sm:$0xff]  }
 0x54e   : > { %5766 = vmatprep.subr.bf16.mxu1 %v23181_v52  ;;  %v23158_v52 = vld [vmem:[%s26227_s15 + $0x6a8] ss:$16 sps:$4 sm:$0xff]  }
 0x550   : > { %4885 = vmatpush1.bf16.msra.mxu0 %v23008_v21  ;;  %v23088_v21 = vld [vmem:[%s26227_s15 + $0x52c] ss:$16 sps:$4 sm:$0xff]  }
 0x551   : > { %4886 = vmatprep.subr.bf16.mxu0 %v23013_v23  ;;  %5767 = vmatpush1.bf16.msra.mxu1 %v23179_v19  ;;  %v23094_v23 = vld [vmem:[%s26227_s15 + $0x54c] ss:$16 sps:$4 sm:$0xff]  }
 0x552   : > { %5768 = vmatprep.subr.bf16.mxu1 %v23187_v58  ;;  %v23209_v58 = vld [vmem:[%s26227_s15 + $0x7c0] ss:$16 sps:$4 sm:$0xff]  }
 0x554   : > { %4887 = vmatpush1.bf16.msra.mxu0 %v23011_v28  ;;  %v23100_v28 = vld [vmem:[%s26227_s15 + $0x56c] ss:$16 sps:$4 sm:$0xff]  }
 0x555   : > { %4888 = vmatprep.subr.bf16.mxu0 %v23016_v30  ;;  %5769 = vmatpush1.bf16.msra.mxu1 %v23185_v62  ;;  %v23106_v30 = vld [vmem:[%s26227_s15 + $0x58c] ss:$16 sps:$4 sm:$0xff]  }
 0x556   : > { %5770 = vmatprep.subr.bf16.mxu1 %v23193_v63 }
 0x558   : > { %4889 = vmatpush1.bf16.msra.mxu0 %v23014_v32  ;;  %v23112_v32 = vld [vmem:[%s26227_s15 + $0x5ac] ss:$16 sps:$4 sm:$0xff]  }
 0x559   : > { %4890 = vmatprep.subr.bf16.mxu0 %v23019_v34  ;;  %5771 = vmatpush1.bf16.msra.mxu1 %v23191_v2  ;;  %v23118_v34 = vld [vmem:[%s26227_s15 + $0x5cc] ss:$16 sps:$4 sm:$0xff]  }
 0x55a   : > { %5772 = vmatprep.subr.bf16.mxu1 %v23199_v3  ;;  %v23172_v2 = vld [vmem:[%s26227_s15 + $0x6ec] ss:$16 sps:$4 sm:$0xff]   ;;  %v23217_v3 = vld [vmem:[%s26227_s15 + $0x7e4] ss:$16 sps:$4 sm:$0xff]  }
 0x55c   : > { %4891 = vmatpush1.bf16.msra.mxu0 %v23017_v36  ;;  %v23124_v36 = vld [vmem:[%s26227_s15 + $0x5ec] ss:$16 sps:$4 sm:$0xff]  }
 0x55d   : > { %4892 = vmatprep.subr.bf16.mxu0 %v23022_v38  ;;  %5773 = vmatpush1.bf16.msra.mxu1 %v23197_v5  ;;  %v23130_v38 = vld [vmem:[%s26227_s15 + $0x60c] ss:$16 sps:$4 sm:$0xff]   ;;  %v23170_v5 = vld [vmem:[%s26227_s15 + $0x6e8] ss:$16 sps:$4 sm:$0xff]  }
 0x55e   : > { %5774 = vmatprep.subr.bf16.mxu1 %v23205_v6  ;;  %v23178_v6 = vld [vmem:[%s26227_s15 + $0x70c] ss:$16 sps:$4 sm:$0xff]  }
 0x560   : > { %4893 = vmatpush1.bf16.msra.mxu0 %v23020_v40  ;;  %v23136_v40 = vld [vmem:[%s26227_s15 + $0x62c] ss:$16 sps:$4 sm:$0xff]  }
 0x561   : > { %4894 = vmatprep.subr.bf16.mxu0 %v23025_v42  ;;  %5775 = vmatpush1.bf16.msra.mxu1 %v23203_v10  ;;  %v23142_v42 = vld [vmem:[%s26227_s15 + $0x64c] ss:$16 sps:$4 sm:$0xff]  }
 0x562   : > { %v23184_v10 = vld [vmem:[%s26227_s15 + $0x72c] ss:$16 sps:$4 sm:$0xff]  }
 0x564   : > { %4895 = vmatpush1.bf16.msra.mxu0 %v23023_v45  ;;  %v23148_v45 = vld [vmem:[%s26227_s15 + $0x66c] ss:$16 sps:$4 sm:$0xff]  }
 0x565   : > { %4896 = vmatprep.subr.bf16.mxu0 %v23028_v47  ;;  %v23154_v47 = vld [vmem:[%s26227_s15 + $0x68c] ss:$16 sps:$4 sm:$0xff]  }
 0x568   : > { %4897 = vmatpush1.bf16.msra.mxu0 %v23026_v14  ;;  %v23160_v14 = vld [vmem:[%s26227_s15 + $0x6ac] ss:$16 sps:$4 sm:$0xff]  }
 0x569   : > { %5789 = vmatprep.subr.bf16.mxu0 %v23034_v51 }
 0x56b   : > { %4899 = vmatmul.mubr.bf16.vlgmr.msra.gmra.mrb[16].mxu0 %v26341_v13 }
 0x56c   : > { %5790 = vmatpush1.bf16.msra.mxu0 %v23032_v53  ;;  %5821 = vmatprep.mubr.bf16.mxu0 %v26954_v8  ;;  %v23064_v8 = vld [vmem:[%s26227_s15 + $0x4ac] ss:$16 sps:$4 sm:$0xff]  }
 0x56d   : > { %5791 = vmatprep.subr.bf16.mxu0 %v23040_v56  ;;  %v23166_v53 = vld [vmem:[%s26227_s15 + $0x6cc] ss:$16 sps:$4 sm:$0xff]   ;;  %v23211_v56 = vld [vmem:[%s26227_s15 + $0x7c4] ss:$16 sps:$4 sm:$0xff]  }
 0x56e   : > { %5776 = vmatprep.subr.bf16.mxu1 %v23211_v56  ;;  %v23239_v56 = vld [vmem:[%s26237_s22 + $0x460] ss:$16 sps:$4 sm:$0xff]  }
 0x56f   : > { %5777 = vmatpush1.bf16.msra.mxu1 %v23209_v58  ;;  %v23247_v58 = vld [vmem:[%s26237_s22 + $0x484] ss:$16 sps:$4 sm:$0xff]  }
 0x570   : > { %5792 = vmatpush1.bf16.msra.mxu0 %v23038_v59  ;;  %5778 = vmatprep.subr.bf16.mxu1 %v23217_v3  ;;  %v23259_v3 = vld [vmem:[%s26237_s22 + $0x4c4] ss:$16 sps:$4 sm:$0xff]  }
 0x571   : > { %5793 = vmatprep.subr.bf16.mxu0 %v23046_v61 }
 0x574   : > { %5794 = vmatpush1.bf16.msra.mxu0 %v23044_v0  ;;  %v23164_v0 = vld [vmem:[%s26227_s15 + $0x6c8] ss:$16 sps:$4 sm:$0xff]  }
 0x575   : > { %5795 = vmatprep.subr.bf16.mxu0 %v23052_v1 }
 0x578   : > { %5796 = vmatpush1.bf16.msra.mxu0 %v23050_v44 }
 0x579   : > { %5797 = vmatprep.subr.bf16.mxu0 %v23058_v4  ;;  %v23215_v4 = vld [vmem:[%s26227_s15 + $0x7e0] ss:$16 sps:$4 sm:$0xff]  }
 0x57a   : > { %5779 = vmatpush1.bf16.msra.mxu1 %v23215_v4  ;;  %v23257_v4 = vld [vmem:[%s26237_s22 + $0x4c0] ss:$16 sps:$4 sm:$0xff]  }
 0x57c   : > { %5798 = vmatpush1.bf16.msra.mxu0 %v23056_v24  ;;  %v23223_v24 = vld [vmem:[%s26237_s22 + $0x404] ss:$16 sps:$4 sm:$0xff]  }
 0x57d   : > { %5799 = vmatprep.subr.bf16.mxu0 %v23064_v8  ;;  %v23176_v8 = vld [vmem:[%s26227_s15 + $0x708] ss:$16 sps:$4 sm:$0xff]   ;;  %6671 = vmatprep.subr.bf16.mxu1 %v23223_v24  ;;  %v23268_v24 = vld [vmem:[%s26237_s22 + $0x4ec] ss:$16 sps:$4 sm:$0xff]  }
 0x580   : > { %5800 = vmatpush1.bf16.msra.mxu0 %v23062_v11  ;;  %v23182_v11 = vld [vmem:[%s26227_s15 + $0x728] ss:$16 sps:$4 sm:$0xff]  }
 0x581   : > { %5801 = vmatprep.subr.bf16.mxu0 %v23070_v12  ;;  %v23190_v12 = vld [vmem:[%s26227_s15 + $0x74c] ss:$16 sps:$4 sm:$0xff]  }
 0x584   : > { %5802 = vmatpush1.bf16.msra.mxu0 %v23068_v15  ;;  %v23188_v15 = vld [vmem:[%s26227_s15 + $0x748] ss:$16 sps:$4 sm:$0xff]  }
 0x585   : > { %5803 = vmatprep.subr.bf16.mxu0 %v23076_v16  ;;  %v23196_v16 = vld [vmem:[%s26227_s15 + $0x76c] ss:$16 sps:$4 sm:$0xff]  }
 0x588   : > { %5804 = vmatpush1.bf16.msra.mxu0 %v23074_v17  ;;  %v23194_v17 = vld [vmem:[%s26227_s15 + $0x768] ss:$16 sps:$4 sm:$0xff]  }
 0x589   : > { %5805 = vmatprep.subr.bf16.mxu0 %v23082_v18  ;;  %v23202_v18 = vld [vmem:[%s26227_s15 + $0x78c] ss:$16 sps:$4 sm:$0xff]  }
 0x58c   : > { %5806 = vmatpush1.bf16.msra.mxu0 %v23080_v20  ;;  %v23200_v20 = vld [vmem:[%s26227_s15 + $0x788] ss:$16 sps:$4 sm:$0xff]  }
 0x58d   : > { %5807 = vmatprep.subr.bf16.mxu0 %v23088_v21  ;;  %v23208_v21 = vld [vmem:[%s26227_s15 + $0x7ac] ss:$16 sps:$4 sm:$0xff]  }
 0x590   : > { %5808 = vmatpush1.bf16.msra.mxu0 %v23086_v22  ;;  %v23206_v22 = vld [vmem:[%s26227_s15 + $0x7a8] ss:$16 sps:$4 sm:$0xff]  }
 0x591   : > { %5809 = vmatprep.subr.bf16.mxu0 %v23094_v23  ;;  %v23214_v23 = vld [vmem:[%s26227_s15 + $0x7cc] ss:$16 sps:$4 sm:$0xff]  }
 0x594   : > { %5810 = vmatpush1.bf16.msra.mxu0 %v23092_v27  ;;  %v23212_v27 = vld [vmem:[%s26227_s15 + $0x7c8] ss:$16 sps:$4 sm:$0xff]  }
 0x595   : > { %5811 = vmatprep.subr.bf16.mxu0 %v23100_v28  ;;  %v23220_v28 = vld [vmem:[%s26227_s15 + $0x7ec] ss:$16 sps:$4 sm:$0xff]  }
 0x598   : > { %5812 = vmatpush1.bf16.msra.mxu0 %v23098_v29  ;;  %v23218_v29 = vld [vmem:[%s26227_s15 + $0x7e8] ss:$16 sps:$4 sm:$0xff]  }
 0x599   : > { %5813 = vmatprep.subr.bf16.mxu0 %v23106_v30  ;;  %v23226_v30 = vld [vmem:[%s26237_s22 + $0x40c] ss:$16 sps:$4 sm:$0xff]  }
 0x59c   : > { %5814 = vmatpush1.bf16.msra.mxu0 %v23104_v31  ;;  %v4094_v31 = vrot.slane %v26935_v49, %v26561_v54 }
 0x59d   : > { %5815 = vmatprep.subr.bf16.mxu0 %v23112_v32  ;;  %v4098_v32 = vrot.slane %v26935_v49, %v26564_v55  ;;  %v23227_v49 = vld [vmem:[%s26237_s22 + $0x420] ss:$16 sps:$4 sm:$0xff]  }
 0x5a0   : > { %5816 = vmatpush1.bf16.msra.mxu0 %v23110_v33 }
 0x5a1   : > { %5817 = vmatprep.subr.bf16.mxu0 %v23118_v34 }
 0x5a4   : > { %5818 = vmatpush1.bf16.msra.mxu0 %v23116_v35 }
 0x5a5   : > { %5819 = vmatprep.subr.bf16.mxu0 %v23124_v36 }
 0x5a8   : > { %5820 = vmatpush1.bf16.msra.mxu0 %v23122_v37 }
 0x5a9   : > { %5830 = vmatprep.subr.bf16.mxu0 %v23130_v38 }
 0x5ab   : > { %5822 = vmatmul.mubr.bf16.vlgmr.msra.gmra.mrb[20].mxu0 %v26951_v7  ;;  %v3523_v7 = vld [vmem:[%s27047_s20] sm:$0x3] }
 0x5ac   : > { %5831 = vmatpush1.bf16.msra.mxu0 %v23128_v39  ;;  %v3528_v50 = vrot.slane %v3523_v7, %v26487_v25  ;;  %v3532_v51 = vrot.slane %v3523_v7, %v26490_v26  ;;  %v23230_v7 = vld [vmem:[%s26237_s22 + $0x428] ss:$16 sps:$4 sm:$0xff]  }
 0x5ad   : > { %5832 = vmatprep.subr.bf16.mxu0 %v23136_v40 }
 0x5b0   : > { %5833 = vmatpush1.bf16.msra.mxu0 %v23134_v41 }
 0x5b1   : > { %5834 = vmatprep.subr.bf16.mxu0 %v23142_v42  ;;  %v23221_v42 = vld [vmem:[%s26237_s22 + $0x400] ss:$16 sps:$4 sm:$0xff]  }
 0x5b4   : > { %5835 = vmatpush1.bf16.msra.mxu0 %v23140_v43  ;;  %v23224_v43 = vld [vmem:[%s26237_s22 + $0x408] ss:$16 sps:$4 sm:$0xff]  }
 0x5b5   : > { %5836 = vmatprep.subr.bf16.mxu0 %v23148_v45 }
 0x5b8   : > { %5837 = vmatpush1.bf16.msra.mxu0 %v23146_v46  ;;  %v23229_v46 = vld [vmem:[%s26237_s22 + $0x424] ss:$16 sps:$4 sm:$0xff]  }
 0x5b9   : > { %5838 = vmatprep.subr.bf16.mxu0 %v23154_v47  ;;  %v23232_v47 = vld [vmem:[%s26237_s22 + $0x42c] ss:$16 sps:$4 sm:$0xff]  }
 0x5bc   : > { %5839 = vmatpush1.bf16.msra.mxu0 %v23152_v48  ;;  %v23235_v48 = vld [vmem:[%s26237_s22 + $0x444] ss:$16 sps:$4 sm:$0xff]  }
 0x5bd   : > { %5840 = vmatprep.subr.bf16.mxu0 %v23160_v14  ;;  %v23238_v14 = vld [vmem:[%s26237_s22 + $0x44c] ss:$16 sps:$4 sm:$0xff]  }
 0x5be   : > { %v3930_v19 = vpop.f32.mrb[12].mxu0 }
 0x5bf   : > { %v21861_v59 = vadd.f32 %v3930_v19, %v3528_v50  ;;  %v3932_v61 = vpop.f32.mrb[13].mxu0  ;;  %v23233_v50 = vld [vmem:[%s26237_s22 + $0x440] ss:$16 sps:$4 sm:$0xff]   ;;  %v23242_v19 = vld [vmem:[%s26237_s22 + $0x468] ss:$16 sps:$4 sm:$0xff]  }
 0x5c0   : > { %v21862_v62 = vadd.f32 %v3932_v61, %v3532_v51  ;;  %v3934_v63 = vpop.f32.mrb[14].mxu0  ;;  %5841 = vmatpush1.bf16.msra.mxu0 %v23158_v52  ;;  %v23236_v51 = vld [vmem:[%s26237_s22 + $0x448] ss:$16 sps:$4 sm:$0xff]   ;;  %v23241_v52 = vld [vmem:[%s26237_s22 + $0x464] ss:$16 sps:$4 sm:$0xff]  }
 0x5c1   : > { %v3935_v1 = vpop.f32.mrb[15].mxu0  ;;  %5842 = vmatprep.subr.bf16.mxu0 %v23166_v53  ;;  %v23244_v53 = vld [vmem:[%s26237_s22 + $0x46c] ss:$16 sps:$4 sm:$0xff]   ;;  %v23245_v61 = vld [vmem:[%s26237_s22 + $0x480] ss:$16 sps:$4 sm:$0xff]  }
 0x5c2   : > { %v3939_v44 = vcombine.low %v21861_v59, %v21862_v62  ;;  %v23250_v59 = vld [vmem:[%s26237_s22 + $0x48c] ss:$16 sps:$4 sm:$0xff]   ;;  %v23248_v62 = vld [vmem:[%s26237_s22 + $0x488] ss:$16 sps:$4 sm:$0xff]   ;;  %v23253_v63 = vld [vmem:[%s26237_s22 + $0x4a4] ss:$16 sps:$4 sm:$0xff]  }
 0x5c3   : > { %v23251_v1 = vld [vmem:[%s26237_s22 + $0x4a0] ss:$16 sps:$4 sm:$0xff]  }
 0x5c4   : > { %18212 = vst.sshfl [vmem:[%s27062_s6] sm:$0x33 pattern:$0x76325410] %v3939_v44  ;;  %5843 = vmatpush1.bf16.msra.mxu0 %v23164_v0  ;;  %v23256_v0 = vld [vmem:[%s26237_s22 + $0x4ac] ss:$16 sps:$4 sm:$0xff]  }
 0x5c5   : > { %5844 = vmatprep.subr.bf16.mxu0 %v23172_v2  ;;  %v23254_v2 = vld [vmem:[%s26237_s22 + $0x4a8] ss:$16 sps:$4 sm:$0xff]   ;;  %v23262_v44 = vld [vmem:[%s26237_s22 + $0x4cc] ss:$16 sps:$4 sm:$0xff]  }
 0x5c8   : > { %5845 = vmatpush1.bf16.msra.mxu0 %v23170_v5  ;;  %v23260_v5 = vld [vmem:[%s26237_s22 + $0x4c8] ss:$16 sps:$4 sm:$0xff]  }
 0x5c9   : > { %5846 = vmatprep.subr.bf16.mxu0 %v23178_v6  ;;  %v23265_v6 = vld [vmem:[%s26237_s22 + $0x4e4] ss:$16 sps:$4 sm:$0xff]  }
 0x5cc   : > { %5847 = vmatpush1.bf16.msra.mxu0 %v23176_v8  ;;  %v23263_v8 = vld [vmem:[%s26237_s22 + $0x4e0] ss:$16 sps:$4 sm:$0xff]  }
 0x5cd   : > { %5848 = vmatprep.subr.bf16.mxu0 %v23184_v10  ;;  %v23266_v10 = vld [vmem:[%s26237_s22 + $0x4e8] ss:$16 sps:$4 sm:$0xff]  }
 0x5d0   : > { %5849 = vmatpush1.bf16.msra.mxu0 %v23182_v11  ;;  %v23271_v11 = vld [vmem:[%s26237_s22 + $0x504] ss:$16 sps:$4 sm:$0xff]  }
 0x5d1   : > { %5850 = vmatprep.subr.bf16.mxu0 %v23190_v12  ;;  %v23274_v12 = vld [vmem:[%s26237_s22 + $0x50c] ss:$16 sps:$4 sm:$0xff]  }
 0x5d4   : > { %5851 = vmatpush1.bf16.msra.mxu0 %v23188_v15  ;;  %v23269_v15 = vld [vmem:[%s26237_s22 + $0x500] ss:$16 sps:$4 sm:$0xff]  }
 0x5d5   : > { %5852 = vmatprep.subr.bf16.mxu0 %v23196_v16  ;;  %v23272_v16 = vld [vmem:[%s26237_s22 + $0x508] ss:$16 sps:$4 sm:$0xff]  }
 0x5d8   : > { %5853 = vmatpush1.bf16.msra.mxu0 %v23194_v17  ;;  %v23277_v17 = vld [vmem:[%s26237_s22 + $0x524] ss:$16 sps:$4 sm:$0xff]  }
 0x5d9   : > { %5854 = vmatprep.subr.bf16.mxu0 %v23202_v18  ;;  %v23280_v18 = vld [vmem:[%s26237_s22 + $0x52c] ss:$16 sps:$4 sm:$0xff]  }
 0x5dc   : > { %5855 = vmatpush1.bf16.msra.mxu0 %v23200_v20  ;;  %v23275_v20 = vld [vmem:[%s26237_s22 + $0x520] ss:$16 sps:$4 sm:$0xff]  }
 0x5dd   : > { %5856 = vmatprep.subr.bf16.mxu0 %v23208_v21  ;;  %v23278_v21 = vld [vmem:[%s26237_s22 + $0x528] ss:$16 sps:$4 sm:$0xff]  }
 0x5e0   : > { %5857 = vmatpush1.bf16.msra.mxu0 %v23206_v22  ;;  %v23283_v22 = vld [vmem:[%s26237_s22 + $0x544] ss:$16 sps:$4 sm:$0xff]  }
 0x5e1   : > { %5858 = vmatprep.subr.bf16.mxu0 %v23214_v23  ;;  %v23286_v23 = vld [vmem:[%s26237_s22 + $0x54c] ss:$16 sps:$4 sm:$0xff]  }
 0x5e4   : > { %5859 = vmatpush1.bf16.msra.mxu0 %v23212_v27  ;;  %v23281_v27 = vld [vmem:[%s26237_s22 + $0x540] ss:$16 sps:$4 sm:$0xff]  }
 0x5e5   : > { %5860 = vmatprep.subr.bf16.mxu0 %v23220_v28  ;;  %v23284_v28 = vld [vmem:[%s26237_s22 + $0x548] ss:$16 sps:$4 sm:$0xff]  }
 0x5e8   : > { %5861 = vmatpush1.bf16.msra.mxu0 %v23218_v29  ;;  %v23289_v29 = vld [vmem:[%s26237_s22 + $0x564] ss:$16 sps:$4 sm:$0xff]  }
 0x5e9   : > { %6753 = vmatprep.subr.bf16.mxu0 %v23226_v30  ;;  %v23292_v30 = vld [vmem:[%s26237_s22 + $0x56c] ss:$16 sps:$4 sm:$0xff]  }
 0x63e   : > { %v4900_v33 = vpop.f32.mrb[16].mxu0 }
 0x63f   : > { %v21865_v34 = vadd.f32 %v4900_v33, %v4094_v31  ;;  %v4902_v35 = vpop.f32.mrb[17].mxu0  ;;  %v23287_v31 = vld [vmem:[%s26237_s22 + $0x560] ss:$16 sps:$4 sm:$0xff]   ;;  %v23295_v33 = vld [vmem:[%s26237_s22 + $0x584] ss:$16 sps:$4 sm:$0xff]  }
 0x640   : > { %v21866_v36 = vadd.f32 %v4902_v35, %v4098_v32  ;;  %v4904_v37 = vpop.f32.mrb[18].mxu0  ;;  %v23290_v32 = vld [vmem:[%s26237_s22 + $0x568] ss:$16 sps:$4 sm:$0xff]   ;;  %v23293_v35 = vld [vmem:[%s26237_s22 + $0x580] ss:$16 sps:$4 sm:$0xff]  }
 0x641   : > { %v4909_v38 = vmax.f32 %v21865_v34, 0.0  ;;  %v4905_v39 = vpop.f32.mrb[19].mxu0  ;;  %v23298_v34 = vld [vmem:[%s26237_s22 + $0x58c] ss:$16 sps:$4 sm:$0xff]   ;;  %v23301_v37 = vld [vmem:[%s26237_s22 + $0x5a4] ss:$16 sps:$4 sm:$0xff]  }
 0x642   : > { %v4910_v40 = vmax.f32 %v21866_v36, 0.0  ;;  %v23296_v36 = vld [vmem:[%s26237_s22 + $0x588] ss:$16 sps:$4 sm:$0xff]   ;;  %v23299_v39 = vld [vmem:[%s26237_s22 + $0x5a0] ss:$16 sps:$4 sm:$0xff]  }
 0x643   : > { %v4913_v45 = vpack.c.bf16 %v4909_v38, %v4909_v38  ;;  %v23304_v38 = vld [vmem:[%s26237_s22 + $0x5ac] ss:$16 sps:$4 sm:$0xff]  }
 0x644   : > { %v4914_v41 = vpack.c.bf16 %v4910_v40, %v4910_v40  ;;  %v23302_v40 = vld [vmem:[%s26237_s22 + $0x5a8] ss:$16 sps:$4 sm:$0xff]  }
 0x646   : > { %5780 = vmatprep.mubr.bf16.mxu1 %v4914_v41  ;;  %5862 = vmatprep.mubr.bf16.mxu0 %v4914_v41  ;;  %v23307_v41 = vld [vmem:[%s26237_s22 + $0x5c4] ss:$16 sps:$4 sm:$0xff]  }
 0x647   : > { %5781 = vmatmul.mubr.bf16.vlgmr.msra.gmra.mrb[20].mxu1 %v4913_v45  ;;  %5863 = vmatmul.mubr.bf16.vlgmr.msra.gmra.mrb[20].mxu0 %v4913_v45  ;;  %v23308_v45 = vld [vmem:[%s26237_s22 + $0x5c8] ss:$16 sps:$4 sm:$0xff]  }
 0x648   : > { %6672 = vmatpush1.bf16.msra.mxu1 %v23221_v42  ;;  %6754 = vmatpush1.bf16.msra.mxu0 %v23224_v43  ;;  %v23310_v42 = vld [vmem:[%s26237_s22 + $0x5cc] ss:$16 sps:$4 sm:$0xff]   ;;  %v23305_v43 = vld [vmem:[%s26237_s22 + $0x5c0] ss:$16 sps:$4 sm:$0xff]  }
 0x649   : > { %6673 = vmatprep.subr.bf16.mxu1 %v23229_v46  ;;  %6755 = vmatprep.subr.bf16.mxu0 %v23232_v47  ;;  %v23313_v46 = vld [vmem:[%s26237_s22 + $0x5e4] ss:$16 sps:$4 sm:$0xff]   ;;  %v23316_v47 = vld [vmem:[%s26237_s22 + $0x5ec] ss:$16 sps:$4 sm:$0xff]  }
 0x64c   : > { %6674 = vmatpush1.bf16.msra.mxu1 %v23227_v49  ;;  %6756 = vmatpush1.bf16.msra.mxu0 %v23230_v7  ;;  %v23311_v49 = vld [vmem:[%s26237_s22 + $0x5e0] ss:$16 sps:$4 sm:$0xff]   ;;  %v23314_v7 = vld [vmem:[%s26237_s22 + $0x5e8] ss:$16 sps:$4 sm:$0xff]  }
 0x64d   : > { %6675 = vmatprep.subr.bf16.mxu1 %v23235_v48  ;;  %6757 = vmatprep.subr.bf16.mxu0 %v23238_v14  ;;  %v23319_v48 = vld [vmem:[%s26237_s22 + $0x604] ss:$16 sps:$4 sm:$0xff]   ;;  %v23322_v14 = vld [vmem:[%s26237_s22 + $0x60c] ss:$16 sps:$4 sm:$0xff]  }
 0x650   : > { %6676 = vmatpush1.bf16.msra.mxu1 %v23233_v50  ;;  %6758 = vmatpush1.bf16.msra.mxu0 %v23236_v51  ;;  %v27156_v50 = vld [vmem:[%s26635_s14 + $0x4] sm:$0xf] }
 0x651   : > { %6677 = vmatprep.subr.bf16.mxu1 %v23241_v52  ;;  %6759 = vmatprep.subr.bf16.mxu0 %v23244_v53  ;;  %v5050_v51 = vrot.slane %v27156_v50, %v26487_v25  ;;  %v5054_v52 = vrot.slane %v27156_v50, %v26490_v26  ;;  %v5062_v53 = vrot.slane %v27156_v50, %v26564_v55 }
 0x654   : > { %6678 = vmatpush1.bf16.msra.mxu1 %v23239_v56  ;;  %6760 = vmatpush1.bf16.msra.mxu0 %v23242_v19 }
 0x655   : > { %6679 = vmatprep.subr.bf16.mxu1 %v23247_v58  ;;  %6761 = vmatprep.subr.bf16.mxu0 %v23250_v59 }
 0x658   : > { %6680 = vmatpush1.bf16.msra.mxu1 %v23245_v61  ;;  %6762 = vmatpush1.bf16.msra.mxu0 %v23248_v62 }
 0x659   : > { %6681 = vmatprep.subr.bf16.mxu1 %v23253_v63  ;;  %6763 = vmatprep.subr.bf16.mxu0 %v23256_v0 }
 0x65c   : > { %6682 = vmatpush1.bf16.msra.mxu1 %v23251_v1  ;;  %6764 = vmatpush1.bf16.msra.mxu0 %v23254_v2 }
 0x65d   : > { %6683 = vmatprep.subr.bf16.mxu1 %v23259_v3  ;;  %6765 = vmatprep.subr.bf16.mxu0 %v23262_v44 }
 0x660   : > { %6684 = vmatpush1.bf16.msra.mxu1 %v23257_v4  ;;  %6766 = vmatpush1.bf16.msra.mxu0 %v23260_v5 }
 0x661   : > { %6685 = vmatprep.subr.bf16.mxu1 %v23265_v6  ;;  %6767 = vmatprep.subr.bf16.mxu0 %v23268_v24  ;;  %v23317_v24 = vld [vmem:[%s26237_s22 + $0x600] ss:$16 sps:$4 sm:$0xff]  }
 0x664   : > { %6686 = vmatpush1.bf16.msra.mxu1 %v23263_v8  ;;  %6768 = vmatpush1.bf16.msra.mxu0 %v23266_v10  ;;  %v23320_v8 = vld [vmem:[%s26237_s22 + $0x608] ss:$16 sps:$4 sm:$0xff]  }
 0x665   : > { %6687 = vmatprep.subr.bf16.mxu1 %v23271_v11  ;;  %6769 = vmatprep.subr.bf16.mxu0 %v23274_v12  ;;  %v23325_v11 = vld [vmem:[%s26237_s22 + $0x624] ss:$16 sps:$4 sm:$0xff]   ;;  %v23328_v12 = vld [vmem:[%s26237_s22 + $0x62c] ss:$16 sps:$4 sm:$0xff]  }
 0x668   : > { %6688 = vmatpush1.bf16.msra.mxu1 %v23269_v15  ;;  %6770 = vmatpush1.bf16.msra.mxu0 %v23272_v16  ;;  %v23323_v16 = vld [vmem:[%s26237_s22 + $0x620] ss:$16 sps:$4 sm:$0xff]  }
 0x669   : > { %6689 = vmatprep.subr.bf16.mxu1 %v23277_v17  ;;  %6771 = vmatprep.subr.bf16.mxu0 %v23280_v18  ;;  %v23326_v17 = vld [vmem:[%s26237_s22 + $0x628] ss:$16 sps:$4 sm:$0xff]   ;;  %v23331_v18 = vld [vmem:[%s26237_s22 + $0x644] ss:$16 sps:$4 sm:$0xff]  }
 0x66c   : > { %6690 = vmatpush1.bf16.msra.mxu1 %v23275_v20  ;;  %6772 = vmatpush1.bf16.msra.mxu0 %v23278_v21  ;;  %v23334_v20 = vld [vmem:[%s26237_s22 + $0x64c] ss:$16 sps:$4 sm:$0xff]   ;;  %v23329_v21 = vld [vmem:[%s26237_s22 + $0x640] ss:$16 sps:$4 sm:$0xff]  }
 0x66d   : > { %6691 = vmatprep.subr.bf16.mxu1 %v23283_v22  ;;  %6773 = vmatprep.subr.bf16.mxu0 %v23286_v23  ;;  %v23332_v22 = vld [vmem:[%s26237_s22 + $0x648] ss:$16 sps:$4 sm:$0xff]   ;;  %v23337_v23 = vld [vmem:[%s26237_s22 + $0x664] ss:$16 sps:$4 sm:$0xff]  }
 0x670   : > { %6692 = vmatpush1.bf16.msra.mxu1 %v23281_v27  ;;  %6774 = vmatpush1.bf16.msra.mxu0 %v23284_v28  ;;  %v23340_v27 = vld [vmem:[%s26237_s22 + $0x66c] ss:$16 sps:$4 sm:$0xff]   ;;  %v23335_v28 = vld [vmem:[%s26237_s22 + $0x660] ss:$16 sps:$4 sm:$0xff]  }
 0x671   : > { %6693 = vmatprep.subr.bf16.mxu1 %v23289_v29  ;;  %6775 = vmatprep.subr.bf16.mxu0 %v23292_v30  ;;  %v23338_v29 = vld [vmem:[%s26237_s22 + $0x668] ss:$16 sps:$4 sm:$0xff]   ;;  %v23343_v30 = vld [vmem:[%s26237_s22 + $0x684] ss:$16 sps:$4 sm:$0xff]  }
 0x674   : > { %6694 = vmatpush1.bf16.msra.mxu1 %v23287_v31  ;;  %6776 = vmatpush1.bf16.msra.mxu0 %v23290_v32  ;;  %v23346_v31 = vld [vmem:[%s26237_s22 + $0x68c] ss:$16 sps:$4 sm:$0xff]   ;;  %v23341_v32 = vld [vmem:[%s26237_s22 + $0x680] ss:$16 sps:$4 sm:$0xff]  }
 0x675   : > { %6695 = vmatprep.subr.bf16.mxu1 %v23295_v33  ;;  %6777 = vmatprep.subr.bf16.mxu0 %v23298_v34  ;;  %v23344_v33 = vld [vmem:[%s26237_s22 + $0x688] ss:$16 sps:$4 sm:$0xff]   ;;  %v23349_v34 = vld [vmem:[%s26237_s22 + $0x6a4] ss:$16 sps:$4 sm:$0xff]  }
 0x678   : > { %6696 = vmatpush1.bf16.msra.mxu1 %v23293_v35  ;;  %6778 = vmatpush1.bf16.msra.mxu0 %v23296_v36  ;;  %v23352_v35 = vld [vmem:[%s26237_s22 + $0x6ac] ss:$16 sps:$4 sm:$0xff]   ;;  %v23347_v36 = vld [vmem:[%s26237_s22 + $0x6a0] ss:$16 sps:$4 sm:$0xff]  }
 0x679   : > { %6697 = vmatprep.subr.bf16.mxu1 %v23301_v37  ;;  %6779 = vmatprep.subr.bf16.mxu0 %v23304_v38  ;;  %v23350_v37 = vld [vmem:[%s26237_s22 + $0x6a8] ss:$16 sps:$4 sm:$0xff]   ;;  %v23355_v38 = vld [vmem:[%s26237_s22 + $0x6c4] ss:$16 sps:$4 sm:$0xff]  }
 0x67c   : > { %6698 = vmatpush1.bf16.msra.mxu1 %v23299_v39  ;;  %6780 = vmatpush1.bf16.msra.mxu0 %v23302_v40  ;;  %v23358_v39 = vld [vmem:[%s26237_s22 + $0x6cc] ss:$16 sps:$4 sm:$0xff]   ;;  %v23353_v40 = vld [vmem:[%s26237_s22 + $0x6c0] ss:$16 sps:$4 sm:$0xff]  }
 0x67d   : > { %6699 = vmatprep.subr.bf16.mxu1 %v23307_v41  ;;  %6781 = vmatprep.subr.bf16.mxu0 %v23310_v42  ;;  %v23356_v41 = vld [vmem:[%s26237_s22 + $0x6c8] ss:$16 sps:$4 sm:$0xff]   ;;  %v23361_v42 = vld [vmem:[%s26237_s22 + $0x6e4] ss:$16 sps:$4 sm:$0xff]  }
 0x680   : > { %6700 = vmatpush1.bf16.msra.mxu1 %v23305_v43  ;;  %6782 = vmatpush1.bf16.msra.mxu0 %v23308_v45  ;;  %v23364_v43 = vld [vmem:[%s26237_s22 + $0x6ec] ss:$16 sps:$4 sm:$0xff]   ;;  %v23359_v45 = vld [vmem:[%s26237_s22 + $0x6e0] ss:$16 sps:$4 sm:$0xff]  }
 0x681   : > { %6701 = vmatprep.subr.bf16.mxu1 %v23313_v46  ;;  %6783 = vmatprep.subr.bf16.mxu0 %v23316_v47  ;;  %v23362_v46 = vld [vmem:[%s26237_s22 + $0x6e8] ss:$16 sps:$4 sm:$0xff]   ;;  %v23367_v47 = vld [vmem:[%s26237_s22 + $0x704] ss:$16 sps:$4 sm:$0xff]  }
 0x684   : > { %6702 = vmatpush1.bf16.msra.mxu1 %v23311_v49  ;;  %6784 = vmatpush1.bf16.msra.mxu0 %v23314_v7  ;;  %v23370_v49 = vld [vmem:[%s26237_s22 + $0x70c] ss:$16 sps:$4 sm:$0xff]   ;;  %v23365_v7 = vld [vmem:[%s26237_s22 + $0x700] ss:$16 sps:$4 sm:$0xff]  }
 0x685   : > { %6712 = vmatprep.subr.bf16.mxu1 %v23319_v48  ;;  %6794 = vmatprep.subr.bf16.mxu0 %v23322_v14  ;;  %v23368_v48 = vld [vmem:[%s26237_s22 + $0x708] ss:$16 sps:$4 sm:$0xff]   ;;  %v23373_v14 = vld [vmem:[%s26237_s22 + $0x724] ss:$16 sps:$4 sm:$0xff]  }
 0x71a   : > { %v5782_v56 = vpop.f32.mrb[20].mxu1  ;;  %v27164_v19 = vpop.f32.mrb[20].mxu0 }
 0x71b   : > { %v21867_v58 = vadd.f32 %v5782_v56, %v5050_v51  ;;  %v5784_v59 = vpop.f32.mrb[21].mxu1  ;;  %v5866_v61 = vpop.f32.mrb[21].mxu0  ;;  %v23376_v51 = vld [vmem:[%s26237_s22 + $0x72c] ss:$16 sps:$4 sm:$0xff]   ;;  %v23379_v56 = vld [vmem:[%s26237_s22 + $0x744] ss:$16 sps:$4 sm:$0xff]  }
 0x71c   : > { %v21868_v62 = vadd.f32 %v5784_v59, %v5054_v52  ;;  %v21870_v63 = vadd.f32 %v5866_v61, %v5062_v53  ;;  %v5786_v0 = vpop.f32.mrb[22].mxu1  ;;  %v5868_v1 = vpop.f32.mrb[22].mxu0  ;;  %v23371_v52 = vld [vmem:[%s26237_s22 + $0x720] ss:$16 sps:$4 sm:$0xff]   ;;  %v23374_v53 = vld [vmem:[%s26237_s22 + $0x728] ss:$16 sps:$4 sm:$0xff]  }
 0x71d   : > { %v5871_v2 = vmax.f32 %v21867_v58, 0.0  ;;  %v5787_v3 = vpop.f32.mrb[23].mxu1  ;;  %v5869_v44 = vpop.f32.mrb[23].mxu0  ;;  %v23382_v58 = vld [vmem:[%s26237_s22 + $0x74c] ss:$16 sps:$4 sm:$0xff]  }
 0x71e   : > { %v5872_v4 = vmax.f32 %v21868_v62, 0.0  ;;  %v5874_v5 = vmax.f32 %v21870_v63, 0.0  ;;  %v23377_v59 = vld [vmem:[%s26237_s22 + $0x740] ss:$16 sps:$4 sm:$0xff]   ;;  %v23380_v61 = vld [vmem:[%s26237_s22 + $0x748] ss:$16 sps:$4 sm:$0xff]  }
 0x71f   : > { %v5875_v10 = vpack.c.bf16 %v5871_v2, %v5871_v2  ;;  %v23385_v62 = vld [vmem:[%s26237_s22 + $0x764] ss:$16 sps:$4 sm:$0xff]   ;;  %v23388_v63 = vld [vmem:[%s26237_s22 + $0x76c] ss:$16 sps:$4 sm:$0xff]   ;;  %v23383_v0 = vld [vmem:[%s26237_s22 + $0x760] ss:$16 sps:$4 sm:$0xff]  }
 0x720   : > { %v5876_v6 = vpack.c.bf16 %v5872_v4, %v5872_v4  ;;  %v5878_v15 = vpack.c.bf16 %v5874_v5, %v5874_v5  ;;  %v23386_v1 = vld [vmem:[%s26237_s22 + $0x768] ss:$16 sps:$4 sm:$0xff]   ;;  %v23391_v2 = vld [vmem:[%s26237_s22 + $0x784] ss:$16 sps:$4 sm:$0xff]   ;;  %v23394_v3 = vld [vmem:[%s26237_s22 + $0x78c] ss:$16 sps:$4 sm:$0xff]  }
 0x721   : > { %v23389_v44 = vld [vmem:[%s26237_s22 + $0x780] ss:$16 sps:$4 sm:$0xff]   ;;  %v23392_v4 = vld [vmem:[%s26237_s22 + $0x788] ss:$16 sps:$4 sm:$0xff]   ;;  %v23397_v5 = vld [vmem:[%s26237_s22 + $0x7a4] ss:$16 sps:$4 sm:$0xff]  }
 0x722   : > { %6703 = vmatprep.mubr.bf16.mxu1 %v5876_v6  ;;  %6785 = vmatprep.mubr.bf16.mxu0 %v5876_v6  ;;  %v23400_v6 = vld [vmem:[%s26237_s22 + $0x7ac] ss:$16 sps:$4 sm:$0xff]  }
 0x723   : > { %6704 = vmatmul.mubr.bf16.vlgmr.msra.gmra.mrb[24].mxu1 %v5875_v10  ;;  %6786 = vmatmul.mubr.bf16.vlgmr.msra.gmra.mrb[24].mxu0 %v5875_v10  ;;  %v5058_v10 = vrot.slane %v27156_v50, %v26561_v54  ;;  %v23412_v50 = vld [vmem:[%s26237_s22 + $0x7ec] ss:$16 sps:$4 sm:$0xff]  }
 0x724   : > { %6713 = vmatpush1.bf16.msra.mxu1 %v23317_v24  ;;  %6795 = vmatpush1.bf16.msra.mxu0 %v23320_v8  ;;  %v23395_v24 = vld [vmem:[%s26237_s22 + $0x7a0] ss:$16 sps:$4 sm:$0xff]   ;;  %v23398_v8 = vld [vmem:[%s26237_s22 + $0x7a8] ss:$16 sps:$4 sm:$0xff]  }
 0x725   : > { %6744 = vmatprep.mubr.bf16.mxu1 %v5878_v15  ;;  %6826 = vmatprep.mubr.bf16.mxu0 %v5878_v15  ;;  %v23401_v15 = vld [vmem:[%s26237_s22 + $0x7c0] ss:$16 sps:$4 sm:$0xff]  }
 0x726   : > { %6714 = vmatprep.subr.bf16.mxu1 %v23325_v11  ;;  %6796 = vmatprep.subr.bf16.mxu0 %v23328_v12  ;;  %v23403_v11 = vld [vmem:[%s26237_s22 + $0x7c4] ss:$16 sps:$4 sm:$0xff]   ;;  %v23406_v12 = vld [vmem:[%s26237_s22 + $0x7cc] ss:$16 sps:$4 sm:$0xff]  }
 0x728   : > { %6715 = vmatpush1.bf16.msra.mxu1 %v23323_v16  ;;  %6797 = vmatpush1.bf16.msra.mxu0 %v23326_v17  ;;  %v23404_v16 = vld [vmem:[%s26237_s22 + $0x7c8] ss:$16 sps:$4 sm:$0xff]   ;;  %v21869_v17 = vadd.f32 %v27164_v19, %v5058_v10  ;;  %v23413_v19 = vld [vmem:[%s26217_s18 + $0x800] ss:$16 sps:$4 sm:$0xff]   ;;  %v23481_v10 = vld [vmem:[%s26217_s18 + $0x964] ss:$16 sps:$4 sm:$0xff]  }
 0x729   : > { %6716 = vmatprep.subr.bf16.mxu1 %v23331_v18  ;;  %6798 = vmatprep.subr.bf16.mxu0 %v23334_v20  ;;  %v23409_v18 = vld [vmem:[%s26237_s22 + $0x7e4] ss:$16 sps:$4 sm:$0xff]   ;;  %v23407_v20 = vld [vmem:[%s26237_s22 + $0x7e0] ss:$16 sps:$4 sm:$0xff]  }
 0x72c   : > { %6717 = vmatpush1.bf16.msra.mxu1 %v23329_v21  ;;  %6799 = vmatpush1.bf16.msra.mxu0 %v23332_v22  ;;  %v23410_v21 = vld [vmem:[%s26237_s22 + $0x7e8] ss:$16 sps:$4 sm:$0xff]   ;;  %v5873_v22 = vmax.f32 %v21869_v17, 0.0  ;;  %v23490_v17 = vld [vmem:[%s26247_s1 + $0x2c4] ss:$8 sps:$4 sm:$0xff]  }
 0x72d   : > { %6718 = vmatprep.subr.bf16.mxu1 %v23337_v23  ;;  %6800 = vmatprep.subr.bf16.mxu0 %v23340_v27  ;;  %v23415_v23 = vld [vmem:[%s26217_s18 + $0x804] ss:$16 sps:$4 sm:$0xff]  }
 0x72e   : > { %v23418_v27 = vld [vmem:[%s26247_s1 + $0x204] ss:$8 sps:$4 sm:$0xff]  }
 0x730   : > { %6719 = vmatpush1.bf16.msra.mxu1 %v23335_v28  ;;  %6801 = vmatpush1.bf16.msra.mxu0 %v23338_v29  ;;  %v23416_v28 = vld [vmem:[%s26247_s1 + $0x200] ss:$8 sps:$4 sm:$0xff]   ;;  %v5877_v29 = vpack.c.bf16 %v5873_v22, %v5873_v22 }
 0x731   : > { %6720 = vmatprep.subr.bf16.mxu1 %v23343_v30  ;;  %6802 = vmatprep.subr.bf16.mxu0 %v23346_v31  ;;  %v23421_v30 = vld [vmem:[%s26217_s18 + $0x824] ss:$16 sps:$4 sm:$0xff]   ;;  %v23491_v22 = vld [vmem:[%s26217_s18 + $0x9a0] ss:$16 sps:$4 sm:$0xff]  }
 0x732   : > { %v23424_v31 = vld [vmem:[%s26247_s1 + $0x214] ss:$8 sps:$4 sm:$0xff]  }
 0x734   : > { %6721 = vmatpush1.bf16.msra.mxu1 %v23341_v32  ;;  %6803 = vmatpush1.bf16.msra.mxu0 %v23344_v33  ;;  %v23419_v32 = vld [vmem:[%s26217_s18 + $0x820] ss:$16 sps:$4 sm:$0xff]  }
 0x735   : > { %6722 = vmatprep.subr.bf16.mxu1 %v23349_v34  ;;  %6804 = vmatprep.subr.bf16.mxu0 %v23352_v35  ;;  %v23422_v33 = vld [vmem:[%s26247_s1 + $0x210] ss:$8 sps:$4 sm:$0xff]   ;;  %v23427_v34 = vld [vmem:[%s26217_s18 + $0x844] ss:$16 sps:$4 sm:$0xff]  }
 0x736   : > { %v23430_v35 = vld [vmem:[%s26247_s1 + $0x224] ss:$8 sps:$4 sm:$0xff]  }
 0x738   : > { %6723 = vmatpush1.bf16.msra.mxu1 %v23347_v36  ;;  %6805 = vmatpush1.bf16.msra.mxu0 %v23350_v37  ;;  %v23425_v36 = vld [vmem:[%s26217_s18 + $0x840] ss:$16 sps:$4 sm:$0xff]  }
 0x739   : > { %6724 = vmatprep.subr.bf16.mxu1 %v23355_v38  ;;  %6806 = vmatprep.subr.bf16.mxu0 %v23358_v39  ;;  %v23428_v37 = vld [vmem:[%s26247_s1 + $0x220] ss:$8 sps:$4 sm:$0xff]   ;;  %v23433_v38 = vld [vmem:[%s26217_s18 + $0x864] ss:$16 sps:$4 sm:$0xff]  }
 0x73a   : > { %v23436_v39 = vld [vmem:[%s26247_s1 + $0x234] ss:$8 sps:$4 sm:$0xff]  }
 0x73c   : > { %6725 = vmatpush1.bf16.msra.mxu1 %v23353_v40  ;;  %6807 = vmatpush1.bf16.msra.mxu0 %v23356_v41  ;;  %v23431_v40 = vld [vmem:[%s26217_s18 + $0x860] ss:$16 sps:$4 sm:$0xff]  }
 0x73d   : > { %6726 = vmatprep.subr.bf16.mxu1 %v23361_v42  ;;  %6808 = vmatprep.subr.bf16.mxu0 %v23364_v43  ;;  %v23434_v41 = vld [vmem:[%s26247_s1 + $0x230] ss:$8 sps:$4 sm:$0xff]   ;;  %v23439_v42 = vld [vmem:[%s26217_s18 + $0x884] ss:$16 sps:$4 sm:$0xff]  }
 0x73e   : > { %v23442_v43 = vld [vmem:[%s26247_s1 + $0x244] ss:$8 sps:$4 sm:$0xff]  }
 0x740   : > { %6727 = vmatpush1.bf16.msra.mxu1 %v23359_v45  ;;  %6809 = vmatpush1.bf16.msra.mxu0 %v23362_v46  ;;  %v23437_v45 = vld [vmem:[%s26217_s18 + $0x880] ss:$16 sps:$4 sm:$0xff]  }
 0x741   : > { %6728 = vmatprep.subr.bf16.mxu1 %v23367_v47  ;;  %6810 = vmatprep.subr.bf16.mxu0 %v23370_v49  ;;  %v23440_v46 = vld [vmem:[%s26247_s1 + $0x240] ss:$8 sps:$4 sm:$0xff]   ;;  %v23445_v47 = vld [vmem:[%s26217_s18 + $0x8a4] ss:$16 sps:$4 sm:$0xff]  }
 0x742   : > { %v23448_v49 = vld [vmem:[%s26247_s1 + $0x254] ss:$8 sps:$4 sm:$0xff]  }
 0x744   : > { %6729 = vmatpush1.bf16.msra.mxu1 %v23365_v7  ;;  %6811 = vmatpush1.bf16.msra.mxu0 %v23368_v48  ;;  %v23443_v7 = vld [vmem:[%s26217_s18 + $0x8a0] ss:$16 sps:$4 sm:$0xff]  }
 0x745   : > { %6730 = vmatprep.subr.bf16.mxu1 %v23373_v14  ;;  %6812 = vmatprep.subr.bf16.mxu0 %v23376_v51  ;;  %v23446_v48 = vld [vmem:[%s26247_s1 + $0x250] ss:$8 sps:$4 sm:$0xff]   ;;  %v23451_v14 = vld [vmem:[%s26217_s18 + $0x8c4] ss:$16 sps:$4 sm:$0xff]  }
 0x746   : > { %v23454_v51 = vld [vmem:[%s26247_s1 + $0x264] ss:$8 sps:$4 sm:$0xff]  }
 0x748   : > { %6731 = vmatpush1.bf16.msra.mxu1 %v23371_v52  ;;  %6813 = vmatpush1.bf16.msra.mxu0 %v23374_v53  ;;  %v23449_v52 = vld [vmem:[%s26217_s18 + $0x8c0] ss:$16 sps:$4 sm:$0xff]  }
 0x749   : > { %6732 = vmatprep.subr.bf16.mxu1 %v23379_v56  ;;  %6814 = vmatprep.subr.bf16.mxu0 %v23382_v58  ;;  %v23452_v53 = vld [vmem:[%s26247_s1 + $0x260] ss:$8 sps:$4 sm:$0xff]   ;;  %v23457_v56 = vld [vmem:[%s26217_s18 + $0x8e4] ss:$16 sps:$4 sm:$0xff]  }
 0x74a   : > { %v23460_v58 = vld [vmem:[%s26247_s1 + $0x274] ss:$8 sps:$4 sm:$0xff]  }
 0x74c   : > { %6733 = vmatpush1.bf16.msra.mxu1 %v23377_v59  ;;  %6815 = vmatpush1.bf16.msra.mxu0 %v23380_v61  ;;  %v23455_v59 = vld [vmem:[%s26217_s18 + $0x8e0] ss:$16 sps:$4 sm:$0xff]  }
 0x74d   : > { %6734 = vmatprep.subr.bf16.mxu1 %v23385_v62  ;;  %6816 = vmatprep.subr.bf16.mxu0 %v23388_v63  ;;  %v23458_v61 = vld [vmem:[%s26247_s1 + $0x270] ss:$8 sps:$4 sm:$0xff]   ;;  %v23463_v62 = vld [vmem:[%s26217_s18 + $0x904] ss:$16 sps:$4 sm:$0xff]  }
 0x74e   : > { %v23466_v63 = vld [vmem:[%s26247_s1 + $0x284] ss:$8 sps:$4 sm:$0xff]  }
 0x750   : > { %6735 = vmatpush1.bf16.msra.mxu1 %v23383_v0  ;;  %6817 = vmatpush1.bf16.msra.mxu0 %v23386_v1  ;;  %v23461_v0 = vld [vmem:[%s26217_s18 + $0x900] ss:$16 sps:$4 sm:$0xff]  }
 0x751   : > { %6736 = vmatprep.subr.bf16.mxu1 %v23391_v2  ;;  %6818 = vmatprep.subr.bf16.mxu0 %v23394_v3  ;;  %v23464_v1 = vld [vmem:[%s26247_s1 + $0x280] ss:$8 sps:$4 sm:$0xff]   ;;  %v23469_v2 = vld [vmem:[%s26217_s18 + $0x924] ss:$16 sps:$4 sm:$0xff]  }
 0x752   : > { %v23472_v3 = vld [vmem:[%s26247_s1 + $0x294] ss:$8 sps:$4 sm:$0xff]  }
 0x754   : > { %6737 = vmatpush1.bf16.msra.mxu1 %v23389_v44  ;;  %6819 = vmatpush1.bf16.msra.mxu0 %v23392_v4  ;;  %v23467_v44 = vld [vmem:[%s26217_s18 + $0x920] ss:$16 sps:$4 sm:$0xff]  }
 0x755   : > { %6738 = vmatprep.subr.bf16.mxu1 %v23397_v5  ;;  %6820 = vmatprep.subr.bf16.mxu0 %v23400_v6  ;;  %v23470_v4 = vld [vmem:[%s26247_s1 + $0x290] ss:$8 sps:$4 sm:$0xff]   ;;  %v23475_v5 = vld [vmem:[%s26217_s18 + $0x944] ss:$16 sps:$4 sm:$0xff]  }
 0x756   : > { %v23478_v6 = vld [vmem:[%s26247_s1 + $0x2a4] ss:$8 sps:$4 sm:$0xff]  }
 0x758   : > { %6739 = vmatpush1.bf16.msra.mxu1 %v23395_v24  ;;  %6821 = vmatpush1.bf16.msra.mxu0 %v23398_v8  ;;  %v23473_v24 = vld [vmem:[%s26217_s18 + $0x940] ss:$16 sps:$4 sm:$0xff]  }
 0x759   : > { %6740 = vmatprep.subr.bf16.mxu1 %v23403_v11  ;;  %6822 = vmatprep.subr.bf16.mxu0 %v23406_v12  ;;  %v23476_v8 = vld [vmem:[%s26247_s1 + $0x2a0] ss:$8 sps:$4 sm:$0xff]   ;;  %v23484_v11 = vld [vmem:[%s26247_s1 + $0x2b4] ss:$8 sps:$4 sm:$0xff]  }
 0x75a   : > { %v23479_v12 = vld [vmem:[%s26217_s18 + $0x960] ss:$16 sps:$4 sm:$0xff]  }
 0x75c   : > { %6741 = vmatpush1.bf16.msra.mxu1 %v23401_v15  ;;  %6823 = vmatpush1.bf16.msra.mxu0 %v23404_v16  ;;  %v23482_v15 = vld [vmem:[%s26247_s1 + $0x2b0] ss:$8 sps:$4 sm:$0xff]   ;;  %v23487_v16 = vld [vmem:[%s26217_s18 + $0x984] ss:$16 sps:$4 sm:$0xff]  }
 0x75d   : > { %6742 = vmatprep.subr.bf16.mxu1 %v23409_v18  ;;  %6824 = vmatprep.subr.bf16.mxu0 %v23412_v50  ;;  %v23485_v18 = vld [vmem:[%s26217_s18 + $0x980] ss:$16 sps:$4 sm:$0xff]  }
 0x75e   : > { %v23488_v50 = vld [vmem:[%s26247_s1 + $0x2c0] ss:$8 sps:$4 sm:$0xff]  }
 0x760   : > { %6743 = vmatpush1.bf16.msra.mxu1 %v23407_v20  ;;  %6825 = vmatpush1.bf16.msra.mxu0 %v23410_v21  ;;  %v23493_v20 = vld [vmem:[%s26217_s18 + $0x9a4] ss:$16 sps:$4 sm:$0xff]  }
 0x761   : > { %8130 = vmatprep.subr.bf16.mxu0 %v23415_v23  ;;  %7242 = vmatprep.subr.bf16.mxu1 %v23418_v27  ;;  %v23496_v21 = vld [vmem:[%s26247_s1 + $0x2d4] ss:$8 sps:$4 sm:$0xff]   ;;  %v23494_v23 = vld [vmem:[%s26247_s1 + $0x2d0] ss:$8 sps:$4 sm:$0xff]  }
 0x762   : > { %v23499_v27 = vld [vmem:[%s26217_s18 + $0x9c4] ss:$16 sps:$4 sm:$0xff]  }
 0x763   : > { %6745 = vmatmul.mubr.bf16.vlgmr.msra.gmra.mrb[24].mxu1 %v5877_v29  ;;  %6827 = vmatmul.mubr.bf16.vlgmr.msra.gmra.mrb[24].mxu0 %v5877_v29  ;;  %v23500_v29 = vld [vmem:[%s26247_s1 + $0x2e0] ss:$8 sps:$4 sm:$0xff]  }
 0x764   : > { %8131 = vmatpush1.bf16.msra.mxu0 %v23413_v19  ;;  %7243 = vmatpush1.bf16.msra.mxu1 %v23416_v28  ;;  %v23497_v19 = vld [vmem:[%s26217_s18 + $0x9c0] ss:$16 sps:$4 sm:$0xff]   ;;  %v23502_v28 = vld [vmem:[%s26247_s1 + $0x2e4] ss:$8 sps:$4 sm:$0xff]  }
 0x765   : > { %8132 = vmatprep.subr.bf16.mxu0 %v23421_v30  ;;  %7244 = vmatprep.subr.bf16.mxu1 %v23424_v31  ;;  %v23505_v30 = vld [vmem:[%s26217_s18 + $0x9e4] ss:$16 sps:$4 sm:$0xff]   ;;  %v23503_v31 = vld [vmem:[%s26217_s18 + $0x9e0] ss:$16 sps:$4 sm:$0xff]  }
 0x766   : > { %8162 = vmatprep.mubr.bf16.mxu0 %v26312_v57 }
 0x768   : > { %8133 = vmatpush1.bf16.msra.mxu0 %v23419_v32  ;;  %7245 = vmatpush1.bf16.msra.mxu1 %v23422_v33  ;;  %v23508_v32 = vld [vmem:[%s26247_s1 + $0x2f4] ss:$8 sps:$4 sm:$0xff]   ;;  %v23506_v33 = vld [vmem:[%s26247_s1 + $0x2f0] ss:$8 sps:$4 sm:$0xff]  }
 0x769   : > { %8134 = vmatprep.subr.bf16.mxu0 %v23427_v34  ;;  %7246 = vmatprep.subr.bf16.mxu1 %v23430_v35  ;;  %v23511_v34 = vld [vmem:[%s26217_s18 + $0xa04] ss:$16 sps:$4 sm:$0xff]   ;;  %v23509_v35 = vld [vmem:[%s26217_s18 + $0xa00] ss:$16 sps:$4 sm:$0xff]  }
 0x76c   : > { %8135 = vmatpush1.bf16.msra.mxu0 %v23425_v36  ;;  %7247 = vmatpush1.bf16.msra.mxu1 %v23428_v37  ;;  %v23514_v36 = vld [vmem:[%s26247_s1 + $0x304] ss:$8 sps:$4 sm:$0xff]   ;;  %v23515_v37 = vld [vmem:[%s26217_s18 + $0xa20] ss:$16 sps:$4 sm:$0xff]  }
 0x76d   : > { %8136 = vmatprep.subr.bf16.mxu0 %v23433_v38  ;;  %7248 = vmatprep.subr.bf16.mxu1 %v23436_v39  ;;  %v23517_v38 = vld [vmem:[%s26217_s18 + $0xa24] ss:$16 sps:$4 sm:$0xff]   ;;  %v23521_v39 = vld [vmem:[%s26217_s18 + $0xa40] ss:$16 sps:$4 sm:$0xff]  }
 0x770   : > { %8137 = vmatpush1.bf16.msra.mxu0 %v23431_v40  ;;  %7249 = vmatpush1.bf16.msra.mxu1 %v23434_v41  ;;  %v23523_v40 = vld [vmem:[%s26217_s18 + $0xa44] ss:$16 sps:$4 sm:$0xff]   ;;  %v23527_v41 = vld [vmem:[%s26217_s18 + $0xa60] ss:$16 sps:$4 sm:$0xff]  }
 0x771   : > { %8138 = vmatprep.subr.bf16.mxu0 %v23439_v42  ;;  %7250 = vmatprep.subr.bf16.mxu1 %v23442_v43  ;;  %v23529_v42 = vld [vmem:[%s26217_s18 + $0xa64] ss:$16 sps:$4 sm:$0xff]   ;;  %v23533_v43 = vld [vmem:[%s26217_s18 + $0xa80] ss:$16 sps:$4 sm:$0xff]  }
 0x774   : > { %8139 = vmatpush1.bf16.msra.mxu0 %v23437_v45  ;;  %7251 = vmatpush1.bf16.msra.mxu1 %v23440_v46  ;;  %v23535_v45 = vld [vmem:[%s26217_s18 + $0xa84] ss:$16 sps:$4 sm:$0xff]   ;;  %v23539_v46 = vld [vmem:[%s26217_s18 + $0xaa0] ss:$16 sps:$4 sm:$0xff]  }
 0x775   : > { %8140 = vmatprep.subr.bf16.mxu0 %v23445_v47  ;;  %7252 = vmatprep.subr.bf16.mxu1 %v23448_v49  ;;  %v23541_v47 = vld [vmem:[%s26217_s18 + $0xaa4] ss:$16 sps:$4 sm:$0xff]   ;;  %v23545_v49 = vld [vmem:[%s26217_s18 + $0xac0] ss:$16 sps:$4 sm:$0xff]  }
 0x778   : > { %8141 = vmatpush1.bf16.msra.mxu0 %v23443_v7  ;;  %7253 = vmatpush1.bf16.msra.mxu1 %v23446_v48  ;;  %v23547_v7 = vld [vmem:[%s26217_s18 + $0xac4] ss:$16 sps:$4 sm:$0xff]   ;;  %v23551_v48 = vld [vmem:[%s26217_s18 + $0xae0] ss:$16 sps:$4 sm:$0xff]  }
 0x779   : > { %8142 = vmatprep.subr.bf16.mxu0 %v23451_v14  ;;  %7254 = vmatprep.subr.bf16.mxu1 %v23454_v51  ;;  %v23553_v14 = vld [vmem:[%s26217_s18 + $0xae4] ss:$16 sps:$4 sm:$0xff]   ;;  %v23557_v51 = vld [vmem:[%s26217_s18 + $0xb00] ss:$16 sps:$4 sm:$0xff]  }
 0x77c   : > { %8143 = vmatpush1.bf16.msra.mxu0 %v23449_v52  ;;  %7255 = vmatpush1.bf16.msra.mxu1 %v23452_v53  ;;  %v23559_v52 = vld [vmem:[%s26217_s18 + $0xb04] ss:$16 sps:$4 sm:$0xff]   ;;  %v23563_v53 = vld [vmem:[%s26217_s18 + $0xb20] ss:$16 sps:$4 sm:$0xff]  }
 0x77d   : > { %8144 = vmatprep.subr.bf16.mxu0 %v23457_v56  ;;  %7256 = vmatprep.subr.bf16.mxu1 %v23460_v58  ;;  %v23565_v56 = vld [vmem:[%s26217_s18 + $0xb24] ss:$16 sps:$4 sm:$0xff]   ;;  %v23569_v58 = vld [vmem:[%s26217_s18 + $0xb40] ss:$16 sps:$4 sm:$0xff]  }
 0x780   : > { %8145 = vmatpush1.bf16.msra.mxu0 %v23455_v59  ;;  %7257 = vmatpush1.bf16.msra.mxu1 %v23458_v61  ;;  %v23571_v59 = vld [vmem:[%s26217_s18 + $0xb44] ss:$16 sps:$4 sm:$0xff]   ;;  %v23575_v61 = vld [vmem:[%s26217_s18 + $0xb60] ss:$16 sps:$4 sm:$0xff]  }
 0x781   : > { %8146 = vmatprep.subr.bf16.mxu0 %v23463_v62  ;;  %7258 = vmatprep.subr.bf16.mxu1 %v23466_v63  ;;  %v23577_v62 = vld [vmem:[%s26217_s18 + $0xb64] ss:$16 sps:$4 sm:$0xff]   ;;  %v23581_v63 = vld [vmem:[%s26217_s18 + $0xb80] ss:$16 sps:$4 sm:$0xff]  }
 0x784   : > { %8147 = vmatpush1.bf16.msra.mxu0 %v23461_v0  ;;  %7259 = vmatpush1.bf16.msra.mxu1 %v23464_v1  ;;  %v23583_v0 = vld [vmem:[%s26217_s18 + $0xb84] ss:$16 sps:$4 sm:$0xff]   ;;  %v23587_v1 = vld [vmem:[%s26217_s18 + $0xba0] ss:$16 sps:$4 sm:$0xff]  }
 0x785   : > { %8148 = vmatprep.subr.bf16.mxu0 %v23469_v2  ;;  %7260 = vmatprep.subr.bf16.mxu1 %v23472_v3  ;;  %v23589_v2 = vld [vmem:[%s26217_s18 + $0xba4] ss:$16 sps:$4 sm:$0xff]   ;;  %v23593_v3 = vld [vmem:[%s26217_s18 + $0xbc0] ss:$16 sps:$4 sm:$0xff]  }
 0x788   : > { %8149 = vmatpush1.bf16.msra.mxu0 %v23467_v44  ;;  %7261 = vmatpush1.bf16.msra.mxu1 %v23470_v4  ;;  %v23595_v44 = vld [vmem:[%s26217_s18 + $0xbc4] ss:$16 sps:$4 sm:$0xff]   ;;  %v23599_v4 = vld [vmem:[%s26217_s18 + $0xbe0] ss:$16 sps:$4 sm:$0xff]  }
 0x789   : > { %8150 = vmatprep.subr.bf16.mxu0 %v23475_v5  ;;  %7262 = vmatprep.subr.bf16.mxu1 %v23478_v6  ;;  %v23601_v5 = vld [vmem:[%s26217_s18 + $0xbe4] ss:$16 sps:$4 sm:$0xff]  }
 0x78a   : > { %v27333_v6 = vld [vmem:[%s26815_s28 + $0x4] sm:$0xf] }
 0x78c   : > { %8151 = vmatpush1.bf16.msra.mxu0 %v23473_v24  ;;  %7263 = vmatpush1.bf16.msra.mxu1 %v23476_v8  ;;  %v6014_v24 = vrot.slane %v27333_v6, %v26487_v25  ;;  %v6018_v8 = vrot.slane %v27333_v6, %v26490_v26 }
 0x78d   : > { %8152 = vmatprep.subr.bf16.mxu0 %v23481_v10  ;;  %7264 = vmatprep.subr.bf16.mxu1 %v23484_v11  ;;  %v6026_v10 = vrot.slane %v27333_v6, %v26564_v55 }
 0x790   : > { %8153 = vmatpush1.bf16.msra.mxu0 %v23479_v12  ;;  %7265 = vmatpush1.bf16.msra.mxu1 %v23482_v15 }
 0x791   : > { %8154 = vmatprep.subr.bf16.mxu0 %v23487_v16  ;;  %7266 = vmatprep.subr.bf16.mxu1 %v23490_v17 }
 0x794   : > { %8155 = vmatpush1.bf16.msra.mxu0 %v23485_v18  ;;  %7267 = vmatpush1.bf16.msra.mxu1 %v23488_v50 }
 0x795   : > { %8156 = vmatprep.subr.bf16.mxu0 %v23493_v20  ;;  %7268 = vmatprep.subr.bf16.mxu1 %v23496_v21 }
 0x798   : > { %8157 = vmatpush1.bf16.msra.mxu0 %v23491_v22  ;;  %7269 = vmatpush1.bf16.msra.mxu1 %v23494_v23 }
 0x799   : > { %8158 = vmatprep.subr.bf16.mxu0 %v23499_v27  ;;  %7270 = vmatprep.subr.bf16.mxu1 %v23502_v28 }
 0x79c   : > { %8159 = vmatpush1.bf16.msra.mxu0 %v23497_v19  ;;  %7271 = vmatpush1.bf16.msra.mxu1 %v23500_v29 }
 0x79d   : > { %8160 = vmatprep.subr.bf16.mxu0 %v23505_v30  ;;  %7272 = vmatprep.subr.bf16.mxu1 %v23508_v32  ;;  %v23512_v30 = vld [vmem:[%s26247_s1 + $0x300] ss:$8 sps:$4 sm:$0xff]   ;;  %v23520_v32 = vld [vmem:[%s26247_s1 + $0x314] ss:$8 sps:$4 sm:$0xff]  }
 0x7a0   : > { %8161 = vmatpush1.bf16.msra.mxu0 %v23503_v31  ;;  %7273 = vmatpush1.bf16.msra.mxu1 %v23506_v33 }
 0x7a1   : > { %8171 = vmatprep.subr.bf16.mxu0 %v23511_v34  ;;  %7283 = vmatprep.subr.bf16.mxu1 %v23514_v36  ;;  %v23518_v34 = vld [vmem:[%s26247_s1 + $0x310] ss:$8 sps:$4 sm:$0xff]   ;;  %v23524_v36 = vld [vmem:[%s26247_s1 + $0x320] ss:$8 sps:$4 sm:$0xff]  }
 0x7a3   : > { %8163 = vmatmul.mubr.bf16.vlgmr.msra.gmra.mrb[28].mxu0 %v26334_v9 }
 0x7a4   : > { %8172 = vmatpush1.bf16.msra.mxu0 %v23509_v35  ;;  %8203 = vmatprep.mubr.bf16.mxu0 %v26319_v60  ;;  %v23526_v35 = vld [vmem:[%s26247_s1 + $0x324] ss:$8 sps:$4 sm:$0xff]  }
 0x7a5   : > { %8173 = vmatprep.subr.bf16.mxu0 %v23517_v38  ;;  %v23530_v38 = vld [vmem:[%s26247_s1 + $0x330] ss:$8 sps:$4 sm:$0xff]  }
 0x7a8   : > { %8174 = vmatpush1.bf16.msra.mxu0 %v23515_v37  ;;  %v23532_v37 = vld [vmem:[%s26247_s1 + $0x334] ss:$8 sps:$4 sm:$0xff]  }
 0x7a9   : > { %8175 = vmatprep.subr.bf16.mxu0 %v23523_v40  ;;  %v23536_v40 = vld [vmem:[%s26247_s1 + $0x340] ss:$8 sps:$4 sm:$0xff]  }
 0x7ac   : > { %8176 = vmatpush1.bf16.msra.mxu0 %v23521_v39  ;;  %v23538_v39 = vld [vmem:[%s26247_s1 + $0x344] ss:$8 sps:$4 sm:$0xff]  }
 0x7ad   : > { %8177 = vmatprep.subr.bf16.mxu0 %v23529_v42  ;;  %v23542_v42 = vld [vmem:[%s26247_s1 + $0x350] ss:$8 sps:$4 sm:$0xff]  }
 0x7b0   : > { %8178 = vmatpush1.bf16.msra.mxu0 %v23527_v41  ;;  %v23544_v41 = vld [vmem:[%s26247_s1 + $0x354] ss:$8 sps:$4 sm:$0xff]  }
 0x7b1   : > { %8179 = vmatprep.subr.bf16.mxu0 %v23535_v45  ;;  %v23548_v45 = vld [vmem:[%s26247_s1 + $0x360] ss:$8 sps:$4 sm:$0xff]  }
 0x7b4   : > { %8180 = vmatpush1.bf16.msra.mxu0 %v23533_v43  ;;  %v23550_v43 = vld [vmem:[%s26247_s1 + $0x364] ss:$8 sps:$4 sm:$0xff]  }
 0x7b5   : > { %8181 = vmatprep.subr.bf16.mxu0 %v23541_v47  ;;  %v23554_v47 = vld [vmem:[%s26247_s1 + $0x370] ss:$8 sps:$4 sm:$0xff]  }
 0x7b8   : > { %8182 = vmatpush1.bf16.msra.mxu0 %v23539_v46  ;;  %v23556_v46 = vld [vmem:[%s26247_s1 + $0x374] ss:$8 sps:$4 sm:$0xff]  }
 0x7b9   : > { %8183 = vmatprep.subr.bf16.mxu0 %v23547_v7  ;;  %v23560_v7 = vld [vmem:[%s26247_s1 + $0x380] ss:$8 sps:$4 sm:$0xff]  }
 0x7bc   : > { %8184 = vmatpush1.bf16.msra.mxu0 %v23545_v49  ;;  %v23562_v49 = vld [vmem:[%s26247_s1 + $0x384] ss:$8 sps:$4 sm:$0xff]  }
 0x7bd   : > { %8185 = vmatprep.subr.bf16.mxu0 %v23553_v14  ;;  %v23566_v14 = vld [vmem:[%s26247_s1 + $0x390] ss:$8 sps:$4 sm:$0xff]  }
 0x7c0   : > { %8186 = vmatpush1.bf16.msra.mxu0 %v23551_v48  ;;  %v23568_v48 = vld [vmem:[%s26247_s1 + $0x394] ss:$8 sps:$4 sm:$0xff]  }
 0x7c1   : > { %8187 = vmatprep.subr.bf16.mxu0 %v23559_v52  ;;  %v23572_v52 = vld [vmem:[%s26247_s1 + $0x3a0] ss:$8 sps:$4 sm:$0xff]  }
 0x7c4   : > { %8188 = vmatpush1.bf16.msra.mxu0 %v23557_v51  ;;  %v23574_v51 = vld [vmem:[%s26247_s1 + $0x3a4] ss:$8 sps:$4 sm:$0xff]  }
 0x7c5   : > { %8189 = vmatprep.subr.bf16.mxu0 %v23565_v56  ;;  %v23578_v56 = vld [vmem:[%s26247_s1 + $0x3b0] ss:$8 sps:$4 sm:$0xff]  }
 0x7c8   : > { %8190 = vmatpush1.bf16.msra.mxu0 %v23563_v53  ;;  %v23580_v53 = vld [vmem:[%s26247_s1 + $0x3b4] ss:$8 sps:$4 sm:$0xff]  }
 0x7c9   : > { %8191 = vmatprep.subr.bf16.mxu0 %v23571_v59  ;;  %v23584_v59 = vld [vmem:[%s26247_s1 + $0x3c0] ss:$8 sps:$4 sm:$0xff]  }
 0x7cc   : > { %8192 = vmatpush1.bf16.msra.mxu0 %v23569_v58  ;;  %v23586_v58 = vld [vmem:[%s26247_s1 + $0x3c4] ss:$8 sps:$4 sm:$0xff]  }
 0x7cd   : > { %8193 = vmatprep.subr.bf16.mxu0 %v23577_v62  ;;  %v23590_v62 = vld [vmem:[%s26247_s1 + $0x3d0] ss:$8 sps:$4 sm:$0xff]  }
 0x7d0   : > { %8194 = vmatpush1.bf16.msra.mxu0 %v23575_v61  ;;  %v23592_v61 = vld [vmem:[%s26247_s1 + $0x3d4] ss:$8 sps:$4 sm:$0xff]  }
 0x7d1   : > { %8195 = vmatprep.subr.bf16.mxu0 %v23583_v0  ;;  %v23598_v0 = vld [vmem:[%s26247_s1 + $0x3e4] ss:$8 sps:$4 sm:$0xff]  }
 0x7d4   : > { %8196 = vmatpush1.bf16.msra.mxu0 %v23581_v63  ;;  %v6022_v63 = vrot.slane %v27333_v6, %v26561_v54  ;;  %v23605_v6 = vld [vmem:[%s26217_s18 + $0x808] ss:$16 sps:$4 sm:$0xff]  }
 0x7d5   : > { %8197 = vmatprep.subr.bf16.mxu0 %v23589_v2 }
 0x7d8   : > { %8198 = vmatpush1.bf16.msra.mxu0 %v23587_v1  ;;  %v23596_v1 = vld [vmem:[%s26247_s1 + $0x3e0] ss:$8 sps:$4 sm:$0xff]  }
 0x7d9   : > { %8199 = vmatprep.subr.bf16.mxu0 %v23595_v44  ;;  %v23602_v44 = vld [vmem:[%s26247_s1 + $0x3f0] ss:$8 sps:$4 sm:$0xff]  }
 0x7dc   : > { %8200 = vmatpush1.bf16.msra.mxu0 %v23593_v3  ;;  %v23604_v3 = vld [vmem:[%s26247_s1 + $0x3f4] ss:$8 sps:$4 sm:$0xff]  }
 0x7dd   : > { %8201 = vmatprep.subr.bf16.mxu0 %v23601_v5  ;;  %v23607_v5 = vld [vmem:[%s26217_s18 + $0x80c] ss:$16 sps:$4 sm:$0xff]  }
 0x7e0   : > { %8202 = vmatpush1.bf16.msra.mxu0 %v23599_v4 }
 0x7e3   : > { %8204 = vmatmul.mubr.bf16.vlgmr.msra.gmra.mrb[28].mxu0 %v26341_v13 }
 0x836   : > { %v6746_v11 = vpop.f32.mrb[24].mxu1  ;;  %v27341_v12 = vpop.f32.mrb[24].mxu0 }
 0x837   : > { %v21871_v15 = vadd.f32 %v6746_v11, %v6014_v24  ;;  %v6748_v16 = vpop.f32.mrb[25].mxu1  ;;  %v6830_v17 = vpop.f32.mrb[25].mxu0  ;;  %v21873_v2 = vadd.f32 %v27341_v12, %v6022_v63  ;;  %v23703_v11 = vld [vmem:[%s26227_s15 + $0x804] ss:$16 sps:$4 sm:$0xff]   ;;  %v23608_v12 = vld [vmem:[%s26217_s18 + $0x828] ss:$16 sps:$4 sm:$0xff]  }
 0x838   : > { %v21872_v18 = vadd.f32 %v6748_v16, %v6018_v8  ;;  %v21874_v50 = vadd.f32 %v6830_v17, %v6026_v10  ;;  %v6750_v20 = vpop.f32.mrb[26].mxu1  ;;  %v6832_v21 = vpop.f32.mrb[26].mxu0  ;;  %v23610_v8 = vld [vmem:[%s26217_s18 + $0x82c] ss:$16 sps:$4 sm:$0xff]   ;;  %v23701_v10 = vld [vmem:[%s26227_s15 + $0x800] ss:$16 sps:$4 sm:$0xff]   ;;  %9094 = vmatprep.subr.bf16.mxu0 %v23703_v11 }
 0x839   : > { %v6835_v22 = vmax.f32 %v21871_v15, 0.0  ;;  %v6751_v23 = vpop.f32.mrb[27].mxu1  ;;  %v6833_v27 = vpop.f32.mrb[27].mxu0  ;;  %v6837_v4 = vmax.f32 %v21873_v2, 0.0  ;;  %v23709_v15 = vld [vmem:[%s26227_s15 + $0x824] ss:$16 sps:$4 sm:$0xff]   ;;  %9095 = vmatpush1.bf16.msra.mxu0 %v23701_v10 }
 0x83a   : > { %v6836_v19 = vmax.f32 %v21872_v18, 0.0  ;;  %v6838_v28 = vmax.f32 %v21874_v50, 0.0  ;;  %v23613_v16 = vld [vmem:[%s26217_s18 + $0x84c] ss:$16 sps:$4 sm:$0xff]   ;;  %v23707_v17 = vld [vmem:[%s26227_s15 + $0x820] ss:$16 sps:$4 sm:$0xff]   ;;  %9096 = vmatprep.subr.bf16.mxu0 %v23709_v15 }
 0x83b   : > { %v6839_v31 = vpack.c.bf16 %v6835_v22, %v6835_v22  ;;  %v6841_v24 = vpack.c.bf16 %v6837_v4, %v6837_v4  ;;  %v23611_v18 = vld [vmem:[%s26217_s18 + $0x848] ss:$16 sps:$4 sm:$0xff]   ;;  %v23715_v50 = vld [vmem:[%s26227_s15 + $0x844] ss:$16 sps:$4 sm:$0xff]   ;;  %v23616_v20 = vld [vmem:[%s26217_s18 + $0x86c] ss:$16 sps:$4 sm:$0xff]  }
 0x83c   : > { %v6840_v29 = vpack.c.bf16 %v6836_v19, %v6836_v19  ;;  %v6842_v33 = vpack.c.bf16 %v6838_v28, %v6838_v28  ;;  %v23713_v21 = vld [vmem:[%s26227_s15 + $0x840] ss:$16 sps:$4 sm:$0xff]   ;;  %v23614_v22 = vld [vmem:[%s26217_s18 + $0x868] ss:$16 sps:$4 sm:$0xff]   ;;  %v23721_v23 = vld [vmem:[%s26227_s15 + $0x864] ss:$16 sps:$4 sm:$0xff]  }
 0x83d   : > { %9097 = vmatpush1.bf16.msra.mxu0 %v23707_v17  ;;  %v23619_v27 = vld [vmem:[%s26217_s18 + $0x88c] ss:$16 sps:$4 sm:$0xff]   ;;  %v23719_v19 = vld [vmem:[%s26227_s15 + $0x860] ss:$16 sps:$4 sm:$0xff]   ;;  %v23617_v28 = vld [vmem:[%s26217_s18 + $0x888] ss:$16 sps:$4 sm:$0xff]  }
 0x83e   : > { %7274 = vmatprep.mubr.bf16.mxu1 %v6840_v29  ;;  %9098 = vmatprep.subr.bf16.mxu0 %v23715_v50  ;;  %v23727_v29 = vld [vmem:[%s26227_s15 + $0x884] ss:$16 sps:$4 sm:$0xff]   ;;  %v23767_v63 = vld [vmem:[%s26227_s15 + $0x960] ss:$16 sps:$4 sm:$0xff]   ;;  %v23646_v2 = vld [vmem:[%s26217_s18 + $0x9ac] ss:$16 sps:$4 sm:$0xff]  }
 0x83f   : > { %7275 = vmatmul.mubr.bf16.vlgmr.msra.gmra.mrb[28].mxu1 %v6839_v31  ;;  %v23725_v31 = vld [vmem:[%s26227_s15 + $0x880] ss:$16 sps:$4 sm:$0xff]   ;;  %v23781_v4 = vld [vmem:[%s26227_s15 + $0x9a4] ss:$16 sps:$4 sm:$0xff]   ;;  %v23650_v10 = vld [vmem:[%s26217_s18 + $0x9e8] ss:$16 sps:$4 sm:$0xff]  }
 0x840   : > { %7284 = vmatpush1.bf16.msra.mxu1 %v23512_v30  ;;  %7315 = vmatprep.mubr.bf16.mxu1 %v6842_v33  ;;  %v23622_v30 = vld [vmem:[%s26217_s18 + $0x8ac] ss:$16 sps:$4 sm:$0xff]   ;;  %v23733_v33 = vld [vmem:[%s26227_s15 + $0x8a4] ss:$16 sps:$4 sm:$0xff]  }
 0x841   : > { %7285 = vmatprep.subr.bf16.mxu1 %v23520_v32  ;;  %9099 = vmatpush1.bf16.msra.mxu0 %v23713_v21  ;;  %v23620_v32 = vld [vmem:[%s26217_s18 + $0x8a8] ss:$16 sps:$4 sm:$0xff]   ;;  %v23655_v11 = vld [vmem:[%s26217_s18 + $0xa0c] ss:$16 sps:$4 sm:$0xff]  }
 0x842   : > { %9100 = vmatprep.subr.bf16.mxu0 %v23721_v23  ;;  %v23658_v15 = vld [vmem:[%s26217_s18 + $0xa2c] ss:$16 sps:$4 sm:$0xff]   ;;  %v23665_v23 = vld [vmem:[%s26217_s18 + $0xa88] ss:$16 sps:$4 sm:$0xff]  }
 0x843   : > { %v23661_v17 = vld [vmem:[%s26217_s18 + $0xa4c] ss:$16 sps:$4 sm:$0xff]  }
 0x844   : > { %7286 = vmatpush1.bf16.msra.mxu1 %v23518_v34  ;;  %v23625_v34 = vld [vmem:[%s26217_s18 + $0x8cc] ss:$16 sps:$4 sm:$0xff]  }
 0x845   : > { %7287 = vmatprep.subr.bf16.mxu1 %v23526_v35  ;;  %9101 = vmatpush1.bf16.msra.mxu0 %v23719_v19  ;;  %v23731_v35 = vld [vmem:[%s26227_s15 + $0x8a0] ss:$16 sps:$4 sm:$0xff]   ;;  %v23664_v50 = vld [vmem:[%s26217_s18 + $0xa6c] ss:$16 sps:$4 sm:$0xff]  }
 0x846   : > { %9102 = vmatprep.subr.bf16.mxu0 %v23727_v29  ;;  %v23667_v21 = vld [vmem:[%s26217_s18 + $0xa8c] ss:$16 sps:$4 sm:$0xff]  }
 0x847   : > { %v23673_v29 = vld [vmem:[%s26217_s18 + $0xacc] ss:$16 sps:$4 sm:$0xff]  }
 0x848   : > { %7288 = vmatpush1.bf16.msra.mxu1 %v23524_v36  ;;  %v23623_v36 = vld [vmem:[%s26217_s18 + $0x8c8] ss:$16 sps:$4 sm:$0xff]  }
 0x849   : > { %7289 = vmatprep.subr.bf16.mxu1 %v23532_v37  ;;  %9103 = vmatpush1.bf16.msra.mxu0 %v23725_v31  ;;  %v23739_v37 = vld [vmem:[%s26227_s15 + $0x8c4] ss:$16 sps:$4 sm:$0xff]  }
 0x84a   : > { %9104 = vmatprep.subr.bf16.mxu0 %v23733_v33  ;;  %v23787_v31 = vld [vmem:[%s26227_s15 + $0x9c4] ss:$16 sps:$4 sm:$0xff]  }
 0x84c   : > { %7290 = vmatpush1.bf16.msra.mxu1 %v23530_v38  ;;  %v23628_v38 = vld [vmem:[%s26217_s18 + $0x8ec] ss:$16 sps:$4 sm:$0xff]  }
 0x84d   : > { %7291 = vmatprep.subr.bf16.mxu1 %v23538_v39  ;;  %9105 = vmatpush1.bf16.msra.mxu0 %v23731_v35  ;;  %v23737_v39 = vld [vmem:[%s26227_s15 + $0x8c0] ss:$16 sps:$4 sm:$0xff]  }
 0x84e   : > { %9106 = vmatprep.subr.bf16.mxu0 %v23739_v37  ;;  %v23785_v35 = vld [vmem:[%s26227_s15 + $0x9c0] ss:$16 sps:$4 sm:$0xff]   ;;  %v23671_v37 = vld [vmem:[%s26217_s18 + $0xac8] ss:$16 sps:$4 sm:$0xff]  }
 0x850   : > { %7292 = vmatpush1.bf16.msra.mxu1 %v23536_v40  ;;  %v23626_v40 = vld [vmem:[%s26217_s18 + $0x8e8] ss:$16 sps:$4 sm:$0xff]  }
 0x851   : > { %7293 = vmatprep.subr.bf16.mxu1 %v23544_v41  ;;  %v23745_v41 = vld [vmem:[%s26227_s15 + $0x8e4] ss:$16 sps:$4 sm:$0xff]   ;;  %9107 = vmatpush1.bf16.msra.mxu0 %v23737_v39 }
 0x852   : > { %9108 = vmatprep.subr.bf16.mxu0 %v23745_v41  ;;  %v23676_v41 = vld [vmem:[%s26217_s18 + $0xaec] ss:$16 sps:$4 sm:$0xff]  }
 0x854   : > { %7294 = vmatpush1.bf16.msra.mxu1 %v23542_v42  ;;  %v23631_v42 = vld [vmem:[%s26217_s18 + $0x90c] ss:$16 sps:$4 sm:$0xff]  }
 0x855   : > { %7295 = vmatprep.subr.bf16.mxu1 %v23550_v43  ;;  %v23743_v43 = vld [vmem:[%s26227_s15 + $0x8e0] ss:$16 sps:$4 sm:$0xff]  }
 0x856   : > { %9109 = vmatpush1.bf16.msra.mxu0 %v23743_v43 }
 0x858   : > { %7296 = vmatpush1.bf16.msra.mxu1 %v23548_v45  ;;  %v23629_v45 = vld [vmem:[%s26217_s18 + $0x908] ss:$16 sps:$4 sm:$0xff]  }
 0x859   : > { %7297 = vmatprep.subr.bf16.mxu1 %v23556_v46  ;;  %v23751_v46 = vld [vmem:[%s26227_s15 + $0x904] ss:$16 sps:$4 sm:$0xff]  }
 0x85a   : > { %9110 = vmatprep.subr.bf16.mxu0 %v23751_v46 }
 0x85c   : > { %7298 = vmatpush1.bf16.msra.mxu1 %v23554_v47  ;;  %v23634_v47 = vld [vmem:[%s26217_s18 + $0x92c] ss:$16 sps:$4 sm:$0xff]  }
 0x85d   : > { %7299 = vmatprep.subr.bf16.mxu1 %v23562_v49  ;;  %v23749_v49 = vld [vmem:[%s26227_s15 + $0x900] ss:$16 sps:$4 sm:$0xff]  }
 0x85e   : > { %9111 = vmatpush1.bf16.msra.mxu0 %v23749_v49 }
 0x860   : > { %7300 = vmatpush1.bf16.msra.mxu1 %v23560_v7  ;;  %v23632_v7 = vld [vmem:[%s26217_s18 + $0x928] ss:$16 sps:$4 sm:$0xff]  }
 0x861   : > { %7301 = vmatprep.subr.bf16.mxu1 %v23568_v48  ;;  %v23757_v48 = vld [vmem:[%s26227_s15 + $0x924] ss:$16 sps:$4 sm:$0xff]  }
 0x862   : > { %9112 = vmatprep.subr.bf16.mxu0 %v23757_v48  ;;  %v23799_v48 = vld [vmem:[%s26227_s15 + $0xa04] ss:$16 sps:$4 sm:$0xff]  }
 0x864   : > { %7302 = vmatpush1.bf16.msra.mxu1 %v23566_v14  ;;  %v23637_v14 = vld [vmem:[%s26217_s18 + $0x94c] ss:$16 sps:$4 sm:$0xff]  }
 0x865   : > { %7303 = vmatprep.subr.bf16.mxu1 %v23574_v51  ;;  %v23755_v51 = vld [vmem:[%s26227_s15 + $0x920] ss:$16 sps:$4 sm:$0xff]  }
 0x866   : > { %9113 = vmatpush1.bf16.msra.mxu0 %v23755_v51  ;;  %v23805_v51 = vld [vmem:[%s26227_s15 + $0xa24] ss:$16 sps:$4 sm:$0xff]  }
 0x868   : > { %7304 = vmatpush1.bf16.msra.mxu1 %v23572_v52  ;;  %v23635_v52 = vld [vmem:[%s26217_s18 + $0x948] ss:$16 sps:$4 sm:$0xff]  }
 0x869   : > { %7305 = vmatprep.subr.bf16.mxu1 %v23580_v53  ;;  %v23763_v53 = vld [vmem:[%s26227_s15 + $0x944] ss:$16 sps:$4 sm:$0xff]  }
 0x86a   : > { %9114 = vmatprep.subr.bf16.mxu0 %v23763_v53  ;;  %v23803_v53 = vld [vmem:[%s26227_s15 + $0xa20] ss:$16 sps:$4 sm:$0xff]  }
 0x86c   : > { %7306 = vmatpush1.bf16.msra.mxu1 %v23578_v56  ;;  %v23640_v56 = vld [vmem:[%s26217_s18 + $0x96c] ss:$16 sps:$4 sm:$0xff]  }
 0x86d   : > { %7307 = vmatprep.subr.bf16.mxu1 %v23586_v58  ;;  %v23761_v58 = vld [vmem:[%s26227_s15 + $0x940] ss:$16 sps:$4 sm:$0xff]  }
 0x86e   : > { %9115 = vmatpush1.bf16.msra.mxu0 %v23761_v58  ;;  %v23811_v58 = vld [vmem:[%s26227_s15 + $0xa44] ss:$16 sps:$4 sm:$0xff]  }
 0x870   : > { %7308 = vmatpush1.bf16.msra.mxu1 %v23584_v59  ;;  %v23638_v59 = vld [vmem:[%s26217_s18 + $0x968] ss:$16 sps:$4 sm:$0xff]  }
 0x871   : > { %7309 = vmatprep.subr.bf16.mxu1 %v23592_v61  ;;  %v23769_v61 = vld [vmem:[%s26227_s15 + $0x964] ss:$16 sps:$4 sm:$0xff]  }
 0x872   : > { %9116 = vmatprep.subr.bf16.mxu0 %v23769_v61  ;;  %v23809_v61 = vld [vmem:[%s26227_s15 + $0xa40] ss:$16 sps:$4 sm:$0xff]  }
 0x873   : > { %9117 = vmatpush1.bf16.msra.mxu0 %v23767_v63  ;;  %v23817_v63 = vld [vmem:[%s26227_s15 + $0xa64] ss:$16 sps:$4 sm:$0xff]  }
 0x874   : > { %7310 = vmatpush1.bf16.msra.mxu1 %v23590_v62  ;;  %v23643_v62 = vld [vmem:[%s26217_s18 + $0x98c] ss:$16 sps:$4 sm:$0xff]  }
 0x875   : > { %7311 = vmatprep.subr.bf16.mxu1 %v23598_v0  ;;  %v23641_v0 = vld [vmem:[%s26217_s18 + $0x988] ss:$16 sps:$4 sm:$0xff]  }
 0x878   : > { %7312 = vmatpush1.bf16.msra.mxu1 %v23596_v1  ;;  %v23775_v1 = vld [vmem:[%s26227_s15 + $0x984] ss:$16 sps:$4 sm:$0xff]  }
 0x879   : > { %7313 = vmatprep.subr.bf16.mxu1 %v23604_v3  ;;  %v23773_v3 = vld [vmem:[%s26227_s15 + $0x980] ss:$16 sps:$4 sm:$0xff]   ;;  %9118 = vmatprep.subr.bf16.mxu0 %v23775_v1 }
 0x87a   : > { %9119 = vmatpush1.bf16.msra.mxu0 %v23773_v3  ;;  %v23815_v1 = vld [vmem:[%s26227_s15 + $0xa60] ss:$16 sps:$4 sm:$0xff]   ;;  %v23823_v3 = vld [vmem:[%s26227_s15 + $0xa84] ss:$16 sps:$4 sm:$0xff]  }
 0x87b   : > { %9120 = vmatprep.subr.bf16.mxu0 %v23781_v4  ;;  %v23821_v4 = vld [vmem:[%s26227_s15 + $0xa80] ss:$16 sps:$4 sm:$0xff]  }
 0x87c   : > { %7314 = vmatpush1.bf16.msra.mxu1 %v23602_v44  ;;  %v23644_v44 = vld [vmem:[%s26217_s18 + $0x9a8] ss:$16 sps:$4 sm:$0xff]  }
 0x87d   : > { %8212 = vmatprep.subr.bf16.mxu1 %v23607_v5  ;;  %v23649_v5 = vld [vmem:[%s26217_s18 + $0x9cc] ss:$16 sps:$4 sm:$0xff]  }
 0x87f   : > { %7316 = vmatmul.mubr.bf16.vlgmr.msra.gmra.mrb[28].mxu1 %v6841_v24  ;;  %v23647_v24 = vld [vmem:[%s26217_s18 + $0x9c8] ss:$16 sps:$4 sm:$0xff]  }
 0x880   : > { %8213 = vmatpush1.bf16.msra.mxu1 %v23605_v6  ;;  %8244 = vmatprep.mubr.bf16.mxu1 %v26312_v57  ;;  %v23779_v6 = vld [vmem:[%s26227_s15 + $0x9a0] ss:$16 sps:$4 sm:$0xff]  }
 0x881   : > { %8214 = vmatprep.subr.bf16.mxu1 %v23610_v8  ;;  %v23652_v8 = vld [vmem:[%s26217_s18 + $0x9ec] ss:$16 sps:$4 sm:$0xff]   ;;  %9121 = vmatpush1.bf16.msra.mxu0 %v23779_v6  ;;  %v23829_v6 = vld [vmem:[%s26227_s15 + $0xaa4] ss:$16 sps:$4 sm:$0xff]  }
 0x882   : > { %9122 = vmatprep.subr.bf16.mxu0 %v23787_v31  ;;  %v23851_v31 = vld [vmem:[%s26227_s15 + $0xb20] ss:$16 sps:$4 sm:$0xff]  }
 0x884   : > { %8215 = vmatpush1.bf16.msra.mxu1 %v23608_v12  ;;  %v23653_v12 = vld [vmem:[%s26217_s18 + $0xa08] ss:$16 sps:$4 sm:$0xff]  }
 0x885   : > { %8216 = vmatprep.subr.bf16.mxu1 %v23613_v16  ;;  %v23656_v16 = vld [vmem:[%s26217_s18 + $0xa28] ss:$16 sps:$4 sm:$0xff]   ;;  %9123 = vmatpush1.bf16.msra.mxu0 %v23785_v35  ;;  %v23857_v35 = vld [vmem:[%s26227_s15 + $0xb40] ss:$16 sps:$4 sm:$0xff]  }
 0x888   : > { %8217 = vmatpush1.bf16.msra.mxu1 %v23611_v18  ;;  %v23659_v18 = vld [vmem:[%s26217_s18 + $0xa48] ss:$16 sps:$4 sm:$0xff]  }
 0x889   : > { %8218 = vmatprep.subr.bf16.mxu1 %v23616_v20  ;;  %v23662_v20 = vld [vmem:[%s26217_s18 + $0xa68] ss:$16 sps:$4 sm:$0xff]  }
 0x88c   : > { %8219 = vmatpush1.bf16.msra.mxu1 %v23614_v22  ;;  %v27450_v22 = vld [vmem:[%s26481_s10 + $0x8] sm:$0xf] }
 0x88d   : > { %8220 = vmatprep.subr.bf16.mxu1 %v23619_v27  ;;  %v23670_v27 = vld [vmem:[%s26217_s18 + $0xaac] ss:$16 sps:$4 sm:$0xff]   ;;  %v7473_v19 = vrot.slane %v27450_v22, %v26487_v25  ;;  %v7477_v33 = vrot.slane %v27450_v22, %v26490_v26 }
 0x890   : > { %8221 = vmatpush1.bf16.msra.mxu1 %v23617_v28  ;;  %v23668_v28 = vld [vmem:[%s26217_s18 + $0xaa8] ss:$16 sps:$4 sm:$0xff]  }
 0x891   : > { %8222 = vmatprep.subr.bf16.mxu1 %v23622_v30 }
 0x894   : > { %8223 = vmatpush1.bf16.msra.mxu1 %v23620_v32 }
 0x895   : > { %8224 = vmatprep.subr.bf16.mxu1 %v23625_v34 }
 0x898   : > { %8225 = vmatpush1.bf16.msra.mxu1 %v23623_v36 }
 0x899   : > { %8226 = vmatprep.subr.bf16.mxu1 %v23628_v38 }
 0x89c   : > { %8227 = vmatpush1.bf16.msra.mxu1 %v23626_v40 }
 0x89d   : > { %8228 = vmatprep.subr.bf16.mxu1 %v23631_v42  ;;  %v23793_v42 = vld [vmem:[%s26227_s15 + $0x9e4] ss:$16 sps:$4 sm:$0xff]  }
 0x89e   : > { %9124 = vmatprep.subr.bf16.mxu0 %v23793_v42  ;;  %v23730_v42 = vld [vmem:[%s26227_s15 + $0x88c] ss:$16 sps:$4 sm:$0xff]  }
 0x8a0   : > { %8229 = vmatpush1.bf16.msra.mxu1 %v23629_v45  ;;  %v23791_v45 = vld [vmem:[%s26227_s15 + $0x9e0] ss:$16 sps:$4 sm:$0xff]  }
 0x8a1   : > { %8230 = vmatprep.subr.bf16.mxu1 %v23634_v47  ;;  %v23674_v47 = vld [vmem:[%s26217_s18 + $0xae8] ss:$16 sps:$4 sm:$0xff]   ;;  %9125 = vmatpush1.bf16.msra.mxu0 %v23791_v45  ;;  %v23877_v45 = vld [vmem:[%s26227_s15 + $0xba4] ss:$16 sps:$4 sm:$0xff]  }
 0x8a2   : > { %9135 = vmatprep.subr.bf16.mxu0 %v23799_v48  ;;  %v23734_v48 = vld [vmem:[%s26227_s15 + $0x8a8] ss:$16 sps:$4 sm:$0xff]  }
 0x8a4   : > { %8231 = vmatpush1.bf16.msra.mxu1 %v23632_v7  ;;  %v23797_v7 = vld [vmem:[%s26227_s15 + $0xa00] ss:$16 sps:$4 sm:$0xff]  }
 0x8a5   : > { %8232 = vmatprep.subr.bf16.mxu1 %v23637_v14  ;;  %v23679_v14 = vld [vmem:[%s26217_s18 + $0xb0c] ss:$16 sps:$4 sm:$0xff]  }
 0x8a8   : > { %8233 = vmatpush1.bf16.msra.mxu1 %v23635_v52  ;;  %v23677_v52 = vld [vmem:[%s26217_s18 + $0xb08] ss:$16 sps:$4 sm:$0xff]  }
 0x8a9   : > { %8234 = vmatprep.subr.bf16.mxu1 %v23640_v56  ;;  %v23682_v56 = vld [vmem:[%s26217_s18 + $0xb2c] ss:$16 sps:$4 sm:$0xff]  }
 0x8ac   : > { %8235 = vmatpush1.bf16.msra.mxu1 %v23638_v59  ;;  %v23680_v59 = vld [vmem:[%s26217_s18 + $0xb28] ss:$16 sps:$4 sm:$0xff]  }
 0x8ad   : > { %8236 = vmatprep.subr.bf16.mxu1 %v23643_v62  ;;  %v23685_v62 = vld [vmem:[%s26217_s18 + $0xb4c] ss:$16 sps:$4 sm:$0xff]  }
 0x8b0   : > { %8237 = vmatpush1.bf16.msra.mxu1 %v23641_v0  ;;  %v23683_v0 = vld [vmem:[%s26217_s18 + $0xb48] ss:$16 sps:$4 sm:$0xff]  }
 0x8b1   : > { %8238 = vmatprep.subr.bf16.mxu1 %v23646_v2  ;;  %v23688_v2 = vld [vmem:[%s26217_s18 + $0xb6c] ss:$16 sps:$4 sm:$0xff]  }
 0x8b4   : > { %8239 = vmatpush1.bf16.msra.mxu1 %v23644_v44  ;;  %v23686_v44 = vld [vmem:[%s26217_s18 + $0xb68] ss:$16 sps:$4 sm:$0xff]  }
 0x8b5   : > { %8240 = vmatprep.subr.bf16.mxu1 %v23649_v5  ;;  %v23691_v5 = vld [vmem:[%s26217_s18 + $0xb8c] ss:$16 sps:$4 sm:$0xff]  }
 0x8b6   : > { %v8205_v30 = vpop.f32.mrb[28].mxu0 }
 0x8b7   : > { %v21877_v32 = vadd.f32 %v8205_v30, %v7473_v19  ;;  %v8207_v34 = vpop.f32.mrb[29].mxu0  ;;  %v23706_v19 = vld [vmem:[%s26227_s15 + $0x80c] ss:$16 sps:$4 sm:$0xff]  }
 0x8b8   : > { %8241 = vmatpush1.bf16.msra.mxu1 %v23647_v24  ;;  %v8209_v36 = vpop.f32.mrb[30].mxu0  ;;  %v21878_v39 = vadd.f32 %v8207_v34, %v7477_v33  ;;  %v23689_v24 = vld [vmem:[%s26217_s18 + $0xb88] ss:$16 sps:$4 sm:$0xff]   ;;  %v23712_v30 = vld [vmem:[%s26227_s15 + $0x82c] ss:$16 sps:$4 sm:$0xff]  }
 0x8b9   : > { %8242 = vmatprep.subr.bf16.mxu1 %v23652_v8  ;;  %v8294_v38 = vmax.f32 %v21877_v32, 0.0  ;;  %v8210_v40 = vpop.f32.mrb[31].mxu0  ;;  %v23827_v8 = vld [vmem:[%s26227_s15 + $0xaa0] ss:$16 sps:$4 sm:$0xff]   ;;  %v23859_v32 = vld [vmem:[%s26227_s15 + $0xb44] ss:$16 sps:$4 sm:$0xff]  }
 0x8ba   : > { %v8295_v43 = vmax.f32 %v21878_v39, 0.0  ;;  %v23710_v33 = vld [vmem:[%s26227_s15 + $0x828] ss:$16 sps:$4 sm:$0xff]   ;;  %v23718_v34 = vld [vmem:[%s26227_s15 + $0x84c] ss:$16 sps:$4 sm:$0xff]  }
 0x8bb   : > { %v27466_v46 = vpack.c.bf16 %v8294_v38, %v8294_v38  ;;  %v23865_v36 = vld [vmem:[%s26227_s15 + $0xb64] ss:$16 sps:$4 sm:$0xff]   ;;  %v23724_v38 = vld [vmem:[%s26227_s15 + $0x86c] ss:$16 sps:$4 sm:$0xff]   ;;  %v23863_v39 = vld [vmem:[%s26227_s15 + $0xb60] ss:$16 sps:$4 sm:$0xff]  }
 0x8bc   : > { %8243 = vmatpush1.bf16.msra.mxu1 %v23650_v10  ;;  %v27469_v49 = vpack.c.bf16 %v8295_v43, %v8295_v43  ;;  %v23694_v10 = vld [vmem:[%s26217_s18 + $0xbac] ss:$16 sps:$4 sm:$0xff]   ;;  %v23871_v40 = vld [vmem:[%s26227_s15 + $0xb84] ss:$16 sps:$4 sm:$0xff]   ;;  %v23869_v43 = vld [vmem:[%s26227_s15 + $0xb80] ss:$16 sps:$4 sm:$0xff]  }
 0x8bd   : > { %8253 = vmatprep.subr.bf16.mxu1 %v23655_v11  ;;  %v23835_v11 = vld [vmem:[%s26227_s15 + $0xac4] ss:$16 sps:$4 sm:$0xff]  }
 0x8be   : > { %9126 = vmatprep.mubr.bf16.mxu0 %v27469_v49 }
 0x8bf   : > { %8245 = vmatmul.mubr.bf16.vlgmr.msra.gmra.mrb[32].mxu1 %v26334_v9  ;;  %9127 = vmatmul.mubr.bf16.vlgmr.msra.gmra.mrb[32].mxu0 %v27466_v46 }
 0x8c0   : > { %8254 = vmatpush1.bf16.msra.mxu1 %v23653_v12  ;;  %8285 = vmatprep.mubr.bf16.mxu1 %v26319_v60  ;;  %v23692_v12 = vld [vmem:[%s26217_s18 + $0xba8] ss:$16 sps:$4 sm:$0xff]  }
 0x8c1   : > { %8255 = vmatprep.subr.bf16.mxu1 %v23658_v15  ;;  %9136 = vmatpush1.bf16.msra.mxu0 %v23797_v7  ;;  %v23833_v15 = vld [vmem:[%s26227_s15 + $0xac0] ss:$16 sps:$4 sm:$0xff]  }
 0x8c2   : > { %9137 = vmatprep.subr.bf16.mxu0 %v23805_v51  ;;  %v23875_v7 = vld [vmem:[%s26227_s15 + $0xba0] ss:$16 sps:$4 sm:$0xff]   ;;  %v23740_v51 = vld [vmem:[%s26227_s15 + $0x8c8] ss:$16 sps:$4 sm:$0xff]  }
 0x8c4   : > { %8256 = vmatpush1.bf16.msra.mxu1 %v23656_v16  ;;  %v23697_v16 = vld [vmem:[%s26217_s18 + $0xbcc] ss:$16 sps:$4 sm:$0xff]  }
 0x8c5   : > { %8257 = vmatprep.subr.bf16.mxu1 %v23661_v17  ;;  %9138 = vmatpush1.bf16.msra.mxu0 %v23803_v53  ;;  %v23841_v17 = vld [vmem:[%s26227_s15 + $0xae4] ss:$16 sps:$4 sm:$0xff]   ;;  %v23746_v53 = vld [vmem:[%s26227_s15 + $0x8e8] ss:$16 sps:$4 sm:$0xff]  }
 0x8c6   : > { %9139 = vmatprep.subr.bf16.mxu0 %v23811_v58  ;;  %v23752_v58 = vld [vmem:[%s26227_s15 + $0x908] ss:$16 sps:$4 sm:$0xff]  }
 0x8c8   : > { %8258 = vmatpush1.bf16.msra.mxu1 %v23659_v18  ;;  %v23695_v18 = vld [vmem:[%s26217_s18 + $0xbc8] ss:$16 sps:$4 sm:$0xff]  }
 0x8c9   : > { %8259 = vmatprep.subr.bf16.mxu1 %v23664_v50  ;;  %9140 = vmatpush1.bf16.msra.mxu0 %v23809_v61  ;;  %v23839_v50 = vld [vmem:[%s26227_s15 + $0xae0] ss:$16 sps:$4 sm:$0xff]   ;;  %v23758_v61 = vld [vmem:[%s26227_s15 + $0x928] ss:$16 sps:$4 sm:$0xff]  }
 0x8ca   : > { %9141 = vmatprep.subr.bf16.mxu0 %v23817_v63  ;;  %v23764_v63 = vld [vmem:[%s26227_s15 + $0x948] ss:$16 sps:$4 sm:$0xff]  }
 0x8cc   : > { %8260 = vmatpush1.bf16.msra.mxu1 %v23662_v20  ;;  %v23700_v20 = vld [vmem:[%s26217_s18 + $0xbec] ss:$16 sps:$4 sm:$0xff]  }
 0x8cd   : > { %8261 = vmatprep.subr.bf16.mxu1 %v23667_v21  ;;  %9142 = vmatpush1.bf16.msra.mxu0 %v23815_v1  ;;  %v23847_v21 = vld [vmem:[%s26227_s15 + $0xb04] ss:$16 sps:$4 sm:$0xff]   ;;  %v23770_v1 = vld [vmem:[%s26227_s15 + $0x968] ss:$16 sps:$4 sm:$0xff]  }
 0x8ce   : > { %9143 = vmatprep.subr.bf16.mxu0 %v23823_v3  ;;  %v23776_v3 = vld [vmem:[%s26227_s15 + $0x988] ss:$16 sps:$4 sm:$0xff]  }
 0x8d0   : > { %8262 = vmatpush1.bf16.msra.mxu1 %v23665_v23  ;;  %v23698_v23 = vld [vmem:[%s26217_s18 + $0xbe8] ss:$16 sps:$4 sm:$0xff]  }
 0x8d1   : > { %8263 = vmatprep.subr.bf16.mxu1 %v23670_v27  ;;  %9144 = vmatpush1.bf16.msra.mxu0 %v23821_v4  ;;  %v23845_v27 = vld [vmem:[%s26227_s15 + $0xb00] ss:$16 sps:$4 sm:$0xff]   ;;  %v23782_v4 = vld [vmem:[%s26227_s15 + $0x9a8] ss:$16 sps:$4 sm:$0xff]  }
 0x8d2   : > { %9145 = vmatprep.subr.bf16.mxu0 %v23829_v6  ;;  %v23788_v6 = vld [vmem:[%s26227_s15 + $0x9c8] ss:$16 sps:$4 sm:$0xff]  }
 0x8d4   : > { %8264 = vmatpush1.bf16.msra.mxu1 %v23668_v28  ;;  %v23853_v28 = vld [vmem:[%s26227_s15 + $0xb24] ss:$16 sps:$4 sm:$0xff]  }
 0x8d5   : > { %8265 = vmatprep.subr.bf16.mxu1 %v23673_v29  ;;  %9146 = vmatpush1.bf16.msra.mxu0 %v23827_v8  ;;  %v23704_v29 = vld [vmem:[%s26227_s15 + $0x808] ss:$16 sps:$4 sm:$0xff]  }
 0x8d6   : > { %9147 = vmatprep.subr.bf16.mxu0 %v23835_v11  ;;  %v23794_v8 = vld [vmem:[%s26227_s15 + $0x9e8] ss:$16 sps:$4 sm:$0xff]  }
 0x8d7   : > { %v23800_v11 = vld [vmem:[%s26227_s15 + $0xa08] ss:$16 sps:$4 sm:$0xff]  }
 0x8d8   : > { %8266 = vmatpush1.bf16.msra.mxu1 %v23671_v37  ;;  %v23716_v37 = vld [vmem:[%s26227_s15 + $0x848] ss:$16 sps:$4 sm:$0xff]  }
 0x8d9   : > { %8267 = vmatprep.subr.bf16.mxu1 %v23676_v41  ;;  %9148 = vmatpush1.bf16.msra.mxu0 %v23833_v15  ;;  %v23722_v41 = vld [vmem:[%s26227_s15 + $0x868] ss:$16 sps:$4 sm:$0xff]  }
 0x8da   : > { %9149 = vmatprep.subr.bf16.mxu0 %v23841_v17  ;;  %v23806_v15 = vld [vmem:[%s26227_s15 + $0xa28] ss:$16 sps:$4 sm:$0xff]  }
 0x8db   : > { %v23812_v17 = vld [vmem:[%s26227_s15 + $0xa48] ss:$16 sps:$4 sm:$0xff]  }
 0x8dc   : > { %8268 = vmatpush1.bf16.msra.mxu1 %v23674_v47  ;;  %v23728_v47 = vld [vmem:[%s26227_s15 + $0x888] ss:$16 sps:$4 sm:$0xff]  }
 0x8dd   : > { %8269 = vmatprep.subr.bf16.mxu1 %v23679_v14  ;;  %9150 = vmatpush1.bf16.msra.mxu0 %v23839_v50  ;;  %v23742_v14 = vld [vmem:[%s26227_s15 + $0x8cc] ss:$16 sps:$4 sm:$0xff]   ;;  %v23818_v50 = vld [vmem:[%s26227_s15 + $0xa68] ss:$16 sps:$4 sm:$0xff]  }
 0x8de   : > { %9151 = vmatprep.subr.bf16.mxu0 %v23847_v21  ;;  %v19052_v21 = vld [vmem:[%s27047_s20 + $0x2] sm:$0x3] }
 0x8e0   : > { %8270 = vmatpush1.bf16.msra.mxu1 %v23677_v52  ;;  %v23748_v52 = vld [vmem:[%s26227_s15 + $0x8ec] ss:$16 sps:$4 sm:$0xff]  }
 0x8e1   : > { %8271 = vmatprep.subr.bf16.mxu1 %v23682_v56  ;;  %9152 = vmatpush1.bf16.msra.mxu0 %v23845_v27  ;;  %v23754_v56 = vld [vmem:[%s26227_s15 + $0x90c] ss:$16 sps:$4 sm:$0xff]   ;;  %v6915_v27 = vrot.slane %v19052_v21, %v26487_v25 }
 0x8e2   : > { %9153 = vmatprep.subr.bf16.mxu0 %v23853_v28  ;;  %v23830_v28 = vld [vmem:[%s26227_s15 + $0xaa8] ss:$16 sps:$4 sm:$0xff]  }
 0x8e4   : > { %8272 = vmatpush1.bf16.msra.mxu1 %v23680_v59  ;;  %v23760_v59 = vld [vmem:[%s26227_s15 + $0x92c] ss:$16 sps:$4 sm:$0xff]  }
 0x8e5   : > { %8273 = vmatprep.subr.bf16.mxu1 %v23685_v62  ;;  %9154 = vmatpush1.bf16.msra.mxu0 %v23851_v31  ;;  %v23766_v62 = vld [vmem:[%s26227_s15 + $0x94c] ss:$16 sps:$4 sm:$0xff]  }
 0x8e6   : > { %9155 = vmatprep.subr.bf16.mxu0 %v23859_v32  ;;  %v23881_v32 = vld [vmem:[%s26227_s15 + $0xbc0] ss:$16 sps:$4 sm:$0xff]  }
 0x8e8   : > { %8274 = vmatpush1.bf16.msra.mxu1 %v23683_v0  ;;  %v23772_v0 = vld [vmem:[%s26227_s15 + $0x96c] ss:$16 sps:$4 sm:$0xff]  }
 0x8e9   : > { %8275 = vmatprep.subr.bf16.mxu1 %v23688_v2  ;;  %9156 = vmatpush1.bf16.msra.mxu0 %v23857_v35  ;;  %v23778_v2 = vld [vmem:[%s26227_s15 + $0x98c] ss:$16 sps:$4 sm:$0xff]  }
 0x8ea   : > { %9157 = vmatprep.subr.bf16.mxu0 %v23865_v36 }
 0x8ec   : > { %8276 = vmatpush1.bf16.msra.mxu1 %v23686_v44  ;;  %v23784_v44 = vld [vmem:[%s26227_s15 + $0x9ac] ss:$16 sps:$4 sm:$0xff]  }
 0x8ed   : > { %8277 = vmatprep.subr.bf16.mxu1 %v23691_v5  ;;  %9158 = vmatpush1.bf16.msra.mxu0 %v23863_v39  ;;  %v23790_v5 = vld [vmem:[%s26227_s15 + $0x9cc] ss:$16 sps:$4 sm:$0xff]  }
 0x8ee   : > { %9159 = vmatprep.subr.bf16.mxu0 %v23871_v40  ;;  %v23844_v39 = vld [vmem:[%s26227_s15 + $0xaec] ss:$16 sps:$4 sm:$0xff]   ;;  %v23889_v40 = vld [vmem:[%s26227_s15 + $0xbe4] ss:$16 sps:$4 sm:$0xff]  }
 0x8f0   : > { %8278 = vmatpush1.bf16.msra.mxu1 %v23689_v24  ;;  %v23796_v24 = vld [vmem:[%s26227_s15 + $0x9ec] ss:$16 sps:$4 sm:$0xff]  }
 0x8f1   : > { %8279 = vmatprep.subr.bf16.mxu1 %v23694_v10  ;;  %9160 = vmatpush1.bf16.msra.mxu0 %v23869_v43  ;;  %v23802_v10 = vld [vmem:[%s26227_s15 + $0xa0c] ss:$16 sps:$4 sm:$0xff]   ;;  %v23842_v43 = vld [vmem:[%s26227_s15 + $0xae8] ss:$16 sps:$4 sm:$0xff]  }
 0x8f2   : > { %9161 = vmatprep.subr.bf16.mxu0 %v23877_v45  ;;  %v23850_v45 = vld [vmem:[%s26227_s15 + $0xb0c] ss:$16 sps:$4 sm:$0xff]  }
 0x8f4   : > { %8280 = vmatpush1.bf16.msra.mxu1 %v23692_v12  ;;  %v23808_v12 = vld [vmem:[%s26227_s15 + $0xa2c] ss:$16 sps:$4 sm:$0xff]  }
 0x8f5   : > { %8281 = vmatprep.subr.bf16.mxu1 %v23697_v16  ;;  %9162 = vmatpush1.bf16.msra.mxu0 %v23875_v7  ;;  %v23814_v16 = vld [vmem:[%s26227_s15 + $0xa4c] ss:$16 sps:$4 sm:$0xff]  }
 0x8f6   : > { %v23856_v7 = vld [vmem:[%s26227_s15 + $0xb2c] ss:$16 sps:$4 sm:$0xff]  }
 0x8f8   : > { %8282 = vmatpush1.bf16.msra.mxu1 %v23695_v18  ;;  %v23820_v18 = vld [vmem:[%s26227_s15 + $0xa6c] ss:$16 sps:$4 sm:$0xff]  }
 0x8f9   : > { %8283 = vmatprep.subr.bf16.mxu1 %v23700_v20  ;;  %v23826_v20 = vld [vmem:[%s26227_s15 + $0xa8c] ss:$16 sps:$4 sm:$0xff]  }
 0x8fc   : > { %8284 = vmatpush1.bf16.msra.mxu1 %v23698_v23  ;;  %v23832_v23 = vld [vmem:[%s26227_s15 + $0xaac] ss:$16 sps:$4 sm:$0xff]  }
 0x8fd   : > { %9176 = vmatprep.subr.bf16.mxu1 %v23706_v19  ;;  %v6919_v19 = vrot.slane %v19052_v21, %v26490_v26  ;;  %v23902_v21 = vld [vmem:[%s26237_s22 + $0x828] ss:$16 sps:$4 sm:$0xff]  }
 0x8ff   : > { %8286 = vmatmul.mubr.bf16.vlgmr.msra.gmra.mrb[32].mxu1 %v26341_v13 }
 0x900   : > { %9177 = vmatpush1.bf16.msra.mxu1 %v23704_v29  ;;  %9208 = vmatprep.mubr.bf16.mxu1 %v27469_v49  ;;  %v23736_v49 = vld [vmem:[%s26227_s15 + $0x8ac] ss:$16 sps:$4 sm:$0xff]  }
 0x901   : > { %9178 = vmatprep.subr.bf16.mxu1 %v23712_v30  ;;  %v23838_v29 = vld [vmem:[%s26227_s15 + $0xacc] ss:$16 sps:$4 sm:$0xff]   ;;  %v23883_v30 = vld [vmem:[%s26227_s15 + $0xbc4] ss:$16 sps:$4 sm:$0xff]  }
 0x902   : > { %9163 = vmatprep.subr.bf16.mxu0 %v23883_v30  ;;  %v23911_v30 = vld [vmem:[%s26237_s22 + $0x860] ss:$16 sps:$4 sm:$0xff]  }
 0x903   : > { %9164 = vmatpush1.bf16.msra.mxu0 %v23881_v32  ;;  %v23919_v32 = vld [vmem:[%s26237_s22 + $0x884] ss:$16 sps:$4 sm:$0xff]  }
 0x904   : > { %9179 = vmatpush1.bf16.msra.mxu1 %v23710_v33  ;;  %9165 = vmatprep.subr.bf16.mxu0 %v23889_v40  ;;  %v23931_v40 = vld [vmem:[%s26237_s22 + $0x8c4] ss:$16 sps:$4 sm:$0xff]  }
 0x905   : > { %9180 = vmatprep.subr.bf16.mxu1 %v23718_v34 }
 0x908   : > { %9181 = vmatpush1.bf16.msra.mxu1 %v23716_v37  ;;  %v23836_v37 = vld [vmem:[%s26227_s15 + $0xac8] ss:$16 sps:$4 sm:$0xff]  }
 0x909   : > { %9182 = vmatprep.subr.bf16.mxu1 %v23724_v38 }
 0x90c   : > { %9183 = vmatpush1.bf16.msra.mxu1 %v23722_v41 }
 0x90d   : > { %9184 = vmatprep.subr.bf16.mxu1 %v23730_v42  ;;  %v23887_v42 = vld [vmem:[%s26227_s15 + $0xbe0] ss:$16 sps:$4 sm:$0xff]  }
 0x90e   : > { %9166 = vmatpush1.bf16.msra.mxu0 %v23887_v42  ;;  %v23929_v42 = vld [vmem:[%s26237_s22 + $0x8c0] ss:$16 sps:$4 sm:$0xff]  }
 0x910   : > { %9185 = vmatpush1.bf16.msra.mxu1 %v23728_v47  ;;  %v23895_v47 = vld [vmem:[%s26237_s22 + $0x804] ss:$16 sps:$4 sm:$0xff]  }
 0x911   : > { %9186 = vmatprep.subr.bf16.mxu1 %v23736_v49  ;;  %v23848_v49 = vld [vmem:[%s26227_s15 + $0xb08] ss:$16 sps:$4 sm:$0xff]   ;;  %10058 = vmatprep.subr.bf16.mxu0 %v23895_v47  ;;  %v23940_v47 = vld [vmem:[%s26237_s22 + $0x8ec] ss:$16 sps:$4 sm:$0xff]  }
 0x914   : > { %9187 = vmatpush1.bf16.msra.mxu1 %v23734_v48  ;;  %v23854_v48 = vld [vmem:[%s26227_s15 + $0xb28] ss:$16 sps:$4 sm:$0xff]  }
 0x915   : > { %9188 = vmatprep.subr.bf16.mxu1 %v23742_v14  ;;  %v23862_v14 = vld [vmem:[%s26227_s15 + $0xb4c] ss:$16 sps:$4 sm:$0xff]  }
 0x918   : > { %9189 = vmatpush1.bf16.msra.mxu1 %v23740_v51  ;;  %v23860_v51 = vld [vmem:[%s26227_s15 + $0xb48] ss:$16 sps:$4 sm:$0xff]  }
 0x919   : > { %9190 = vmatprep.subr.bf16.mxu1 %v23748_v52  ;;  %v23868_v52 = vld [vmem:[%s26227_s15 + $0xb6c] ss:$16 sps:$4 sm:$0xff]  }
 0x91c   : > { %9191 = vmatpush1.bf16.msra.mxu1 %v23746_v53  ;;  %v23866_v53 = vld [vmem:[%s26227_s15 + $0xb68] ss:$16 sps:$4 sm:$0xff]  }
 0x91d   : > { %9192 = vmatprep.subr.bf16.mxu1 %v23754_v56  ;;  %v23874_v56 = vld [vmem:[%s26227_s15 + $0xb8c] ss:$16 sps:$4 sm:$0xff]  }
 0x920   : > { %9193 = vmatpush1.bf16.msra.mxu1 %v23752_v58  ;;  %v23872_v58 = vld [vmem:[%s26227_s15 + $0xb88] ss:$16 sps:$4 sm:$0xff]  }
 0x921   : > { %9194 = vmatprep.subr.bf16.mxu1 %v23760_v59  ;;  %v23880_v59 = vld [vmem:[%s26227_s15 + $0xbac] ss:$16 sps:$4 sm:$0xff]  }
 0x924   : > { %9195 = vmatpush1.bf16.msra.mxu1 %v23758_v61  ;;  %v23878_v61 = vld [vmem:[%s26227_s15 + $0xba8] ss:$16 sps:$4 sm:$0xff]  }
 0x925   : > { %9196 = vmatprep.subr.bf16.mxu1 %v23766_v62  ;;  %v23886_v62 = vld [vmem:[%s26227_s15 + $0xbcc] ss:$16 sps:$4 sm:$0xff]  }
 0x928   : > { %9197 = vmatpush1.bf16.msra.mxu1 %v23764_v63  ;;  %v23884_v63 = vld [vmem:[%s26227_s15 + $0xbc8] ss:$16 sps:$4 sm:$0xff]  }
 0x929   : > { %9198 = vmatprep.subr.bf16.mxu1 %v23772_v0  ;;  %v23892_v0 = vld [vmem:[%s26227_s15 + $0xbec] ss:$16 sps:$4 sm:$0xff]  }
 0x92c   : > { %9199 = vmatpush1.bf16.msra.mxu1 %v23770_v1  ;;  %v23890_v1 = vld [vmem:[%s26227_s15 + $0xbe8] ss:$16 sps:$4 sm:$0xff]  }
 0x92d   : > { %9200 = vmatprep.subr.bf16.mxu1 %v23778_v2  ;;  %v23898_v2 = vld [vmem:[%s26237_s22 + $0x80c] ss:$16 sps:$4 sm:$0xff]  }
 0x930   : > { %9201 = vmatpush1.bf16.msra.mxu1 %v23776_v3  ;;  %v7481_v3 = vrot.slane %v27450_v22, %v26561_v54 }
 0x931   : > { %9202 = vmatprep.subr.bf16.mxu1 %v23784_v44  ;;  %v7485_v44 = vrot.slane %v27450_v22, %v26564_v55  ;;  %v23899_v22 = vld [vmem:[%s26237_s22 + $0x820] ss:$16 sps:$4 sm:$0xff]  }
 0x934   : > { %9203 = vmatpush1.bf16.msra.mxu1 %v23782_v4 }
 0x935   : > { %9204 = vmatprep.subr.bf16.mxu1 %v23790_v5 }
 0x938   : > { %9205 = vmatpush1.bf16.msra.mxu1 %v23788_v6 }
 0x939   : > { %9206 = vmatprep.subr.bf16.mxu1 %v23796_v24 }
 0x93c   : > { %9207 = vmatpush1.bf16.msra.mxu1 %v23794_v8 }
 0x93d   : > { %9217 = vmatprep.subr.bf16.mxu1 %v23802_v10 }
 0x93f   : > { %9209 = vmatmul.mubr.bf16.vlgmr.msra.gmra.mrb[36].mxu1 %v27466_v46  ;;  %v23824_v46 = vld [vmem:[%s26227_s15 + $0xa88] ss:$16 sps:$4 sm:$0xff]  }
 0x940   : > { %9218 = vmatpush1.bf16.msra.mxu1 %v23800_v11 }
 0x941   : > { %9219 = vmatprep.subr.bf16.mxu1 %v23808_v12 }
 0x944   : > { %9220 = vmatpush1.bf16.msra.mxu1 %v23806_v15 }
 0x945   : > { %9221 = vmatprep.subr.bf16.mxu1 %v23814_v16  ;;  %v23893_v16 = vld [vmem:[%s26237_s22 + $0x800] ss:$16 sps:$4 sm:$0xff]  }
 0x948   : > { %9222 = vmatpush1.bf16.msra.mxu1 %v23812_v17  ;;  %v23896_v17 = vld [vmem:[%s26237_s22 + $0x808] ss:$16 sps:$4 sm:$0xff]  }
 0x949   : > { %9223 = vmatprep.subr.bf16.mxu1 %v23820_v18 }
 0x94c   : > { %9224 = vmatpush1.bf16.msra.mxu1 %v23818_v50  ;;  %v23901_v50 = vld [vmem:[%s26237_s22 + $0x824] ss:$16 sps:$4 sm:$0xff]  }
 0x94d   : > { %9225 = vmatprep.subr.bf16.mxu1 %v23826_v20  ;;  %v23904_v20 = vld [vmem:[%s26237_s22 + $0x82c] ss:$16 sps:$4 sm:$0xff]  }
 0x950   : > { %9226 = vmatpush1.bf16.msra.mxu1 %v23824_v46  ;;  %v23907_v46 = vld [vmem:[%s26237_s22 + $0x844] ss:$16 sps:$4 sm:$0xff]  }
 0x951   : > { %9227 = vmatprep.subr.bf16.mxu1 %v23832_v23  ;;  %v23910_v23 = vld [vmem:[%s26237_s22 + $0x84c] ss:$16 sps:$4 sm:$0xff]  }
 0x952   : > { %v7317_v31 = vpop.f32.mrb[28].mxu1 }
 0x953   : > { %v21875_v33 = vadd.f32 %v7317_v31, %v6915_v27  ;;  %v7319_v34 = vpop.f32.mrb[29].mxu1  ;;  %v23905_v27 = vld [vmem:[%s26237_s22 + $0x840] ss:$16 sps:$4 sm:$0xff]   ;;  %v23914_v31 = vld [vmem:[%s26237_s22 + $0x868] ss:$16 sps:$4 sm:$0xff]  }
 0x954   : > { %v21876_v35 = vadd.f32 %v7319_v34, %v6919_v19  ;;  %v7321_v36 = vpop.f32.mrb[30].mxu1  ;;  %9228 = vmatpush1.bf16.msra.mxu1 %v23830_v28  ;;  %v23908_v19 = vld [vmem:[%s26237_s22 + $0x848] ss:$16 sps:$4 sm:$0xff]   ;;  %v23913_v28 = vld [vmem:[%s26237_s22 + $0x864] ss:$16 sps:$4 sm:$0xff]  }
 0x955   : > { %v7322_v38 = vpop.f32.mrb[31].mxu1  ;;  %9229 = vmatprep.subr.bf16.mxu1 %v23838_v29  ;;  %v23916_v29 = vld [vmem:[%s26237_s22 + $0x86c] ss:$16 sps:$4 sm:$0xff]   ;;  %v23917_v34 = vld [vmem:[%s26237_s22 + $0x880] ss:$16 sps:$4 sm:$0xff]  }
 0x956   : > { %v7326_v41 = vcombine.low %v21875_v33, %v21876_v35  ;;  %v23922_v33 = vld [vmem:[%s26237_s22 + $0x88c] ss:$16 sps:$4 sm:$0xff]   ;;  %v23920_v35 = vld [vmem:[%s26237_s22 + $0x888] ss:$16 sps:$4 sm:$0xff]   ;;  %v23925_v36 = vld [vmem:[%s26237_s22 + $0x8a4] ss:$16 sps:$4 sm:$0xff]  }
 0x957   : > { %v23923_v38 = vld [vmem:[%s26237_s22 + $0x8a0] ss:$16 sps:$4 sm:$0xff]  }
 0x958   : > { %19117 = vst.sshfl [vmem:[%s27062_s6 + $0x4] sm:$0x33 pattern:$0x76325410] %v7326_v41  ;;  %9230 = vmatpush1.bf16.msra.mxu1 %v23836_v37  ;;  %v23928_v37 = vld [vmem:[%s26237_s22 + $0x8ac] ss:$16 sps:$4 sm:$0xff]  }
 0x959   : > { %9231 = vmatprep.subr.bf16.mxu1 %v23844_v39  ;;  %v23926_v39 = vld [vmem:[%s26237_s22 + $0x8a8] ss:$16 sps:$4 sm:$0xff]   ;;  %v23934_v41 = vld [vmem:[%s26237_s22 + $0x8cc] ss:$16 sps:$4 sm:$0xff]  }
 0x95c   : > { %9232 = vmatpush1.bf16.msra.mxu1 %v23842_v43  ;;  %v23932_v43 = vld [vmem:[%s26237_s22 + $0x8c8] ss:$16 sps:$4 sm:$0xff]  }
 0x95d   : > { %9233 = vmatprep.subr.bf16.mxu1 %v23850_v45  ;;  %v23937_v45 = vld [vmem:[%s26237_s22 + $0x8e4] ss:$16 sps:$4 sm:$0xff]  }
 0x960   : > { %9234 = vmatpush1.bf16.msra.mxu1 %v23848_v49  ;;  %v23935_v49 = vld [vmem:[%s26237_s22 + $0x8e0] ss:$16 sps:$4 sm:$0xff]  }
 0x961   : > { %9235 = vmatprep.subr.bf16.mxu1 %v23856_v7  ;;  %v23938_v7 = vld [vmem:[%s26237_s22 + $0x8e8] ss:$16 sps:$4 sm:$0xff]  }
 0x964   : > { %9236 = vmatpush1.bf16.msra.mxu1 %v23854_v48  ;;  %v23943_v48 = vld [vmem:[%s26237_s22 + $0x904] ss:$16 sps:$4 sm:$0xff]  }
 0x965   : > { %9237 = vmatprep.subr.bf16.mxu1 %v23862_v14  ;;  %v23946_v14 = vld [vmem:[%s26237_s22 + $0x90c] ss:$16 sps:$4 sm:$0xff]  }
 0x968   : > { %9238 = vmatpush1.bf16.msra.mxu1 %v23860_v51  ;;  %v23941_v51 = vld [vmem:[%s26237_s22 + $0x900] ss:$16 sps:$4 sm:$0xff]  }
 0x969   : > { %9239 = vmatprep.subr.bf16.mxu1 %v23868_v52  ;;  %v23944_v52 = vld [vmem:[%s26237_s22 + $0x908] ss:$16 sps:$4 sm:$0xff]  }
 0x96c   : > { %9240 = vmatpush1.bf16.msra.mxu1 %v23866_v53  ;;  %v23949_v53 = vld [vmem:[%s26237_s22 + $0x924] ss:$16 sps:$4 sm:$0xff]  }
 0x96d   : > { %9241 = vmatprep.subr.bf16.mxu1 %v23874_v56  ;;  %v23952_v56 = vld [vmem:[%s26237_s22 + $0x92c] ss:$16 sps:$4 sm:$0xff]  }
 0x970   : > { %9242 = vmatpush1.bf16.msra.mxu1 %v23872_v58  ;;  %v23947_v58 = vld [vmem:[%s26237_s22 + $0x920] ss:$16 sps:$4 sm:$0xff]  }
 0x971   : > { %9243 = vmatprep.subr.bf16.mxu1 %v23880_v59  ;;  %v23950_v59 = vld [vmem:[%s26237_s22 + $0x928] ss:$16 sps:$4 sm:$0xff]  }
 0x974   : > { %9244 = vmatpush1.bf16.msra.mxu1 %v23878_v61  ;;  %v23955_v61 = vld [vmem:[%s26237_s22 + $0x944] ss:$16 sps:$4 sm:$0xff]  }
 0x975   : > { %9245 = vmatprep.subr.bf16.mxu1 %v23886_v62  ;;  %v23958_v62 = vld [vmem:[%s26237_s22 + $0x94c] ss:$16 sps:$4 sm:$0xff]  }
 0x978   : > { %9246 = vmatpush1.bf16.msra.mxu1 %v23884_v63  ;;  %v23953_v63 = vld [vmem:[%s26237_s22 + $0x940] ss:$16 sps:$4 sm:$0xff]  }
 0x979   : > { %9247 = vmatprep.subr.bf16.mxu1 %v23892_v0  ;;  %v23956_v0 = vld [vmem:[%s26237_s22 + $0x948] ss:$16 sps:$4 sm:$0xff]  }
 0x97c   : > { %9248 = vmatpush1.bf16.msra.mxu1 %v23890_v1  ;;  %v23961_v1 = vld [vmem:[%s26237_s22 + $0x964] ss:$16 sps:$4 sm:$0xff]  }
 0x97d   : > { %10140 = vmatprep.subr.bf16.mxu1 %v23898_v2  ;;  %v23964_v2 = vld [vmem:[%s26237_s22 + $0x96c] ss:$16 sps:$4 sm:$0xff]  }
 0x9d2   : > { %v8287_v4 = vpop.f32.mrb[32].mxu1 }
 0x9d3   : > { %v21879_v5 = vadd.f32 %v8287_v4, %v7481_v3  ;;  %v8289_v6 = vpop.f32.mrb[33].mxu1  ;;  %v23959_v3 = vld [vmem:[%s26237_s22 + $0x960] ss:$16 sps:$4 sm:$0xff]   ;;  %v23967_v4 = vld [vmem:[%s26237_s22 + $0x984] ss:$16 sps:$4 sm:$0xff]  }
 0x9d4   : > { %v21880_v24 = vadd.f32 %v8289_v6, %v7485_v44  ;;  %v8291_v8 = vpop.f32.mrb[34].mxu1  ;;  %v23962_v44 = vld [vmem:[%s26237_s22 + $0x968] ss:$16 sps:$4 sm:$0xff]   ;;  %v23965_v6 = vld [vmem:[%s26237_s22 + $0x980] ss:$16 sps:$4 sm:$0xff]  }
 0x9d5   : > { %v8296_v10 = vmax.f32 %v21879_v5, 0.0  ;;  %v8292_v11 = vpop.f32.mrb[35].mxu1  ;;  %v23970_v5 = vld [vmem:[%s26237_s22 + $0x98c] ss:$16 sps:$4 sm:$0xff]   ;;  %v23973_v8 = vld [vmem:[%s26237_s22 + $0x9a4] ss:$16 sps:$4 sm:$0xff]  }
 0x9d6   : > { %v8297_v12 = vmax.f32 %v21880_v24, 0.0  ;;  %v23968_v24 = vld [vmem:[%s26237_s22 + $0x988] ss:$16 sps:$4 sm:$0xff]   ;;  %v23971_v11 = vld [vmem:[%s26237_s22 + $0x9a0] ss:$16 sps:$4 sm:$0xff]  }
 0x9d7   : > { %v8300_v18 = vpack.c.bf16 %v8296_v10, %v8296_v10  ;;  %v23976_v10 = vld [vmem:[%s26237_s22 + $0x9ac] ss:$16 sps:$4 sm:$0xff]  }
 0x9d8   : > { %v8301_v15 = vpack.c.bf16 %v8297_v12, %v8297_v12  ;;  %v23974_v12 = vld [vmem:[%s26237_s22 + $0x9a8] ss:$16 sps:$4 sm:$0xff]  }
 0x9da   : > { %9167 = vmatprep.mubr.bf16.mxu0 %v8301_v15  ;;  %9249 = vmatprep.mubr.bf16.mxu1 %v8301_v15  ;;  %v23979_v15 = vld [vmem:[%s26237_s22 + $0x9c4] ss:$16 sps:$4 sm:$0xff]  }
 0x9db   : > { %9168 = vmatmul.mubr.bf16.vlgmr.msra.gmra.mrb[32].mxu0 %v8300_v18  ;;  %9250 = vmatmul.mubr.bf16.vlgmr.msra.gmra.mrb[36].mxu1 %v8300_v18  ;;  %v23980_v18 = vld [vmem:[%s26237_s22 + $0x9c8] ss:$16 sps:$4 sm:$0xff]  }
 0x9dc   : > { %10059 = vmatpush1.bf16.msra.mxu0 %v23893_v16  ;;  %10141 = vmatpush1.bf16.msra.mxu1 %v23896_v17  ;;  %v23982_v16 = vld [vmem:[%s26237_s22 + $0x9cc] ss:$16 sps:$4 sm:$0xff]   ;;  %v23977_v17 = vld [vmem:[%s26237_s22 + $0x9c0] ss:$16 sps:$4 sm:$0xff]  }
 0x9dd   : > { %10060 = vmatprep.subr.bf16.mxu0 %v23901_v50  ;;  %10142 = vmatprep.subr.bf16.mxu1 %v23904_v20  ;;  %v23985_v50 = vld [vmem:[%s26237_s22 + $0x9e4] ss:$16 sps:$4 sm:$0xff]   ;;  %v23988_v20 = vld [vmem:[%s26237_s22 + $0x9ec] ss:$16 sps:$4 sm:$0xff]  }
 0x9e0   : > { %10061 = vmatpush1.bf16.msra.mxu0 %v23899_v22  ;;  %10143 = vmatpush1.bf16.msra.mxu1 %v23902_v21  ;;  %v23983_v22 = vld [vmem:[%s26237_s22 + $0x9e0] ss:$16 sps:$4 sm:$0xff]   ;;  %v23986_v21 = vld [vmem:[%s26237_s22 + $0x9e8] ss:$16 sps:$4 sm:$0xff]  }
 0x9e1   : > { %10062 = vmatprep.subr.bf16.mxu0 %v23907_v46  ;;  %10144 = vmatprep.subr.bf16.mxu1 %v23910_v23  ;;  %v23991_v46 = vld [vmem:[%s26237_s22 + $0xa04] ss:$16 sps:$4 sm:$0xff]   ;;  %v23994_v23 = vld [vmem:[%s26237_s22 + $0xa0c] ss:$16 sps:$4 sm:$0xff]  }
 0x9e4   : > { %10063 = vmatpush1.bf16.msra.mxu0 %v23905_v27  ;;  %10145 = vmatpush1.bf16.msra.mxu1 %v23908_v19  ;;  %v27663_v27 = vld [vmem:[%s26635_s14 + $0x8] sm:$0xf] }
 0x9e5   : > { %10064 = vmatprep.subr.bf16.mxu0 %v23913_v28  ;;  %10146 = vmatprep.subr.bf16.mxu1 %v23916_v29  ;;  %v8437_v19 = vrot.slane %v27663_v27, %v26487_v25  ;;  %v8441_v28 = vrot.slane %v27663_v27, %v26490_v26  ;;  %v8449_v29 = vrot.slane %v27663_v27, %v26564_v55 }
 0x9e8   : > { %10065 = vmatpush1.bf16.msra.mxu0 %v23911_v30  ;;  %10147 = vmatpush1.bf16.msra.mxu1 %v23914_v31 }
 0x9e9   : > { %10066 = vmatprep.subr.bf16.mxu0 %v23919_v32  ;;  %10148 = vmatprep.subr.bf16.mxu1 %v23922_v33 }
 0x9ec   : > { %10067 = vmatpush1.bf16.msra.mxu0 %v23917_v34  ;;  %10149 = vmatpush1.bf16.msra.mxu1 %v23920_v35 }
 0x9ed   : > { %10068 = vmatprep.subr.bf16.mxu0 %v23925_v36  ;;  %10150 = vmatprep.subr.bf16.mxu1 %v23928_v37 }
 0x9f0   : > { %10069 = vmatpush1.bf16.msra.mxu0 %v23923_v38  ;;  %10151 = vmatpush1.bf16.msra.mxu1 %v23926_v39 }
 0x9f1   : > { %10070 = vmatprep.subr.bf16.mxu0 %v23931_v40  ;;  %10152 = vmatprep.subr.bf16.mxu1 %v23934_v41 }
 0x9f4   : > { %10071 = vmatpush1.bf16.msra.mxu0 %v23929_v42  ;;  %10153 = vmatpush1.bf16.msra.mxu1 %v23932_v43 }
 0x9f5   : > { %10072 = vmatprep.subr.bf16.mxu0 %v23937_v45  ;;  %10154 = vmatprep.subr.bf16.mxu1 %v23940_v47  ;;  %v23989_v47 = vld [vmem:[%s26237_s22 + $0xa00] ss:$16 sps:$4 sm:$0xff]  }
 0x9f8   : > { %10073 = vmatpush1.bf16.msra.mxu0 %v23935_v49  ;;  %10155 = vmatpush1.bf16.msra.mxu1 %v23938_v7  ;;  %v23992_v49 = vld [vmem:[%s26237_s22 + $0xa08] ss:$16 sps:$4 sm:$0xff]  }
 0x9f9   : > { %10074 = vmatprep.subr.bf16.mxu0 %v23943_v48  ;;  %10156 = vmatprep.subr.bf16.mxu1 %v23946_v14  ;;  %v23997_v48 = vld [vmem:[%s26237_s22 + $0xa24] ss:$16 sps:$4 sm:$0xff]   ;;  %v24000_v14 = vld [vmem:[%s26237_s22 + $0xa2c] ss:$16 sps:$4 sm:$0xff]  }
 0x9fc   : > { %10075 = vmatpush1.bf16.msra.mxu0 %v23941_v51  ;;  %10157 = vmatpush1.bf16.msra.mxu1 %v23944_v52  ;;  %v23995_v52 = vld [vmem:[%s26237_s22 + $0xa20] ss:$16 sps:$4 sm:$0xff]  }
 0x9fd   : > { %10076 = vmatprep.subr.bf16.mxu0 %v23949_v53  ;;  %10158 = vmatprep.subr.bf16.mxu1 %v23952_v56  ;;  %v23998_v53 = vld [vmem:[%s26237_s22 + $0xa28] ss:$16 sps:$4 sm:$0xff]   ;;  %v24003_v56 = vld [vmem:[%s26237_s22 + $0xa44] ss:$16 sps:$4 sm:$0xff]  }
 0xa00   : > { %10077 = vmatpush1.bf16.msra.mxu0 %v23947_v58  ;;  %10159 = vmatpush1.bf16.msra.mxu1 %v23950_v59  ;;  %v24006_v58 = vld [vmem:[%s26237_s22 + $0xa4c] ss:$16 sps:$4 sm:$0xff]   ;;  %v24001_v59 = vld [vmem:[%s26237_s22 + $0xa40] ss:$16 sps:$4 sm:$0xff]  }
 0xa01   : > { %10078 = vmatprep.subr.bf16.mxu0 %v23955_v61  ;;  %10160 = vmatprep.subr.bf16.mxu1 %v23958_v62  ;;  %v24004_v61 = vld [vmem:[%s26237_s22 + $0xa48] ss:$16 sps:$4 sm:$0xff]   ;;  %v24009_v62 = vld [vmem:[%s26237_s22 + $0xa64] ss:$16 sps:$4 sm:$0xff]  }
 0xa04   : > { %10079 = vmatpush1.bf16.msra.mxu0 %v23953_v63  ;;  %10161 = vmatpush1.bf16.msra.mxu1 %v23956_v0  ;;  %v24012_v63 = vld [vmem:[%s26237_s22 + $0xa6c] ss:$16 sps:$4 sm:$0xff]   ;;  %v24007_v0 = vld [vmem:[%s26237_s22 + $0xa60] ss:$16 sps:$4 sm:$0xff]  }
 0xa05   : > { %10080 = vmatprep.subr.bf16.mxu0 %v23961_v1  ;;  %10162 = vmatprep.subr.bf16.mxu1 %v23964_v2  ;;  %v24010_v1 = vld [vmem:[%s26237_s22 + $0xa68] ss:$16 sps:$4 sm:$0xff]   ;;  %v24015_v2 = vld [vmem:[%s26237_s22 + $0xa84] ss:$16 sps:$4 sm:$0xff]  }
 0xa08   : > { %10081 = vmatpush1.bf16.msra.mxu0 %v23959_v3  ;;  %10163 = vmatpush1.bf16.msra.mxu1 %v23962_v44  ;;  %v24018_v3 = vld [vmem:[%s26237_s22 + $0xa8c] ss:$16 sps:$4 sm:$0xff]   ;;  %v24013_v44 = vld [vmem:[%s26237_s22 + $0xa80] ss:$16 sps:$4 sm:$0xff]  }
 0xa09   : > { %10082 = vmatprep.subr.bf16.mxu0 %v23967_v4  ;;  %10164 = vmatprep.subr.bf16.mxu1 %v23970_v5  ;;  %v24016_v4 = vld [vmem:[%s26237_s22 + $0xa88] ss:$16 sps:$4 sm:$0xff]   ;;  %v24021_v5 = vld [vmem:[%s26237_s22 + $0xaa4] ss:$16 sps:$4 sm:$0xff]  }
 0xa0c   : > { %10083 = vmatpush1.bf16.msra.mxu0 %v23965_v6  ;;  %10165 = vmatpush1.bf16.msra.mxu1 %v23968_v24  ;;  %v24024_v6 = vld [vmem:[%s26237_s22 + $0xaac] ss:$16 sps:$4 sm:$0xff]   ;;  %v24019_v24 = vld [vmem:[%s26237_s22 + $0xaa0] ss:$16 sps:$4 sm:$0xff]  }
 0xa0d   : > { %10084 = vmatprep.subr.bf16.mxu0 %v23973_v8  ;;  %10166 = vmatprep.subr.bf16.mxu1 %v23976_v10  ;;  %v24022_v8 = vld [vmem:[%s26237_s22 + $0xaa8] ss:$16 sps:$4 sm:$0xff]   ;;  %v24027_v10 = vld [vmem:[%s26237_s22 + $0xac4] ss:$16 sps:$4 sm:$0xff]  }
 0xa10   : > { %10085 = vmatpush1.bf16.msra.mxu0 %v23971_v11  ;;  %10167 = vmatpush1.bf16.msra.mxu1 %v23974_v12  ;;  %v24030_v11 = vld [vmem:[%s26237_s22 + $0xacc] ss:$16 sps:$4 sm:$0xff]   ;;  %v24025_v12 = vld [vmem:[%s26237_s22 + $0xac0] ss:$16 sps:$4 sm:$0xff]  }
 0xa11   : > { %10086 = vmatprep.subr.bf16.mxu0 %v23979_v15  ;;  %10168 = vmatprep.subr.bf16.mxu1 %v23982_v16  ;;  %v24028_v15 = vld [vmem:[%s26237_s22 + $0xac8] ss:$16 sps:$4 sm:$0xff]   ;;  %v24033_v16 = vld [vmem:[%s26237_s22 + $0xae4] ss:$16 sps:$4 sm:$0xff]  }
 0xa14   : > { %10087 = vmatpush1.bf16.msra.mxu0 %v23977_v17  ;;  %10169 = vmatpush1.bf16.msra.mxu1 %v23980_v18  ;;  %v24036_v17 = vld [vmem:[%s26237_s22 + $0xaec] ss:$16 sps:$4 sm:$0xff]   ;;  %v24031_v18 = vld [vmem:[%s26237_s22 + $0xae0] ss:$16 sps:$4 sm:$0xff]  }
 0xa15   : > { %10088 = vmatprep.subr.bf16.mxu0 %v23985_v50  ;;  %10170 = vmatprep.subr.bf16.mxu1 %v23988_v20  ;;  %v24034_v50 = vld [vmem:[%s26237_s22 + $0xae8] ss:$16 sps:$4 sm:$0xff]   ;;  %v24039_v20 = vld [vmem:[%s26237_s22 + $0xb04] ss:$16 sps:$4 sm:$0xff]  }
 0xa18   : > { %10089 = vmatpush1.bf16.msra.mxu0 %v23983_v22  ;;  %10171 = vmatpush1.bf16.msra.mxu1 %v23986_v21  ;;  %v24042_v22 = vld [vmem:[%s26237_s22 + $0xb0c] ss:$16 sps:$4 sm:$0xff]   ;;  %v24037_v21 = vld [vmem:[%s26237_s22 + $0xb00] ss:$16 sps:$4 sm:$0xff]  }
 0xa19   : > { %10099 = vmatprep.subr.bf16.mxu0 %v23991_v46  ;;  %10181 = vmatprep.subr.bf16.mxu1 %v23994_v23  ;;  %v24040_v46 = vld [vmem:[%s26237_s22 + $0xb08] ss:$16 sps:$4 sm:$0xff]   ;;  %v24045_v23 = vld [vmem:[%s26237_s22 + $0xb24] ss:$16 sps:$4 sm:$0xff]  }
 0xaae   : > { %v9169_v30 = vpop.f32.mrb[32].mxu0  ;;  %v27671_v31 = vpop.f32.mrb[36].mxu1 }
 0xaaf   : > { %v21881_v32 = vadd.f32 %v9169_v30, %v8437_v19  ;;  %v9171_v33 = vpop.f32.mrb[33].mxu0  ;;  %v9253_v34 = vpop.f32.mrb[37].mxu1  ;;  %v24048_v19 = vld [vmem:[%s26237_s22 + $0xb2c] ss:$16 sps:$4 sm:$0xff]   ;;  %v24051_v30 = vld [vmem:[%s26237_s22 + $0xb44] ss:$16 sps:$4 sm:$0xff]  }
 0xab0   : > { %v21882_v35 = vadd.f32 %v9171_v33, %v8441_v28  ;;  %v21884_v36 = vadd.f32 %v9253_v34, %v8449_v29  ;;  %v9173_v37 = vpop.f32.mrb[34].mxu0  ;;  %v9255_v38 = vpop.f32.mrb[38].mxu1  ;;  %v24043_v28 = vld [vmem:[%s26237_s22 + $0xb20] ss:$16 sps:$4 sm:$0xff]   ;;  %v24046_v29 = vld [vmem:[%s26237_s22 + $0xb28] ss:$16 sps:$4 sm:$0xff]  }
 0xab1   : > { %v9258_v39 = vmax.f32 %v21881_v32, 0.0  ;;  %v9174_v40 = vpop.f32.mrb[35].mxu0  ;;  %v9256_v41 = vpop.f32.mrb[39].mxu1  ;;  %v24054_v32 = vld [vmem:[%s26237_s22 + $0xb4c] ss:$16 sps:$4 sm:$0xff]  }
 0xab2   : > { %v9259_v42 = vmax.f32 %v21882_v35, 0.0  ;;  %v9261_v43 = vmax.f32 %v21884_v36, 0.0  ;;  %v24049_v33 = vld [vmem:[%s26237_s22 + $0xb40] ss:$16 sps:$4 sm:$0xff]   ;;  %v24052_v34 = vld [vmem:[%s26237_s22 + $0xb48] ss:$16 sps:$4 sm:$0xff]  }
 0xab3   : > { %v9262_v7 = vpack.c.bf16 %v9258_v39, %v9258_v39  ;;  %v24057_v35 = vld [vmem:[%s26237_s22 + $0xb64] ss:$16 sps:$4 sm:$0xff]   ;;  %v24060_v36 = vld [vmem:[%s26237_s22 + $0xb6c] ss:$16 sps:$4 sm:$0xff]   ;;  %v24055_v37 = vld [vmem:[%s26237_s22 + $0xb60] ss:$16 sps:$4 sm:$0xff]  }
 0xab4   : > { %v9263_v45 = vpack.c.bf16 %v9259_v42, %v9259_v42  ;;  %v9265_v51 = vpack.c.bf16 %v9261_v43, %v9261_v43  ;;  %v24058_v38 = vld [vmem:[%s26237_s22 + $0xb68] ss:$16 sps:$4 sm:$0xff]   ;;  %v24063_v39 = vld [vmem:[%s26237_s22 + $0xb84] ss:$16 sps:$4 sm:$0xff]   ;;  %v24066_v40 = vld [vmem:[%s26237_s22 + $0xb8c] ss:$16 sps:$4 sm:$0xff]  }
 0xab5   : > { %v24061_v41 = vld [vmem:[%s26237_s22 + $0xb80] ss:$16 sps:$4 sm:$0xff]   ;;  %v24064_v42 = vld [vmem:[%s26237_s22 + $0xb88] ss:$16 sps:$4 sm:$0xff]   ;;  %v24069_v43 = vld [vmem:[%s26237_s22 + $0xba4] ss:$16 sps:$4 sm:$0xff]  }
 0xab6   : > { %10090 = vmatprep.mubr.bf16.mxu0 %v9263_v45  ;;  %10172 = vmatprep.mubr.bf16.mxu1 %v9263_v45  ;;  %v24072_v45 = vld [vmem:[%s26237_s22 + $0xbac] ss:$16 sps:$4 sm:$0xff]  }
 0xab7   : > { %10091 = vmatmul.mubr.bf16.vlgmr.msra.gmra.mrb[36].mxu0 %v9262_v7  ;;  %10173 = vmatmul.mubr.bf16.vlgmr.msra.gmra.mrb[40].mxu1 %v9262_v7  ;;  %v8445_v7 = vrot.slane %v27663_v27, %v26561_v54  ;;  %v24084_v27 = vld [vmem:[%s26237_s22 + $0xbec] ss:$16 sps:$4 sm:$0xff]  }
 0xab8   : > { %10100 = vmatpush1.bf16.msra.mxu0 %v23989_v47  ;;  %10182 = vmatpush1.bf16.msra.mxu1 %v23992_v49  ;;  %v24067_v47 = vld [vmem:[%s26237_s22 + $0xba0] ss:$16 sps:$4 sm:$0xff]   ;;  %v24070_v49 = vld [vmem:[%s26237_s22 + $0xba8] ss:$16 sps:$4 sm:$0xff]  }
 0xab9   : > { %10131 = vmatprep.mubr.bf16.mxu0 %v9265_v51  ;;  %10213 = vmatprep.mubr.bf16.mxu1 %v9265_v51  ;;  %v24073_v51 = vld [vmem:[%s26237_s22 + $0xbc0] ss:$16 sps:$4 sm:$0xff]  }
 0xaba   : > { %10101 = vmatprep.subr.bf16.mxu0 %v23997_v48  ;;  %10183 = vmatprep.subr.bf16.mxu1 %v24000_v14  ;;  %v24075_v48 = vld [vmem:[%s26237_s22 + $0xbc4] ss:$16 sps:$4 sm:$0xff]   ;;  %v24078_v14 = vld [vmem:[%s26237_s22 + $0xbcc] ss:$16 sps:$4 sm:$0xff]  }
 0xabc   : > { %10102 = vmatpush1.bf16.msra.mxu0 %v23995_v52  ;;  %10184 = vmatpush1.bf16.msra.mxu1 %v23998_v53  ;;  %v24076_v52 = vld [vmem:[%s26237_s22 + $0xbc8] ss:$16 sps:$4 sm:$0xff]   ;;  %v21883_v53 = vadd.f32 %v27671_v31, %v8445_v7  ;;  %v24085_v31 = vld [vmem:[%s26217_s18 + $0xc00] ss:$16 sps:$4 sm:$0xff]   ;;  %v24153_v7 = vld [vmem:[%s26217_s18 + $0xd64] ss:$16 sps:$4 sm:$0xff]  }
 0xabd   : > { %10103 = vmatprep.subr.bf16.mxu0 %v24003_v56  ;;  %10185 = vmatprep.subr.bf16.mxu1 %v24006_v58  ;;  %v24081_v56 = vld [vmem:[%s26237_s22 + $0xbe4] ss:$16 sps:$4 sm:$0xff]   ;;  %v24079_v58 = vld [vmem:[%s26237_s22 + $0xbe0] ss:$16 sps:$4 sm:$0xff]  }
 0xac0   : > { %10104 = vmatpush1.bf16.msra.mxu0 %v24001_v59  ;;  %10186 = vmatpush1.bf16.msra.mxu1 %v24004_v61  ;;  %v24082_v59 = vld [vmem:[%s26237_s22 + $0xbe8] ss:$16 sps:$4 sm:$0xff]   ;;  %v9260_v61 = vmax.f32 %v21883_v53, 0.0  ;;  %v24162_v53 = vld [vmem:[%s26247_s1 + $0x4c4] ss:$8 sps:$4 sm:$0xff]  }
 0xac1   : > { %10105 = vmatprep.subr.bf16.mxu0 %v24009_v62  ;;  %10187 = vmatprep.subr.bf16.mxu1 %v24012_v63  ;;  %v24087_v62 = vld [vmem:[%s26217_s18 + $0xc04] ss:$16 sps:$4 sm:$0xff]  }
 0xac2   : > { %v24090_v63 = vld [vmem:[%s26247_s1 + $0x404] ss:$8 sps:$4 sm:$0xff]  }
 0xac4   : > { %10106 = vmatpush1.bf16.msra.mxu0 %v24007_v0  ;;  %10188 = vmatpush1.bf16.msra.mxu1 %v24010_v1  ;;  %v24088_v0 = vld [vmem:[%s26247_s1 + $0x400] ss:$8 sps:$4 sm:$0xff]   ;;  %v9264_v1 = vpack.c.bf16 %v9260_v61, %v9260_v61 }
 0xac5   : > { %10107 = vmatprep.subr.bf16.mxu0 %v24015_v2  ;;  %10189 = vmatprep.subr.bf16.mxu1 %v24018_v3  ;;  %v24093_v2 = vld [vmem:[%s26217_s18 + $0xc24] ss:$16 sps:$4 sm:$0xff]   ;;  %v24163_v61 = vld [vmem:[%s26217_s18 + $0xda0] ss:$16 sps:$4 sm:$0xff]  }
 0xac6   : > { %v24096_v3 = vld [vmem:[%s26247_s1 + $0x414] ss:$8 sps:$4 sm:$0xff]  }
 0xac8   : > { %10108 = vmatpush1.bf16.msra.mxu0 %v24013_v44  ;;  %10190 = vmatpush1.bf16.msra.mxu1 %v24016_v4  ;;  %v24091_v44 = vld [vmem:[%s26217_s18 + $0xc20] ss:$16 sps:$4 sm:$0xff]  }
 0xac9   : > { %10109 = vmatprep.subr.bf16.mxu0 %v24021_v5  ;;  %10191 = vmatprep.subr.bf16.mxu1 %v24024_v6  ;;  %v24094_v4 = vld [vmem:[%s26247_s1 + $0x410] ss:$8 sps:$4 sm:$0xff]   ;;  %v24099_v5 = vld [vmem:[%s26217_s18 + $0xc44] ss:$16 sps:$4 sm:$0xff]  }
 0xaca   : > { %v24102_v6 = vld [vmem:[%s26247_s1 + $0x424] ss:$8 sps:$4 sm:$0xff]  }
 0xacc   : > { %10110 = vmatpush1.bf16.msra.mxu0 %v24019_v24  ;;  %10192 = vmatpush1.bf16.msra.mxu1 %v24022_v8  ;;  %v24097_v24 = vld [vmem:[%s26217_s18 + $0xc40] ss:$16 sps:$4 sm:$0xff]  }
 0xacd   : > { %10111 = vmatprep.subr.bf16.mxu0 %v24027_v10  ;;  %10193 = vmatprep.subr.bf16.mxu1 %v24030_v11  ;;  %v24100_v8 = vld [vmem:[%s26247_s1 + $0x420] ss:$8 sps:$4 sm:$0xff]   ;;  %v24105_v10 = vld [vmem:[%s26217_s18 + $0xc64] ss:$16 sps:$4 sm:$0xff]  }
 0xace   : > { %v24108_v11 = vld [vmem:[%s26247_s1 + $0x434] ss:$8 sps:$4 sm:$0xff]  }
 0xad0   : > { %10112 = vmatpush1.bf16.msra.mxu0 %v24025_v12  ;;  %10194 = vmatpush1.bf16.msra.mxu1 %v24028_v15  ;;  %v24103_v12 = vld [vmem:[%s26217_s18 + $0xc60] ss:$16 sps:$4 sm:$0xff]  }
 0xad1   : > { %10113 = vmatprep.subr.bf16.mxu0 %v24033_v16  ;;  %10195 = vmatprep.subr.bf16.mxu1 %v24036_v17  ;;  %v24106_v15 = vld [vmem:[%s26247_s1 + $0x430] ss:$8 sps:$4 sm:$0xff]   ;;  %v24111_v16 = vld [vmem:[%s26217_s18 + $0xc84] ss:$16 sps:$4 sm:$0xff]  }
 0xad2   : > { %v24114_v17 = vld [vmem:[%s26247_s1 + $0x444] ss:$8 sps:$4 sm:$0xff]  }
 0xad4   : > { %10114 = vmatpush1.bf16.msra.mxu0 %v24031_v18  ;;  %10196 = vmatpush1.bf16.msra.mxu1 %v24034_v50  ;;  %v24109_v18 = vld [vmem:[%s26217_s18 + $0xc80] ss:$16 sps:$4 sm:$0xff]  }
 0xad5   : > { %10115 = vmatprep.subr.bf16.mxu0 %v24039_v20  ;;  %10197 = vmatprep.subr.bf16.mxu1 %v24042_v22  ;;  %v24112_v50 = vld [vmem:[%s26247_s1 + $0x440] ss:$8 sps:$4 sm:$0xff]   ;;  %v24117_v20 = vld [vmem:[%s26217_s18 + $0xca4] ss:$16 sps:$4 sm:$0xff]  }
 0xad6   : > { %v24120_v22 = vld [vmem:[%s26247_s1 + $0x454] ss:$8 sps:$4 sm:$0xff]  }
 0xad8   : > { %10116 = vmatpush1.bf16.msra.mxu0 %v24037_v21  ;;  %10198 = vmatpush1.bf16.msra.mxu1 %v24040_v46  ;;  %v24115_v21 = vld [vmem:[%s26217_s18 + $0xca0] ss:$16 sps:$4 sm:$0xff]  }
 0xad9   : > { %10117 = vmatprep.subr.bf16.mxu0 %v24045_v23  ;;  %10199 = vmatprep.subr.bf16.mxu1 %v24048_v19  ;;  %v24118_v46 = vld [vmem:[%s26247_s1 + $0x450] ss:$8 sps:$4 sm:$0xff]   ;;  %v24123_v23 = vld [vmem:[%s26217_s18 + $0xcc4] ss:$16 sps:$4 sm:$0xff]  }
 0xada   : > { %v24126_v19 = vld [vmem:[%s26247_s1 + $0x464] ss:$8 sps:$4 sm:$0xff]  }
 0xadc   : > { %10118 = vmatpush1.bf16.msra.mxu0 %v24043_v28  ;;  %10200 = vmatpush1.bf16.msra.mxu1 %v24046_v29  ;;  %v24121_v28 = vld [vmem:[%s26217_s18 + $0xcc0] ss:$16 sps:$4 sm:$0xff]  }
 0xadd   : > { %10119 = vmatprep.subr.bf16.mxu0 %v24051_v30  ;;  %10201 = vmatprep.subr.bf16.mxu1 %v24054_v32  ;;  %v24124_v29 = vld [vmem:[%s26247_s1 + $0x460] ss:$8 sps:$4 sm:$0xff]   ;;  %v24129_v30 = vld [vmem:[%s26217_s18 + $0xce4] ss:$16 sps:$4 sm:$0xff]  }
 0xade   : > { %v24132_v32 = vld [vmem:[%s26247_s1 + $0x474] ss:$8 sps:$4 sm:$0xff]  }
 0xae0   : > { %10120 = vmatpush1.bf16.msra.mxu0 %v24049_v33  ;;  %10202 = vmatpush1.bf16.msra.mxu1 %v24052_v34  ;;  %v24127_v33 = vld [vmem:[%s26217_s18 + $0xce0] ss:$16 sps:$4 sm:$0xff]  }
 0xae1   : > { %10121 = vmatprep.subr.bf16.mxu0 %v24057_v35  ;;  %10203 = vmatprep.subr.bf16.mxu1 %v24060_v36  ;;  %v24130_v34 = vld [vmem:[%s26247_s1 + $0x470] ss:$8 sps:$4 sm:$0xff]   ;;  %v24135_v35 = vld [vmem:[%s26217_s18 + $0xd04] ss:$16 sps:$4 sm:$0xff]  }
 0xae2   : > { %v24138_v36 = vld [vmem:[%s26247_s1 + $0x484] ss:$8 sps:$4 sm:$0xff]  }
 0xae4   : > { %10122 = vmatpush1.bf16.msra.mxu0 %v24055_v37  ;;  %10204 = vmatpush1.bf16.msra.mxu1 %v24058_v38  ;;  %v24133_v37 = vld [vmem:[%s26217_s18 + $0xd00] ss:$16 sps:$4 sm:$0xff]  }
 0xae5   : > { %10123 = vmatprep.subr.bf16.mxu0 %v24063_v39  ;;  %10205 = vmatprep.subr.bf16.mxu1 %v24066_v40  ;;  %v24136_v38 = vld [vmem:[%s26247_s1 + $0x480] ss:$8 sps:$4 sm:$0xff]   ;;  %v24141_v39 = vld [vmem:[%s26217_s18 + $0xd24] ss:$16 sps:$4 sm:$0xff]  }
 0xae6   : > { %v24144_v40 = vld [vmem:[%s26247_s1 + $0x494] ss:$8 sps:$4 sm:$0xff]  }
 0xae8   : > { %10124 = vmatpush1.bf16.msra.mxu0 %v24061_v41  ;;  %10206 = vmatpush1.bf16.msra.mxu1 %v24064_v42  ;;  %v24139_v41 = vld [vmem:[%s26217_s18 + $0xd20] ss:$16 sps:$4 sm:$0xff]  }
 0xae9   : > { %10125 = vmatprep.subr.bf16.mxu0 %v24069_v43  ;;  %10207 = vmatprep.subr.bf16.mxu1 %v24072_v45  ;;  %v24142_v42 = vld [vmem:[%s26247_s1 + $0x490] ss:$8 sps:$4 sm:$0xff]   ;;  %v24147_v43 = vld [vmem:[%s26217_s18 + $0xd44] ss:$16 sps:$4 sm:$0xff]  }
 0xaea   : > { %v24150_v45 = vld [vmem:[%s26247_s1 + $0x4a4] ss:$8 sps:$4 sm:$0xff]  }
 0xaec   : > { %10126 = vmatpush1.bf16.msra.mxu0 %v24067_v47  ;;  %10208 = vmatpush1.bf16.msra.mxu1 %v24070_v49  ;;  %v24145_v47 = vld [vmem:[%s26217_s18 + $0xd40] ss:$16 sps:$4 sm:$0xff]  }
 0xaed   : > { %10127 = vmatprep.subr.bf16.mxu0 %v24075_v48  ;;  %10209 = vmatprep.subr.bf16.mxu1 %v24078_v14  ;;  %v24148_v49 = vld [vmem:[%s26247_s1 + $0x4a0] ss:$8 sps:$4 sm:$0xff]   ;;  %v24156_v48 = vld [vmem:[%s26247_s1 + $0x4b4] ss:$8 sps:$4 sm:$0xff]  }
 0xaee   : > { %v24151_v14 = vld [vmem:[%s26217_s18 + $0xd60] ss:$16 sps:$4 sm:$0xff]  }
 0xaf0   : > { %10128 = vmatpush1.bf16.msra.mxu0 %v24073_v51  ;;  %10210 = vmatpush1.bf16.msra.mxu1 %v24076_v52  ;;  %v24154_v51 = vld [vmem:[%s26247_s1 + $0x4b0] ss:$8 sps:$4 sm:$0xff]   ;;  %v24159_v52 = vld [vmem:[%s26217_s18 + $0xd84] ss:$16 sps:$4 sm:$0xff]  }
 0xaf1   : > { %10129 = vmatprep.subr.bf16.mxu0 %v24081_v56  ;;  %10211 = vmatprep.subr.bf16.mxu1 %v24084_v27  ;;  %v24157_v56 = vld [vmem:[%s26217_s18 + $0xd80] ss:$16 sps:$4 sm:$0xff]  }
 0xaf2   : > { %v24160_v27 = vld [vmem:[%s26247_s1 + $0x4c0] ss:$8 sps:$4 sm:$0xff]  }
 0xaf4   : > { %10130 = vmatpush1.bf16.msra.mxu0 %v24079_v58  ;;  %10212 = vmatpush1.bf16.msra.mxu1 %v24082_v59  ;;  %v24165_v58 = vld [vmem:[%s26217_s18 + $0xda4] ss:$16 sps:$4 sm:$0xff]  }
 0xaf5   : > { %11517 = vmatprep.subr.bf16.mxu1 %v24087_v62  ;;  %10629 = vmatprep.subr.bf16.mxu0 %v24090_v63  ;;  %v24168_v59 = vld [vmem:[%s26247_s1 + $0x4d4] ss:$8 sps:$4 sm:$0xff]   ;;  %v24166_v62 = vld [vmem:[%s26247_s1 + $0x4d0] ss:$8 sps:$4 sm:$0xff]  }
 0xaf6   : > { %v24171_v63 = vld [vmem:[%s26217_s18 + $0xdc4] ss:$16 sps:$4 sm:$0xff]  }
 0xaf7   : > { %10132 = vmatmul.mubr.bf16.vlgmr.msra.gmra.mrb[36].mxu0 %v9264_v1  ;;  %10214 = vmatmul.mubr.bf16.vlgmr.msra.gmra.mrb[40].mxu1 %v9264_v1  ;;  %v24172_v1 = vld [vmem:[%s26247_s1 + $0x4e0] ss:$8 sps:$4 sm:$0xff]  }
 0xaf8   : > { %11518 = vmatpush1.bf16.msra.mxu1 %v24085_v31  ;;  %10630 = vmatpush1.bf16.msra.mxu0 %v24088_v0  ;;  %v24169_v31 = vld [vmem:[%s26217_s18 + $0xdc0] ss:$16 sps:$4 sm:$0xff]   ;;  %v24174_v0 = vld [vmem:[%s26247_s1 + $0x4e4] ss:$8 sps:$4 sm:$0xff]  }
 0xaf9   : > { %11519 = vmatprep.subr.bf16.mxu1 %v24093_v2  ;;  %10631 = vmatprep.subr.bf16.mxu0 %v24096_v3  ;;  %v24177_v2 = vld [vmem:[%s26217_s18 + $0xde4] ss:$16 sps:$4 sm:$0xff]   ;;  %v24175_v3 = vld [vmem:[%s26217_s18 + $0xde0] ss:$16 sps:$4 sm:$0xff]  }
 0xafa   : > { %11549 = vmatprep.mubr.bf16.mxu1 %v26312_v57 }
 0xafc   : > { %11520 = vmatpush1.bf16.msra.mxu1 %v24091_v44  ;;  %10632 = vmatpush1.bf16.msra.mxu0 %v24094_v4  ;;  %v24180_v44 = vld [vmem:[%s26247_s1 + $0x4f4] ss:$8 sps:$4 sm:$0xff]   ;;  %v24178_v4 = vld [vmem:[%s26247_s1 + $0x4f0] ss:$8 sps:$4 sm:$0xff]  }
 0xafd   : > { %11521 = vmatprep.subr.bf16.mxu1 %v24099_v5  ;;  %10633 = vmatprep.subr.bf16.mxu0 %v24102_v6  ;;  %v24183_v5 = vld [vmem:[%s26217_s18 + $0xe04] ss:$16 sps:$4 sm:$0xff]   ;;  %v24181_v6 = vld [vmem:[%s26217_s18 + $0xe00] ss:$16 sps:$4 sm:$0xff]  }
 0xb00   : > { %11522 = vmatpush1.bf16.msra.mxu1 %v24097_v24  ;;  %10634 = vmatpush1.bf16.msra.mxu0 %v24100_v8  ;;  %v24186_v24 = vld [vmem:[%s26247_s1 + $0x504] ss:$8 sps:$4 sm:$0xff]   ;;  %v24187_v8 = vld [vmem:[%s26217_s18 + $0xe20] ss:$16 sps:$4 sm:$0xff]  }
 0xb01   : > { %11523 = vmatprep.subr.bf16.mxu1 %v24105_v10  ;;  %10635 = vmatprep.subr.bf16.mxu0 %v24108_v11  ;;  %v24189_v10 = vld [vmem:[%s26217_s18 + $0xe24] ss:$16 sps:$4 sm:$0xff]   ;;  %v24193_v11 = vld [vmem:[%s26217_s18 + $0xe40] ss:$16 sps:$4 sm:$0xff]  }
 0xb04   : > { %11524 = vmatpush1.bf16.msra.mxu1 %v24103_v12  ;;  %10636 = vmatpush1.bf16.msra.mxu0 %v24106_v15  ;;  %v24195_v12 = vld [vmem:[%s26217_s18 + $0xe44] ss:$16 sps:$4 sm:$0xff]   ;;  %v24199_v15 = vld [vmem:[%s26217_s18 + $0xe60] ss:$16 sps:$4 sm:$0xff]  }
 0xb05   : > { %11525 = vmatprep.subr.bf16.mxu1 %v24111_v16  ;;  %10637 = vmatprep.subr.bf16.mxu0 %v24114_v17  ;;  %v24201_v16 = vld [vmem:[%s26217_s18 + $0xe64] ss:$16 sps:$4 sm:$0xff]   ;;  %v24205_v17 = vld [vmem:[%s26217_s18 + $0xe80] ss:$16 sps:$4 sm:$0xff]  }
 0xb08   : > { %11526 = vmatpush1.bf16.msra.mxu1 %v24109_v18  ;;  %10638 = vmatpush1.bf16.msra.mxu0 %v24112_v50  ;;  %v24207_v18 = vld [vmem:[%s26217_s18 + $0xe84] ss:$16 sps:$4 sm:$0xff]   ;;  %v24211_v50 = vld [vmem:[%s26217_s18 + $0xea0] ss:$16 sps:$4 sm:$0xff]  }
 0xb09   : > { %11527 = vmatprep.subr.bf16.mxu1 %v24117_v20  ;;  %10639 = vmatprep.subr.bf16.mxu0 %v24120_v22  ;;  %v24213_v20 = vld [vmem:[%s26217_s18 + $0xea4] ss:$16 sps:$4 sm:$0xff]   ;;  %v24217_v22 = vld [vmem:[%s26217_s18 + $0xec0] ss:$16 sps:$4 sm:$0xff]  }
 0xb0c   : > { %11528 = vmatpush1.bf16.msra.mxu1 %v24115_v21  ;;  %10640 = vmatpush1.bf16.msra.mxu0 %v24118_v46  ;;  %v24219_v21 = vld [vmem:[%s26217_s18 + $0xec4] ss:$16 sps:$4 sm:$0xff]   ;;  %v24223_v46 = vld [vmem:[%s26217_s18 + $0xee0] ss:$16 sps:$4 sm:$0xff]  }
 0xb0d   : > { %11529 = vmatprep.subr.bf16.mxu1 %v24123_v23  ;;  %10641 = vmatprep.subr.bf16.mxu0 %v24126_v19  ;;  %v24225_v23 = vld [vmem:[%s26217_s18 + $0xee4] ss:$16 sps:$4 sm:$0xff]   ;;  %v24229_v19 = vld [vmem:[%s26217_s18 + $0xf00] ss:$16 sps:$4 sm:$0xff]  }
 0xb10   : > { %11530 = vmatpush1.bf16.msra.mxu1 %v24121_v28  ;;  %10642 = vmatpush1.bf16.msra.mxu0 %v24124_v29  ;;  %v24231_v28 = vld [vmem:[%s26217_s18 + $0xf04] ss:$16 sps:$4 sm:$0xff]   ;;  %v24235_v29 = vld [vmem:[%s26217_s18 + $0xf20] ss:$16 sps:$4 sm:$0xff]  }
 0xb11   : > { %11531 = vmatprep.subr.bf16.mxu1 %v24129_v30  ;;  %10643 = vmatprep.subr.bf16.mxu0 %v24132_v32  ;;  %v24237_v30 = vld [vmem:[%s26217_s18 + $0xf24] ss:$16 sps:$4 sm:$0xff]   ;;  %v24241_v32 = vld [vmem:[%s26217_s18 + $0xf40] ss:$16 sps:$4 sm:$0xff]  }
 0xb14   : > { %11532 = vmatpush1.bf16.msra.mxu1 %v24127_v33  ;;  %10644 = vmatpush1.bf16.msra.mxu0 %v24130_v34  ;;  %v24243_v33 = vld [vmem:[%s26217_s18 + $0xf44] ss:$16 sps:$4 sm:$0xff]   ;;  %v24247_v34 = vld [vmem:[%s26217_s18 + $0xf60] ss:$16 sps:$4 sm:$0xff]  }
 0xb15   : > { %11533 = vmatprep.subr.bf16.mxu1 %v24135_v35  ;;  %10645 = vmatprep.subr.bf16.mxu0 %v24138_v36  ;;  %v24249_v35 = vld [vmem:[%s26217_s18 + $0xf64] ss:$16 sps:$4 sm:$0xff]   ;;  %v24253_v36 = vld [vmem:[%s26217_s18 + $0xf80] ss:$16 sps:$4 sm:$0xff]  }
 0xb18   : > { %11534 = vmatpush1.bf16.msra.mxu1 %v24133_v37  ;;  %10646 = vmatpush1.bf16.msra.mxu0 %v24136_v38  ;;  %v24255_v37 = vld [vmem:[%s26217_s18 + $0xf84] ss:$16 sps:$4 sm:$0xff]   ;;  %v24259_v38 = vld [vmem:[%s26217_s18 + $0xfa0] ss:$16 sps:$4 sm:$0xff]  }
 0xb19   : > { %11535 = vmatprep.subr.bf16.mxu1 %v24141_v39  ;;  %10647 = vmatprep.subr.bf16.mxu0 %v24144_v40  ;;  %v24261_v39 = vld [vmem:[%s26217_s18 + $0xfa4] ss:$16 sps:$4 sm:$0xff]   ;;  %v24265_v40 = vld [vmem:[%s26217_s18 + $0xfc0] ss:$16 sps:$4 sm:$0xff]  }
 0xb1c   : > { %11536 = vmatpush1.bf16.msra.mxu1 %v24139_v41  ;;  %10648 = vmatpush1.bf16.msra.mxu0 %v24142_v42  ;;  %v24267_v41 = vld [vmem:[%s26217_s18 + $0xfc4] ss:$16 sps:$4 sm:$0xff]   ;;  %v24271_v42 = vld [vmem:[%s26217_s18 + $0xfe0] ss:$16 sps:$4 sm:$0xff]  }
 0xb1d   : > { %11537 = vmatprep.subr.bf16.mxu1 %v24147_v43  ;;  %10649 = vmatprep.subr.bf16.mxu0 %v24150_v45  ;;  %v24273_v43 = vld [vmem:[%s26217_s18 + $0xfe4] ss:$16 sps:$4 sm:$0xff]   ;;  %v27840_v45 = vld [vmem:[%s26815_s28 + $0x8] sm:$0xf] }
 0xb20   : > { %11538 = vmatpush1.bf16.msra.mxu1 %v24145_v47  ;;  %10650 = vmatpush1.bf16.msra.mxu0 %v24148_v49  ;;  %v9401_v47 = vrot.slane %v27840_v45, %v26487_v25  ;;  %v9405_v49 = vrot.slane %v27840_v45, %v26490_v26 }
 0xb21   : > { %11539 = vmatprep.subr.bf16.mxu1 %v24153_v7  ;;  %10651 = vmatprep.subr.bf16.mxu0 %v24156_v48  ;;  %v9413_v7 = vrot.slane %v27840_v45, %v26564_v55 }
 0xb24   : > { %11540 = vmatpush1.bf16.msra.mxu1 %v24151_v14  ;;  %10652 = vmatpush1.bf16.msra.mxu0 %v24154_v51 }
 0xb25   : > { %11541 = vmatprep.subr.bf16.mxu1 %v24159_v52  ;;  %10653 = vmatprep.subr.bf16.mxu0 %v24162_v53 }
 0xb28   : > { %11542 = vmatpush1.bf16.msra.mxu1 %v24157_v56  ;;  %10654 = vmatpush1.bf16.msra.mxu0 %v24160_v27 }
 0xb29   : > { %11543 = vmatprep.subr.bf16.mxu1 %v24165_v58  ;;  %10655 = vmatprep.subr.bf16.mxu0 %v24168_v59 }
 0xb2c   : > { %11544 = vmatpush1.bf16.msra.mxu1 %v24163_v61  ;;  %10656 = vmatpush1.bf16.msra.mxu0 %v24166_v62 }
 0xb2d   : > { %11545 = vmatprep.subr.bf16.mxu1 %v24171_v63  ;;  %10657 = vmatprep.subr.bf16.mxu0 %v24174_v0 }
 0xb30   : > { %11546 = vmatpush1.bf16.msra.mxu1 %v24169_v31  ;;  %10658 = vmatpush1.bf16.msra.mxu0 %v24172_v1 }
 0xb31   : > { %11547 = vmatprep.subr.bf16.mxu1 %v24177_v2  ;;  %10659 = vmatprep.subr.bf16.mxu0 %v24180_v44  ;;  %v24184_v2 = vld [vmem:[%s26247_s1 + $0x500] ss:$8 sps:$4 sm:$0xff]   ;;  %v24192_v44 = vld [vmem:[%s26247_s1 + $0x514] ss:$8 sps:$4 sm:$0xff]  }
 0xb34   : > { %11548 = vmatpush1.bf16.msra.mxu1 %v24175_v3  ;;  %10660 = vmatpush1.bf16.msra.mxu0 %v24178_v4 }
 0xb35   : > { %11558 = vmatprep.subr.bf16.mxu1 %v24183_v5  ;;  %10670 = vmatprep.subr.bf16.mxu0 %v24186_v24  ;;  %v24190_v5 = vld [vmem:[%s26247_s1 + $0x510] ss:$8 sps:$4 sm:$0xff]   ;;  %v24196_v24 = vld [vmem:[%s26247_s1 + $0x520] ss:$8 sps:$4 sm:$0xff]  }
 0xb37   : > { %11550 = vmatmul.mubr.bf16.vlgmr.msra.gmra.mrb[44].mxu1 %v26334_v9 }
 0xb38   : > { %11559 = vmatpush1.bf16.msra.mxu1 %v24181_v6  ;;  %11590 = vmatprep.mubr.bf16.mxu1 %v26319_v60  ;;  %v24198_v6 = vld [vmem:[%s26247_s1 + $0x524] ss:$8 sps:$4 sm:$0xff]  }
 0xb39   : > { %11560 = vmatprep.subr.bf16.mxu1 %v24189_v10  ;;  %v24202_v10 = vld [vmem:[%s26247_s1 + $0x530] ss:$8 sps:$4 sm:$0xff]  }
 0xb3c   : > { %11561 = vmatpush1.bf16.msra.mxu1 %v24187_v8  ;;  %v24204_v8 = vld [vmem:[%s26247_s1 + $0x534] ss:$8 sps:$4 sm:$0xff]  }
 0xb3d   : > { %11562 = vmatprep.subr.bf16.mxu1 %v24195_v12  ;;  %v24208_v12 = vld [vmem:[%s26247_s1 + $0x540] ss:$8 sps:$4 sm:$0xff]  }
 0xb40   : > { %11563 = vmatpush1.bf16.msra.mxu1 %v24193_v11  ;;  %v24210_v11 = vld [vmem:[%s26247_s1 + $0x544] ss:$8 sps:$4 sm:$0xff]  }
 0xb41   : > { %11564 = vmatprep.subr.bf16.mxu1 %v24201_v16  ;;  %v24214_v16 = vld [vmem:[%s26247_s1 + $0x550] ss:$8 sps:$4 sm:$0xff]  }
 0xb44   : > { %11565 = vmatpush1.bf16.msra.mxu1 %v24199_v15  ;;  %v24216_v15 = vld [vmem:[%s26247_s1 + $0x554] ss:$8 sps:$4 sm:$0xff]  }
 0xb45   : > { %11566 = vmatprep.subr.bf16.mxu1 %v24207_v18  ;;  %v24220_v18 = vld [vmem:[%s26247_s1 + $0x560] ss:$8 sps:$4 sm:$0xff]  }
 0xb48   : > { %11567 = vmatpush1.bf16.msra.mxu1 %v24205_v17  ;;  %v24222_v17 = vld [vmem:[%s26247_s1 + $0x564] ss:$8 sps:$4 sm:$0xff]  }
 0xb49   : > { %11568 = vmatprep.subr.bf16.mxu1 %v24213_v20  ;;  %v24226_v20 = vld [vmem:[%s26247_s1 + $0x570] ss:$8 sps:$4 sm:$0xff]  }
 0xb4c   : > { %11569 = vmatpush1.bf16.msra.mxu1 %v24211_v50  ;;  %v24228_v50 = vld [vmem:[%s26247_s1 + $0x574] ss:$8 sps:$4 sm:$0xff]  }
 0xb4d   : > { %11570 = vmatprep.subr.bf16.mxu1 %v24219_v21  ;;  %v24232_v21 = vld [vmem:[%s26247_s1 + $0x580] ss:$8 sps:$4 sm:$0xff]  }
 0xb50   : > { %11571 = vmatpush1.bf16.msra.mxu1 %v24217_v22  ;;  %v24234_v22 = vld [vmem:[%s26247_s1 + $0x584] ss:$8 sps:$4 sm:$0xff]  }
 0xb51   : > { %11572 = vmatprep.subr.bf16.mxu1 %v24225_v23  ;;  %v24238_v23 = vld [vmem:[%s26247_s1 + $0x590] ss:$8 sps:$4 sm:$0xff]  }
 0xb54   : > { %11573 = vmatpush1.bf16.msra.mxu1 %v24223_v46  ;;  %v24240_v46 = vld [vmem:[%s26247_s1 + $0x594] ss:$8 sps:$4 sm:$0xff]  }
 0xb55   : > { %11574 = vmatprep.subr.bf16.mxu1 %v24231_v28  ;;  %v24244_v28 = vld [vmem:[%s26247_s1 + $0x5a0] ss:$8 sps:$4 sm:$0xff]  }
 0xb58   : > { %11575 = vmatpush1.bf16.msra.mxu1 %v24229_v19  ;;  %v24246_v19 = vld [vmem:[%s26247_s1 + $0x5a4] ss:$8 sps:$4 sm:$0xff]  }
 0xb59   : > { %11576 = vmatprep.subr.bf16.mxu1 %v24237_v30  ;;  %v24250_v30 = vld [vmem:[%s26247_s1 + $0x5b0] ss:$8 sps:$4 sm:$0xff]  }
 0xb5c   : > { %11577 = vmatpush1.bf16.msra.mxu1 %v24235_v29  ;;  %v24252_v29 = vld [vmem:[%s26247_s1 + $0x5b4] ss:$8 sps:$4 sm:$0xff]  }
 0xb5d   : > { %11578 = vmatprep.subr.bf16.mxu1 %v24243_v33  ;;  %v24256_v33 = vld [vmem:[%s26247_s1 + $0x5c0] ss:$8 sps:$4 sm:$0xff]  }
 0xb60   : > { %11579 = vmatpush1.bf16.msra.mxu1 %v24241_v32  ;;  %v24258_v32 = vld [vmem:[%s26247_s1 + $0x5c4] ss:$8 sps:$4 sm:$0xff]  }
 0xb61   : > { %11580 = vmatprep.subr.bf16.mxu1 %v24249_v35  ;;  %v24262_v35 = vld [vmem:[%s26247_s1 + $0x5d0] ss:$8 sps:$4 sm:$0xff]  }
 0xb64   : > { %11581 = vmatpush1.bf16.msra.mxu1 %v24247_v34  ;;  %v24264_v34 = vld [vmem:[%s26247_s1 + $0x5d4] ss:$8 sps:$4 sm:$0xff]  }
 0xb65   : > { %11582 = vmatprep.subr.bf16.mxu1 %v24255_v37  ;;  %v24270_v37 = vld [vmem:[%s26247_s1 + $0x5e4] ss:$8 sps:$4 sm:$0xff]  }
 0xb68   : > { %11583 = vmatpush1.bf16.msra.mxu1 %v24253_v36  ;;  %v9409_v36 = vrot.slane %v27840_v45, %v26561_v54  ;;  %v24277_v45 = vld [vmem:[%s26217_s18 + $0xc08] ss:$16 sps:$4 sm:$0xff]  }
 0xb69   : > { %11584 = vmatprep.subr.bf16.mxu1 %v24261_v39 }
 0xb6c   : > { %11585 = vmatpush1.bf16.msra.mxu1 %v24259_v38  ;;  %v24268_v38 = vld [vmem:[%s26247_s1 + $0x5e0] ss:$8 sps:$4 sm:$0xff]  }
 0xb6d   : > { %11586 = vmatprep.subr.bf16.mxu1 %v24267_v41  ;;  %v24274_v41 = vld [vmem:[%s26247_s1 + $0x5f0] ss:$8 sps:$4 sm:$0xff]  }
 0xb70   : > { %11587 = vmatpush1.bf16.msra.mxu1 %v24265_v40  ;;  %v24276_v40 = vld [vmem:[%s26247_s1 + $0x5f4] ss:$8 sps:$4 sm:$0xff]  }
 0xb71   : > { %11588 = vmatprep.subr.bf16.mxu1 %v24273_v43  ;;  %v24279_v43 = vld [vmem:[%s26217_s18 + $0xc0c] ss:$16 sps:$4 sm:$0xff]  }
 0xb74   : > { %11589 = vmatpush1.bf16.msra.mxu1 %v24271_v42 }
 0xb77   : > { %11591 = vmatmul.mubr.bf16.vlgmr.msra.gmra.mrb[44].mxu1 %v26341_v13 }
 0xbca   : > { %v10133_v48 = vpop.f32.mrb[36].mxu0  ;;  %v27848_v14 = vpop.f32.mrb[40].mxu1 }
 0xbcb   : > { %v21885_v51 = vadd.f32 %v10133_v48, %v9401_v47  ;;  %v10135_v52 = vpop.f32.mrb[37].mxu0  ;;  %v10217_v53 = vpop.f32.mrb[41].mxu1  ;;  %v21887_v39 = vadd.f32 %v27848_v14, %v9409_v36  ;;  %v24375_v48 = vld [vmem:[%s26227_s15 + $0xc04] ss:$16 sps:$4 sm:$0xff]   ;;  %v24280_v14 = vld [vmem:[%s26217_s18 + $0xc28] ss:$16 sps:$4 sm:$0xff]  }
 0xbcc   : > { %v21886_v56 = vadd.f32 %v10135_v52, %v9405_v49  ;;  %v21888_v27 = vadd.f32 %v10217_v53, %v9413_v7  ;;  %v10137_v58 = vpop.f32.mrb[38].mxu0  ;;  %v10219_v59 = vpop.f32.mrb[42].mxu1  ;;  %v24282_v49 = vld [vmem:[%s26217_s18 + $0xc2c] ss:$16 sps:$4 sm:$0xff]   ;;  %v24373_v7 = vld [vmem:[%s26227_s15 + $0xc00] ss:$16 sps:$4 sm:$0xff]   ;;  %12481 = vmatprep.subr.bf16.mxu1 %v24375_v48 }
 0xbcd   : > { %v10222_v61 = vmax.f32 %v21885_v51, 0.0  ;;  %v10138_v62 = vpop.f32.mrb[39].mxu0  ;;  %v10220_v63 = vpop.f32.mrb[43].mxu1  ;;  %v10224_v42 = vmax.f32 %v21887_v39, 0.0  ;;  %v24381_v51 = vld [vmem:[%s26227_s15 + $0xc24] ss:$16 sps:$4 sm:$0xff]   ;;  %12482 = vmatpush1.bf16.msra.mxu1 %v24373_v7 }
 0xbce   : > { %v10223_v31 = vmax.f32 %v21886_v56, 0.0  ;;  %v10225_v0 = vmax.f32 %v21888_v27, 0.0  ;;  %v24285_v52 = vld [vmem:[%s26217_s18 + $0xc4c] ss:$16 sps:$4 sm:$0xff]   ;;  %v24379_v53 = vld [vmem:[%s26227_s15 + $0xc20] ss:$16 sps:$4 sm:$0xff]   ;;  %12483 = vmatprep.subr.bf16.mxu1 %v24381_v51 }
 0xbcf   : > { %v10226_v3 = vpack.c.bf16 %v10222_v61, %v10222_v61  ;;  %v10228_v47 = vpack.c.bf16 %v10224_v42, %v10224_v42  ;;  %v24283_v56 = vld [vmem:[%s26217_s18 + $0xc48] ss:$16 sps:$4 sm:$0xff]   ;;  %v24387_v27 = vld [vmem:[%s26227_s15 + $0xc44] ss:$16 sps:$4 sm:$0xff]   ;;  %v24288_v58 = vld [vmem:[%s26217_s18 + $0xc6c] ss:$16 sps:$4 sm:$0xff]  }
 0xbd0   : > { %v10227_v1 = vpack.c.bf16 %v10223_v31, %v10223_v31  ;;  %v10229_v4 = vpack.c.bf16 %v10225_v0, %v10225_v0  ;;  %v24385_v59 = vld [vmem:[%s26227_s15 + $0xc40] ss:$16 sps:$4 sm:$0xff]   ;;  %v24286_v61 = vld [vmem:[%s26217_s18 + $0xc68] ss:$16 sps:$4 sm:$0xff]   ;;  %v24393_v62 = vld [vmem:[%s26227_s15 + $0xc64] ss:$16 sps:$4 sm:$0xff]  }
 0xbd1   : > { %12484 = vmatpush1.bf16.msra.mxu1 %v24379_v53  ;;  %v24291_v63 = vld [vmem:[%s26217_s18 + $0xc8c] ss:$16 sps:$4 sm:$0xff]   ;;  %v24391_v31 = vld [vmem:[%s26227_s15 + $0xc60] ss:$16 sps:$4 sm:$0xff]   ;;  %v24289_v0 = vld [vmem:[%s26217_s18 + $0xc88] ss:$16 sps:$4 sm:$0xff]  }
 0xbd2   : > { %10661 = vmatprep.mubr.bf16.mxu0 %v10227_v1  ;;  %12485 = vmatprep.subr.bf16.mxu1 %v24387_v27  ;;  %v24399_v1 = vld [vmem:[%s26227_s15 + $0xc84] ss:$16 sps:$4 sm:$0xff]   ;;  %v24439_v36 = vld [vmem:[%s26227_s15 + $0xd60] ss:$16 sps:$4 sm:$0xff]   ;;  %v24318_v39 = vld [vmem:[%s26217_s18 + $0xdac] ss:$16 sps:$4 sm:$0xff]  }
 0xbd3   : > { %10662 = vmatmul.mubr.bf16.vlgmr.msra.gmra.mrb[40].mxu0 %v10226_v3  ;;  %v24397_v3 = vld [vmem:[%s26227_s15 + $0xc80] ss:$16 sps:$4 sm:$0xff]   ;;  %v24453_v42 = vld [vmem:[%s26227_s15 + $0xda4] ss:$16 sps:$4 sm:$0xff]   ;;  %v24322_v7 = vld [vmem:[%s26217_s18 + $0xde8] ss:$16 sps:$4 sm:$0xff]  }
 0xbd4   : > { %10671 = vmatpush1.bf16.msra.mxu0 %v24184_v2  ;;  %10702 = vmatprep.mubr.bf16.mxu0 %v10229_v4  ;;  %v24294_v2 = vld [vmem:[%s26217_s18 + $0xcac] ss:$16 sps:$4 sm:$0xff]   ;;  %v24405_v4 = vld [vmem:[%s26227_s15 + $0xca4] ss:$16 sps:$4 sm:$0xff]  }
 0xbd5   : > { %10672 = vmatprep.subr.bf16.mxu0 %v24192_v44  ;;  %12486 = vmatpush1.bf16.msra.mxu1 %v24385_v59  ;;  %v24292_v44 = vld [vmem:[%s26217_s18 + $0xca8] ss:$16 sps:$4 sm:$0xff]   ;;  %v24327_v48 = vld [vmem:[%s26217_s18 + $0xe0c] ss:$16 sps:$4 sm:$0xff]  }
 0xbd6   : > { %12487 = vmatprep.subr.bf16.mxu1 %v24393_v62  ;;  %v24330_v51 = vld [vmem:[%s26217_s18 + $0xe2c] ss:$16 sps:$4 sm:$0xff]   ;;  %v24337_v62 = vld [vmem:[%s26217_s18 + $0xe88] ss:$16 sps:$4 sm:$0xff]  }
 0xbd7   : > { %v24333_v53 = vld [vmem:[%s26217_s18 + $0xe4c] ss:$16 sps:$4 sm:$0xff]  }
 0xbd8   : > { %10673 = vmatpush1.bf16.msra.mxu0 %v24190_v5  ;;  %v24297_v5 = vld [vmem:[%s26217_s18 + $0xccc] ss:$16 sps:$4 sm:$0xff]  }
 0xbd9   : > { %10674 = vmatprep.subr.bf16.mxu0 %v24198_v6  ;;  %12488 = vmatpush1.bf16.msra.mxu1 %v24391_v31  ;;  %v24403_v6 = vld [vmem:[%s26227_s15 + $0xca0] ss:$16 sps:$4 sm:$0xff]   ;;  %v24336_v27 = vld [vmem:[%s26217_s18 + $0xe6c] ss:$16 sps:$4 sm:$0xff]  }
 0xbda   : > { %12489 = vmatprep.subr.bf16.mxu1 %v24399_v1  ;;  %v24339_v59 = vld [vmem:[%s26217_s18 + $0xe8c] ss:$16 sps:$4 sm:$0xff]  }
 0xbdb   : > { %v24345_v1 = vld [vmem:[%s26217_s18 + $0xecc] ss:$16 sps:$4 sm:$0xff]  }
 0xbdc   : > { %10675 = vmatpush1.bf16.msra.mxu0 %v24196_v24  ;;  %v24295_v24 = vld [vmem:[%s26217_s18 + $0xcc8] ss:$16 sps:$4 sm:$0xff]  }
 0xbdd   : > { %10676 = vmatprep.subr.bf16.mxu0 %v24204_v8  ;;  %12490 = vmatpush1.bf16.msra.mxu1 %v24397_v3  ;;  %v24411_v8 = vld [vmem:[%s26227_s15 + $0xcc4] ss:$16 sps:$4 sm:$0xff]  }
 0xbde   : > { %12491 = vmatprep.subr.bf16.mxu1 %v24405_v4  ;;  %v24459_v3 = vld [vmem:[%s26227_s15 + $0xdc4] ss:$16 sps:$4 sm:$0xff]  }
 0xbe0   : > { %10677 = vmatpush1.bf16.msra.mxu0 %v24202_v10  ;;  %v24300_v10 = vld [vmem:[%s26217_s18 + $0xcec] ss:$16 sps:$4 sm:$0xff]  }
 0xbe1   : > { %10678 = vmatprep.subr.bf16.mxu0 %v24210_v11  ;;  %12492 = vmatpush1.bf16.msra.mxu1 %v24403_v6  ;;  %v24409_v11 = vld [vmem:[%s26227_s15 + $0xcc0] ss:$16 sps:$4 sm:$0xff]  }
 0xbe2   : > { %12493 = vmatprep.subr.bf16.mxu1 %v24411_v8  ;;  %v24457_v6 = vld [vmem:[%s26227_s15 + $0xdc0] ss:$16 sps:$4 sm:$0xff]   ;;  %v24343_v8 = vld [vmem:[%s26217_s18 + $0xec8] ss:$16 sps:$4 sm:$0xff]  }
 0xbe4   : > { %10679 = vmatpush1.bf16.msra.mxu0 %v24208_v12  ;;  %v24298_v12 = vld [vmem:[%s26217_s18 + $0xce8] ss:$16 sps:$4 sm:$0xff]  }
 0xbe5   : > { %10680 = vmatprep.subr.bf16.mxu0 %v24216_v15  ;;  %v24417_v15 = vld [vmem:[%s26227_s15 + $0xce4] ss:$16 sps:$4 sm:$0xff]   ;;  %12494 = vmatpush1.bf16.msra.mxu1 %v24409_v11 }
 0xbe6   : > { %12495 = vmatprep.subr.bf16.mxu1 %v24417_v15  ;;  %v24348_v15 = vld [vmem:[%s26217_s18 + $0xeec] ss:$16 sps:$4 sm:$0xff]  }
 0xbe8   : > { %10681 = vmatpush1.bf16.msra.mxu0 %v24214_v16  ;;  %v24303_v16 = vld [vmem:[%s26217_s18 + $0xd0c] ss:$16 sps:$4 sm:$0xff]  }
 0xbe9   : > { %10682 = vmatprep.subr.bf16.mxu0 %v24222_v17  ;;  %v24415_v17 = vld [vmem:[%s26227_s15 + $0xce0] ss:$16 sps:$4 sm:$0xff]  }
 0xbea   : > { %12496 = vmatpush1.bf16.msra.mxu1 %v24415_v17 }
 0xbec   : > { %10683 = vmatpush1.bf16.msra.mxu0 %v24220_v18  ;;  %v24301_v18 = vld [vmem:[%s26217_s18 + $0xd08] ss:$16 sps:$4 sm:$0xff]  }
 0xbed   : > { %10684 = vmatprep.subr.bf16.mxu0 %v24228_v50  ;;  %v24423_v50 = vld [vmem:[%s26227_s15 + $0xd04] ss:$16 sps:$4 sm:$0xff]  }
 0xbee   : > { %12497 = vmatprep.subr.bf16.mxu1 %v24423_v50 }
 0xbf0   : > { %10685 = vmatpush1.bf16.msra.mxu0 %v24226_v20  ;;  %v24306_v20 = vld [vmem:[%s26217_s18 + $0xd2c] ss:$16 sps:$4 sm:$0xff]  }
 0xbf1   : > { %10686 = vmatprep.subr.bf16.mxu0 %v24234_v22  ;;  %v24421_v22 = vld [vmem:[%s26227_s15 + $0xd00] ss:$16 sps:$4 sm:$0xff]  }
 0xbf2   : > { %12498 = vmatpush1.bf16.msra.mxu1 %v24421_v22 }
 0xbf4   : > { %10687 = vmatpush1.bf16.msra.mxu0 %v24232_v21  ;;  %v24304_v21 = vld [vmem:[%s26217_s18 + $0xd28] ss:$16 sps:$4 sm:$0xff]  }
 0xbf5   : > { %10688 = vmatprep.subr.bf16.mxu0 %v24240_v46  ;;  %v24429_v46 = vld [vmem:[%s26227_s15 + $0xd24] ss:$16 sps:$4 sm:$0xff]  }
 0xbf6   : > { %12499 = vmatprep.subr.bf16.mxu1 %v24429_v46  ;;  %v24471_v46 = vld [vmem:[%s26227_s15 + $0xe04] ss:$16 sps:$4 sm:$0xff]  }
 0xbf8   : > { %10689 = vmatpush1.bf16.msra.mxu0 %v24238_v23  ;;  %v24309_v23 = vld [vmem:[%s26217_s18 + $0xd4c] ss:$16 sps:$4 sm:$0xff]  }
 0xbf9   : > { %10690 = vmatprep.subr.bf16.mxu0 %v24246_v19  ;;  %v24427_v19 = vld [vmem:[%s26227_s15 + $0xd20] ss:$16 sps:$4 sm:$0xff]  }
 0xbfa   : > { %12500 = vmatpush1.bf16.msra.mxu1 %v24427_v19  ;;  %v24477_v19 = vld [vmem:[%s26227_s15 + $0xe24] ss:$16 sps:$4 sm:$0xff]  }
 0xbfc   : > { %10691 = vmatpush1.bf16.msra.mxu0 %v24244_v28  ;;  %v24307_v28 = vld [vmem:[%s26217_s18 + $0xd48] ss:$16 sps:$4 sm:$0xff]  }
 0xbfd   : > { %10692 = vmatprep.subr.bf16.mxu0 %v24252_v29  ;;  %v24435_v29 = vld [vmem:[%s26227_s15 + $0xd44] ss:$16 sps:$4 sm:$0xff]  }
 0xbfe   : > { %12501 = vmatprep.subr.bf16.mxu1 %v24435_v29  ;;  %v24475_v29 = vld [vmem:[%s26227_s15 + $0xe20] ss:$16 sps:$4 sm:$0xff]  }
 0xc00   : > { %10693 = vmatpush1.bf16.msra.mxu0 %v24250_v30  ;;  %v24312_v30 = vld [vmem:[%s26217_s18 + $0xd6c] ss:$16 sps:$4 sm:$0xff]  }
 0xc01   : > { %10694 = vmatprep.subr.bf16.mxu0 %v24258_v32  ;;  %v24433_v32 = vld [vmem:[%s26227_s15 + $0xd40] ss:$16 sps:$4 sm:$0xff]  }
 0xc02   : > { %12502 = vmatpush1.bf16.msra.mxu1 %v24433_v32  ;;  %v24483_v32 = vld [vmem:[%s26227_s15 + $0xe44] ss:$16 sps:$4 sm:$0xff]  }
 0xc04   : > { %10695 = vmatpush1.bf16.msra.mxu0 %v24256_v33  ;;  %v24310_v33 = vld [vmem:[%s26217_s18 + $0xd68] ss:$16 sps:$4 sm:$0xff]  }
 0xc05   : > { %10696 = vmatprep.subr.bf16.mxu0 %v24264_v34  ;;  %v24441_v34 = vld [vmem:[%s26227_s15 + $0xd64] ss:$16 sps:$4 sm:$0xff]  }
 0xc06   : > { %12503 = vmatprep.subr.bf16.mxu1 %v24441_v34  ;;  %v24481_v34 = vld [vmem:[%s26227_s15 + $0xe40] ss:$16 sps:$4 sm:$0xff]  }
 0xc07   : > { %12504 = vmatpush1.bf16.msra.mxu1 %v24439_v36  ;;  %v24489_v36 = vld [vmem:[%s26227_s15 + $0xe64] ss:$16 sps:$4 sm:$0xff]  }
 0xc08   : > { %10697 = vmatpush1.bf16.msra.mxu0 %v24262_v35  ;;  %v24315_v35 = vld [vmem:[%s26217_s18 + $0xd8c] ss:$16 sps:$4 sm:$0xff]  }
 0xc09   : > { %10698 = vmatprep.subr.bf16.mxu0 %v24270_v37  ;;  %v24313_v37 = vld [vmem:[%s26217_s18 + $0xd88] ss:$16 sps:$4 sm:$0xff]  }
 0xc0c   : > { %10699 = vmatpush1.bf16.msra.mxu0 %v24268_v38  ;;  %v24447_v38 = vld [vmem:[%s26227_s15 + $0xd84] ss:$16 sps:$4 sm:$0xff]  }
 0xc0d   : > { %10700 = vmatprep.subr.bf16.mxu0 %v24276_v40  ;;  %v24445_v40 = vld [vmem:[%s26227_s15 + $0xd80] ss:$16 sps:$4 sm:$0xff]   ;;  %12505 = vmatprep.subr.bf16.mxu1 %v24447_v38 }
 0xc0e   : > { %12506 = vmatpush1.bf16.msra.mxu1 %v24445_v40  ;;  %v24487_v38 = vld [vmem:[%s26227_s15 + $0xe60] ss:$16 sps:$4 sm:$0xff]   ;;  %v24495_v40 = vld [vmem:[%s26227_s15 + $0xe84] ss:$16 sps:$4 sm:$0xff]  }
 0xc0f   : > { %12507 = vmatprep.subr.bf16.mxu1 %v24453_v42  ;;  %v24493_v42 = vld [vmem:[%s26227_s15 + $0xe80] ss:$16 sps:$4 sm:$0xff]  }
 0xc10   : > { %10701 = vmatpush1.bf16.msra.mxu0 %v24274_v41  ;;  %v24316_v41 = vld [vmem:[%s26217_s18 + $0xda8] ss:$16 sps:$4 sm:$0xff]  }
 0xc11   : > { %11599 = vmatprep.subr.bf16.mxu0 %v24279_v43  ;;  %v24321_v43 = vld [vmem:[%s26217_s18 + $0xdcc] ss:$16 sps:$4 sm:$0xff]  }
 0xc13   : > { %10703 = vmatmul.mubr.bf16.vlgmr.msra.gmra.mrb[40].mxu0 %v10228_v47  ;;  %v24319_v47 = vld [vmem:[%s26217_s18 + $0xdc8] ss:$16 sps:$4 sm:$0xff]  }
 0xc14   : > { %11600 = vmatpush1.bf16.msra.mxu0 %v24277_v45  ;;  %11631 = vmatprep.mubr.bf16.mxu0 %v26312_v57  ;;  %v24451_v45 = vld [vmem:[%s26227_s15 + $0xda0] ss:$16 sps:$4 sm:$0xff]  }
 0xc15   : > { %11601 = vmatprep.subr.bf16.mxu0 %v24282_v49  ;;  %v24324_v49 = vld [vmem:[%s26217_s18 + $0xdec] ss:$16 sps:$4 sm:$0xff]   ;;  %12508 = vmatpush1.bf16.msra.mxu1 %v24451_v45  ;;  %v24501_v45 = vld [vmem:[%s26227_s15 + $0xea4] ss:$16 sps:$4 sm:$0xff]  }
 0xc16   : > { %12509 = vmatprep.subr.bf16.mxu1 %v24459_v3  ;;  %v24523_v3 = vld [vmem:[%s26227_s15 + $0xf20] ss:$16 sps:$4 sm:$0xff]  }
 0xc18   : > { %11602 = vmatpush1.bf16.msra.mxu0 %v24280_v14  ;;  %v24325_v14 = vld [vmem:[%s26217_s18 + $0xe08] ss:$16 sps:$4 sm:$0xff]  }
 0xc19   : > { %11603 = vmatprep.subr.bf16.mxu0 %v24285_v52  ;;  %v24328_v52 = vld [vmem:[%s26217_s18 + $0xe28] ss:$16 sps:$4 sm:$0xff]   ;;  %12510 = vmatpush1.bf16.msra.mxu1 %v24457_v6  ;;  %v24529_v6 = vld [vmem:[%s26227_s15 + $0xf40] ss:$16 sps:$4 sm:$0xff]  }
 0xc1c   : > { %11604 = vmatpush1.bf16.msra.mxu0 %v24283_v56  ;;  %v24331_v56 = vld [vmem:[%s26217_s18 + $0xe48] ss:$16 sps:$4 sm:$0xff]  }
 0xc1d   : > { %11605 = vmatprep.subr.bf16.mxu0 %v24288_v58  ;;  %v24334_v58 = vld [vmem:[%s26217_s18 + $0xe68] ss:$16 sps:$4 sm:$0xff]  }
 0xc20   : > { %11606 = vmatpush1.bf16.msra.mxu0 %v24286_v61  ;;  %v27957_v61 = vld [vmem:[%s26481_s10 + $0xc] sm:$0xf] }
 0xc21   : > { %11607 = vmatprep.subr.bf16.mxu0 %v24291_v63  ;;  %v24342_v63 = vld [vmem:[%s26217_s18 + $0xeac] ss:$16 sps:$4 sm:$0xff]   ;;  %v10860_v31 = vrot.slane %v27957_v61, %v26487_v25  ;;  %v10864_v4 = vrot.slane %v27957_v61, %v26490_v26 }
 0xc24   : > { %11608 = vmatpush1.bf16.msra.mxu0 %v24289_v0  ;;  %v24340_v0 = vld [vmem:[%s26217_s18 + $0xea8] ss:$16 sps:$4 sm:$0xff]  }
 0xc25   : > { %11609 = vmatprep.subr.bf16.mxu0 %v24294_v2 }
 0xc28   : > { %11610 = vmatpush1.bf16.msra.mxu0 %v24292_v44 }
 0xc29   : > { %11611 = vmatprep.subr.bf16.mxu0 %v24297_v5 }
 0xc2c   : > { %11612 = vmatpush1.bf16.msra.mxu0 %v24295_v24 }
 0xc2d   : > { %11613 = vmatprep.subr.bf16.mxu0 %v24300_v10 }
 0xc30   : > { %11614 = vmatpush1.bf16.msra.mxu0 %v24298_v12 }
 0xc31   : > { %11615 = vmatprep.subr.bf16.mxu0 %v24303_v16  ;;  %v24465_v16 = vld [vmem:[%s26227_s15 + $0xde4] ss:$16 sps:$4 sm:$0xff]  }
 0xc32   : > { %12511 = vmatprep.subr.bf16.mxu1 %v24465_v16  ;;  %v24402_v16 = vld [vmem:[%s26227_s15 + $0xc8c] ss:$16 sps:$4 sm:$0xff]  }
 0xc34   : > { %11616 = vmatpush1.bf16.msra.mxu0 %v24301_v18  ;;  %v24463_v18 = vld [vmem:[%s26227_s15 + $0xde0] ss:$16 sps:$4 sm:$0xff]  }
 0xc35   : > { %11617 = vmatprep.subr.bf16.mxu0 %v24306_v20  ;;  %v24346_v20 = vld [vmem:[%s26217_s18 + $0xee8] ss:$16 sps:$4 sm:$0xff]   ;;  %12512 = vmatpush1.bf16.msra.mxu1 %v24463_v18  ;;  %v24549_v18 = vld [vmem:[%s26227_s15 + $0xfa4] ss:$16 sps:$4 sm:$0xff]  }
 0xc36   : > { %12522 = vmatprep.subr.bf16.mxu1 %v24471_v46  ;;  %v24406_v46 = vld [vmem:[%s26227_s15 + $0xca8] ss:$16 sps:$4 sm:$0xff]  }
 0xc38   : > { %11618 = vmatpush1.bf16.msra.mxu0 %v24304_v21  ;;  %v24469_v21 = vld [vmem:[%s26227_s15 + $0xe00] ss:$16 sps:$4 sm:$0xff]  }
 0xc39   : > { %11619 = vmatprep.subr.bf16.mxu0 %v24309_v23  ;;  %v24351_v23 = vld [vmem:[%s26217_s18 + $0xf0c] ss:$16 sps:$4 sm:$0xff]  }
 0xc3c   : > { %11620 = vmatpush1.bf16.msra.mxu0 %v24307_v28  ;;  %v24349_v28 = vld [vmem:[%s26217_s18 + $0xf08] ss:$16 sps:$4 sm:$0xff]  }
 0xc3d   : > { %11621 = vmatprep.subr.bf16.mxu0 %v24312_v30  ;;  %v24354_v30 = vld [vmem:[%s26217_s18 + $0xf2c] ss:$16 sps:$4 sm:$0xff]  }
 0xc40   : > { %11622 = vmatpush1.bf16.msra.mxu0 %v24310_v33  ;;  %v24352_v33 = vld [vmem:[%s26217_s18 + $0xf28] ss:$16 sps:$4 sm:$0xff]  }
 0xc41   : > { %11623 = vmatprep.subr.bf16.mxu0 %v24315_v35  ;;  %v24357_v35 = vld [vmem:[%s26217_s18 + $0xf4c] ss:$16 sps:$4 sm:$0xff]  }
 0xc44   : > { %11624 = vmatpush1.bf16.msra.mxu0 %v24313_v37  ;;  %v24355_v37 = vld [vmem:[%s26217_s18 + $0xf48] ss:$16 sps:$4 sm:$0xff]  }
 0xc45   : > { %11625 = vmatprep.subr.bf16.mxu0 %v24318_v39  ;;  %v24360_v39 = vld [vmem:[%s26217_s18 + $0xf6c] ss:$16 sps:$4 sm:$0xff]  }
 0xc48   : > { %11626 = vmatpush1.bf16.msra.mxu0 %v24316_v41  ;;  %v24358_v41 = vld [vmem:[%s26217_s18 + $0xf68] ss:$16 sps:$4 sm:$0xff]  }
 0xc49   : > { %11627 = vmatprep.subr.bf16.mxu0 %v24321_v43  ;;  %v24363_v43 = vld [vmem:[%s26217_s18 + $0xf8c] ss:$16 sps:$4 sm:$0xff]  }
 0xc4a   : > { %v11592_v2 = vpop.f32.mrb[44].mxu1 }
 0xc4b   : > { %v21891_v44 = vadd.f32 %v11592_v2, %v10860_v31  ;;  %v11594_v5 = vpop.f32.mrb[45].mxu1  ;;  %v24378_v31 = vld [vmem:[%s26227_s15 + $0xc0c] ss:$16 sps:$4 sm:$0xff]  }
 0xc4c   : > { %11628 = vmatpush1.bf16.msra.mxu0 %v24319_v47  ;;  %v11596_v24 = vpop.f32.mrb[46].mxu1  ;;  %v21892_v11 = vadd.f32 %v11594_v5, %v10864_v4  ;;  %v24361_v47 = vld [vmem:[%s26217_s18 + $0xf88] ss:$16 sps:$4 sm:$0xff]   ;;  %v24384_v2 = vld [vmem:[%s26227_s15 + $0xc2c] ss:$16 sps:$4 sm:$0xff]  }
 0xc4d   : > { %11629 = vmatprep.subr.bf16.mxu0 %v24324_v49  ;;  %v11681_v10 = vmax.f32 %v21891_v44, 0.0  ;;  %v11597_v12 = vpop.f32.mrb[47].mxu1  ;;  %v24499_v49 = vld [vmem:[%s26227_s15 + $0xea0] ss:$16 sps:$4 sm:$0xff]   ;;  %v24531_v44 = vld [vmem:[%s26227_s15 + $0xf44] ss:$16 sps:$4 sm:$0xff]  }
 0xc4e   : > { %v11682_v17 = vmax.f32 %v21892_v11, 0.0  ;;  %v24382_v4 = vld [vmem:[%s26227_s15 + $0xc28] ss:$16 sps:$4 sm:$0xff]   ;;  %v24390_v5 = vld [vmem:[%s26227_s15 + $0xc4c] ss:$16 sps:$4 sm:$0xff]  }
 0xc4f   : > { %v27973_v50 = vpack.c.bf16 %v11681_v10, %v11681_v10  ;;  %v24537_v24 = vld [vmem:[%s26227_s15 + $0xf64] ss:$16 sps:$4 sm:$0xff]   ;;  %v24396_v10 = vld [vmem:[%s26227_s15 + $0xc6c] ss:$16 sps:$4 sm:$0xff]   ;;  %v24535_v11 = vld [vmem:[%s26227_s15 + $0xf60] ss:$16 sps:$4 sm:$0xff]  }
 0xc50   : > { %11630 = vmatpush1.bf16.msra.mxu0 %v24322_v7  ;;  %v27976_v22 = vpack.c.bf16 %v11682_v17, %v11682_v17  ;;  %v24366_v7 = vld [vmem:[%s26217_s18 + $0xfac] ss:$16 sps:$4 sm:$0xff]   ;;  %v24543_v12 = vld [vmem:[%s26227_s15 + $0xf84] ss:$16 sps:$4 sm:$0xff]   ;;  %v24541_v17 = vld [vmem:[%s26227_s15 + $0xf80] ss:$16 sps:$4 sm:$0xff]  }
 0xc51   : > { %11640 = vmatprep.subr.bf16.mxu0 %v24327_v48  ;;  %v24507_v48 = vld [vmem:[%s26227_s15 + $0xec4] ss:$16 sps:$4 sm:$0xff]  }
 0xc52   : > { %12513 = vmatprep.mubr.bf16.mxu1 %v27976_v22 }
 0xc53   : > { %11632 = vmatmul.mubr.bf16.vlgmr.msra.gmra.mrb[44].mxu0 %v26334_v9  ;;  %12514 = vmatmul.mubr.bf16.vlgmr.msra.gmra.mrb[48].mxu1 %v27973_v50 }
 0xc54   : > { %11641 = vmatpush1.bf16.msra.mxu0 %v24325_v14  ;;  %11672 = vmatprep.mubr.bf16.mxu0 %v26319_v60  ;;  %v24364_v14 = vld [vmem:[%s26217_s18 + $0xfa8] ss:$16 sps:$4 sm:$0xff]  }
 0xc55   : > { %11642 = vmatprep.subr.bf16.mxu0 %v24330_v51  ;;  %12523 = vmatpush1.bf16.msra.mxu1 %v24469_v21  ;;  %v24505_v51 = vld [vmem:[%s26227_s15 + $0xec0] ss:$16 sps:$4 sm:$0xff]  }
 0xc56   : > { %12524 = vmatprep.subr.bf16.mxu1 %v24477_v19  ;;  %v24547_v21 = vld [vmem:[%s26227_s15 + $0xfa0] ss:$16 sps:$4 sm:$0xff]   ;;  %v24412_v19 = vld [vmem:[%s26227_s15 + $0xcc8] ss:$16 sps:$4 sm:$0xff]  }
 0xc58   : > { %11643 = vmatpush1.bf16.msra.mxu0 %v24328_v52  ;;  %v24369_v52 = vld [vmem:[%s26217_s18 + $0xfcc] ss:$16 sps:$4 sm:$0xff]  }
 0xc59   : > { %11644 = vmatprep.subr.bf16.mxu0 %v24333_v53  ;;  %12525 = vmatpush1.bf16.msra.mxu1 %v24475_v29  ;;  %v24513_v53 = vld [vmem:[%s26227_s15 + $0xee4] ss:$16 sps:$4 sm:$0xff]   ;;  %v24418_v29 = vld [vmem:[%s26227_s15 + $0xce8] ss:$16 sps:$4 sm:$0xff]  }
 0xc5a   : > { %12526 = vmatprep.subr.bf16.mxu1 %v24483_v32  ;;  %v24424_v32 = vld [vmem:[%s26227_s15 + $0xd08] ss:$16 sps:$4 sm:$0xff]  }
 0xc5c   : > { %11645 = vmatpush1.bf16.msra.mxu0 %v24331_v56  ;;  %v24367_v56 = vld [vmem:[%s26217_s18 + $0xfc8] ss:$16 sps:$4 sm:$0xff]  }
 0xc5d   : > { %11646 = vmatprep.subr.bf16.mxu0 %v24336_v27  ;;  %12527 = vmatpush1.bf16.msra.mxu1 %v24481_v34  ;;  %v24511_v27 = vld [vmem:[%s26227_s15 + $0xee0] ss:$16 sps:$4 sm:$0xff]   ;;  %v24430_v34 = vld [vmem:[%s26227_s15 + $0xd28] ss:$16 sps:$4 sm:$0xff]  }
 0xc5e   : > { %12528 = vmatprep.subr.bf16.mxu1 %v24489_v36  ;;  %v24436_v36 = vld [vmem:[%s26227_s15 + $0xd48] ss:$16 sps:$4 sm:$0xff]  }
 0xc60   : > { %11647 = vmatpush1.bf16.msra.mxu0 %v24334_v58  ;;  %v24372_v58 = vld [vmem:[%s26217_s18 + $0xfec] ss:$16 sps:$4 sm:$0xff]  }
 0xc61   : > { %11648 = vmatprep.subr.bf16.mxu0 %v24339_v59  ;;  %12529 = vmatpush1.bf16.msra.mxu1 %v24487_v38  ;;  %v24519_v59 = vld [vmem:[%s26227_s15 + $0xf04] ss:$16 sps:$4 sm:$0xff]   ;;  %v24442_v38 = vld [vmem:[%s26227_s15 + $0xd68] ss:$16 sps:$4 sm:$0xff]  }
 0xc62   : > { %12530 = vmatprep.subr.bf16.mxu1 %v24495_v40  ;;  %v24448_v40 = vld [vmem:[%s26227_s15 + $0xd88] ss:$16 sps:$4 sm:$0xff]  }
 0xc64   : > { %11649 = vmatpush1.bf16.msra.mxu0 %v24337_v62  ;;  %v24370_v62 = vld [vmem:[%s26217_s18 + $0xfe8] ss:$16 sps:$4 sm:$0xff]  }
 0xc65   : > { %11650 = vmatprep.subr.bf16.mxu0 %v24342_v63  ;;  %12531 = vmatpush1.bf16.msra.mxu1 %v24493_v42  ;;  %v24517_v63 = vld [vmem:[%s26227_s15 + $0xf00] ss:$16 sps:$4 sm:$0xff]   ;;  %v24454_v42 = vld [vmem:[%s26227_s15 + $0xda8] ss:$16 sps:$4 sm:$0xff]  }
 0xc66   : > { %12532 = vmatprep.subr.bf16.mxu1 %v24501_v45  ;;  %v24460_v45 = vld [vmem:[%s26227_s15 + $0xdc8] ss:$16 sps:$4 sm:$0xff]  }
 0xc68   : > { %11651 = vmatpush1.bf16.msra.mxu0 %v24340_v0  ;;  %v24525_v0 = vld [vmem:[%s26227_s15 + $0xf24] ss:$16 sps:$4 sm:$0xff]  }
 0xc69   : > { %11652 = vmatprep.subr.bf16.mxu0 %v24345_v1  ;;  %12533 = vmatpush1.bf16.msra.mxu1 %v24499_v49  ;;  %v24376_v1 = vld [vmem:[%s26227_s15 + $0xc08] ss:$16 sps:$4 sm:$0xff]  }
 0xc6a   : > { %12534 = vmatprep.subr.bf16.mxu1 %v24507_v48  ;;  %v24466_v49 = vld [vmem:[%s26227_s15 + $0xde8] ss:$16 sps:$4 sm:$0xff]  }
 0xc6b   : > { %v24472_v48 = vld [vmem:[%s26227_s15 + $0xe08] ss:$16 sps:$4 sm:$0xff]  }
 0xc6c   : > { %11653 = vmatpush1.bf16.msra.mxu0 %v24343_v8  ;;  %v24388_v8 = vld [vmem:[%s26227_s15 + $0xc48] ss:$16 sps:$4 sm:$0xff]  }
 0xc6d   : > { %11654 = vmatprep.subr.bf16.mxu0 %v24348_v15  ;;  %12535 = vmatpush1.bf16.msra.mxu1 %v24505_v51  ;;  %v24394_v15 = vld [vmem:[%s26227_s15 + $0xc68] ss:$16 sps:$4 sm:$0xff]  }
 0xc6e   : > { %12536 = vmatprep.subr.bf16.mxu1 %v24513_v53  ;;  %v24478_v51 = vld [vmem:[%s26227_s15 + $0xe28] ss:$16 sps:$4 sm:$0xff]  }
 0xc6f   : > { %v24484_v53 = vld [vmem:[%s26227_s15 + $0xe48] ss:$16 sps:$4 sm:$0xff]  }
 0xc70   : > { %11655 = vmatpush1.bf16.msra.mxu0 %v24346_v20  ;;  %v24400_v20 = vld [vmem:[%s26227_s15 + $0xc88] ss:$16 sps:$4 sm:$0xff]  }
 0xc71   : > { %11656 = vmatprep.subr.bf16.mxu0 %v24351_v23  ;;  %12537 = vmatpush1.bf16.msra.mxu1 %v24511_v27  ;;  %v24414_v23 = vld [vmem:[%s26227_s15 + $0xccc] ss:$16 sps:$4 sm:$0xff]   ;;  %v24490_v27 = vld [vmem:[%s26227_s15 + $0xe68] ss:$16 sps:$4 sm:$0xff]  }
 0xc72   : > { %12538 = vmatprep.subr.bf16.mxu1 %v24519_v59  ;;  %v19957_v59 = vld [vmem:[%s27047_s20 + $0x4] sm:$0x3] }
 0xc74   : > { %11657 = vmatpush1.bf16.msra.mxu0 %v24349_v28  ;;  %v24420_v28 = vld [vmem:[%s26227_s15 + $0xcec] ss:$16 sps:$4 sm:$0xff]  }
 0xc75   : > { %11658 = vmatprep.subr.bf16.mxu0 %v24354_v30  ;;  %12539 = vmatpush1.bf16.msra.mxu1 %v24517_v63  ;;  %v24426_v30 = vld [vmem:[%s26227_s15 + $0xd0c] ss:$16 sps:$4 sm:$0xff]   ;;  %v10302_v63 = vrot.slane %v19957_v59, %v26487_v25 }
 0xc76   : > { %12540 = vmatprep.subr.bf16.mxu1 %v24525_v0  ;;  %v24502_v0 = vld [vmem:[%s26227_s15 + $0xea8] ss:$16 sps:$4 sm:$0xff]  }
 0xc78   : > { %11659 = vmatpush1.bf16.msra.mxu0 %v24352_v33  ;;  %v24432_v33 = vld [vmem:[%s26227_s15 + $0xd2c] ss:$16 sps:$4 sm:$0xff]  }
 0xc79   : > { %11660 = vmatprep.subr.bf16.mxu0 %v24357_v35  ;;  %12541 = vmatpush1.bf16.msra.mxu1 %v24523_v3  ;;  %v24438_v35 = vld [vmem:[%s26227_s15 + $0xd4c] ss:$16 sps:$4 sm:$0xff]  }
 0xc7a   : > { %12542 = vmatprep.subr.bf16.mxu1 %v24531_v44  ;;  %v24553_v44 = vld [vmem:[%s26227_s15 + $0xfc0] ss:$16 sps:$4 sm:$0xff]  }
 0xc7c   : > { %11661 = vmatpush1.bf16.msra.mxu0 %v24355_v37  ;;  %v24444_v37 = vld [vmem:[%s26227_s15 + $0xd6c] ss:$16 sps:$4 sm:$0xff]  }
 0xc7d   : > { %11662 = vmatprep.subr.bf16.mxu0 %v24360_v39  ;;  %12543 = vmatpush1.bf16.msra.mxu1 %v24529_v6  ;;  %v24450_v39 = vld [vmem:[%s26227_s15 + $0xd8c] ss:$16 sps:$4 sm:$0xff]  }
 0xc7e   : > { %12544 = vmatprep.subr.bf16.mxu1 %v24537_v24 }
 0xc80   : > { %11663 = vmatpush1.bf16.msra.mxu0 %v24358_v41  ;;  %v24456_v41 = vld [vmem:[%s26227_s15 + $0xdac] ss:$16 sps:$4 sm:$0xff]  }
 0xc81   : > { %11664 = vmatprep.subr.bf16.mxu0 %v24363_v43  ;;  %12545 = vmatpush1.bf16.msra.mxu1 %v24535_v11  ;;  %v24462_v43 = vld [vmem:[%s26227_s15 + $0xdcc] ss:$16 sps:$4 sm:$0xff]  }
 0xc82   : > { %12546 = vmatprep.subr.bf16.mxu1 %v24543_v12  ;;  %v24516_v11 = vld [vmem:[%s26227_s15 + $0xeec] ss:$16 sps:$4 sm:$0xff]   ;;  %v24561_v12 = vld [vmem:[%s26227_s15 + $0xfe4] ss:$16 sps:$4 sm:$0xff]  }
 0xc84   : > { %11665 = vmatpush1.bf16.msra.mxu0 %v24361_v47  ;;  %v24468_v47 = vld [vmem:[%s26227_s15 + $0xdec] ss:$16 sps:$4 sm:$0xff]  }
 0xc85   : > { %11666 = vmatprep.subr.bf16.mxu0 %v24366_v7  ;;  %12547 = vmatpush1.bf16.msra.mxu1 %v24541_v17  ;;  %v24474_v7 = vld [vmem:[%s26227_s15 + $0xe0c] ss:$16 sps:$4 sm:$0xff]   ;;  %v24514_v17 = vld [vmem:[%s26227_s15 + $0xee8] ss:$16 sps:$4 sm:$0xff]  }
 0xc86   : > { %12548 = vmatprep.subr.bf16.mxu1 %v24549_v18  ;;  %v24522_v18 = vld [vmem:[%s26227_s15 + $0xf0c] ss:$16 sps:$4 sm:$0xff]  }
 0xc88   : > { %11667 = vmatpush1.bf16.msra.mxu0 %v24364_v14  ;;  %v24480_v14 = vld [vmem:[%s26227_s15 + $0xe2c] ss:$16 sps:$4 sm:$0xff]  }
 0xc89   : > { %11668 = vmatprep.subr.bf16.mxu0 %v24369_v52  ;;  %12549 = vmatpush1.bf16.msra.mxu1 %v24547_v21  ;;  %v24486_v52 = vld [vmem:[%s26227_s15 + $0xe4c] ss:$16 sps:$4 sm:$0xff]  }
 0xc8a   : > { %v24528_v21 = vld [vmem:[%s26227_s15 + $0xf2c] ss:$16 sps:$4 sm:$0xff]  }
 0xc8c   : > { %11669 = vmatpush1.bf16.msra.mxu0 %v24367_v56  ;;  %v24492_v56 = vld [vmem:[%s26227_s15 + $0xe6c] ss:$16 sps:$4 sm:$0xff]  }
 0xc8d   : > { %11670 = vmatprep.subr.bf16.mxu0 %v24372_v58  ;;  %v24498_v58 = vld [vmem:[%s26227_s15 + $0xe8c] ss:$16 sps:$4 sm:$0xff]  }
 0xc90   : > { %11671 = vmatpush1.bf16.msra.mxu0 %v24370_v62  ;;  %v24504_v62 = vld [vmem:[%s26227_s15 + $0xeac] ss:$16 sps:$4 sm:$0xff]  }
 0xc91   : > { %12563 = vmatprep.subr.bf16.mxu0 %v24378_v31  ;;  %v10306_v31 = vrot.slane %v19957_v59, %v26490_v26  ;;  %v24574_v59 = vld [vmem:[%s26237_s22 + $0xc28] ss:$16 sps:$4 sm:$0xff]  }
 0xc93   : > { %11673 = vmatmul.mubr.bf16.vlgmr.msra.gmra.mrb[44].mxu0 %v26341_v13 }
 0xc94   : > { %12564 = vmatpush1.bf16.msra.mxu0 %v24376_v1  ;;  %12595 = vmatprep.mubr.bf16.mxu0 %v27976_v22  ;;  %v24408_v22 = vld [vmem:[%s26227_s15 + $0xcac] ss:$16 sps:$4 sm:$0xff]  }
 0xc95   : > { %12565 = vmatprep.subr.bf16.mxu0 %v24384_v2  ;;  %v24510_v1 = vld [vmem:[%s26227_s15 + $0xecc] ss:$16 sps:$4 sm:$0xff]   ;;  %v24555_v2 = vld [vmem:[%s26227_s15 + $0xfc4] ss:$16 sps:$4 sm:$0xff]  }
 0xc96   : > { %12550 = vmatprep.subr.bf16.mxu1 %v24555_v2  ;;  %v24583_v2 = vld [vmem:[%s26237_s22 + $0xc60] ss:$16 sps:$4 sm:$0xff]  }
 0xc97   : > { %12551 = vmatpush1.bf16.msra.mxu1 %v24553_v44  ;;  %v24591_v44 = vld [vmem:[%s26237_s22 + $0xc84] ss:$16 sps:$4 sm:$0xff]  }
 0xc98   : > { %12566 = vmatpush1.bf16.msra.mxu0 %v24382_v4  ;;  %12552 = vmatprep.subr.bf16.mxu1 %v24561_v12  ;;  %v24603_v12 = vld [vmem:[%s26237_s22 + $0xcc4] ss:$16 sps:$4 sm:$0xff]  }
 0xc99   : > { %12567 = vmatprep.subr.bf16.mxu0 %v24390_v5 }
 0xc9c   : > { %12568 = vmatpush1.bf16.msra.mxu0 %v24388_v8  ;;  %v24508_v8 = vld [vmem:[%s26227_s15 + $0xec8] ss:$16 sps:$4 sm:$0xff]  }
 0xc9d   : > { %12569 = vmatprep.subr.bf16.mxu0 %v24396_v10 }
 0xca0   : > { %12570 = vmatpush1.bf16.msra.mxu0 %v24394_v15 }
 0xca1   : > { %12571 = vmatprep.subr.bf16.mxu0 %v24402_v16  ;;  %v24559_v16 = vld [vmem:[%s26227_s15 + $0xfe0] ss:$16 sps:$4 sm:$0xff]  }
 0xca2   : > { %12553 = vmatpush1.bf16.msra.mxu1 %v24559_v16  ;;  %v24601_v16 = vld [vmem:[%s26237_s22 + $0xcc0] ss:$16 sps:$4 sm:$0xff]  }
 0xca4   : > { %12572 = vmatpush1.bf16.msra.mxu0 %v24400_v20  ;;  %v24567_v20 = vld [vmem:[%s26237_s22 + $0xc04] ss:$16 sps:$4 sm:$0xff]  }
 0xca5   : > { %12573 = vmatprep.subr.bf16.mxu0 %v24408_v22  ;;  %v24520_v22 = vld [vmem:[%s26227_s15 + $0xf08] ss:$16 sps:$4 sm:$0xff]   ;;  %13445 = vmatprep.subr.bf16.mxu1 %v24567_v20  ;;  %v24612_v20 = vld [vmem:[%s26237_s22 + $0xcec] ss:$16 sps:$4 sm:$0xff]  }
 0xca8   : > { %12574 = vmatpush1.bf16.msra.mxu0 %v24406_v46  ;;  %v24526_v46 = vld [vmem:[%s26227_s15 + $0xf28] ss:$16 sps:$4 sm:$0xff]  }
 0xca9   : > { %12575 = vmatprep.subr.bf16.mxu0 %v24414_v23  ;;  %v24534_v23 = vld [vmem:[%s26227_s15 + $0xf4c] ss:$16 sps:$4 sm:$0xff]  }
 0xcac   : > { %12576 = vmatpush1.bf16.msra.mxu0 %v24412_v19  ;;  %v24532_v19 = vld [vmem:[%s26227_s15 + $0xf48] ss:$16 sps:$4 sm:$0xff]  }
 0xcad   : > { %12577 = vmatprep.subr.bf16.mxu0 %v24420_v28  ;;  %v24540_v28 = vld [vmem:[%s26227_s15 + $0xf6c] ss:$16 sps:$4 sm:$0xff]  }
 0xcb0   : > { %12578 = vmatpush1.bf16.msra.mxu0 %v24418_v29  ;;  %v24538_v29 = vld [vmem:[%s26227_s15 + $0xf68] ss:$16 sps:$4 sm:$0xff]  }
 0xcb1   : > { %12579 = vmatprep.subr.bf16.mxu0 %v24426_v30  ;;  %v24546_v30 = vld [vmem:[%s26227_s15 + $0xf8c] ss:$16 sps:$4 sm:$0xff]  }
 0xcb4   : > { %12580 = vmatpush1.bf16.msra.mxu0 %v24424_v32  ;;  %v24544_v32 = vld [vmem:[%s26227_s15 + $0xf88] ss:$16 sps:$4 sm:$0xff]  }
 0xcb5   : > { %12581 = vmatprep.subr.bf16.mxu0 %v24432_v33  ;;  %v24552_v33 = vld [vmem:[%s26227_s15 + $0xfac] ss:$16 sps:$4 sm:$0xff]  }
 0xcb8   : > { %12582 = vmatpush1.bf16.msra.mxu0 %v24430_v34  ;;  %v24550_v34 = vld [vmem:[%s26227_s15 + $0xfa8] ss:$16 sps:$4 sm:$0xff]  }
 0xcb9   : > { %12583 = vmatprep.subr.bf16.mxu0 %v24438_v35  ;;  %v24558_v35 = vld [vmem:[%s26227_s15 + $0xfcc] ss:$16 sps:$4 sm:$0xff]  }
 0xcbc   : > { %12584 = vmatpush1.bf16.msra.mxu0 %v24436_v36  ;;  %v24556_v36 = vld [vmem:[%s26227_s15 + $0xfc8] ss:$16 sps:$4 sm:$0xff]  }
 0xcbd   : > { %12585 = vmatprep.subr.bf16.mxu0 %v24444_v37  ;;  %v24564_v37 = vld [vmem:[%s26227_s15 + $0xfec] ss:$16 sps:$4 sm:$0xff]  }
 0xcc0   : > { %12586 = vmatpush1.bf16.msra.mxu0 %v24442_v38  ;;  %v24562_v38 = vld [vmem:[%s26227_s15 + $0xfe8] ss:$16 sps:$4 sm:$0xff]  }
 0xcc1   : > { %12587 = vmatprep.subr.bf16.mxu0 %v24450_v39  ;;  %v24570_v39 = vld [vmem:[%s26237_s22 + $0xc0c] ss:$16 sps:$4 sm:$0xff]  }
 0xcc4   : > { %12588 = vmatpush1.bf16.msra.mxu0 %v24448_v40  ;;  %v10868_v40 = vrot.slane %v27957_v61, %v26561_v54 }
 0xcc5   : > { %12589 = vmatprep.subr.bf16.mxu0 %v24456_v41  ;;  %v10872_v41 = vrot.slane %v27957_v61, %v26564_v55  ;;  %v24571_v61 = vld [vmem:[%s26237_s22 + $0xc20] ss:$16 sps:$4 sm:$0xff]  }
 0xcc8   : > { %12590 = vmatpush1.bf16.msra.mxu0 %v24454_v42 }
 0xcc9   : > { %12591 = vmatprep.subr.bf16.mxu0 %v24462_v43 }
 0xccc   : > { %12592 = vmatpush1.bf16.msra.mxu0 %v24460_v45 }
 0xccd   : > { %12593 = vmatprep.subr.bf16.mxu0 %v24468_v47 }
 0xcd0   : > { %12594 = vmatpush1.bf16.msra.mxu0 %v24466_v49 }
 0xcd1   : > { %12604 = vmatprep.subr.bf16.mxu0 %v24474_v7 }
 0xcd3   : > { %12596 = vmatmul.mubr.bf16.vlgmr.msra.gmra.mrb[48].mxu0 %v27973_v50  ;;  %v24496_v50 = vld [vmem:[%s26227_s15 + $0xe88] ss:$16 sps:$4 sm:$0xff]  }
 0xcd4   : > { %12605 = vmatpush1.bf16.msra.mxu0 %v24472_v48 }
 0xcd5   : > { %12606 = vmatprep.subr.bf16.mxu0 %v24480_v14 }
 0xcd8   : > { %12607 = vmatpush1.bf16.msra.mxu0 %v24478_v51 }
 0xcd9   : > { %12608 = vmatprep.subr.bf16.mxu0 %v24486_v52  ;;  %v24565_v52 = vld [vmem:[%s26237_s22 + $0xc00] ss:$16 sps:$4 sm:$0xff]  }
 0xcdc   : > { %12609 = vmatpush1.bf16.msra.mxu0 %v24484_v53  ;;  %v24568_v53 = vld [vmem:[%s26237_s22 + $0xc08] ss:$16 sps:$4 sm:$0xff]  }
 0xcdd   : > { %12610 = vmatprep.subr.bf16.mxu0 %v24492_v56 }
 0xce0   : > { %12611 = vmatpush1.bf16.msra.mxu0 %v24490_v27  ;;  %v24573_v27 = vld [vmem:[%s26237_s22 + $0xc24] ss:$16 sps:$4 sm:$0xff]  }
 0xce1   : > { %12612 = vmatprep.subr.bf16.mxu0 %v24498_v58  ;;  %v24576_v58 = vld [vmem:[%s26237_s22 + $0xc2c] ss:$16 sps:$4 sm:$0xff]  }
 0xce4   : > { %12613 = vmatpush1.bf16.msra.mxu0 %v24496_v50  ;;  %v24579_v50 = vld [vmem:[%s26237_s22 + $0xc44] ss:$16 sps:$4 sm:$0xff]  }
 0xce5   : > { %12614 = vmatprep.subr.bf16.mxu0 %v24504_v62  ;;  %v24582_v62 = vld [vmem:[%s26237_s22 + $0xc4c] ss:$16 sps:$4 sm:$0xff]  }
 0xce6   : > { %v10704_v3 = vpop.f32.mrb[40].mxu0 }
 0xce7   : > { %v21889_v4 = vadd.f32 %v10704_v3, %v10302_v63  ;;  %v10706_v5 = vpop.f32.mrb[41].mxu0  ;;  %v24577_v63 = vld [vmem:[%s26237_s22 + $0xc40] ss:$16 sps:$4 sm:$0xff]   ;;  %v24586_v3 = vld [vmem:[%s26237_s22 + $0xc68] ss:$16 sps:$4 sm:$0xff]  }
 0xce8   : > { %v21890_v6 = vadd.f32 %v10706_v5, %v10306_v31  ;;  %v10708_v24 = vpop.f32.mrb[42].mxu0  ;;  %12615 = vmatpush1.bf16.msra.mxu0 %v24502_v0  ;;  %v24580_v31 = vld [vmem:[%s26237_s22 + $0xc48] ss:$16 sps:$4 sm:$0xff]   ;;  %v24585_v0 = vld [vmem:[%s26237_s22 + $0xc64] ss:$16 sps:$4 sm:$0xff]  }
 0xce9   : > { %v10709_v10 = vpop.f32.mrb[43].mxu0  ;;  %12616 = vmatprep.subr.bf16.mxu0 %v24510_v1  ;;  %v24588_v1 = vld [vmem:[%s26237_s22 + $0xc6c] ss:$16 sps:$4 sm:$0xff]   ;;  %v24589_v5 = vld [vmem:[%s26237_s22 + $0xc80] ss:$16 sps:$4 sm:$0xff]  }
 0xcea   : > { %v10713_v15 = vcombine.low %v21889_v4, %v21890_v6  ;;  %v24594_v4 = vld [vmem:[%s26237_s22 + $0xc8c] ss:$16 sps:$4 sm:$0xff]   ;;  %v24592_v6 = vld [vmem:[%s26237_s22 + $0xc88] ss:$16 sps:$4 sm:$0xff]   ;;  %v24597_v24 = vld [vmem:[%s26237_s22 + $0xca4] ss:$16 sps:$4 sm:$0xff]  }
 0xceb   : > { %v24595_v10 = vld [vmem:[%s26237_s22 + $0xca0] ss:$16 sps:$4 sm:$0xff]  }
 0xcec   : > { %20022 = vst.sshfl [vmem:[%s27062_s6 + $0x8] sm:$0x33 pattern:$0x76325410] %v10713_v15  ;;  %12617 = vmatpush1.bf16.msra.mxu0 %v24508_v8  ;;  %v24600_v8 = vld [vmem:[%s26237_s22 + $0xcac] ss:$16 sps:$4 sm:$0xff]  }
 0xced   : > { %12618 = vmatprep.subr.bf16.mxu0 %v24516_v11  ;;  %v24598_v11 = vld [vmem:[%s26237_s22 + $0xca8] ss:$16 sps:$4 sm:$0xff]   ;;  %v24606_v15 = vld [vmem:[%s26237_s22 + $0xccc] ss:$16 sps:$4 sm:$0xff]  }
 0xcf0   : > { %12619 = vmatpush1.bf16.msra.mxu0 %v24514_v17  ;;  %v24604_v17 = vld [vmem:[%s26237_s22 + $0xcc8] ss:$16 sps:$4 sm:$0xff]  }
 0xcf1   : > { %12620 = vmatprep.subr.bf16.mxu0 %v24522_v18  ;;  %v24609_v18 = vld [vmem:[%s26237_s22 + $0xce4] ss:$16 sps:$4 sm:$0xff]  }
 0xcf4   : > { %12621 = vmatpush1.bf16.msra.mxu0 %v24520_v22  ;;  %v24607_v22 = vld [vmem:[%s26237_s22 + $0xce0] ss:$16 sps:$4 sm:$0xff]  }
 0xcf5   : > { %12622 = vmatprep.subr.bf16.mxu0 %v24528_v21  ;;  %v24610_v21 = vld [vmem:[%s26237_s22 + $0xce8] ss:$16 sps:$4 sm:$0xff]  }
 0xcf8   : > { %12623 = vmatpush1.bf16.msra.mxu0 %v24526_v46  ;;  %v24615_v46 = vld [vmem:[%s26237_s22 + $0xd04] ss:$16 sps:$4 sm:$0xff]  }
 0xcf9   : > { %12624 = vmatprep.subr.bf16.mxu0 %v24534_v23  ;;  %v24618_v23 = vld [vmem:[%s26237_s22 + $0xd0c] ss:$16 sps:$4 sm:$0xff]  }
 0xcfc   : > { %12625 = vmatpush1.bf16.msra.mxu0 %v24532_v19  ;;  %v24613_v19 = vld [vmem:[%s26237_s22 + $0xd00] ss:$16 sps:$4 sm:$0xff]  }
 0xcfd   : > { %12626 = vmatprep.subr.bf16.mxu0 %v24540_v28  ;;  %v24616_v28 = vld [vmem:[%s26237_s22 + $0xd08] ss:$16 sps:$4 sm:$0xff]  }
 0xd00   : > { %12627 = vmatpush1.bf16.msra.mxu0 %v24538_v29  ;;  %v24621_v29 = vld [vmem:[%s26237_s22 + $0xd24] ss:$16 sps:$4 sm:$0xff]  }
 0xd01   : > { %12628 = vmatprep.subr.bf16.mxu0 %v24546_v30  ;;  %v24624_v30 = vld [vmem:[%s26237_s22 + $0xd2c] ss:$16 sps:$4 sm:$0xff]  }
 0xd04   : > { %12629 = vmatpush1.bf16.msra.mxu0 %v24544_v32  ;;  %v24619_v32 = vld [vmem:[%s26237_s22 + $0xd20] ss:$16 sps:$4 sm:$0xff]  }
 0xd05   : > { %12630 = vmatprep.subr.bf16.mxu0 %v24552_v33  ;;  %v24622_v33 = vld [vmem:[%s26237_s22 + $0xd28] ss:$16 sps:$4 sm:$0xff]  }
 0xd08   : > { %12631 = vmatpush1.bf16.msra.mxu0 %v24550_v34  ;;  %v24627_v34 = vld [vmem:[%s26237_s22 + $0xd44] ss:$16 sps:$4 sm:$0xff]  }
 0xd09   : > { %12632 = vmatprep.subr.bf16.mxu0 %v24558_v35  ;;  %v24630_v35 = vld [vmem:[%s26237_s22 + $0xd4c] ss:$16 sps:$4 sm:$0xff]  }
 0xd0c   : > { %12633 = vmatpush1.bf16.msra.mxu0 %v24556_v36  ;;  %v24625_v36 = vld [vmem:[%s26237_s22 + $0xd40] ss:$16 sps:$4 sm:$0xff]  }
 0xd0d   : > { %12634 = vmatprep.subr.bf16.mxu0 %v24564_v37  ;;  %v24628_v37 = vld [vmem:[%s26237_s22 + $0xd48] ss:$16 sps:$4 sm:$0xff]  }
 0xd10   : > { %12635 = vmatpush1.bf16.msra.mxu0 %v24562_v38  ;;  %v24633_v38 = vld [vmem:[%s26237_s22 + $0xd64] ss:$16 sps:$4 sm:$0xff]  }
 0xd11   : > { %13527 = vmatprep.subr.bf16.mxu0 %v24570_v39  ;;  %v24636_v39 = vld [vmem:[%s26237_s22 + $0xd6c] ss:$16 sps:$4 sm:$0xff]  }
 0xd66   : > { %v11674_v42 = vpop.f32.mrb[44].mxu0 }
 0xd67   : > { %v21893_v43 = vadd.f32 %v11674_v42, %v10868_v40  ;;  %v11676_v45 = vpop.f32.mrb[45].mxu0  ;;  %v24631_v40 = vld [vmem:[%s26237_s22 + $0xd60] ss:$16 sps:$4 sm:$0xff]   ;;  %v24639_v42 = vld [vmem:[%s26237_s22 + $0xd84] ss:$16 sps:$4 sm:$0xff]  }
 0xd68   : > { %v21894_v47 = vadd.f32 %v11676_v45, %v10872_v41  ;;  %v11678_v49 = vpop.f32.mrb[46].mxu0  ;;  %v24634_v41 = vld [vmem:[%s26237_s22 + $0xd68] ss:$16 sps:$4 sm:$0xff]   ;;  %v24637_v45 = vld [vmem:[%s26237_s22 + $0xd80] ss:$16 sps:$4 sm:$0xff]  }
 0xd69   : > { %v11683_v7 = vmax.f32 %v21893_v43, 0.0  ;;  %v11679_v48 = vpop.f32.mrb[47].mxu0  ;;  %v24642_v43 = vld [vmem:[%s26237_s22 + $0xd8c] ss:$16 sps:$4 sm:$0xff]   ;;  %v24645_v49 = vld [vmem:[%s26237_s22 + $0xda4] ss:$16 sps:$4 sm:$0xff]  }
 0xd6a   : > { %v11684_v14 = vmax.f32 %v21894_v47, 0.0  ;;  %v24640_v47 = vld [vmem:[%s26237_s22 + $0xd88] ss:$16 sps:$4 sm:$0xff]   ;;  %v24643_v48 = vld [vmem:[%s26237_s22 + $0xda0] ss:$16 sps:$4 sm:$0xff]  }
 0xd6b   : > { %v11687_v56 = vpack.c.bf16 %v11683_v7, %v11683_v7  ;;  %v24648_v7 = vld [vmem:[%s26237_s22 + $0xdac] ss:$16 sps:$4 sm:$0xff]  }
 0xd6c   : > { %v11688_v51 = vpack.c.bf16 %v11684_v14, %v11684_v14  ;;  %v24646_v14 = vld [vmem:[%s26237_s22 + $0xda8] ss:$16 sps:$4 sm:$0xff]  }
 0xd6e   : > { %12554 = vmatprep.mubr.bf16.mxu1 %v11688_v51  ;;  %12636 = vmatprep.mubr.bf16.mxu0 %v11688_v51  ;;  %v24651_v51 = vld [vmem:[%s26237_s22 + $0xdc4] ss:$16 sps:$4 sm:$0xff]  }
 0xd6f   : > { %12555 = vmatmul.mubr.bf16.vlgmr.msra.gmra.mrb[48].mxu1 %v11687_v56  ;;  %12637 = vmatmul.mubr.bf16.vlgmr.msra.gmra.mrb[48].mxu0 %v11687_v56  ;;  %v24652_v56 = vld [vmem:[%s26237_s22 + $0xdc8] ss:$16 sps:$4 sm:$0xff]  }
 0xd70   : > { %13446 = vmatpush1.bf16.msra.mxu1 %v24565_v52  ;;  %13528 = vmatpush1.bf16.msra.mxu0 %v24568_v53  ;;  %v24654_v52 = vld [vmem:[%s26237_s22 + $0xdcc] ss:$16 sps:$4 sm:$0xff]   ;;  %v24649_v53 = vld [vmem:[%s26237_s22 + $0xdc0] ss:$16 sps:$4 sm:$0xff]  }
 0xd71   : > { %13447 = vmatprep.subr.bf16.mxu1 %v24573_v27  ;;  %13529 = vmatprep.subr.bf16.mxu0 %v24576_v58  ;;  %v24657_v27 = vld [vmem:[%s26237_s22 + $0xde4] ss:$16 sps:$4 sm:$0xff]   ;;  %v24660_v58 = vld [vmem:[%s26237_s22 + $0xdec] ss:$16 sps:$4 sm:$0xff]  }
 0xd74   : > { %13448 = vmatpush1.bf16.msra.mxu1 %v24571_v61  ;;  %13530 = vmatpush1.bf16.msra.mxu0 %v24574_v59  ;;  %v24655_v61 = vld [vmem:[%s26237_s22 + $0xde0] ss:$16 sps:$4 sm:$0xff]   ;;  %v24658_v59 = vld [vmem:[%s26237_s22 + $0xde8] ss:$16 sps:$4 sm:$0xff]  }
 0xd75   : > { %13449 = vmatprep.subr.bf16.mxu1 %v24579_v50  ;;  %13531 = vmatprep.subr.bf16.mxu0 %v24582_v62  ;;  %v24663_v50 = vld [vmem:[%s26237_s22 + $0xe04] ss:$16 sps:$4 sm:$0xff]   ;;  %v24666_v62 = vld [vmem:[%s26237_s22 + $0xe0c] ss:$16 sps:$4 sm:$0xff]  }
 0xd78   : > { %13450 = vmatpush1.bf16.msra.mxu1 %v24577_v63  ;;  %13532 = vmatpush1.bf16.msra.mxu0 %v24580_v31  ;;  %v28170_v63 = vld [vmem:[%s26635_s14 + $0xc] sm:$0xf] }
 0xd79   : > { %13451 = vmatprep.subr.bf16.mxu1 %v24585_v0  ;;  %13533 = vmatprep.subr.bf16.mxu0 %v24588_v1  ;;  %v11824_v31 = vrot.slane %v28170_v63, %v26487_v25  ;;  %v11828_v0 = vrot.slane %v28170_v63, %v26490_v26  ;;  %v11836_v1 = vrot.slane %v28170_v63, %v26564_v55 }
 0xd7c   : > { %13452 = vmatpush1.bf16.msra.mxu1 %v24583_v2  ;;  %13534 = vmatpush1.bf16.msra.mxu0 %v24586_v3 }
 0xd7d   : > { %13453 = vmatprep.subr.bf16.mxu1 %v24591_v44  ;;  %13535 = vmatprep.subr.bf16.mxu0 %v24594_v4 }
 0xd80   : > { %13454 = vmatpush1.bf16.msra.mxu1 %v24589_v5  ;;  %13536 = vmatpush1.bf16.msra.mxu0 %v24592_v6 }
 0xd81   : > { %13455 = vmatprep.subr.bf16.mxu1 %v24597_v24  ;;  %13537 = vmatprep.subr.bf16.mxu0 %v24600_v8 }
 0xd84   : > { %13456 = vmatpush1.bf16.msra.mxu1 %v24595_v10  ;;  %13538 = vmatpush1.bf16.msra.mxu0 %v24598_v11 }
 0xd85   : > { %13457 = vmatprep.subr.bf16.mxu1 %v24603_v12  ;;  %13539 = vmatprep.subr.bf16.mxu0 %v24606_v15 }
 0xd88   : > { %13458 = vmatpush1.bf16.msra.mxu1 %v24601_v16  ;;  %13540 = vmatpush1.bf16.msra.mxu0 %v24604_v17 }
 0xd89   : > { %13459 = vmatprep.subr.bf16.mxu1 %v24609_v18  ;;  %13541 = vmatprep.subr.bf16.mxu0 %v24612_v20  ;;  %v24661_v20 = vld [vmem:[%s26237_s22 + $0xe00] ss:$16 sps:$4 sm:$0xff]  }
 0xd8c   : > { %13460 = vmatpush1.bf16.msra.mxu1 %v24607_v22  ;;  %13542 = vmatpush1.bf16.msra.mxu0 %v24610_v21  ;;  %v24664_v22 = vld [vmem:[%s26237_s22 + $0xe08] ss:$16 sps:$4 sm:$0xff]  }
 0xd8d   : > { %13461 = vmatprep.subr.bf16.mxu1 %v24615_v46  ;;  %13543 = vmatprep.subr.bf16.mxu0 %v24618_v23  ;;  %v24669_v46 = vld [vmem:[%s26237_s22 + $0xe24] ss:$16 sps:$4 sm:$0xff]   ;;  %v24672_v23 = vld [vmem:[%s26237_s22 + $0xe2c] ss:$16 sps:$4 sm:$0xff]  }
 0xd90   : > { %13462 = vmatpush1.bf16.msra.mxu1 %v24613_v19  ;;  %13544 = vmatpush1.bf16.msra.mxu0 %v24616_v28  ;;  %v24667_v28 = vld [vmem:[%s26237_s22 + $0xe20] ss:$16 sps:$4 sm:$0xff]  }
 0xd91   : > { %13463 = vmatprep.subr.bf16.mxu1 %v24621_v29  ;;  %13545 = vmatprep.subr.bf16.mxu0 %v24624_v30  ;;  %v24670_v29 = vld [vmem:[%s26237_s22 + $0xe28] ss:$16 sps:$4 sm:$0xff]   ;;  %v24675_v30 = vld [vmem:[%s26237_s22 + $0xe44] ss:$16 sps:$4 sm:$0xff]  }
 0xd94   : > { %13464 = vmatpush1.bf16.msra.mxu1 %v24619_v32  ;;  %13546 = vmatpush1.bf16.msra.mxu0 %v24622_v33  ;;  %v24678_v32 = vld [vmem:[%s26237_s22 + $0xe4c] ss:$16 sps:$4 sm:$0xff]   ;;  %v24673_v33 = vld [vmem:[%s26237_s22 + $0xe40] ss:$16 sps:$4 sm:$0xff]  }
 0xd95   : > { %13465 = vmatprep.subr.bf16.mxu1 %v24627_v34  ;;  %13547 = vmatprep.subr.bf16.mxu0 %v24630_v35  ;;  %v24676_v34 = vld [vmem:[%s26237_s22 + $0xe48] ss:$16 sps:$4 sm:$0xff]   ;;  %v24681_v35 = vld [vmem:[%s26237_s22 + $0xe64] ss:$16 sps:$4 sm:$0xff]  }
 0xd98   : > { %13466 = vmatpush1.bf16.msra.mxu1 %v24625_v36  ;;  %13548 = vmatpush1.bf16.msra.mxu0 %v24628_v37  ;;  %v24684_v36 = vld [vmem:[%s26237_s22 + $0xe6c] ss:$16 sps:$4 sm:$0xff]   ;;  %v24679_v37 = vld [vmem:[%s26237_s22 + $0xe60] ss:$16 sps:$4 sm:$0xff]  }
 0xd99   : > { %13467 = vmatprep.subr.bf16.mxu1 %v24633_v38  ;;  %13549 = vmatprep.subr.bf16.mxu0 %v24636_v39  ;;  %v24682_v38 = vld [vmem:[%s26237_s22 + $0xe68] ss:$16 sps:$4 sm:$0xff]   ;;  %v24687_v39 = vld [vmem:[%s26237_s22 + $0xe84] ss:$16 sps:$4 sm:$0xff]  }
 0xd9c   : > { %13468 = vmatpush1.bf16.msra.mxu1 %v24631_v40  ;;  %13550 = vmatpush1.bf16.msra.mxu0 %v24634_v41  ;;  %v24690_v40 = vld [vmem:[%s26237_s22 + $0xe8c] ss:$16 sps:$4 sm:$0xff]   ;;  %v24685_v41 = vld [vmem:[%s26237_s22 + $0xe80] ss:$16 sps:$4 sm:$0xff]  }
 0xd9d   : > { %13469 = vmatprep.subr.bf16.mxu1 %v24639_v42  ;;  %13551 = vmatprep.subr.bf16.mxu0 %v24642_v43  ;;  %v24688_v42 = vld [vmem:[%s26237_s22 + $0xe88] ss:$16 sps:$4 sm:$0xff]   ;;  %v24693_v43 = vld [vmem:[%s26237_s22 + $0xea4] ss:$16 sps:$4 sm:$0xff]  }
 0xda0   : > { %13470 = vmatpush1.bf16.msra.mxu1 %v24637_v45  ;;  %13552 = vmatpush1.bf16.msra.mxu0 %v24640_v47  ;;  %v24696_v45 = vld [vmem:[%s26237_s22 + $0xeac] ss:$16 sps:$4 sm:$0xff]   ;;  %v24691_v47 = vld [vmem:[%s26237_s22 + $0xea0] ss:$16 sps:$4 sm:$0xff]  }
 0xda1   : > { %13471 = vmatprep.subr.bf16.mxu1 %v24645_v49  ;;  %13553 = vmatprep.subr.bf16.mxu0 %v24648_v7  ;;  %v24694_v49 = vld [vmem:[%s26237_s22 + $0xea8] ss:$16 sps:$4 sm:$0xff]   ;;  %v24699_v7 = vld [vmem:[%s26237_s22 + $0xec4] ss:$16 sps:$4 sm:$0xff]  }
 0xda4   : > { %13472 = vmatpush1.bf16.msra.mxu1 %v24643_v48  ;;  %13554 = vmatpush1.bf16.msra.mxu0 %v24646_v14  ;;  %v24702_v48 = vld [vmem:[%s26237_s22 + $0xecc] ss:$16 sps:$4 sm:$0xff]   ;;  %v24697_v14 = vld [vmem:[%s26237_s22 + $0xec0] ss:$16 sps:$4 sm:$0xff]  }
 0xda5   : > { %13473 = vmatprep.subr.bf16.mxu1 %v24651_v51  ;;  %13555 = vmatprep.subr.bf16.mxu0 %v24654_v52  ;;  %v24700_v51 = vld [vmem:[%s26237_s22 + $0xec8] ss:$16 sps:$4 sm:$0xff]   ;;  %v24705_v52 = vld [vmem:[%s26237_s22 + $0xee4] ss:$16 sps:$4 sm:$0xff]  }
 0xda8   : > { %13474 = vmatpush1.bf16.msra.mxu1 %v24649_v53  ;;  %13556 = vmatpush1.bf16.msra.mxu0 %v24652_v56  ;;  %v24708_v53 = vld [vmem:[%s26237_s22 + $0xeec] ss:$16 sps:$4 sm:$0xff]   ;;  %v24703_v56 = vld [vmem:[%s26237_s22 + $0xee0] ss:$16 sps:$4 sm:$0xff]  }
 0xda9   : > { %13475 = vmatprep.subr.bf16.mxu1 %v24657_v27  ;;  %13557 = vmatprep.subr.bf16.mxu0 %v24660_v58  ;;  %v24706_v27 = vld [vmem:[%s26237_s22 + $0xee8] ss:$16 sps:$4 sm:$0xff]   ;;  %v24711_v58 = vld [vmem:[%s26237_s22 + $0xf04] ss:$16 sps:$4 sm:$0xff]  }
 0xdac   : > { %13476 = vmatpush1.bf16.msra.mxu1 %v24655_v61  ;;  %13558 = vmatpush1.bf16.msra.mxu0 %v24658_v59  ;;  %v24714_v61 = vld [vmem:[%s26237_s22 + $0xf0c] ss:$16 sps:$4 sm:$0xff]   ;;  %v24709_v59 = vld [vmem:[%s26237_s22 + $0xf00] ss:$16 sps:$4 sm:$0xff]  }
 0xdad   : > { %13486 = vmatprep.subr.bf16.mxu1 %v24663_v50  ;;  %13568 = vmatprep.subr.bf16.mxu0 %v24666_v62  ;;  %v24712_v50 = vld [vmem:[%s26237_s22 + $0xf08] ss:$16 sps:$4 sm:$0xff]   ;;  %v24717_v62 = vld [vmem:[%s26237_s22 + $0xf24] ss:$16 sps:$4 sm:$0xff]  }
 0xe42   : > { %v12556_v2 = vpop.f32.mrb[48].mxu1  ;;  %v28178_v3 = vpop.f32.mrb[48].mxu0 }
 0xe43   : > { %v21895_v44 = vadd.f32 %v12556_v2, %v11824_v31  ;;  %v12558_v4 = vpop.f32.mrb[49].mxu1  ;;  %v12640_v5 = vpop.f32.mrb[49].mxu0  ;;  %v24720_v31 = vld [vmem:[%s26237_s22 + $0xf2c] ss:$16 sps:$4 sm:$0xff]   ;;  %v24723_v2 = vld [vmem:[%s26237_s22 + $0xf44] ss:$16 sps:$4 sm:$0xff]  }
 0xe44   : > { %v21896_v6 = vadd.f32 %v12558_v4, %v11828_v0  ;;  %v21898_v24 = vadd.f32 %v12640_v5, %v11836_v1  ;;  %v12560_v8 = vpop.f32.mrb[50].mxu1  ;;  %v12642_v10 = vpop.f32.mrb[50].mxu0  ;;  %v24715_v0 = vld [vmem:[%s26237_s22 + $0xf20] ss:$16 sps:$4 sm:$0xff]   ;;  %v24718_v1 = vld [vmem:[%s26237_s22 + $0xf28] ss:$16 sps:$4 sm:$0xff]  }
 0xe45   : > { %v12645_v11 = vmax.f32 %v21895_v44, 0.0  ;;  %v12561_v12 = vpop.f32.mrb[51].mxu1  ;;  %v12643_v15 = vpop.f32.mrb[51].mxu0  ;;  %v24726_v44 = vld [vmem:[%s26237_s22 + $0xf4c] ss:$16 sps:$4 sm:$0xff]  }
 0xe46   : > { %v12646_v16 = vmax.f32 %v21896_v6, 0.0  ;;  %v12648_v17 = vmax.f32 %v21898_v24, 0.0  ;;  %v24721_v4 = vld [vmem:[%s26237_s22 + $0xf40] ss:$16 sps:$4 sm:$0xff]   ;;  %v24724_v5 = vld [vmem:[%s26237_s22 + $0xf48] ss:$16 sps:$4 sm:$0xff]  }
 0xe47   : > { %v12649_v21 = vpack.c.bf16 %v12645_v11, %v12645_v11  ;;  %v24729_v6 = vld [vmem:[%s26237_s22 + $0xf64] ss:$16 sps:$4 sm:$0xff]   ;;  %v24732_v24 = vld [vmem:[%s26237_s22 + $0xf6c] ss:$16 sps:$4 sm:$0xff]   ;;  %v24727_v8 = vld [vmem:[%s26237_s22 + $0xf60] ss:$16 sps:$4 sm:$0xff]  }
 0xe48   : > { %v12650_v18 = vpack.c.bf16 %v12646_v16, %v12646_v16  ;;  %v12652_v19 = vpack.c.bf16 %v12648_v17, %v12648_v17  ;;  %v24730_v10 = vld [vmem:[%s26237_s22 + $0xf68] ss:$16 sps:$4 sm:$0xff]   ;;  %v24735_v11 = vld [vmem:[%s26237_s22 + $0xf84] ss:$16 sps:$4 sm:$0xff]   ;;  %v24738_v12 = vld [vmem:[%s26237_s22 + $0xf8c] ss:$16 sps:$4 sm:$0xff]  }
 0xe49   : > { %v24733_v15 = vld [vmem:[%s26237_s22 + $0xf80] ss:$16 sps:$4 sm:$0xff]   ;;  %v24736_v16 = vld [vmem:[%s26237_s22 + $0xf88] ss:$16 sps:$4 sm:$0xff]   ;;  %v24741_v17 = vld [vmem:[%s26237_s22 + $0xfa4] ss:$16 sps:$4 sm:$0xff]  }
 0xe4a   : > { %13477 = vmatprep.mubr.bf16.mxu1 %v12650_v18  ;;  %13559 = vmatprep.mubr.bf16.mxu0 %v12650_v18  ;;  %v24744_v18 = vld [vmem:[%s26237_s22 + $0xfac] ss:$16 sps:$4 sm:$0xff]  }
 0xe4b   : > { %13478 = vmatmul.mubr.bf16.vlgmr.msra.gmra.mrb[52].mxu1 %v12649_v21  ;;  %13560 = vmatmul.mubr.bf16.vlgmr.msra.gmra.mrb[52].mxu0 %v12649_v21  ;;  %v11832_v21 = vrot.slane %v28170_v63, %v26561_v54  ;;  %v24756_v63 = vld [vmem:[%s26237_s22 + $0xfec] ss:$16 sps:$4 sm:$0xff]  }
 0xe4c   : > { %13487 = vmatpush1.bf16.msra.mxu1 %v24661_v20  ;;  %13569 = vmatpush1.bf16.msra.mxu0 %v24664_v22  ;;  %v24739_v20 = vld [vmem:[%s26237_s22 + $0xfa0] ss:$16 sps:$4 sm:$0xff]   ;;  %v24742_v22 = vld [vmem:[%s26237_s22 + $0xfa8] ss:$16 sps:$4 sm:$0xff]  }
 0xe4d   : > { %13518 = vmatprep.mubr.bf16.mxu1 %v12652_v19  ;;  %13600 = vmatprep.mubr.bf16.mxu0 %v12652_v19  ;;  %v24745_v19 = vld [vmem:[%s26237_s22 + $0xfc0] ss:$16 sps:$4 sm:$0xff]  }
 0xe4e   : > { %13488 = vmatprep.subr.bf16.mxu1 %v24669_v46  ;;  %13570 = vmatprep.subr.bf16.mxu0 %v24672_v23  ;;  %v24747_v46 = vld [vmem:[%s26237_s22 + $0xfc4] ss:$16 sps:$4 sm:$0xff]   ;;  %v24750_v23 = vld [vmem:[%s26237_s22 + $0xfcc] ss:$16 sps:$4 sm:$0xff]  }
 0xe50   : > { %13489 = vmatpush1.bf16.msra.mxu1 %v24667_v28  ;;  %13571 = vmatpush1.bf16.msra.mxu0 %v24670_v29  ;;  %v24748_v28 = vld [vmem:[%s26237_s22 + $0xfc8] ss:$16 sps:$4 sm:$0xff]   ;;  %v21897_v29 = vadd.f32 %v28178_v3, %v11832_v21  ;;  %v24757_v3 = vld [vmem:[%s26217_s18 + $0x1000] ss:$16 sps:$4 sm:$0xff]   ;;  %v24825_v21 = vld [vmem:[%s26217_s18 + $0x1164] ss:$16 sps:$4 sm:$0xff]  }
 0xe51   : > { %13490 = vmatprep.subr.bf16.mxu1 %v24675_v30  ;;  %13572 = vmatprep.subr.bf16.mxu0 %v24678_v32  ;;  %v24753_v30 = vld [vmem:[%s26237_s22 + $0xfe4] ss:$16 sps:$4 sm:$0xff]   ;;  %v24751_v32 = vld [vmem:[%s26237_s22 + $0xfe0] ss:$16 sps:$4 sm:$0xff]  }
 0xe54   : > { %13491 = vmatpush1.bf16.msra.mxu1 %v24673_v33  ;;  %13573 = vmatpush1.bf16.msra.mxu0 %v24676_v34  ;;  %v24754_v33 = vld [vmem:[%s26237_s22 + $0xfe8] ss:$16 sps:$4 sm:$0xff]   ;;  %v12647_v34 = vmax.f32 %v21897_v29, 0.0  ;;  %v24834_v29 = vld [vmem:[%s26247_s1 + $0x6c4] ss:$8 sps:$4 sm:$0xff]  }
 0xe55   : > { %13492 = vmatprep.subr.bf16.mxu1 %v24681_v35  ;;  %13574 = vmatprep.subr.bf16.mxu0 %v24684_v36  ;;  %v24759_v35 = vld [vmem:[%s26217_s18 + $0x1004] ss:$16 sps:$4 sm:$0xff]  }
 0xe56   : > { %v24762_v36 = vld [vmem:[%s26247_s1 + $0x604] ss:$8 sps:$4 sm:$0xff]  }
 0xe58   : > { %13493 = vmatpush1.bf16.msra.mxu1 %v24679_v37  ;;  %13575 = vmatpush1.bf16.msra.mxu0 %v24682_v38  ;;  %v24760_v37 = vld [vmem:[%s26247_s1 + $0x600] ss:$8 sps:$4 sm:$0xff]   ;;  %v12651_v38 = vpack.c.bf16 %v12647_v34, %v12647_v34 }
 0xe59   : > { %13494 = vmatprep.subr.bf16.mxu1 %v24687_v39  ;;  %13576 = vmatprep.subr.bf16.mxu0 %v24690_v40  ;;  %v24765_v39 = vld [vmem:[%s26217_s18 + $0x1024] ss:$16 sps:$4 sm:$0xff]   ;;  %v24835_v34 = vld [vmem:[%s26217_s18 + $0x11a0] ss:$16 sps:$4 sm:$0xff]  }
 0xe5a   : > { %v24768_v40 = vld [vmem:[%s26247_s1 + $0x614] ss:$8 sps:$4 sm:$0xff]  }
 0xe5c   : > { %13495 = vmatpush1.bf16.msra.mxu1 %v24685_v41  ;;  %13577 = vmatpush1.bf16.msra.mxu0 %v24688_v42  ;;  %v24763_v41 = vld [vmem:[%s26217_s18 + $0x1020] ss:$16 sps:$4 sm:$0xff]  }
 0xe5d   : > { %13496 = vmatprep.subr.bf16.mxu1 %v24693_v43  ;;  %13578 = vmatprep.subr.bf16.mxu0 %v24696_v45  ;;  %v24766_v42 = vld [vmem:[%s26247_s1 + $0x610] ss:$8 sps:$4 sm:$0xff]   ;;  %v24771_v43 = vld [vmem:[%s26217_s18 + $0x1044] ss:$16 sps:$4 sm:$0xff]  }
 0xe5e   : > { %v24774_v45 = vld [vmem:[%s26247_s1 + $0x624] ss:$8 sps:$4 sm:$0xff]  }
 0xe60   : > { %13497 = vmatpush1.bf16.msra.mxu1 %v24691_v47  ;;  %13579 = vmatpush1.bf16.msra.mxu0 %v24694_v49  ;;  %v24769_v47 = vld [vmem:[%s26217_s18 + $0x1040] ss:$16 sps:$4 sm:$0xff]  }
 0xe61   : > { %13498 = vmatprep.subr.bf16.mxu1 %v24699_v7  ;;  %13580 = vmatprep.subr.bf16.mxu0 %v24702_v48  ;;  %v24772_v49 = vld [vmem:[%s26247_s1 + $0x620] ss:$8 sps:$4 sm:$0xff]   ;;  %v24777_v7 = vld [vmem:[%s26217_s18 + $0x1064] ss:$16 sps:$4 sm:$0xff]  }
 0xe62   : > { %v24780_v48 = vld [vmem:[%s26247_s1 + $0x634] ss:$8 sps:$4 sm:$0xff]  }
 0xe64   : > { %13499 = vmatpush1.bf16.msra.mxu1 %v24697_v14  ;;  %13581 = vmatpush1.bf16.msra.mxu0 %v24700_v51  ;;  %v24775_v14 = vld [vmem:[%s26217_s18 + $0x1060] ss:$16 sps:$4 sm:$0xff]  }
 0xe65   : > { %13500 = vmatprep.subr.bf16.mxu1 %v24705_v52  ;;  %13582 = vmatprep.subr.bf16.mxu0 %v24708_v53  ;;  %v24778_v51 = vld [vmem:[%s26247_s1 + $0x630] ss:$8 sps:$4 sm:$0xff]   ;;  %v24783_v52 = vld [vmem:[%s26217_s18 + $0x1084] ss:$16 sps:$4 sm:$0xff]  }
 0xe66   : > { %v24786_v53 = vld [vmem:[%s26247_s1 + $0x644] ss:$8 sps:$4 sm:$0xff]  }
 0xe68   : > { %13501 = vmatpush1.bf16.msra.mxu1 %v24703_v56  ;;  %13583 = vmatpush1.bf16.msra.mxu0 %v24706_v27  ;;  %v24781_v56 = vld [vmem:[%s26217_s18 + $0x1080] ss:$16 sps:$4 sm:$0xff]  }
 0xe69   : > { %13502 = vmatprep.subr.bf16.mxu1 %v24711_v58  ;;  %13584 = vmatprep.subr.bf16.mxu0 %v24714_v61  ;;  %v24784_v27 = vld [vmem:[%s26247_s1 + $0x640] ss:$8 sps:$4 sm:$0xff]   ;;  %v24789_v58 = vld [vmem:[%s26217_s18 + $0x10a4] ss:$16 sps:$4 sm:$0xff]  }
 0xe6a   : > { %v24792_v61 = vld [vmem:[%s26247_s1 + $0x654] ss:$8 sps:$4 sm:$0xff]  }
 0xe6c   : > { %13503 = vmatpush1.bf16.msra.mxu1 %v24709_v59  ;;  %13585 = vmatpush1.bf16.msra.mxu0 %v24712_v50  ;;  %v24787_v59 = vld [vmem:[%s26217_s18 + $0x10a0] ss:$16 sps:$4 sm:$0xff]  }
 0xe6d   : > { %13504 = vmatprep.subr.bf16.mxu1 %v24717_v62  ;;  %13586 = vmatprep.subr.bf16.mxu0 %v24720_v31  ;;  %v24790_v50 = vld [vmem:[%s26247_s1 + $0x650] ss:$8 sps:$4 sm:$0xff]   ;;  %v24795_v62 = vld [vmem:[%s26217_s18 + $0x10c4] ss:$16 sps:$4 sm:$0xff]  }
 0xe6e   : > { %v24798_v31 = vld [vmem:[%s26247_s1 + $0x664] ss:$8 sps:$4 sm:$0xff]  }
 0xe70   : > { %13505 = vmatpush1.bf16.msra.mxu1 %v24715_v0  ;;  %13587 = vmatpush1.bf16.msra.mxu0 %v24718_v1  ;;  %v24793_v0 = vld [vmem:[%s26217_s18 + $0x10c0] ss:$16 sps:$4 sm:$0xff]  }
 0xe71   : > { %13506 = vmatprep.subr.bf16.mxu1 %v24723_v2  ;;  %13588 = vmatprep.subr.bf16.mxu0 %v24726_v44  ;;  %v24796_v1 = vld [vmem:[%s26247_s1 + $0x660] ss:$8 sps:$4 sm:$0xff]   ;;  %v24801_v2 = vld [vmem:[%s26217_s18 + $0x10e4] ss:$16 sps:$4 sm:$0xff]  }
 0xe72   : > { %v24804_v44 = vld [vmem:[%s26247_s1 + $0x674] ss:$8 sps:$4 sm:$0xff]  }
 0xe74   : > { %13507 = vmatpush1.bf16.msra.mxu1 %v24721_v4  ;;  %13589 = vmatpush1.bf16.msra.mxu0 %v24724_v5  ;;  %v24799_v4 = vld [vmem:[%s26217_s18 + $0x10e0] ss:$16 sps:$4 sm:$0xff]  }
 0xe75   : > { %13508 = vmatprep.subr.bf16.mxu1 %v24729_v6  ;;  %13590 = vmatprep.subr.bf16.mxu0 %v24732_v24  ;;  %v24802_v5 = vld [vmem:[%s26247_s1 + $0x670] ss:$8 sps:$4 sm:$0xff]   ;;  %v24807_v6 = vld [vmem:[%s26217_s18 + $0x1104] ss:$16 sps:$4 sm:$0xff]  }
 0xe76   : > { %v24810_v24 = vld [vmem:[%s26247_s1 + $0x684] ss:$8 sps:$4 sm:$0xff]  }
 0xe78   : > { %13509 = vmatpush1.bf16.msra.mxu1 %v24727_v8  ;;  %13591 = vmatpush1.bf16.msra.mxu0 %v24730_v10  ;;  %v24805_v8 = vld [vmem:[%s26217_s18 + $0x1100] ss:$16 sps:$4 sm:$0xff]  }
 0xe79   : > { %13510 = vmatprep.subr.bf16.mxu1 %v24735_v11  ;;  %13592 = vmatprep.subr.bf16.mxu0 %v24738_v12  ;;  %v24808_v10 = vld [vmem:[%s26247_s1 + $0x680] ss:$8 sps:$4 sm:$0xff]   ;;  %v24813_v11 = vld [vmem:[%s26217_s18 + $0x1124] ss:$16 sps:$4 sm:$0xff]  }
 0xe7a   : > { %v24816_v12 = vld [vmem:[%s26247_s1 + $0x694] ss:$8 sps:$4 sm:$0xff]  }
 0xe7c   : > { %13511 = vmatpush1.bf16.msra.mxu1 %v24733_v15  ;;  %13593 = vmatpush1.bf16.msra.mxu0 %v24736_v16  ;;  %v24811_v15 = vld [vmem:[%s26217_s18 + $0x1120] ss:$16 sps:$4 sm:$0xff]  }
 0xe7d   : > { %13512 = vmatprep.subr.bf16.mxu1 %v24741_v17  ;;  %13594 = vmatprep.subr.bf16.mxu0 %v24744_v18  ;;  %v24814_v16 = vld [vmem:[%s26247_s1 + $0x690] ss:$8 sps:$4 sm:$0xff]   ;;  %v24819_v17 = vld [vmem:[%s26217_s18 + $0x1144] ss:$16 sps:$4 sm:$0xff]  }
 0xe7e   : > { %v24822_v18 = vld [vmem:[%s26247_s1 + $0x6a4] ss:$8 sps:$4 sm:$0xff]  }
 0xe80   : > { %13513 = vmatpush1.bf16.msra.mxu1 %v24739_v20  ;;  %13595 = vmatpush1.bf16.msra.mxu0 %v24742_v22  ;;  %v24817_v20 = vld [vmem:[%s26217_s18 + $0x1140] ss:$16 sps:$4 sm:$0xff]  }
 0xe81   : > { %13514 = vmatprep.subr.bf16.mxu1 %v24747_v46  ;;  %13596 = vmatprep.subr.bf16.mxu0 %v24750_v23  ;;  %v24820_v22 = vld [vmem:[%s26247_s1 + $0x6a0] ss:$8 sps:$4 sm:$0xff]   ;;  %v24828_v46 = vld [vmem:[%s26247_s1 + $0x6b4] ss:$8 sps:$4 sm:$0xff]  }
 0xe82   : > { %v24823_v23 = vld [vmem:[%s26217_s18 + $0x1160] ss:$16 sps:$4 sm:$0xff]  }
 0xe84   : > { %13515 = vmatpush1.bf16.msra.mxu1 %v24745_v19  ;;  %13597 = vmatpush1.bf16.msra.mxu0 %v24748_v28  ;;  %v24826_v19 = vld [vmem:[%s26247_s1 + $0x6b0] ss:$8 sps:$4 sm:$0xff]   ;;  %v24831_v28 = vld [vmem:[%s26217_s18 + $0x1184] ss:$16 sps:$4 sm:$0xff]  }
 0xe85   : > { %13516 = vmatprep.subr.bf16.mxu1 %v24753_v30  ;;  %13598 = vmatprep.subr.bf16.mxu0 %v24756_v63  ;;  %v24829_v30 = vld [vmem:[%s26217_s18 + $0x1180] ss:$16 sps:$4 sm:$0xff]  }
 0xe86   : > { %v24832_v63 = vld [vmem:[%s26247_s1 + $0x6c0] ss:$8 sps:$4 sm:$0xff]  }
 0xe88   : > { %13517 = vmatpush1.bf16.msra.mxu1 %v24751_v32  ;;  %13599 = vmatpush1.bf16.msra.mxu0 %v24754_v33  ;;  %v24837_v32 = vld [vmem:[%s26217_s18 + $0x11a4] ss:$16 sps:$4 sm:$0xff]  }
 0xe89   : > { %14904 = vmatprep.subr.bf16.mxu0 %v24759_v35  ;;  %14016 = vmatprep.subr.bf16.mxu1 %v24762_v36  ;;  %v24840_v33 = vld [vmem:[%s26247_s1 + $0x6d4] ss:$8 sps:$4 sm:$0xff]   ;;  %v24838_v35 = vld [vmem:[%s26247_s1 + $0x6d0] ss:$8 sps:$4 sm:$0xff]  }
 0xe8a   : > { %v24843_v36 = vld [vmem:[%s26217_s18 + $0x11c4] ss:$16 sps:$4 sm:$0xff]  }
 0xe8b   : > { %13519 = vmatmul.mubr.bf16.vlgmr.msra.gmra.mrb[52].mxu1 %v12651_v38  ;;  %13601 = vmatmul.mubr.bf16.vlgmr.msra.gmra.mrb[52].mxu0 %v12651_v38  ;;  %v24844_v38 = vld [vmem:[%s26247_s1 + $0x6e0] ss:$8 sps:$4 sm:$0xff]  }
 0xe8c   : > { %14905 = vmatpush1.bf16.msra.mxu0 %v24757_v3  ;;  %14017 = vmatpush1.bf16.msra.mxu1 %v24760_v37  ;;  %v24841_v3 = vld [vmem:[%s26217_s18 + $0x11c0] ss:$16 sps:$4 sm:$0xff]   ;;  %v24846_v37 = vld [vmem:[%s26247_s1 + $0x6e4] ss:$8 sps:$4 sm:$0xff]  }
 0xe8d   : > { %14906 = vmatprep.subr.bf16.mxu0 %v24765_v39  ;;  %14018 = vmatprep.subr.bf16.mxu1 %v24768_v40  ;;  %v24849_v39 = vld [vmem:[%s26217_s18 + $0x11e4] ss:$16 sps:$4 sm:$0xff]   ;;  %v24847_v40 = vld [vmem:[%s26217_s18 + $0x11e0] ss:$16 sps:$4 sm:$0xff]  }
 0xe8e   : > { %14936 = vmatprep.mubr.bf16.mxu0 %v26312_v57 }
 0xe90   : > { %14907 = vmatpush1.bf16.msra.mxu0 %v24763_v41  ;;  %14019 = vmatpush1.bf16.msra.mxu1 %v24766_v42  ;;  %v24852_v41 = vld [vmem:[%s26247_s1 + $0x6f4] ss:$8 sps:$4 sm:$0xff]   ;;  %v24850_v42 = vld [vmem:[%s26247_s1 + $0x6f0] ss:$8 sps:$4 sm:$0xff]  }
 0xe91   : > { %14908 = vmatprep.subr.bf16.mxu0 %v24771_v43  ;;  %14020 = vmatprep.subr.bf16.mxu1 %v24774_v45  ;;  %v24855_v43 = vld [vmem:[%s26217_s18 + $0x1204] ss:$16 sps:$4 sm:$0xff]   ;;  %v24853_v45 = vld [vmem:[%s26217_s18 + $0x1200] ss:$16 sps:$4 sm:$0xff]  }
 0xe94   : > { %14909 = vmatpush1.bf16.msra.mxu0 %v24769_v47  ;;  %14021 = vmatpush1.bf16.msra.mxu1 %v24772_v49  ;;  %v24858_v47 = vld [vmem:[%s26247_s1 + $0x704] ss:$8 sps:$4 sm:$0xff]   ;;  %v24859_v49 = vld [vmem:[%s26217_s18 + $0x1220] ss:$16 sps:$4 sm:$0xff]  }
 0xe95   : > { %14910 = vmatprep.subr.bf16.mxu0 %v24777_v7  ;;  %14022 = vmatprep.subr.bf16.mxu1 %v24780_v48  ;;  %v24861_v7 = vld [vmem:[%s26217_s18 + $0x1224] ss:$16 sps:$4 sm:$0xff]   ;;  %v24865_v48 = vld [vmem:[%s26217_s18 + $0x1240] ss:$16 sps:$4 sm:$0xff]  }
 0xe98   : > { %14911 = vmatpush1.bf16.msra.mxu0 %v24775_v14  ;;  %14023 = vmatpush1.bf16.msra.mxu1 %v24778_v51  ;;  %v24867_v14 = vld [vmem:[%s26217_s18 + $0x1244] ss:$16 sps:$4 sm:$0xff]   ;;  %v24871_v51 = vld [vmem:[%s26217_s18 + $0x1260] ss:$16 sps:$4 sm:$0xff]  }
 0xe99   : > { %14912 = vmatprep.subr.bf16.mxu0 %v24783_v52  ;;  %14024 = vmatprep.subr.bf16.mxu1 %v24786_v53  ;;  %v24873_v52 = vld [vmem:[%s26217_s18 + $0x1264] ss:$16 sps:$4 sm:$0xff]   ;;  %v24877_v53 = vld [vmem:[%s26217_s18 + $0x1280] ss:$16 sps:$4 sm:$0xff]  }
 0xe9c   : > { %14913 = vmatpush1.bf16.msra.mxu0 %v24781_v56  ;;  %14025 = vmatpush1.bf16.msra.mxu1 %v24784_v27  ;;  %v24879_v56 = vld [vmem:[%s26217_s18 + $0x1284] ss:$16 sps:$4 sm:$0xff]   ;;  %v24883_v27 = vld [vmem:[%s26217_s18 + $0x12a0] ss:$16 sps:$4 sm:$0xff]  }
 0xe9d   : > { %14914 = vmatprep.subr.bf16.mxu0 %v24789_v58  ;;  %14026 = vmatprep.subr.bf16.mxu1 %v24792_v61  ;;  %v24885_v58 = vld [vmem:[%s26217_s18 + $0x12a4] ss:$16 sps:$4 sm:$0xff]   ;;  %v24889_v61 = vld [vmem:[%s26217_s18 + $0x12c0] ss:$16 sps:$4 sm:$0xff]  }
 0xea0   : > { %14915 = vmatpush1.bf16.msra.mxu0 %v24787_v59  ;;  %14027 = vmatpush1.bf16.msra.mxu1 %v24790_v50  ;;  %v24891_v59 = vld [vmem:[%s26217_s18 + $0x12c4] ss:$16 sps:$4 sm:$0xff]   ;;  %v24895_v50 = vld [vmem:[%s26217_s18 + $0x12e0] ss:$16 sps:$4 sm:$0xff]  }
 0xea1   : > { %14916 = vmatprep.subr.bf16.mxu0 %v24795_v62  ;;  %14028 = vmatprep.subr.bf16.mxu1 %v24798_v31  ;;  %v24897_v62 = vld [vmem:[%s26217_s18 + $0x12e4] ss:$16 sps:$4 sm:$0xff]   ;;  %v24901_v31 = vld [vmem:[%s26217_s18 + $0x1300] ss:$16 sps:$4 sm:$0xff]  }
 0xea4   : > { %14917 = vmatpush1.bf16.msra.mxu0 %v24793_v0  ;;  %14029 = vmatpush1.bf16.msra.mxu1 %v24796_v1  ;;  %v24903_v0 = vld [vmem:[%s26217_s18 + $0x1304] ss:$16 sps:$4 sm:$0xff]   ;;  %v24907_v1 = vld [vmem:[%s26217_s18 + $0x1320] ss:$16 sps:$4 sm:$0xff]  }
 0xea5   : > { %14918 = vmatprep.subr.bf16.mxu0 %v24801_v2  ;;  %14030 = vmatprep.subr.bf16.mxu1 %v24804_v44  ;;  %v24909_v2 = vld [vmem:[%s26217_s18 + $0x1324] ss:$16 sps:$4 sm:$0xff]   ;;  %v24913_v44 = vld [vmem:[%s26217_s18 + $0x1340] ss:$16 sps:$4 sm:$0xff]  }
 0xea8   : > { %14919 = vmatpush1.bf16.msra.mxu0 %v24799_v4  ;;  %14031 = vmatpush1.bf16.msra.mxu1 %v24802_v5  ;;  %v24915_v4 = vld [vmem:[%s26217_s18 + $0x1344] ss:$16 sps:$4 sm:$0xff]   ;;  %v24919_v5 = vld [vmem:[%s26217_s18 + $0x1360] ss:$16 sps:$4 sm:$0xff]  }
 0xea9   : > { %14920 = vmatprep.subr.bf16.mxu0 %v24807_v6  ;;  %14032 = vmatprep.subr.bf16.mxu1 %v24810_v24  ;;  %v24921_v6 = vld [vmem:[%s26217_s18 + $0x1364] ss:$16 sps:$4 sm:$0xff]   ;;  %v24925_v24 = vld [vmem:[%s26217_s18 + $0x1380] ss:$16 sps:$4 sm:$0xff]  }
 0xeac   : > { %14921 = vmatpush1.bf16.msra.mxu0 %v24805_v8  ;;  %14033 = vmatpush1.bf16.msra.mxu1 %v24808_v10  ;;  %v24927_v8 = vld [vmem:[%s26217_s18 + $0x1384] ss:$16 sps:$4 sm:$0xff]   ;;  %v24931_v10 = vld [vmem:[%s26217_s18 + $0x13a0] ss:$16 sps:$4 sm:$0xff]  }
 0xead   : > { %14922 = vmatprep.subr.bf16.mxu0 %v24813_v11  ;;  %14034 = vmatprep.subr.bf16.mxu1 %v24816_v12  ;;  %v24933_v11 = vld [vmem:[%s26217_s18 + $0x13a4] ss:$16 sps:$4 sm:$0xff]   ;;  %v24937_v12 = vld [vmem:[%s26217_s18 + $0x13c0] ss:$16 sps:$4 sm:$0xff]  }
 0xeb0   : > { %14923 = vmatpush1.bf16.msra.mxu0 %v24811_v15  ;;  %14035 = vmatpush1.bf16.msra.mxu1 %v24814_v16  ;;  %v24939_v15 = vld [vmem:[%s26217_s18 + $0x13c4] ss:$16 sps:$4 sm:$0xff]   ;;  %v24943_v16 = vld [vmem:[%s26217_s18 + $0x13e0] ss:$16 sps:$4 sm:$0xff]  }
 0xeb1   : > { %14924 = vmatprep.subr.bf16.mxu0 %v24819_v17  ;;  %14036 = vmatprep.subr.bf16.mxu1 %v24822_v18  ;;  %v24945_v17 = vld [vmem:[%s26217_s18 + $0x13e4] ss:$16 sps:$4 sm:$0xff]   ;;  %v28347_v18 = vld [vmem:[%s26815_s28 + $0xc] sm:$0xf] }
 0xeb4   : > { %14925 = vmatpush1.bf16.msra.mxu0 %v24817_v20  ;;  %14037 = vmatpush1.bf16.msra.mxu1 %v24820_v22  ;;  %v12788_v20 = vrot.slane %v28347_v18, %v26487_v25  ;;  %v12792_v22 = vrot.slane %v28347_v18, %v26490_v26 }
 0xeb5   : > { %14926 = vmatprep.subr.bf16.mxu0 %v24825_v21  ;;  %14038 = vmatprep.subr.bf16.mxu1 %v24828_v46  ;;  %v12800_v21 = vrot.slane %v28347_v18, %v26564_v55 }
 0xeb8   : > { %14927 = vmatpush1.bf16.msra.mxu0 %v24823_v23  ;;  %14039 = vmatpush1.bf16.msra.mxu1 %v24826_v19 }
 0xeb9   : > { %14928 = vmatprep.subr.bf16.mxu0 %v24831_v28  ;;  %14040 = vmatprep.subr.bf16.mxu1 %v24834_v29 }
 0xebc   : > { %14929 = vmatpush1.bf16.msra.mxu0 %v24829_v30  ;;  %14041 = vmatpush1.bf16.msra.mxu1 %v24832_v63 }
 0xebd   : > { %14930 = vmatprep.subr.bf16.mxu0 %v24837_v32  ;;  %14042 = vmatprep.subr.bf16.mxu1 %v24840_v33 }
 0xec0   : > { %14931 = vmatpush1.bf16.msra.mxu0 %v24835_v34  ;;  %14043 = vmatpush1.bf16.msra.mxu1 %v24838_v35 }
 0xec1   : > { %14932 = vmatprep.subr.bf16.mxu0 %v24843_v36  ;;  %14044 = vmatprep.subr.bf16.mxu1 %v24846_v37 }
 0xec4   : > { %14933 = vmatpush1.bf16.msra.mxu0 %v24841_v3  ;;  %14045 = vmatpush1.bf16.msra.mxu1 %v24844_v38 }
 0xec5   : > { %14934 = vmatprep.subr.bf16.mxu0 %v24849_v39  ;;  %14046 = vmatprep.subr.bf16.mxu1 %v24852_v41  ;;  %v24856_v39 = vld [vmem:[%s26247_s1 + $0x700] ss:$8 sps:$4 sm:$0xff]   ;;  %v24864_v41 = vld [vmem:[%s26247_s1 + $0x714] ss:$8 sps:$4 sm:$0xff]  }
 0xec8   : > { %14935 = vmatpush1.bf16.msra.mxu0 %v24847_v40  ;;  %14047 = vmatpush1.bf16.msra.mxu1 %v24850_v42 }
 0xec9   : > { %14945 = vmatprep.subr.bf16.mxu0 %v24855_v43  ;;  %14057 = vmatprep.subr.bf16.mxu1 %v24858_v47  ;;  %v24862_v43 = vld [vmem:[%s26247_s1 + $0x710] ss:$8 sps:$4 sm:$0xff]   ;;  %v24868_v47 = vld [vmem:[%s26247_s1 + $0x720] ss:$8 sps:$4 sm:$0xff]  }
 0xecb   : > { %14937 = vmatmul.mubr.bf16.vlgmr.msra.gmra.mrb[56].mxu0 %v26334_v9 }
 0xecc   : > { %14946 = vmatpush1.bf16.msra.mxu0 %v24853_v45  ;;  %14977 = vmatprep.mubr.bf16.mxu0 %v26319_v60  ;;  %v24870_v45 = vld [vmem:[%s26247_s1 + $0x724] ss:$8 sps:$4 sm:$0xff]  }
 0xecd   : > { %14947 = vmatprep.subr.bf16.mxu0 %v24861_v7  ;;  %v24874_v7 = vld [vmem:[%s26247_s1 + $0x730] ss:$8 sps:$4 sm:$0xff]  }
 0xed0   : > { %14948 = vmatpush1.bf16.msra.mxu0 %v24859_v49  ;;  %v24876_v49 = vld [vmem:[%s26247_s1 + $0x734] ss:$8 sps:$4 sm:$0xff]  }
 0xed1   : > { %14949 = vmatprep.subr.bf16.mxu0 %v24867_v14  ;;  %v24880_v14 = vld [vmem:[%s26247_s1 + $0x740] ss:$8 sps:$4 sm:$0xff]  }
 0xed4   : > { %14950 = vmatpush1.bf16.msra.mxu0 %v24865_v48  ;;  %v24882_v48 = vld [vmem:[%s26247_s1 + $0x744] ss:$8 sps:$4 sm:$0xff]  }
 0xed5   : > { %14951 = vmatprep.subr.bf16.mxu0 %v24873_v52  ;;  %v24886_v52 = vld [vmem:[%s26247_s1 + $0x750] ss:$8 sps:$4 sm:$0xff]  }
 0xed8   : > { %14952 = vmatpush1.bf16.msra.mxu0 %v24871_v51  ;;  %v24888_v51 = vld [vmem:[%s26247_s1 + $0x754] ss:$8 sps:$4 sm:$0xff]  }
 0xed9   : > { %14953 = vmatprep.subr.bf16.mxu0 %v24879_v56  ;;  %v24892_v56 = vld [vmem:[%s26247_s1 + $0x760] ss:$8 sps:$4 sm:$0xff]  }
 0xedc   : > { %14954 = vmatpush1.bf16.msra.mxu0 %v24877_v53  ;;  %v24894_v53 = vld [vmem:[%s26247_s1 + $0x764] ss:$8 sps:$4 sm:$0xff]  }
 0xedd   : > { %14955 = vmatprep.subr.bf16.mxu0 %v24885_v58  ;;  %v24898_v58 = vld [vmem:[%s26247_s1 + $0x770] ss:$8 sps:$4 sm:$0xff]  }
 0xee0   : > { %14956 = vmatpush1.bf16.msra.mxu0 %v24883_v27  ;;  %v24900_v27 = vld [vmem:[%s26247_s1 + $0x774] ss:$8 sps:$4 sm:$0xff]  }
 0xee1   : > { %14957 = vmatprep.subr.bf16.mxu0 %v24891_v59  ;;  %v24904_v59 = vld [vmem:[%s26247_s1 + $0x780] ss:$8 sps:$4 sm:$0xff]  }
 0xee4   : > { %14958 = vmatpush1.bf16.msra.mxu0 %v24889_v61  ;;  %v24906_v61 = vld [vmem:[%s26247_s1 + $0x784] ss:$8 sps:$4 sm:$0xff]  }
 0xee5   : > { %14959 = vmatprep.subr.bf16.mxu0 %v24897_v62  ;;  %v24910_v62 = vld [vmem:[%s26247_s1 + $0x790] ss:$8 sps:$4 sm:$0xff]  }
 0xee8   : > { %14960 = vmatpush1.bf16.msra.mxu0 %v24895_v50  ;;  %v24912_v50 = vld [vmem:[%s26247_s1 + $0x794] ss:$8 sps:$4 sm:$0xff]  }
 0xee9   : > { %14961 = vmatprep.subr.bf16.mxu0 %v24903_v0  ;;  %v24916_v0 = vld [vmem:[%s26247_s1 + $0x7a0] ss:$8 sps:$4 sm:$0xff]  }
 0xeec   : > { %14962 = vmatpush1.bf16.msra.mxu0 %v24901_v31  ;;  %v24918_v31 = vld [vmem:[%s26247_s1 + $0x7a4] ss:$8 sps:$4 sm:$0xff]  }
 0xeed   : > { %14963 = vmatprep.subr.bf16.mxu0 %v24909_v2  ;;  %v24922_v2 = vld [vmem:[%s26247_s1 + $0x7b0] ss:$8 sps:$4 sm:$0xff]  }
 0xef0   : > { %14964 = vmatpush1.bf16.msra.mxu0 %v24907_v1  ;;  %v24924_v1 = vld [vmem:[%s26247_s1 + $0x7b4] ss:$8 sps:$4 sm:$0xff]  }
 0xef1   : > { %14965 = vmatprep.subr.bf16.mxu0 %v24915_v4  ;;  %v24928_v4 = vld [vmem:[%s26247_s1 + $0x7c0] ss:$8 sps:$4 sm:$0xff]  }
 0xef4   : > { %14966 = vmatpush1.bf16.msra.mxu0 %v24913_v44  ;;  %v24930_v44 = vld [vmem:[%s26247_s1 + $0x7c4] ss:$8 sps:$4 sm:$0xff]  }
 0xef5   : > { %14967 = vmatprep.subr.bf16.mxu0 %v24921_v6  ;;  %v24934_v6 = vld [vmem:[%s26247_s1 + $0x7d0] ss:$8 sps:$4 sm:$0xff]  }
 0xef8   : > { %14968 = vmatpush1.bf16.msra.mxu0 %v24919_v5  ;;  %v24936_v5 = vld [vmem:[%s26247_s1 + $0x7d4] ss:$8 sps:$4 sm:$0xff]  }
 0xef9   : > { %14969 = vmatprep.subr.bf16.mxu0 %v24927_v8  ;;  %v24942_v8 = vld [vmem:[%s26247_s1 + $0x7e4] ss:$8 sps:$4 sm:$0xff]  }
 0xefc   : > { %14970 = vmatpush1.bf16.msra.mxu0 %v24925_v24  ;;  %v12796_v24 = vrot.slane %v28347_v18, %v26561_v54  ;;  %v24949_v18 = vld [vmem:[%s26217_s18 + $0x1008] ss:$16 sps:$4 sm:$0xff]  }
 0xefd   : > { %14971 = vmatprep.subr.bf16.mxu0 %v24933_v11 }
 0xf00   : > { %14972 = vmatpush1.bf16.msra.mxu0 %v24931_v10  ;;  %v24940_v10 = vld [vmem:[%s26247_s1 + $0x7e0] ss:$8 sps:$4 sm:$0xff]  }
 0xf01   : > { %14973 = vmatprep.subr.bf16.mxu0 %v24939_v15  ;;  %v24946_v15 = vld [vmem:[%s26247_s1 + $0x7f0] ss:$8 sps:$4 sm:$0xff]  }
 0xf04   : > { %14974 = vmatpush1.bf16.msra.mxu0 %v24937_v12  ;;  %v24948_v12 = vld [vmem:[%s26247_s1 + $0x7f4] ss:$8 sps:$4 sm:$0xff]  }
 0xf05   : > { %14975 = vmatprep.subr.bf16.mxu0 %v24945_v17  ;;  %v24951_v17 = vld [vmem:[%s26217_s18 + $0x100c] ss:$16 sps:$4 sm:$0xff]  }
 0xf08   : > { %14976 = vmatpush1.bf16.msra.mxu0 %v24943_v16 }
 0xf0b   : > { %14978 = vmatmul.mubr.bf16.vlgmr.msra.gmra.mrb[56].mxu0 %v26341_v13 }
 0xf5e   : > { %v13520_v46 = vpop.f32.mrb[52].mxu1  ;;  %v28355_v23 = vpop.f32.mrb[52].mxu0 }
 0xf5f   : > { %v21899_v19 = vadd.f32 %v13520_v46, %v12788_v20  ;;  %v13522_v28 = vpop.f32.mrb[53].mxu1  ;;  %v13604_v29 = vpop.f32.mrb[53].mxu0  ;;  %v21901_v11 = vadd.f32 %v28355_v23, %v12796_v24  ;;  %v25047_v46 = vld [vmem:[%s26227_s15 + $0x1004] ss:$16 sps:$4 sm:$0xff]   ;;  %v24952_v23 = vld [vmem:[%s26217_s18 + $0x1028] ss:$16 sps:$4 sm:$0xff]  }
 0xf60   : > { %v21900_v30 = vadd.f32 %v13522_v28, %v12792_v22  ;;  %v21902_v63 = vadd.f32 %v13604_v29, %v12800_v21  ;;  %v13524_v32 = vpop.f32.mrb[54].mxu1  ;;  %v13606_v33 = vpop.f32.mrb[54].mxu0  ;;  %v24954_v22 = vld [vmem:[%s26217_s18 + $0x102c] ss:$16 sps:$4 sm:$0xff]   ;;  %v25045_v21 = vld [vmem:[%s26227_s15 + $0x1000] ss:$16 sps:$4 sm:$0xff]   ;;  %15868 = vmatprep.subr.bf16.mxu0 %v25047_v46 }
 0xf61   : > { %v13609_v34 = vmax.f32 %v21899_v19, 0.0  ;;  %v13525_v35 = vpop.f32.mrb[55].mxu1  ;;  %v13607_v36 = vpop.f32.mrb[55].mxu0  ;;  %v13611_v16 = vmax.f32 %v21901_v11, 0.0  ;;  %v25053_v19 = vld [vmem:[%s26227_s15 + $0x1024] ss:$16 sps:$4 sm:$0xff]   ;;  %15869 = vmatpush1.bf16.msra.mxu0 %v25045_v21 }
 0xf62   : > { %v13610_v3 = vmax.f32 %v21900_v30, 0.0  ;;  %v13612_v37 = vmax.f32 %v21902_v63, 0.0  ;;  %v24957_v28 = vld [vmem:[%s26217_s18 + $0x104c] ss:$16 sps:$4 sm:$0xff]   ;;  %v25051_v29 = vld [vmem:[%s26227_s15 + $0x1020] ss:$16 sps:$4 sm:$0xff]   ;;  %15870 = vmatprep.subr.bf16.mxu0 %v25053_v19 }
 0xf63   : > { %v13613_v40 = vpack.c.bf16 %v13609_v34, %v13609_v34  ;;  %v13615_v20 = vpack.c.bf16 %v13611_v16, %v13611_v16  ;;  %v24955_v30 = vld [vmem:[%s26217_s18 + $0x1048] ss:$16 sps:$4 sm:$0xff]   ;;  %v25059_v63 = vld [vmem:[%s26227_s15 + $0x1044] ss:$16 sps:$4 sm:$0xff]   ;;  %v24960_v32 = vld [vmem:[%s26217_s18 + $0x106c] ss:$16 sps:$4 sm:$0xff]  }
 0xf64   : > { %v13614_v38 = vpack.c.bf16 %v13610_v3, %v13610_v3  ;;  %v13616_v42 = vpack.c.bf16 %v13612_v37, %v13612_v37  ;;  %v24958_v33 = vld [vmem:[%s26217_s18 + $0x1068] ss:$16 sps:$4 sm:$0xff]   ;;  %v25065_v34 = vld [vmem:[%s26227_s15 + $0x1064] ss:$16 sps:$4 sm:$0xff]   ;;  %v24963_v35 = vld [vmem:[%s26217_s18 + $0x108c] ss:$16 sps:$4 sm:$0xff]  }
 0xf65   : > { %15871 = vmatpush1.bf16.msra.mxu0 %v25051_v29  ;;  %v25063_v36 = vld [vmem:[%s26227_s15 + $0x1060] ss:$16 sps:$4 sm:$0xff]   ;;  %v24961_v3 = vld [vmem:[%s26217_s18 + $0x1088] ss:$16 sps:$4 sm:$0xff]   ;;  %v25071_v37 = vld [vmem:[%s26227_s15 + $0x1084] ss:$16 sps:$4 sm:$0xff]  }
 0xf66   : > { %14048 = vmatprep.mubr.bf16.mxu1 %v13614_v38  ;;  %15872 = vmatprep.subr.bf16.mxu0 %v25059_v63  ;;  %v24966_v38 = vld [vmem:[%s26217_s18 + $0x10ac] ss:$16 sps:$4 sm:$0xff]   ;;  %v24985_v24 = vld [vmem:[%s26217_s18 + $0x1188] ss:$16 sps:$4 sm:$0xff]   ;;  %v25117_v11 = vld [vmem:[%s26227_s15 + $0x1180] ss:$16 sps:$4 sm:$0xff]  }
 0xf67   : > { %14049 = vmatmul.mubr.bf16.vlgmr.msra.gmra.mrb[56].mxu1 %v13613_v40  ;;  %v24964_v40 = vld [vmem:[%s26217_s18 + $0x10a8] ss:$16 sps:$4 sm:$0xff]   ;;  %v24993_v16 = vld [vmem:[%s26217_s18 + $0x11cc] ss:$16 sps:$4 sm:$0xff]  }
 0xf68   : > { %14058 = vmatpush1.bf16.msra.mxu1 %v24856_v39  ;;  %14089 = vmatprep.mubr.bf16.mxu1 %v13616_v42  ;;  %v25069_v39 = vld [vmem:[%s26227_s15 + $0x1080] ss:$16 sps:$4 sm:$0xff]   ;;  %v24969_v42 = vld [vmem:[%s26217_s18 + $0x10cc] ss:$16 sps:$4 sm:$0xff]   ;;  %v24997_v46 = vld [vmem:[%s26217_s18 + $0x1208] ss:$16 sps:$4 sm:$0xff]  }
 0xf69   : > { %14059 = vmatprep.subr.bf16.mxu1 %v24864_v41  ;;  %v25077_v41 = vld [vmem:[%s26227_s15 + $0x10a4] ss:$16 sps:$4 sm:$0xff]   ;;  %v24999_v21 = vld [vmem:[%s26217_s18 + $0x120c] ss:$16 sps:$4 sm:$0xff]   ;;  %v25000_v19 = vld [vmem:[%s26217_s18 + $0x1228] ss:$16 sps:$4 sm:$0xff]  }
 0xf6a   : > { %v25003_v29 = vld [vmem:[%s26217_s18 + $0x1248] ss:$16 sps:$4 sm:$0xff]  }
 0xf6b   : > { %v25006_v63 = vld [vmem:[%s26217_s18 + $0x1268] ss:$16 sps:$4 sm:$0xff]  }
 0xf6c   : > { %14060 = vmatpush1.bf16.msra.mxu1 %v24862_v43  ;;  %v25075_v43 = vld [vmem:[%s26227_s15 + $0x10a0] ss:$16 sps:$4 sm:$0xff]  }
 0xf6d   : > { %14061 = vmatprep.subr.bf16.mxu1 %v24870_v45  ;;  %v24967_v45 = vld [vmem:[%s26217_s18 + $0x10c8] ss:$16 sps:$4 sm:$0xff]  }
 0xf70   : > { %14062 = vmatpush1.bf16.msra.mxu1 %v24868_v47  ;;  %v25083_v47 = vld [vmem:[%s26227_s15 + $0x10c4] ss:$16 sps:$4 sm:$0xff]  }
 0xf71   : > { %14063 = vmatprep.subr.bf16.mxu1 %v24876_v49  ;;  %v24972_v49 = vld [vmem:[%s26217_s18 + $0x10ec] ss:$16 sps:$4 sm:$0xff]  }
 0xf74   : > { %14064 = vmatpush1.bf16.msra.mxu1 %v24874_v7  ;;  %v25081_v7 = vld [vmem:[%s26227_s15 + $0x10c0] ss:$16 sps:$4 sm:$0xff]  }
 0xf75   : > { %14065 = vmatprep.subr.bf16.mxu1 %v24882_v48  ;;  %v24970_v48 = vld [vmem:[%s26217_s18 + $0x10e8] ss:$16 sps:$4 sm:$0xff]  }
 0xf78   : > { %14066 = vmatpush1.bf16.msra.mxu1 %v24880_v14  ;;  %v25089_v14 = vld [vmem:[%s26227_s15 + $0x10e4] ss:$16 sps:$4 sm:$0xff]  }
 0xf79   : > { %14067 = vmatprep.subr.bf16.mxu1 %v24888_v51  ;;  %v24975_v51 = vld [vmem:[%s26217_s18 + $0x110c] ss:$16 sps:$4 sm:$0xff]  }
 0xf7c   : > { %14068 = vmatpush1.bf16.msra.mxu1 %v24886_v52  ;;  %v25087_v52 = vld [vmem:[%s26227_s15 + $0x10e0] ss:$16 sps:$4 sm:$0xff]  }
 0xf7d   : > { %14069 = vmatprep.subr.bf16.mxu1 %v24894_v53  ;;  %v24973_v53 = vld [vmem:[%s26217_s18 + $0x1108] ss:$16 sps:$4 sm:$0xff]  }
 0xf80   : > { %14070 = vmatpush1.bf16.msra.mxu1 %v24892_v56  ;;  %v25095_v56 = vld [vmem:[%s26227_s15 + $0x1104] ss:$16 sps:$4 sm:$0xff]  }
 0xf81   : > { %14071 = vmatprep.subr.bf16.mxu1 %v24900_v27  ;;  %v24978_v27 = vld [vmem:[%s26217_s18 + $0x112c] ss:$16 sps:$4 sm:$0xff]  }
 0xf84   : > { %14072 = vmatpush1.bf16.msra.mxu1 %v24898_v58  ;;  %v25093_v58 = vld [vmem:[%s26227_s15 + $0x1100] ss:$16 sps:$4 sm:$0xff]  }
 0xf85   : > { %14073 = vmatprep.subr.bf16.mxu1 %v24906_v61  ;;  %v24976_v61 = vld [vmem:[%s26217_s18 + $0x1128] ss:$16 sps:$4 sm:$0xff]  }
 0xf88   : > { %14074 = vmatpush1.bf16.msra.mxu1 %v24904_v59  ;;  %v25101_v59 = vld [vmem:[%s26227_s15 + $0x1124] ss:$16 sps:$4 sm:$0xff]  }
 0xf89   : > { %14075 = vmatprep.subr.bf16.mxu1 %v24912_v50  ;;  %v24981_v50 = vld [vmem:[%s26217_s18 + $0x114c] ss:$16 sps:$4 sm:$0xff]  }
 0xf8c   : > { %14076 = vmatpush1.bf16.msra.mxu1 %v24910_v62  ;;  %v25099_v62 = vld [vmem:[%s26227_s15 + $0x1120] ss:$16 sps:$4 sm:$0xff]  }
 0xf8d   : > { %14077 = vmatprep.subr.bf16.mxu1 %v24918_v31  ;;  %v24979_v31 = vld [vmem:[%s26217_s18 + $0x1148] ss:$16 sps:$4 sm:$0xff]  }
 0xf90   : > { %14078 = vmatpush1.bf16.msra.mxu1 %v24916_v0  ;;  %v25107_v0 = vld [vmem:[%s26227_s15 + $0x1144] ss:$16 sps:$4 sm:$0xff]  }
 0xf91   : > { %14079 = vmatprep.subr.bf16.mxu1 %v24924_v1  ;;  %v24984_v1 = vld [vmem:[%s26217_s18 + $0x116c] ss:$16 sps:$4 sm:$0xff]  }
 0xf94   : > { %14080 = vmatpush1.bf16.msra.mxu1 %v24922_v2  ;;  %v25105_v2 = vld [vmem:[%s26227_s15 + $0x1140] ss:$16 sps:$4 sm:$0xff]  }
 0xf95   : > { %14081 = vmatprep.subr.bf16.mxu1 %v24930_v44  ;;  %v24982_v44 = vld [vmem:[%s26217_s18 + $0x1168] ss:$16 sps:$4 sm:$0xff]  }
 0xf98   : > { %14082 = vmatpush1.bf16.msra.mxu1 %v24928_v4  ;;  %v25113_v4 = vld [vmem:[%s26227_s15 + $0x1164] ss:$16 sps:$4 sm:$0xff]  }
 0xf99   : > { %14083 = vmatprep.subr.bf16.mxu1 %v24936_v5  ;;  %v24987_v5 = vld [vmem:[%s26217_s18 + $0x118c] ss:$16 sps:$4 sm:$0xff]  }
 0xf9c   : > { %14084 = vmatpush1.bf16.msra.mxu1 %v24934_v6  ;;  %v25111_v6 = vld [vmem:[%s26227_s15 + $0x1160] ss:$16 sps:$4 sm:$0xff]  }
 0xf9d   : > { %14085 = vmatprep.subr.bf16.mxu1 %v24942_v8  ;;  %v25119_v8 = vld [vmem:[%s26227_s15 + $0x1184] ss:$16 sps:$4 sm:$0xff]  }
 0xfa0   : > { %14086 = vmatpush1.bf16.msra.mxu1 %v24940_v10  ;;  %v24990_v10 = vld [vmem:[%s26217_s18 + $0x11ac] ss:$16 sps:$4 sm:$0xff]  }
 0xfa1   : > { %14087 = vmatprep.subr.bf16.mxu1 %v24948_v12  ;;  %v24988_v12 = vld [vmem:[%s26217_s18 + $0x11a8] ss:$16 sps:$4 sm:$0xff]  }
 0xfa4   : > { %14088 = vmatpush1.bf16.msra.mxu1 %v24946_v15  ;;  %v25125_v15 = vld [vmem:[%s26227_s15 + $0x11a4] ss:$16 sps:$4 sm:$0xff]  }
 0xfa5   : > { %14986 = vmatprep.subr.bf16.mxu1 %v24951_v17  ;;  %v25123_v17 = vld [vmem:[%s26227_s15 + $0x11a0] ss:$16 sps:$4 sm:$0xff]  }
 0xfa7   : > { %14090 = vmatmul.mubr.bf16.vlgmr.msra.gmra.mrb[56].mxu1 %v13615_v20  ;;  %v24996_v20 = vld [vmem:[%s26217_s18 + $0x11ec] ss:$16 sps:$4 sm:$0xff]  }
 0xfa8   : > { %14987 = vmatpush1.bf16.msra.mxu1 %v24949_v18  ;;  %15018 = vmatprep.mubr.bf16.mxu1 %v26312_v57  ;;  %v25057_v57 = vld [vmem:[%s26227_s15 + $0x1040] ss:$16 sps:$4 sm:$0xff]   ;;  %v24991_v18 = vld [vmem:[%s26217_s18 + $0x11c8] ss:$16 sps:$4 sm:$0xff]  }
 0xfa9   : > { %14988 = vmatprep.subr.bf16.mxu1 %v24954_v22  ;;  %15873 = vmatpush1.bf16.msra.mxu0 %v25057_v57  ;;  %v24994_v22 = vld [vmem:[%s26217_s18 + $0x11e8] ss:$16 sps:$4 sm:$0xff]  }
 0xfaa   : > { %15874 = vmatprep.subr.bf16.mxu0 %v25065_v34  ;;  %v25009_v57 = vld [vmem:[%s26217_s18 + $0x1288] ss:$16 sps:$4 sm:$0xff]  }
 0xfab   : > { %v25012_v34 = vld [vmem:[%s26217_s18 + $0x12a8] ss:$16 sps:$4 sm:$0xff]  }
 0xfac   : > { %14989 = vmatpush1.bf16.msra.mxu1 %v24952_v23  ;;  %v25002_v23 = vld [vmem:[%s26217_s18 + $0x122c] ss:$16 sps:$4 sm:$0xff]  }
 0xfad   : > { %14990 = vmatprep.subr.bf16.mxu1 %v24957_v28  ;;  %15875 = vmatpush1.bf16.msra.mxu0 %v25063_v36  ;;  %v25005_v28 = vld [vmem:[%s26217_s18 + $0x124c] ss:$16 sps:$4 sm:$0xff]  }
 0xfae   : > { %15876 = vmatprep.subr.bf16.mxu0 %v25071_v37 }
 0xfb0   : > { %14991 = vmatpush1.bf16.msra.mxu1 %v24955_v30  ;;  %v25008_v30 = vld [vmem:[%s26217_s18 + $0x126c] ss:$16 sps:$4 sm:$0xff]  }
 0xfb1   : > { %14992 = vmatprep.subr.bf16.mxu1 %v24960_v32  ;;  %15877 = vmatpush1.bf16.msra.mxu0 %v25069_v39  ;;  %v25011_v32 = vld [vmem:[%s26217_s18 + $0x128c] ss:$16 sps:$4 sm:$0xff]  }
 0xfb2   : > { %15878 = vmatprep.subr.bf16.mxu0 %v25077_v41 }
 0xfb4   : > { %14993 = vmatpush1.bf16.msra.mxu1 %v24958_v33 }
 0xfb5   : > { %14994 = vmatprep.subr.bf16.mxu1 %v24963_v35  ;;  %15879 = vmatpush1.bf16.msra.mxu0 %v25075_v43  ;;  %v25017_v35 = vld [vmem:[%s26217_s18 + $0x12cc] ss:$16 sps:$4 sm:$0xff]  }
 0xfb6   : > { %15880 = vmatprep.subr.bf16.mxu0 %v25083_v47 }
 0xfb8   : > { %14995 = vmatpush1.bf16.msra.mxu1 %v24961_v3  ;;  %v25131_v3 = vld [vmem:[%s26227_s15 + $0x11c4] ss:$16 sps:$4 sm:$0xff]  }
 0xfb9   : > { %14996 = vmatprep.subr.bf16.mxu1 %v24966_v38  ;;  %15881 = vmatpush1.bf16.msra.mxu0 %v25081_v7  ;;  %v25137_v7 = vld [vmem:[%s26227_s15 + $0x11e4] ss:$16 sps:$4 sm:$0xff]  }
 0xfba   : > { %15882 = vmatprep.subr.bf16.mxu0 %v25089_v14  ;;  %v25135_v14 = vld [vmem:[%s26227_s15 + $0x11e0] ss:$16 sps:$4 sm:$0xff]  }
 0xfbc   : > { %14997 = vmatpush1.bf16.msra.mxu1 %v24964_v40  ;;  %v25129_v40 = vld [vmem:[%s26227_s15 + $0x11c0] ss:$16 sps:$4 sm:$0xff]  }
 0xfbd   : > { %14998 = vmatprep.subr.bf16.mxu1 %v24969_v42  ;;  %15883 = vmatpush1.bf16.msra.mxu0 %v25087_v52  ;;  %v25015_v42 = vld [vmem:[%s26217_s18 + $0x12c8] ss:$16 sps:$4 sm:$0xff]  }
 0xfbe   : > { %15884 = vmatprep.subr.bf16.mxu0 %v25095_v56  ;;  %v25018_v52 = vld [vmem:[%s26217_s18 + $0x12e8] ss:$16 sps:$4 sm:$0xff]   ;;  %v25141_v56 = vld [vmem:[%s26227_s15 + $0x1200] ss:$16 sps:$4 sm:$0xff]  }
 0xfc0   : > { %14999 = vmatpush1.bf16.msra.mxu1 %v24967_v45 }
 0xfc1   : > { %15000 = vmatprep.subr.bf16.mxu1 %v24972_v49  ;;  %15885 = vmatpush1.bf16.msra.mxu0 %v25093_v58  ;;  %v25020_v49 = vld [vmem:[%s26217_s18 + $0x12ec] ss:$16 sps:$4 sm:$0xff]  }
 0xfc2   : > { %15886 = vmatprep.subr.bf16.mxu0 %v25101_v59  ;;  %v25023_v58 = vld [vmem:[%s26217_s18 + $0x130c] ss:$16 sps:$4 sm:$0xff]   ;;  %v25021_v59 = vld [vmem:[%s26217_s18 + $0x1308] ss:$16 sps:$4 sm:$0xff]  }
 0xfc4   : > { %15001 = vmatpush1.bf16.msra.mxu1 %v24970_v48 }
 0xfc5   : > { %15002 = vmatprep.subr.bf16.mxu1 %v24975_v51  ;;  %15887 = vmatpush1.bf16.msra.mxu0 %v25099_v62  ;;  %v25026_v62 = vld [vmem:[%s26217_s18 + $0x132c] ss:$16 sps:$4 sm:$0xff]  }
 0xfc6   : > { %15888 = vmatprep.subr.bf16.mxu0 %v25107_v0  ;;  %v25024_v0 = vld [vmem:[%s26217_s18 + $0x1328] ss:$16 sps:$4 sm:$0xff]  }
 0xfc8   : > { %15003 = vmatpush1.bf16.msra.mxu1 %v24973_v53 }
 0xfc9   : > { %15004 = vmatprep.subr.bf16.mxu1 %v24978_v27  ;;  %15889 = vmatpush1.bf16.msra.mxu0 %v25105_v2  ;;  %v25143_v27 = vld [vmem:[%s26227_s15 + $0x1204] ss:$16 sps:$4 sm:$0xff]   ;;  %v25029_v2 = vld [vmem:[%s26217_s18 + $0x134c] ss:$16 sps:$4 sm:$0xff]  }
 0xfca   : > { %15890 = vmatprep.subr.bf16.mxu0 %v25113_v4  ;;  %v25027_v4 = vld [vmem:[%s26217_s18 + $0x1348] ss:$16 sps:$4 sm:$0xff]  }
 0xfcc   : > { %15005 = vmatpush1.bf16.msra.mxu1 %v24976_v61  ;;  %v25149_v61 = vld [vmem:[%s26227_s15 + $0x1224] ss:$16 sps:$4 sm:$0xff]  }
 0xfcd   : > { %15006 = vmatprep.subr.bf16.mxu1 %v24981_v50  ;;  %15891 = vmatpush1.bf16.msra.mxu0 %v25111_v6  ;;  %v25147_v50 = vld [vmem:[%s26227_s15 + $0x1220] ss:$16 sps:$4 sm:$0xff]   ;;  %v25032_v6 = vld [vmem:[%s26217_s18 + $0x136c] ss:$16 sps:$4 sm:$0xff]  }
 0xfce   : > { %15892 = vmatprep.subr.bf16.mxu0 %v25119_v8  ;;  %v25030_v8 = vld [vmem:[%s26217_s18 + $0x1368] ss:$16 sps:$4 sm:$0xff]  }
 0xfd0   : > { %15007 = vmatpush1.bf16.msra.mxu1 %v24979_v31  ;;  %v25155_v31 = vld [vmem:[%s26227_s15 + $0x1244] ss:$16 sps:$4 sm:$0xff]  }
 0xfd1   : > { %15008 = vmatprep.subr.bf16.mxu1 %v24984_v1  ;;  %15893 = vmatpush1.bf16.msra.mxu0 %v25117_v11  ;;  %v25153_v1 = vld [vmem:[%s26227_s15 + $0x1240] ss:$16 sps:$4 sm:$0xff]   ;;  %v25035_v11 = vld [vmem:[%s26217_s18 + $0x138c] ss:$16 sps:$4 sm:$0xff]  }
 0xfd2   : > { %15894 = vmatprep.subr.bf16.mxu0 %v25125_v15  ;;  %v25033_v15 = vld [vmem:[%s26217_s18 + $0x1388] ss:$16 sps:$4 sm:$0xff]  }
 0xfd4   : > { %15009 = vmatpush1.bf16.msra.mxu1 %v24982_v44  ;;  %v25161_v44 = vld [vmem:[%s26227_s15 + $0x1264] ss:$16 sps:$4 sm:$0xff]  }
 0xfd5   : > { %15010 = vmatprep.subr.bf16.mxu1 %v24987_v5  ;;  %15895 = vmatpush1.bf16.msra.mxu0 %v25123_v17  ;;  %v25159_v5 = vld [vmem:[%s26227_s15 + $0x1260] ss:$16 sps:$4 sm:$0xff]   ;;  %v25038_v17 = vld [vmem:[%s26217_s18 + $0x13ac] ss:$16 sps:$4 sm:$0xff]  }
 0xfd6   : > { %15896 = vmatprep.subr.bf16.mxu0 %v25131_v3  ;;  %v25062_v3 = vld [vmem:[%s26227_s15 + $0x104c] ss:$16 sps:$4 sm:$0xff]  }
 0xfd8   : > { %15011 = vmatpush1.bf16.msra.mxu1 %v24985_v24  ;;  %v25167_v24 = vld [vmem:[%s26227_s15 + $0x1284] ss:$16 sps:$4 sm:$0xff]  }
 0xfd9   : > { %15012 = vmatprep.subr.bf16.mxu1 %v24990_v10  ;;  %15897 = vmatpush1.bf16.msra.mxu0 %v25129_v40  ;;  %v25165_v10 = vld [vmem:[%s26227_s15 + $0x1280] ss:$16 sps:$4 sm:$0xff]  }
 0xfda   : > { %15898 = vmatprep.subr.bf16.mxu0 %v25137_v7  ;;  %v25207_v40 = vld [vmem:[%s26227_s15 + $0x1360] ss:$16 sps:$4 sm:$0xff]   ;;  %v25080_v7 = vld [vmem:[%s26227_s15 + $0x10ac] ss:$16 sps:$4 sm:$0xff]  }
 0xfdc   : > { %15013 = vmatpush1.bf16.msra.mxu1 %v24988_v12  ;;  %v25173_v12 = vld [vmem:[%s26227_s15 + $0x12a4] ss:$16 sps:$4 sm:$0xff]  }
 0xfdd   : > { %15014 = vmatprep.subr.bf16.mxu1 %v24993_v16  ;;  %15899 = vmatpush1.bf16.msra.mxu0 %v25135_v14  ;;  %v25171_v16 = vld [vmem:[%s26227_s15 + $0x12a0] ss:$16 sps:$4 sm:$0xff]   ;;  %v25078_v14 = vld [vmem:[%s26227_s15 + $0x10a8] ss:$16 sps:$4 sm:$0xff]  }
 0xfde   : > { %v14979_v36 = vpop.f32.mrb[56].mxu0  ;;  %15909 = vmatprep.subr.bf16.mxu0 %v25143_v27  ;;  %v25090_v27 = vld [vmem:[%s26227_s15 + $0x10e8] ss:$16 sps:$4 sm:$0xff]  }
 0xfdf   : > { %v14981_v39 = vpop.f32.mrb[57].mxu0 }
 0xfe0   : > { %15015 = vmatpush1.bf16.msra.mxu1 %v24991_v18  ;;  %v14983_v41 = vpop.f32.mrb[58].mxu0  ;;  %v25179_v18 = vld [vmem:[%s26227_s15 + $0x12c4] ss:$16 sps:$4 sm:$0xff]  }
 0xfe1   : > { %15016 = vmatprep.subr.bf16.mxu1 %v24996_v20  ;;  %v14984_v47 = vpop.f32.mrb[59].mxu0  ;;  %v25036_v20 = vld [vmem:[%s26217_s18 + $0x13a8] ss:$16 sps:$4 sm:$0xff]   ;;  %v25215_v41 = vld [vmem:[%s26227_s15 + $0x1384] ss:$16 sps:$4 sm:$0xff]  }
 0xfe2   : > { %v25221_v47 = vld [vmem:[%s26227_s15 + $0x13a4] ss:$16 sps:$4 sm:$0xff]  }
 0xfe4   : > { %15017 = vmatpush1.bf16.msra.mxu1 %v24994_v22  ;;  %v25177_v22 = vld [vmem:[%s26227_s15 + $0x12c0] ss:$16 sps:$4 sm:$0xff]  }
 0xfe5   : > { %15027 = vmatprep.subr.bf16.mxu1 %v24999_v21  ;;  %v25041_v21 = vld [vmem:[%s26217_s18 + $0x13cc] ss:$16 sps:$4 sm:$0xff]  }
 0xfe7   : > { %15019 = vmatmul.mubr.bf16.vlgmr.msra.gmra.mrb[60].mxu1 %v26334_v9  ;;  %v28464_v9 = vld [vmem:[%s26481_s10 + $0x10] sm:$0xf] }
 0xfe8   : > { %15028 = vmatpush1.bf16.msra.mxu1 %v24997_v46  ;;  %15059 = vmatprep.mubr.bf16.mxu1 %v26319_v60  ;;  %v25014_v60 = vld [vmem:[%s26217_s18 + $0x12ac] ss:$16 sps:$4 sm:$0xff]   ;;  %v14247_v33 = vrot.slane %v28464_v9, %v26487_v25  ;;  %v14251_v38 = vrot.slane %v28464_v9, %v26490_v26  ;;  %v25185_v46 = vld [vmem:[%s26227_s15 + $0x12e4] ss:$16 sps:$4 sm:$0xff]  }
 0xfe9   : > { %15029 = vmatprep.subr.bf16.mxu1 %v25002_v23  ;;  %v25039_v23 = vld [vmem:[%s26217_s18 + $0x13c8] ss:$16 sps:$4 sm:$0xff]  }
 0xfea   : > { %v21905_v37 = vadd.f32 %v14979_v36, %v14247_v33  ;;  %v21906_v45 = vadd.f32 %v14981_v39, %v14251_v38  ;;  %v25056_v33 = vld [vmem:[%s26227_s15 + $0x102c] ss:$16 sps:$4 sm:$0xff]   ;;  %v25054_v36 = vld [vmem:[%s26227_s15 + $0x1028] ss:$16 sps:$4 sm:$0xff]   ;;  %v25209_v38 = vld [vmem:[%s26227_s15 + $0x1364] ss:$16 sps:$4 sm:$0xff]  }
 0xfeb   : > { %v25060_v39 = vld [vmem:[%s26227_s15 + $0x1048] ss:$16 sps:$4 sm:$0xff]  }
 0xfec   : > { %15030 = vmatpush1.bf16.msra.mxu1 %v25000_v19  ;;  %v15068_v43 = vmax.f32 %v21905_v37, 0.0  ;;  %v15069_v48 = vmax.f32 %v21906_v45, 0.0  ;;  %v25183_v19 = vld [vmem:[%s26227_s15 + $0x12e0] ss:$16 sps:$4 sm:$0xff]  }
 0xfed   : > { %15031 = vmatprep.subr.bf16.mxu1 %v25005_v28  ;;  %v25044_v28 = vld [vmem:[%s26217_s18 + $0x13ec] ss:$16 sps:$4 sm:$0xff]   ;;  %v25201_v37 = vld [vmem:[%s26227_s15 + $0x1340] ss:$16 sps:$4 sm:$0xff]  }
 0xfee   : > { %v28480_v51 = vpack.c.bf16 %v15068_v43, %v15068_v43  ;;  %v28483_v53 = vpack.c.bf16 %v15069_v48, %v15069_v48  ;;  %v25074_v43 = vld [vmem:[%s26227_s15 + $0x108c] ss:$16 sps:$4 sm:$0xff]   ;;  %v25213_v45 = vld [vmem:[%s26227_s15 + $0x1380] ss:$16 sps:$4 sm:$0xff]  }
 0xfef   : > { %v25219_v48 = vld [vmem:[%s26227_s15 + $0x13a0] ss:$16 sps:$4 sm:$0xff]  }
 0xff0   : > { %15032 = vmatpush1.bf16.msra.mxu1 %v25003_v29  ;;  %15900 = vmatprep.mubr.bf16.mxu0 %v28483_v53  ;;  %v25191_v29 = vld [vmem:[%s26227_s15 + $0x1304] ss:$16 sps:$4 sm:$0xff]  }
 0xff1   : > { %15033 = vmatprep.subr.bf16.mxu1 %v25008_v30  ;;  %15901 = vmatmul.mubr.bf16.vlgmr.msra.gmra.mrb[60].mxu0 %v28480_v51  ;;  %v25042_v30 = vld [vmem:[%s26217_s18 + $0x13e8] ss:$16 sps:$4 sm:$0xff]  }
 0xff2   : > { %15910 = vmatpush1.bf16.msra.mxu0 %v25141_v56  ;;  %v25092_v56 = vld [vmem:[%s26227_s15 + $0x10ec] ss:$16 sps:$4 sm:$0xff]  }
 0xff3   : > { %15911 = vmatprep.subr.bf16.mxu0 %v25149_v61  ;;  %v25096_v61 = vld [vmem:[%s26227_s15 + $0x1108] ss:$16 sps:$4 sm:$0xff]  }
 0xff4   : > { %15034 = vmatpush1.bf16.msra.mxu1 %v25006_v63  ;;  %v25189_v63 = vld [vmem:[%s26227_s15 + $0x1300] ss:$16 sps:$4 sm:$0xff]  }
 0xff5   : > { %15035 = vmatprep.subr.bf16.mxu1 %v25011_v32  ;;  %v25050_v32 = vld [vmem:[%s26227_s15 + $0x100c] ss:$16 sps:$4 sm:$0xff]  }
 0xff6   : > { %15912 = vmatpush1.bf16.msra.mxu0 %v25147_v50  ;;  %v25102_v50 = vld [vmem:[%s26227_s15 + $0x1128] ss:$16 sps:$4 sm:$0xff]  }
 0xff7   : > { %15913 = vmatprep.subr.bf16.mxu0 %v25155_v31  ;;  %v25108_v31 = vld [vmem:[%s26227_s15 + $0x1148] ss:$16 sps:$4 sm:$0xff]  }
 0xff8   : > { %15036 = vmatpush1.bf16.msra.mxu1 %v25009_v57  ;;  %v25197_v57 = vld [vmem:[%s26227_s15 + $0x1324] ss:$16 sps:$4 sm:$0xff]  }
 0xff9   : > { %15037 = vmatprep.subr.bf16.mxu1 %v25014_v60  ;;  %v25048_v60 = vld [vmem:[%s26227_s15 + $0x1008] ss:$16 sps:$4 sm:$0xff]  }
 0xffa   : > { %15914 = vmatpush1.bf16.msra.mxu0 %v25153_v1  ;;  %v25114_v1 = vld [vmem:[%s26227_s15 + $0x1168] ss:$16 sps:$4 sm:$0xff]  }
 0xffb   : > { %15915 = vmatprep.subr.bf16.mxu0 %v25161_v44  ;;  %v25120_v44 = vld [vmem:[%s26227_s15 + $0x1188] ss:$16 sps:$4 sm:$0xff]  }
 0xffc   : > { %15038 = vmatpush1.bf16.msra.mxu1 %v25012_v34  ;;  %v25195_v34 = vld [vmem:[%s26227_s15 + $0x1320] ss:$16 sps:$4 sm:$0xff]  }
 0xffd   : > { %15039 = vmatprep.subr.bf16.mxu1 %v25017_v35  ;;  %v25203_v35 = vld [vmem:[%s26227_s15 + $0x1344] ss:$16 sps:$4 sm:$0xff]  }
 0xffe   : > { %15916 = vmatpush1.bf16.msra.mxu0 %v25159_v5  ;;  %v25126_v5 = vld [vmem:[%s26227_s15 + $0x11a8] ss:$16 sps:$4 sm:$0xff]  }
 0xfff   : > { %15917 = vmatprep.subr.bf16.mxu0 %v25167_v24  ;;  %v25132_v24 = vld [vmem:[%s26227_s15 + $0x11c8] ss:$16 sps:$4 sm:$0xff]  }
0x1000   : > { %15040 = vmatpush1.bf16.msra.mxu1 %v25015_v42  ;;  %v25066_v42 = vld [vmem:[%s26227_s15 + $0x1068] ss:$16 sps:$4 sm:$0xff]  }
0x1001   : > { %15041 = vmatprep.subr.bf16.mxu1 %v25020_v49  ;;  %v25072_v49 = vld [vmem:[%s26227_s15 + $0x1088] ss:$16 sps:$4 sm:$0xff]  }
0x1002   : > { %15918 = vmatpush1.bf16.msra.mxu0 %v25165_v10  ;;  %v25138_v10 = vld [vmem:[%s26227_s15 + $0x11e8] ss:$16 sps:$4 sm:$0xff]  }
0x1003   : > { %15919 = vmatprep.subr.bf16.mxu0 %v25173_v12  ;;  %v25144_v12 = vld [vmem:[%s26227_s15 + $0x1208] ss:$16 sps:$4 sm:$0xff]  }
0x1004   : > { %15042 = vmatpush1.bf16.msra.mxu1 %v25018_v52  ;;  %v25086_v52 = vld [vmem:[%s26227_s15 + $0x10cc] ss:$16 sps:$4 sm:$0xff]  }
0x1005   : > { %15043 = vmatprep.subr.bf16.mxu1 %v25023_v58  ;;  %v25098_v58 = vld [vmem:[%s26227_s15 + $0x110c] ss:$16 sps:$4 sm:$0xff]  }
0x1006   : > { %15920 = vmatpush1.bf16.msra.mxu0 %v25171_v16  ;;  %v25150_v16 = vld [vmem:[%s26227_s15 + $0x1228] ss:$16 sps:$4 sm:$0xff]  }
0x1007   : > { %15921 = vmatprep.subr.bf16.mxu0 %v25179_v18  ;;  %v25156_v18 = vld [vmem:[%s26227_s15 + $0x1248] ss:$16 sps:$4 sm:$0xff]  }
0x1008   : > { %15044 = vmatpush1.bf16.msra.mxu1 %v25021_v59  ;;  %v25104_v59 = vld [vmem:[%s26227_s15 + $0x112c] ss:$16 sps:$4 sm:$0xff]  }
0x1009   : > { %15045 = vmatprep.subr.bf16.mxu1 %v25026_v62  ;;  %v25110_v62 = vld [vmem:[%s26227_s15 + $0x114c] ss:$16 sps:$4 sm:$0xff]  }
0x100a   : > { %15922 = vmatpush1.bf16.msra.mxu0 %v25177_v22  ;;  %v25162_v22 = vld [vmem:[%s26227_s15 + $0x1268] ss:$16 sps:$4 sm:$0xff]  }
0x100b   : > { %15923 = vmatprep.subr.bf16.mxu0 %v25185_v46  ;;  %v20862_v46 = vld [vmem:[%s27047_s20 + $0x6] sm:$0x3] }
0x100c   : > { %15046 = vmatpush1.bf16.msra.mxu1 %v25024_v0  ;;  %v25116_v0 = vld [vmem:[%s26227_s15 + $0x116c] ss:$16 sps:$4 sm:$0xff]  }
0x100d   : > { %15047 = vmatprep.subr.bf16.mxu1 %v25029_v2  ;;  %v25122_v2 = vld [vmem:[%s26227_s15 + $0x118c] ss:$16 sps:$4 sm:$0xff]  }
0x100e   : > { %15924 = vmatpush1.bf16.msra.mxu0 %v25183_v19  ;;  %v13689_v19 = vrot.slane %v20862_v46, %v26487_v25 }
0x100f   : > { %15925 = vmatprep.subr.bf16.mxu0 %v25191_v29  ;;  %v25174_v29 = vld [vmem:[%s26227_s15 + $0x12a8] ss:$16 sps:$4 sm:$0xff]  }
0x1010   : > { %15048 = vmatpush1.bf16.msra.mxu1 %v25027_v4  ;;  %v25128_v4 = vld [vmem:[%s26227_s15 + $0x11ac] ss:$16 sps:$4 sm:$0xff]  }
0x1011   : > { %15049 = vmatprep.subr.bf16.mxu1 %v25032_v6  ;;  %v25134_v6 = vld [vmem:[%s26227_s15 + $0x11cc] ss:$16 sps:$4 sm:$0xff]  }
0x1012   : > { %15926 = vmatpush1.bf16.msra.mxu0 %v25189_v63  ;;  %v25227_v63 = vld [vmem:[%s26227_s15 + $0x13c4] ss:$16 sps:$4 sm:$0xff]  }
0x1013   : > { %15927 = vmatprep.subr.bf16.mxu0 %v25197_v57  ;;  %v25225_v57 = vld [vmem:[%s26227_s15 + $0x13c0] ss:$16 sps:$4 sm:$0xff]  }
0x1014   : > { %15050 = vmatpush1.bf16.msra.mxu1 %v25030_v8  ;;  %v25140_v8 = vld [vmem:[%s26227_s15 + $0x11ec] ss:$16 sps:$4 sm:$0xff]  }
0x1015   : > { %15051 = vmatprep.subr.bf16.mxu1 %v25035_v11  ;;  %v25146_v11 = vld [vmem:[%s26227_s15 + $0x120c] ss:$16 sps:$4 sm:$0xff]  }
0x1016   : > { %15928 = vmatpush1.bf16.msra.mxu0 %v25195_v34 }
0x1017   : > { %15929 = vmatprep.subr.bf16.mxu0 %v25203_v35 }
0x1018   : > { %15052 = vmatpush1.bf16.msra.mxu1 %v25033_v15  ;;  %v25152_v15 = vld [vmem:[%s26227_s15 + $0x122c] ss:$16 sps:$4 sm:$0xff]  }
0x1019   : > { %15053 = vmatprep.subr.bf16.mxu1 %v25038_v17  ;;  %v25158_v17 = vld [vmem:[%s26227_s15 + $0x124c] ss:$16 sps:$4 sm:$0xff]  }
0x101a   : > { %15930 = vmatpush1.bf16.msra.mxu0 %v25201_v37  ;;  %v25188_v37 = vld [vmem:[%s26227_s15 + $0x12ec] ss:$16 sps:$4 sm:$0xff]  }
0x101b   : > { %15931 = vmatprep.subr.bf16.mxu0 %v25209_v38  ;;  %v25233_v38 = vld [vmem:[%s26227_s15 + $0x13e4] ss:$16 sps:$4 sm:$0xff]  }
0x101c   : > { %15054 = vmatpush1.bf16.msra.mxu1 %v25036_v20  ;;  %v25164_v20 = vld [vmem:[%s26227_s15 + $0x126c] ss:$16 sps:$4 sm:$0xff]  }
0x101d   : > { %15055 = vmatprep.subr.bf16.mxu1 %v25041_v21  ;;  %v25170_v21 = vld [vmem:[%s26227_s15 + $0x128c] ss:$16 sps:$4 sm:$0xff]  }
0x101e   : > { %15932 = vmatpush1.bf16.msra.mxu0 %v25207_v40  ;;  %v25186_v40 = vld [vmem:[%s26227_s15 + $0x12e8] ss:$16 sps:$4 sm:$0xff]  }
0x101f   : > { %15933 = vmatprep.subr.bf16.mxu0 %v25215_v41  ;;  %v25194_v41 = vld [vmem:[%s26227_s15 + $0x130c] ss:$16 sps:$4 sm:$0xff]  }
0x1020   : > { %15056 = vmatpush1.bf16.msra.mxu1 %v25039_v23  ;;  %v25176_v23 = vld [vmem:[%s26227_s15 + $0x12ac] ss:$16 sps:$4 sm:$0xff]  }
0x1021   : > { %15057 = vmatprep.subr.bf16.mxu1 %v25044_v28  ;;  %v13693_v28 = vrot.slane %v20862_v46, %v26490_v26  ;;  %v25252_v46 = vld [vmem:[%s26237_s22 + $0x1048] ss:$16 sps:$4 sm:$0xff]  }
0x1022   : > { %15934 = vmatpush1.bf16.msra.mxu0 %v25213_v45  ;;  %v25200_v45 = vld [vmem:[%s26227_s15 + $0x132c] ss:$16 sps:$4 sm:$0xff]  }
0x1023   : > { %15935 = vmatprep.subr.bf16.mxu0 %v25221_v47  ;;  %v25198_v47 = vld [vmem:[%s26227_s15 + $0x1328] ss:$16 sps:$4 sm:$0xff]  }
0x1024   : > { %15058 = vmatpush1.bf16.msra.mxu1 %v25042_v30  ;;  %v25182_v30 = vld [vmem:[%s26227_s15 + $0x12cc] ss:$16 sps:$4 sm:$0xff]  }
0x1025   : > { %15950 = vmatprep.subr.bf16.mxu1 %v25050_v32 }
0x1026   : > { %15936 = vmatpush1.bf16.msra.mxu0 %v25219_v48  ;;  %v25212_v48 = vld [vmem:[%s26227_s15 + $0x136c] ss:$16 sps:$4 sm:$0xff]  }
0x1027   : > { %15060 = vmatmul.mubr.bf16.vlgmr.msra.gmra.mrb[60].mxu1 %v26341_v13  ;;  %v25068_v13 = vld [vmem:[%s26227_s15 + $0x106c] ss:$16 sps:$4 sm:$0xff]   ;;  %15937 = vmatprep.subr.bf16.mxu0 %v25227_v63  ;;  %v25261_v63 = vld [vmem:[%s26237_s22 + $0x1080] ss:$16 sps:$4 sm:$0xff]  }
0x1028   : > { %15951 = vmatpush1.bf16.msra.mxu1 %v25048_v60  ;;  %15982 = vmatprep.mubr.bf16.mxu1 %v28483_v53  ;;  %v25084_v53 = vld [vmem:[%s26227_s15 + $0x10c8] ss:$16 sps:$4 sm:$0xff]  }
0x1029   : > { %15952 = vmatprep.subr.bf16.mxu1 %v25056_v33 }
0x102a   : > { %15938 = vmatpush1.bf16.msra.mxu0 %v25225_v57  ;;  %v25269_v57 = vld [vmem:[%s26237_s22 + $0x10a4] ss:$16 sps:$4 sm:$0xff]  }
0x102b   : > { %15939 = vmatprep.subr.bf16.mxu0 %v25233_v38  ;;  %v25281_v38 = vld [vmem:[%s26237_s22 + $0x10e4] ss:$16 sps:$4 sm:$0xff]  }
0x102c   : > { %15953 = vmatpush1.bf16.msra.mxu1 %v25054_v36  ;;  %v25180_v36 = vld [vmem:[%s26227_s15 + $0x12c8] ss:$16 sps:$4 sm:$0xff]  }
0x102d   : > { %15954 = vmatprep.subr.bf16.mxu1 %v25062_v3 }
0x1030   : > { %15955 = vmatpush1.bf16.msra.mxu1 %v25060_v39 }
0x1031   : > { %15956 = vmatprep.subr.bf16.mxu1 %v25068_v13  ;;  %v25231_v13 = vld [vmem:[%s26227_s15 + $0x13e0] ss:$16 sps:$4 sm:$0xff]  }
0x1032   : > { %15940 = vmatpush1.bf16.msra.mxu0 %v25231_v13  ;;  %v25279_v13 = vld [vmem:[%s26237_s22 + $0x10e0] ss:$16 sps:$4 sm:$0xff]  }
0x1034   : > { %15957 = vmatpush1.bf16.msra.mxu1 %v25066_v42  ;;  %v25239_v42 = vld [vmem:[%s26237_s22 + $0x1004] ss:$16 sps:$4 sm:$0xff]  }
0x1035   : > { %15958 = vmatprep.subr.bf16.mxu1 %v25074_v43  ;;  %v25192_v43 = vld [vmem:[%s26227_s15 + $0x1308] ss:$16 sps:$4 sm:$0xff]   ;;  %16832 = vmatprep.subr.bf16.mxu0 %v25239_v42  ;;  %v25290_v42 = vld [vmem:[%s26237_s22 + $0x110c] ss:$16 sps:$4 sm:$0xff]  }
0x1038   : > { %15959 = vmatpush1.bf16.msra.mxu1 %v25072_v49  ;;  %v25206_v49 = vld [vmem:[%s26227_s15 + $0x134c] ss:$16 sps:$4 sm:$0xff]  }
0x1039   : > { %15960 = vmatprep.subr.bf16.mxu1 %v25080_v7  ;;  %v25204_v7 = vld [vmem:[%s26227_s15 + $0x1348] ss:$16 sps:$4 sm:$0xff]  }
0x103c   : > { %15961 = vmatpush1.bf16.msra.mxu1 %v25078_v14  ;;  %v25210_v14 = vld [vmem:[%s26227_s15 + $0x1368] ss:$16 sps:$4 sm:$0xff]  }
0x103d   : > { %15962 = vmatprep.subr.bf16.mxu1 %v25086_v52  ;;  %v25218_v52 = vld [vmem:[%s26227_s15 + $0x138c] ss:$16 sps:$4 sm:$0xff]  }
0x1040   : > { %15963 = vmatpush1.bf16.msra.mxu1 %v25084_v53  ;;  %v25216_v53 = vld [vmem:[%s26227_s15 + $0x1388] ss:$16 sps:$4 sm:$0xff]  }
0x1041   : > { %15964 = vmatprep.subr.bf16.mxu1 %v25092_v56  ;;  %v25224_v56 = vld [vmem:[%s26227_s15 + $0x13ac] ss:$16 sps:$4 sm:$0xff]  }
0x1044   : > { %15965 = vmatpush1.bf16.msra.mxu1 %v25090_v27  ;;  %v25222_v27 = vld [vmem:[%s26227_s15 + $0x13a8] ss:$16 sps:$4 sm:$0xff]  }
0x1045   : > { %15966 = vmatprep.subr.bf16.mxu1 %v25098_v58  ;;  %v25230_v58 = vld [vmem:[%s26227_s15 + $0x13cc] ss:$16 sps:$4 sm:$0xff]  }
0x1048   : > { %15967 = vmatpush1.bf16.msra.mxu1 %v25096_v61  ;;  %v25228_v61 = vld [vmem:[%s26227_s15 + $0x13c8] ss:$16 sps:$4 sm:$0xff]  }
0x1049   : > { %15968 = vmatprep.subr.bf16.mxu1 %v25104_v59  ;;  %v25236_v59 = vld [vmem:[%s26227_s15 + $0x13ec] ss:$16 sps:$4 sm:$0xff]  }
0x104c   : > { %15969 = vmatpush1.bf16.msra.mxu1 %v25102_v50  ;;  %v25234_v50 = vld [vmem:[%s26227_s15 + $0x13e8] ss:$16 sps:$4 sm:$0xff]  }
0x104d   : > { %15970 = vmatprep.subr.bf16.mxu1 %v25110_v62  ;;  %v25242_v62 = vld [vmem:[%s26237_s22 + $0x100c] ss:$16 sps:$4 sm:$0xff]  }
0x1050   : > { %15971 = vmatpush1.bf16.msra.mxu1 %v25108_v31  ;;  %v14255_v31 = vrot.slane %v28464_v9, %v26561_v54 }
0x1051   : > { %15972 = vmatprep.subr.bf16.mxu1 %v25116_v0  ;;  %v14259_v0 = vrot.slane %v28464_v9, %v26564_v55  ;;  %v25243_v9 = vld [vmem:[%s26237_s22 + $0x1020] ss:$16 sps:$4 sm:$0xff]  }
0x1054   : > { %15973 = vmatpush1.bf16.msra.mxu1 %v25114_v1 }
0x1055   : > { %15974 = vmatprep.subr.bf16.mxu1 %v25122_v2 }
0x1058   : > { %15975 = vmatpush1.bf16.msra.mxu1 %v25120_v44 }
0x1059   : > { %15976 = vmatprep.subr.bf16.mxu1 %v25128_v4 }
0x105c   : > { %15977 = vmatpush1.bf16.msra.mxu1 %v25126_v5 }
0x105d   : > { %15978 = vmatprep.subr.bf16.mxu1 %v25134_v6 }
0x1060   : > { %15979 = vmatpush1.bf16.msra.mxu1 %v25132_v24 }
0x1061   : > { %15980 = vmatprep.subr.bf16.mxu1 %v25140_v8 }
0x1064   : > { %15981 = vmatpush1.bf16.msra.mxu1 %v25138_v10 }
0x1065   : > { %15991 = vmatprep.subr.bf16.mxu1 %v25146_v11  ;;  %v25237_v11 = vld [vmem:[%s26237_s22 + $0x1000] ss:$16 sps:$4 sm:$0xff]  }
0x1067   : > { %15983 = vmatmul.mubr.bf16.vlgmr.msra.gmra.mrb[64].mxu1 %v28480_v51  ;;  %v25168_v51 = vld [vmem:[%s26227_s15 + $0x1288] ss:$16 sps:$4 sm:$0xff]  }
0x1068   : > { %15992 = vmatpush1.bf16.msra.mxu1 %v25144_v12  ;;  %v25240_v12 = vld [vmem:[%s26237_s22 + $0x1008] ss:$16 sps:$4 sm:$0xff]  }
0x1069   : > { %15993 = vmatprep.subr.bf16.mxu1 %v25152_v15 }
0x106c   : > { %15994 = vmatpush1.bf16.msra.mxu1 %v25150_v16  ;;  %v25245_v16 = vld [vmem:[%s26237_s22 + $0x1024] ss:$16 sps:$4 sm:$0xff]  }
0x106d   : > { %15995 = vmatprep.subr.bf16.mxu1 %v25158_v17  ;;  %v25248_v17 = vld [vmem:[%s26237_s22 + $0x102c] ss:$16 sps:$4 sm:$0xff]  }
0x1070   : > { %15996 = vmatpush1.bf16.msra.mxu1 %v25156_v18  ;;  %v25246_v18 = vld [vmem:[%s26237_s22 + $0x1028] ss:$16 sps:$4 sm:$0xff]  }
0x1071   : > { %15997 = vmatprep.subr.bf16.mxu1 %v25164_v20  ;;  %v25251_v20 = vld [vmem:[%s26237_s22 + $0x1044] ss:$16 sps:$4 sm:$0xff]  }
0x1074   : > { %15998 = vmatpush1.bf16.msra.mxu1 %v25162_v22  ;;  %v25254_v22 = vld [vmem:[%s26237_s22 + $0x104c] ss:$16 sps:$4 sm:$0xff]  }
0x1075   : > { %15999 = vmatprep.subr.bf16.mxu1 %v25170_v21  ;;  %v25249_v21 = vld [vmem:[%s26237_s22 + $0x1040] ss:$16 sps:$4 sm:$0xff]  }
0x1078   : > { %16000 = vmatpush1.bf16.msra.mxu1 %v25168_v51  ;;  %v25257_v51 = vld [vmem:[%s26237_s22 + $0x1064] ss:$16 sps:$4 sm:$0xff]  }
0x1079   : > { %16001 = vmatprep.subr.bf16.mxu1 %v25176_v23  ;;  %v25260_v23 = vld [vmem:[%s26237_s22 + $0x106c] ss:$16 sps:$4 sm:$0xff]  }
0x107a   : > { %v14091_v32 = vpop.f32.mrb[56].mxu1 }
0x107b   : > { %v21903_v60 = vadd.f32 %v14091_v32, %v13689_v19  ;;  %v14093_v33 = vpop.f32.mrb[57].mxu1  ;;  %v25255_v19 = vld [vmem:[%s26237_s22 + $0x1060] ss:$16 sps:$4 sm:$0xff]   ;;  %v25264_v32 = vld [vmem:[%s26237_s22 + $0x1088] ss:$16 sps:$4 sm:$0xff]  }
0x107c   : > { %v21904_v34 = vadd.f32 %v14093_v33, %v13693_v28  ;;  %v14095_v35 = vpop.f32.mrb[58].mxu1  ;;  %16002 = vmatpush1.bf16.msra.mxu1 %v25174_v29  ;;  %v25258_v28 = vld [vmem:[%s26237_s22 + $0x1068] ss:$16 sps:$4 sm:$0xff]   ;;  %v25263_v29 = vld [vmem:[%s26237_s22 + $0x1084] ss:$16 sps:$4 sm:$0xff]  }
0x107d   : > { %v14096_v3 = vpop.f32.mrb[59].mxu1  ;;  %16003 = vmatprep.subr.bf16.mxu1 %v25182_v30  ;;  %v25266_v30 = vld [vmem:[%s26237_s22 + $0x108c] ss:$16 sps:$4 sm:$0xff]   ;;  %v25267_v33 = vld [vmem:[%s26237_s22 + $0x10a0] ss:$16 sps:$4 sm:$0xff]  }
0x107e   : > { %v14100_v39 = vcombine.low %v21903_v60, %v21904_v34  ;;  %v25272_v60 = vld [vmem:[%s26237_s22 + $0x10ac] ss:$16 sps:$4 sm:$0xff]   ;;  %v25270_v34 = vld [vmem:[%s26237_s22 + $0x10a8] ss:$16 sps:$4 sm:$0xff]   ;;  %v25275_v35 = vld [vmem:[%s26237_s22 + $0x10c4] ss:$16 sps:$4 sm:$0xff]  }
0x107f   : > { %v25273_v3 = vld [vmem:[%s26237_s22 + $0x10c0] ss:$16 sps:$4 sm:$0xff]  }
0x1080   : > { %20927 = vst.sshfl [vmem:[%s27062_s6 + $0xc] sm:$0x33 pattern:$0x76325410] %v14100_v39  ;;  %16004 = vmatpush1.bf16.msra.mxu1 %v25180_v36  ;;  %v25278_v36 = vld [vmem:[%s26237_s22 + $0x10cc] ss:$16 sps:$4 sm:$0xff]  }
0x1081   : > { %16005 = vmatprep.subr.bf16.mxu1 %v25188_v37  ;;  %v25276_v37 = vld [vmem:[%s26237_s22 + $0x10c8] ss:$16 sps:$4 sm:$0xff]   ;;  %v25284_v39 = vld [vmem:[%s26237_s22 + $0x10ec] ss:$16 sps:$4 sm:$0xff]  }
0x1084   : > { %16006 = vmatpush1.bf16.msra.mxu1 %v25186_v40  ;;  %v25282_v40 = vld [vmem:[%s26237_s22 + $0x10e8] ss:$16 sps:$4 sm:$0xff]  }
0x1085   : > { %16007 = vmatprep.subr.bf16.mxu1 %v25194_v41  ;;  %v25287_v41 = vld [vmem:[%s26237_s22 + $0x1104] ss:$16 sps:$4 sm:$0xff]  }
0x1088   : > { %16008 = vmatpush1.bf16.msra.mxu1 %v25192_v43  ;;  %v25285_v43 = vld [vmem:[%s26237_s22 + $0x1100] ss:$16 sps:$4 sm:$0xff]  }
0x1089   : > { %16009 = vmatprep.subr.bf16.mxu1 %v25200_v45  ;;  %v25288_v45 = vld [vmem:[%s26237_s22 + $0x1108] ss:$16 sps:$4 sm:$0xff]  }
0x108c   : > { %16010 = vmatpush1.bf16.msra.mxu1 %v25198_v47  ;;  %v25293_v47 = vld [vmem:[%s26237_s22 + $0x1124] ss:$16 sps:$4 sm:$0xff]  }
0x108d   : > { %16011 = vmatprep.subr.bf16.mxu1 %v25206_v49  ;;  %v25296_v49 = vld [vmem:[%s26237_s22 + $0x112c] ss:$16 sps:$4 sm:$0xff]  }
0x1090   : > { %16012 = vmatpush1.bf16.msra.mxu1 %v25204_v7  ;;  %v25291_v7 = vld [vmem:[%s26237_s22 + $0x1120] ss:$16 sps:$4 sm:$0xff]  }
0x1091   : > { %16013 = vmatprep.subr.bf16.mxu1 %v25212_v48  ;;  %v25294_v48 = vld [vmem:[%s26237_s22 + $0x1128] ss:$16 sps:$4 sm:$0xff]  }
0x1094   : > { %16014 = vmatpush1.bf16.msra.mxu1 %v25210_v14  ;;  %v25299_v14 = vld [vmem:[%s26237_s22 + $0x1144] ss:$16 sps:$4 sm:$0xff]  }
0x1095   : > { %16015 = vmatprep.subr.bf16.mxu1 %v25218_v52  ;;  %v25302_v52 = vld [vmem:[%s26237_s22 + $0x114c] ss:$16 sps:$4 sm:$0xff]  }
0x1098   : > { %16016 = vmatpush1.bf16.msra.mxu1 %v25216_v53  ;;  %v25297_v53 = vld [vmem:[%s26237_s22 + $0x1140] ss:$16 sps:$4 sm:$0xff]  }
0x1099   : > { %16017 = vmatprep.subr.bf16.mxu1 %v25224_v56  ;;  %v25300_v56 = vld [vmem:[%s26237_s22 + $0x1148] ss:$16 sps:$4 sm:$0xff]  }
0x109c   : > { %16018 = vmatpush1.bf16.msra.mxu1 %v25222_v27  ;;  %v25305_v27 = vld [vmem:[%s26237_s22 + $0x1164] ss:$16 sps:$4 sm:$0xff]  }
0x109d   : > { %16019 = vmatprep.subr.bf16.mxu1 %v25230_v58  ;;  %v25308_v58 = vld [vmem:[%s26237_s22 + $0x116c] ss:$16 sps:$4 sm:$0xff]  }
0x10a0   : > { %16020 = vmatpush1.bf16.msra.mxu1 %v25228_v61  ;;  %v25303_v61 = vld [vmem:[%s26237_s22 + $0x1160] ss:$16 sps:$4 sm:$0xff]  }
0x10a1   : > { %16021 = vmatprep.subr.bf16.mxu1 %v25236_v59  ;;  %v25306_v59 = vld [vmem:[%s26237_s22 + $0x1168] ss:$16 sps:$4 sm:$0xff]  }
0x10a4   : > { %16022 = vmatpush1.bf16.msra.mxu1 %v25234_v50  ;;  %v25311_v50 = vld [vmem:[%s26237_s22 + $0x1184] ss:$16 sps:$4 sm:$0xff]  }
0x10a5   : > { %16914 = vmatprep.subr.bf16.mxu1 %v25242_v62  ;;  %v25314_v62 = vld [vmem:[%s26237_s22 + $0x118c] ss:$16 sps:$4 sm:$0xff]  }
0x10fa   : > { %v15061_v1 = vpop.f32.mrb[60].mxu1 }
0x10fb   : > { %v21907_v2 = vadd.f32 %v15061_v1, %v14255_v31  ;;  %v15063_v44 = vpop.f32.mrb[61].mxu1  ;;  %v25309_v31 = vld [vmem:[%s26237_s22 + $0x1180] ss:$16 sps:$4 sm:$0xff]   ;;  %v25317_v1 = vld [vmem:[%s26237_s22 + $0x11a4] ss:$16 sps:$4 sm:$0xff]  }
0x10fc   : > { %v21908_v4 = vadd.f32 %v15063_v44, %v14259_v0  ;;  %v15065_v5 = vpop.f32.mrb[62].mxu1  ;;  %v25312_v0 = vld [vmem:[%s26237_s22 + $0x1188] ss:$16 sps:$4 sm:$0xff]   ;;  %v25315_v44 = vld [vmem:[%s26237_s22 + $0x11a0] ss:$16 sps:$4 sm:$0xff]  }
0x10fd   : > { %v15070_v6 = vmax.f32 %v21907_v2, 0.0  ;;  %v15066_v24 = vpop.f32.mrb[63].mxu1  ;;  %v25320_v2 = vld [vmem:[%s26237_s22 + $0x11ac] ss:$16 sps:$4 sm:$0xff]   ;;  %v25323_v5 = vld [vmem:[%s26237_s22 + $0x11c4] ss:$16 sps:$4 sm:$0xff]  }
0x10fe   : > { %v15071_v8 = vmax.f32 %v21908_v4, 0.0  ;;  %v25318_v4 = vld [vmem:[%s26237_s22 + $0x11a8] ss:$16 sps:$4 sm:$0xff]   ;;  %v25321_v24 = vld [vmem:[%s26237_s22 + $0x11c0] ss:$16 sps:$4 sm:$0xff]  }
0x10ff   : > { %v15074_v15 = vpack.c.bf16 %v15070_v6, %v15070_v6  ;;  %v25326_v6 = vld [vmem:[%s26237_s22 + $0x11cc] ss:$16 sps:$4 sm:$0xff]  }
0x1100   : > { %v15075_v10 = vpack.c.bf16 %v15071_v8, %v15071_v8  ;;  %v25324_v8 = vld [vmem:[%s26237_s22 + $0x11c8] ss:$16 sps:$4 sm:$0xff]  }
0x1102   : > { %15941 = vmatprep.mubr.bf16.mxu0 %v15075_v10  ;;  %16023 = vmatprep.mubr.bf16.mxu1 %v15075_v10  ;;  %v25329_v10 = vld [vmem:[%s26237_s22 + $0x11e4] ss:$16 sps:$4 sm:$0xff]  }
0x1103   : > { %15942 = vmatmul.mubr.bf16.vlgmr.msra.gmra.mrb[60].mxu0 %v15074_v15  ;;  %16024 = vmatmul.mubr.bf16.vlgmr.msra.gmra.mrb[64].mxu1 %v15074_v15  ;;  %v25330_v15 = vld [vmem:[%s26237_s22 + $0x11e8] ss:$16 sps:$4 sm:$0xff]  }
0x1104   : > { %16833 = vmatpush1.bf16.msra.mxu0 %v25237_v11  ;;  %16915 = vmatpush1.bf16.msra.mxu1 %v25240_v12  ;;  %v25332_v11 = vld [vmem:[%s26237_s22 + $0x11ec] ss:$16 sps:$4 sm:$0xff]   ;;  %v25327_v12 = vld [vmem:[%s26237_s22 + $0x11e0] ss:$16 sps:$4 sm:$0xff]  }
0x1105   : > { %16834 = vmatprep.subr.bf16.mxu0 %v25245_v16  ;;  %16916 = vmatprep.subr.bf16.mxu1 %v25248_v17  ;;  %v25335_v16 = vld [vmem:[%s26237_s22 + $0x1204] ss:$16 sps:$4 sm:$0xff]   ;;  %v25338_v17 = vld [vmem:[%s26237_s22 + $0x120c] ss:$16 sps:$4 sm:$0xff]  }
0x1108   : > { %16835 = vmatpush1.bf16.msra.mxu0 %v25243_v9  ;;  %16917 = vmatpush1.bf16.msra.mxu1 %v25246_v18  ;;  %v28677_v9 = vld [vmem:[%s26635_s14 + $0x10] sm:$0xf] }
0x1109   : > { %16836 = vmatprep.subr.bf16.mxu0 %v25251_v20  ;;  %16918 = vmatprep.subr.bf16.mxu1 %v25254_v22  ;;  %v15211_v18 = vrot.slane %v28677_v9, %v26487_v25  ;;  %v15215_v20 = vrot.slane %v28677_v9, %v26490_v26  ;;  %v15223_v22 = vrot.slane %v28677_v9, %v26564_v55 }
0x110c   : > { %16837 = vmatpush1.bf16.msra.mxu0 %v25249_v21  ;;  %16919 = vmatpush1.bf16.msra.mxu1 %v25252_v46 }
0x110d   : > { %16838 = vmatprep.subr.bf16.mxu0 %v25257_v51  ;;  %16920 = vmatprep.subr.bf16.mxu1 %v25260_v23 }
0x1110   : > { %16839 = vmatpush1.bf16.msra.mxu0 %v25255_v19  ;;  %16921 = vmatpush1.bf16.msra.mxu1 %v25258_v28 }
0x1111   : > { %16840 = vmatprep.subr.bf16.mxu0 %v25263_v29  ;;  %16922 = vmatprep.subr.bf16.mxu1 %v25266_v30 }
0x1114   : > { %16841 = vmatpush1.bf16.msra.mxu0 %v25261_v63  ;;  %16923 = vmatpush1.bf16.msra.mxu1 %v25264_v32 }
0x1115   : > { %16842 = vmatprep.subr.bf16.mxu0 %v25269_v57  ;;  %16924 = vmatprep.subr.bf16.mxu1 %v25272_v60 }
0x1118   : > { %16843 = vmatpush1.bf16.msra.mxu0 %v25267_v33  ;;  %16925 = vmatpush1.bf16.msra.mxu1 %v25270_v34 }
0x1119   : > { %16844 = vmatprep.subr.bf16.mxu0 %v25275_v35  ;;  %16926 = vmatprep.subr.bf16.mxu1 %v25278_v36  ;;  %v25333_v36 = vld [vmem:[%s26237_s22 + $0x1200] ss:$16 sps:$4 sm:$0xff]  }
0x111c   : > { %16845 = vmatpush1.bf16.msra.mxu0 %v25273_v3  ;;  %16927 = vmatpush1.bf16.msra.mxu1 %v25276_v37  ;;  %v25336_v3 = vld [vmem:[%s26237_s22 + $0x1208] ss:$16 sps:$4 sm:$0xff]  }
0x111d   : > { %16846 = vmatprep.subr.bf16.mxu0 %v25281_v38  ;;  %16928 = vmatprep.subr.bf16.mxu1 %v25284_v39  ;;  %v25341_v38 = vld [vmem:[%s26237_s22 + $0x1224] ss:$16 sps:$4 sm:$0xff]   ;;  %v25344_v39 = vld [vmem:[%s26237_s22 + $0x122c] ss:$16 sps:$4 sm:$0xff]  }
0x1120   : > { %16847 = vmatpush1.bf16.msra.mxu0 %v25279_v13  ;;  %16929 = vmatpush1.bf16.msra.mxu1 %v25282_v40  ;;  %v25339_v40 = vld [vmem:[%s26237_s22 + $0x1220] ss:$16 sps:$4 sm:$0xff]  }
0x1121   : > { %16848 = vmatprep.subr.bf16.mxu0 %v25287_v41  ;;  %16930 = vmatprep.subr.bf16.mxu1 %v25290_v42  ;;  %v25342_v41 = vld [vmem:[%s26237_s22 + $0x1228] ss:$16 sps:$4 sm:$0xff]   ;;  %v25347_v42 = vld [vmem:[%s26237_s22 + $0x1244] ss:$16 sps:$4 sm:$0xff]  }
0x1124   : > { %16849 = vmatpush1.bf16.msra.mxu0 %v25285_v43  ;;  %16931 = vmatpush1.bf16.msra.mxu1 %v25288_v45  ;;  %v25350_v43 = vld [vmem:[%s26237_s22 + $0x124c] ss:$16 sps:$4 sm:$0xff]   ;;  %v25345_v45 = vld [vmem:[%s26237_s22 + $0x1240] ss:$16 sps:$4 sm:$0xff]  }
0x1125   : > { %16850 = vmatprep.subr.bf16.mxu0 %v25293_v47  ;;  %16932 = vmatprep.subr.bf16.mxu1 %v25296_v49  ;;  %v25348_v47 = vld [vmem:[%s26237_s22 + $0x1248] ss:$16 sps:$4 sm:$0xff]   ;;  %v25353_v49 = vld [vmem:[%s26237_s22 + $0x1264] ss:$16 sps:$4 sm:$0xff]  }
0x1128   : > { %16851 = vmatpush1.bf16.msra.mxu0 %v25291_v7  ;;  %16933 = vmatpush1.bf16.msra.mxu1 %v25294_v48  ;;  %v25356_v7 = vld [vmem:[%s26237_s22 + $0x126c] ss:$16 sps:$4 sm:$0xff]   ;;  %v25351_v48 = vld [vmem:[%s26237_s22 + $0x1260] ss:$16 sps:$4 sm:$0xff]  }
0x1129   : > { %16852 = vmatprep.subr.bf16.mxu0 %v25299_v14  ;;  %16934 = vmatprep.subr.bf16.mxu1 %v25302_v52  ;;  %v25354_v14 = vld [vmem:[%s26237_s22 + $0x1268] ss:$16 sps:$4 sm:$0xff]   ;;  %v25359_v52 = vld [vmem:[%s26237_s22 + $0x1284] ss:$16 sps:$4 sm:$0xff]  }
0x112c   : > { %16853 = vmatpush1.bf16.msra.mxu0 %v25297_v53  ;;  %16935 = vmatpush1.bf16.msra.mxu1 %v25300_v56  ;;  %v25362_v53 = vld [vmem:[%s26237_s22 + $0x128c] ss:$16 sps:$4 sm:$0xff]   ;;  %v25357_v56 = vld [vmem:[%s26237_s22 + $0x1280] ss:$16 sps:$4 sm:$0xff]  }
0x112d   : > { %16854 = vmatprep.subr.bf16.mxu0 %v25305_v27  ;;  %16936 = vmatprep.subr.bf16.mxu1 %v25308_v58  ;;  %v25360_v27 = vld [vmem:[%s26237_s22 + $0x1288] ss:$16 sps:$4 sm:$0xff]   ;;  %v25365_v58 = vld [vmem:[%s26237_s22 + $0x12a4] ss:$16 sps:$4 sm:$0xff]  }
0x1130   : > { %16855 = vmatpush1.bf16.msra.mxu0 %v25303_v61  ;;  %16937 = vmatpush1.bf16.msra.mxu1 %v25306_v59  ;;  %v25368_v61 = vld [vmem:[%s26237_s22 + $0x12ac] ss:$16 sps:$4 sm:$0xff]   ;;  %v25363_v59 = vld [vmem:[%s26237_s22 + $0x12a0] ss:$16 sps:$4 sm:$0xff]  }
0x1131   : > { %16856 = vmatprep.subr.bf16.mxu0 %v25311_v50  ;;  %16938 = vmatprep.subr.bf16.mxu1 %v25314_v62  ;;  %v25366_v50 = vld [vmem:[%s26237_s22 + $0x12a8] ss:$16 sps:$4 sm:$0xff]   ;;  %v25371_v62 = vld [vmem:[%s26237_s22 + $0x12c4] ss:$16 sps:$4 sm:$0xff]  }
0x1134   : > { %16857 = vmatpush1.bf16.msra.mxu0 %v25309_v31  ;;  %16939 = vmatpush1.bf16.msra.mxu1 %v25312_v0  ;;  %v25374_v31 = vld [vmem:[%s26237_s22 + $0x12cc] ss:$16 sps:$4 sm:$0xff]   ;;  %v25369_v0 = vld [vmem:[%s26237_s22 + $0x12c0] ss:$16 sps:$4 sm:$0xff]  }
0x1135   : > { %16858 = vmatprep.subr.bf16.mxu0 %v25317_v1  ;;  %16940 = vmatprep.subr.bf16.mxu1 %v25320_v2  ;;  %v25372_v1 = vld [vmem:[%s26237_s22 + $0x12c8] ss:$16 sps:$4 sm:$0xff]   ;;  %v25377_v2 = vld [vmem:[%s26237_s22 + $0x12e4] ss:$16 sps:$4 sm:$0xff]  }
0x1138   : > { %16859 = vmatpush1.bf16.msra.mxu0 %v25315_v44  ;;  %16941 = vmatpush1.bf16.msra.mxu1 %v25318_v4  ;;  %v25380_v44 = vld [vmem:[%s26237_s22 + $0x12ec] ss:$16 sps:$4 sm:$0xff]   ;;  %v25375_v4 = vld [vmem:[%s26237_s22 + $0x12e0] ss:$16 sps:$4 sm:$0xff]  }
0x1139   : > { %16860 = vmatprep.subr.bf16.mxu0 %v25323_v5  ;;  %16942 = vmatprep.subr.bf16.mxu1 %v25326_v6  ;;  %v25378_v5 = vld [vmem:[%s26237_s22 + $0x12e8] ss:$16 sps:$4 sm:$0xff]   ;;  %v25383_v6 = vld [vmem:[%s26237_s22 + $0x1304] ss:$16 sps:$4 sm:$0xff]  }
0x113c   : > { %16861 = vmatpush1.bf16.msra.mxu0 %v25321_v24  ;;  %16943 = vmatpush1.bf16.msra.mxu1 %v25324_v8  ;;  %v25386_v24 = vld [vmem:[%s26237_s22 + $0x130c] ss:$16 sps:$4 sm:$0xff]   ;;  %v25381_v8 = vld [vmem:[%s26237_s22 + $0x1300] ss:$16 sps:$4 sm:$0xff]  }
0x113d   : > { %16862 = vmatprep.subr.bf16.mxu0 %v25329_v10  ;;  %16944 = vmatprep.subr.bf16.mxu1 %v25332_v11  ;;  %v25384_v10 = vld [vmem:[%s26237_s22 + $0x1308] ss:$16 sps:$4 sm:$0xff]   ;;  %v25389_v11 = vld [vmem:[%s26237_s22 + $0x1324] ss:$16 sps:$4 sm:$0xff]  }
0x1140   : > { %16863 = vmatpush1.bf16.msra.mxu0 %v25327_v12  ;;  %16945 = vmatpush1.bf16.msra.mxu1 %v25330_v15  ;;  %v25392_v12 = vld [vmem:[%s26237_s22 + $0x132c] ss:$16 sps:$4 sm:$0xff]   ;;  %v25387_v15 = vld [vmem:[%s26237_s22 + $0x1320] ss:$16 sps:$4 sm:$0xff]  }
0x1141   : > { %16873 = vmatprep.subr.bf16.mxu0 %v25335_v16  ;;  %16955 = vmatprep.subr.bf16.mxu1 %v25338_v17  ;;  %v25390_v16 = vld [vmem:[%s26237_s22 + $0x1328] ss:$16 sps:$4 sm:$0xff]   ;;  %v25395_v17 = vld [vmem:[%s26237_s22 + $0x1344] ss:$16 sps:$4 sm:$0xff]  }
0x11d6   : > { %v15943_v21 = vpop.f32.mrb[60].mxu0  ;;  %v28685_v46 = vpop.f32.mrb[64].mxu1 }
0x11d7   : > { %v21909_v51 = vadd.f32 %v15943_v21, %v15211_v18  ;;  %v15945_v23 = vpop.f32.mrb[61].mxu0  ;;  %v16027_v19 = vpop.f32.mrb[65].mxu1  ;;  %v25398_v18 = vld [vmem:[%s26237_s22 + $0x134c] ss:$16 sps:$4 sm:$0xff]   ;;  %v25401_v21 = vld [vmem:[%s26237_s22 + $0x1364] ss:$16 sps:$4 sm:$0xff]  }
0x11d8   : > { %v21910_v28 = vadd.f32 %v15945_v23, %v15215_v20  ;;  %v21912_v29 = vadd.f32 %v16027_v19, %v15223_v22  ;;  %v15947_v30 = vpop.f32.mrb[62].mxu0  ;;  %v16029_v63 = vpop.f32.mrb[66].mxu1  ;;  %v25393_v20 = vld [vmem:[%s26237_s22 + $0x1340] ss:$16 sps:$4 sm:$0xff]   ;;  %v25396_v22 = vld [vmem:[%s26237_s22 + $0x1348] ss:$16 sps:$4 sm:$0xff]  }
0x11d9   : > { %v16032_v32 = vmax.f32 %v21909_v51, 0.0  ;;  %v15948_v57 = vpop.f32.mrb[63].mxu0  ;;  %v16030_v60 = vpop.f32.mrb[67].mxu1  ;;  %v25404_v51 = vld [vmem:[%s26237_s22 + $0x136c] ss:$16 sps:$4 sm:$0xff]  }
0x11da   : > { %v16033_v33 = vmax.f32 %v21910_v28, 0.0  ;;  %v16035_v34 = vmax.f32 %v21912_v29, 0.0  ;;  %v25399_v23 = vld [vmem:[%s26237_s22 + $0x1360] ss:$16 sps:$4 sm:$0xff]   ;;  %v25402_v19 = vld [vmem:[%s26237_s22 + $0x1368] ss:$16 sps:$4 sm:$0xff]  }
0x11db   : > { %v16036_v37 = vpack.c.bf16 %v16032_v32, %v16032_v32  ;;  %v25407_v28 = vld [vmem:[%s26237_s22 + $0x1384] ss:$16 sps:$4 sm:$0xff]   ;;  %v25410_v29 = vld [vmem:[%s26237_s22 + $0x138c] ss:$16 sps:$4 sm:$0xff]   ;;  %v25405_v30 = vld [vmem:[%s26237_s22 + $0x1380] ss:$16 sps:$4 sm:$0xff]  }
0x11dc   : > { %v16037_v35 = vpack.c.bf16 %v16033_v33, %v16033_v33  ;;  %v16039_v13 = vpack.c.bf16 %v16035_v34, %v16035_v34  ;;  %v25408_v63 = vld [vmem:[%s26237_s22 + $0x1388] ss:$16 sps:$4 sm:$0xff]   ;;  %v25413_v32 = vld [vmem:[%s26237_s22 + $0x13a4] ss:$16 sps:$4 sm:$0xff]   ;;  %v25416_v57 = vld [vmem:[%s26237_s22 + $0x13ac] ss:$16 sps:$4 sm:$0xff]   ;;  %v15219_v34 = vrot.slane %v28677_v9, %v26561_v54 }
0x11dd   : > { %v25411_v60 = vld [vmem:[%s26237_s22 + $0x13a0] ss:$16 sps:$4 sm:$0xff]   ;;  %v25414_v33 = vld [vmem:[%s26237_s22 + $0x13a8] ss:$16 sps:$4 sm:$0xff]  }
0x11de   : > { %16864 = vmatprep.mubr.bf16.mxu0 %v16037_v35  ;;  %16946 = vmatprep.mubr.bf16.mxu1 %v16037_v35  ;;  %v25419_v35 = vld [vmem:[%s26237_s22 + $0x13c4] ss:$16 sps:$4 sm:$0xff]   ;;  %v25423_v9 = vld [vmem:[%s26237_s22 + $0x13e0] ss:$16 sps:$4 sm:$0xff]  }
0x11df   : > { %16865 = vmatmul.mubr.bf16.vlgmr.msra.gmra.mrb[64].mxu0 %v16036_v37  ;;  %16947 = vmatmul.mubr.bf16.vlgmr.msra.gmra.mrb[68].mxu1 %v16036_v37  ;;  %v25420_v37 = vld [vmem:[%s26237_s22 + $0x13c8] ss:$16 sps:$4 sm:$0xff]  }
0x11e0   : > { %16874 = vmatpush1.bf16.msra.mxu0 %v25333_v36  ;;  %16956 = vmatpush1.bf16.msra.mxu1 %v25336_v3  ;;  %v25422_v36 = vld [vmem:[%s26237_s22 + $0x13cc] ss:$16 sps:$4 sm:$0xff]   ;;  %v25417_v3 = vld [vmem:[%s26237_s22 + $0x13c0] ss:$16 sps:$4 sm:$0xff]  }
0x11e1   : > { %16905 = vmatprep.mubr.bf16.mxu0 %v16039_v13  ;;  %16987 = vmatprep.mubr.bf16.mxu1 %v16039_v13  ;;  %v25428_v13 = vld [vmem:[%s26237_s22 + $0x13ec] ss:$16 sps:$4 sm:$0xff]  }
0x11e2   : > { %16875 = vmatprep.subr.bf16.mxu0 %v25341_v38  ;;  %16957 = vmatprep.subr.bf16.mxu1 %v25344_v39  ;;  %v21911_v38 = vadd.f32 %v28685_v46, %v15219_v34  ;;  %v25425_v39 = vld [vmem:[%s26237_s22 + $0x13e4] ss:$16 sps:$4 sm:$0xff]   ;;  %v25429_v46 = vld [vmem:[%s26247_s1 + $0x800] ss:$8 sps:$4 sm:$0xff]  }
0x11e4   : > { %16876 = vmatpush1.bf16.msra.mxu0 %v25339_v40  ;;  %16958 = vmatpush1.bf16.msra.mxu1 %v25342_v41  ;;  %v25426_v40 = vld [vmem:[%s26237_s22 + $0x13e8] ss:$16 sps:$4 sm:$0xff]   ;;  %v16034_v41 = vmax.f32 %v21911_v38, 0.0  ;;  %v25482_v38 = vld [vmem:[%s26247_s1 + $0x914] ss:$8 sps:$4 sm:$0xff]  }
0x11e5   : > { %16877 = vmatprep.subr.bf16.mxu0 %v25347_v42  ;;  %16959 = vmatprep.subr.bf16.mxu1 %v25350_v43  ;;  %v25431_v42 = vld [vmem:[%s26247_s1 + $0x804] ss:$8 sps:$4 sm:$0xff]  }
0x11e6   : > { %v16038_v43 = vpack.c.bf16 %v16034_v41, %v16034_v41  ;;  %v25488_v41 = vld [vmem:[%s26247_s1 + $0x934] ss:$8 sps:$4 sm:$0xff]  }
0x11e8   : > { %16878 = vmatpush1.bf16.msra.mxu0 %v25345_v45  ;;  %16960 = vmatpush1.bf16.msra.mxu1 %v25348_v47  ;;  %v25434_v45 = vld [vmem:[%s26247_s1 + $0x814] ss:$8 sps:$4 sm:$0xff]   ;;  %v25432_v47 = vld [vmem:[%s26247_s1 + $0x810] ss:$8 sps:$4 sm:$0xff]  }
0x11e9   : > { %16879 = vmatprep.subr.bf16.mxu0 %v25353_v49  ;;  %16961 = vmatprep.subr.bf16.mxu1 %v25356_v7  ;;  %v25437_v49 = vld [vmem:[%s26247_s1 + $0x824] ss:$8 sps:$4 sm:$0xff]   ;;  %v25435_v7 = vld [vmem:[%s26247_s1 + $0x820] ss:$8 sps:$4 sm:$0xff]  }
0x11ec   : > { %16880 = vmatpush1.bf16.msra.mxu0 %v25351_v48  ;;  %16962 = vmatpush1.bf16.msra.mxu1 %v25354_v14  ;;  %v25440_v48 = vld [vmem:[%s26247_s1 + $0x834] ss:$8 sps:$4 sm:$0xff]   ;;  %v25438_v14 = vld [vmem:[%s26247_s1 + $0x830] ss:$8 sps:$4 sm:$0xff]  }
0x11ed   : > { %16881 = vmatprep.subr.bf16.mxu0 %v25359_v52  ;;  %16963 = vmatprep.subr.bf16.mxu1 %v25362_v53  ;;  %v25443_v52 = vld [vmem:[%s26247_s1 + $0x844] ss:$8 sps:$4 sm:$0xff]   ;;  %v25441_v53 = vld [vmem:[%s26247_s1 + $0x840] ss:$8 sps:$4 sm:$0xff]  }
0x11f0   : > { %16882 = vmatpush1.bf16.msra.mxu0 %v25357_v56  ;;  %16964 = vmatpush1.bf16.msra.mxu1 %v25360_v27  ;;  %v25446_v56 = vld [vmem:[%s26247_s1 + $0x854] ss:$8 sps:$4 sm:$0xff]   ;;  %v25444_v27 = vld [vmem:[%s26247_s1 + $0x850] ss:$8 sps:$4 sm:$0xff]  }
0x11f1   : > { %16883 = vmatprep.subr.bf16.mxu0 %v25365_v58  ;;  %16965 = vmatprep.subr.bf16.mxu1 %v25368_v61  ;;  %v25449_v58 = vld [vmem:[%s26247_s1 + $0x864] ss:$8 sps:$4 sm:$0xff]   ;;  %v25447_v61 = vld [vmem:[%s26247_s1 + $0x860] ss:$8 sps:$4 sm:$0xff]  }
0x11f4   : > { %16884 = vmatpush1.bf16.msra.mxu0 %v25363_v59  ;;  %16966 = vmatpush1.bf16.msra.mxu1 %v25366_v50  ;;  %v25452_v59 = vld [vmem:[%s26247_s1 + $0x874] ss:$8 sps:$4 sm:$0xff]   ;;  %v25450_v50 = vld [vmem:[%s26247_s1 + $0x870] ss:$8 sps:$4 sm:$0xff]  }
0x11f5   : > { %16885 = vmatprep.subr.bf16.mxu0 %v25371_v62  ;;  %16967 = vmatprep.subr.bf16.mxu1 %v25374_v31  ;;  %v25455_v62 = vld [vmem:[%s26247_s1 + $0x884] ss:$8 sps:$4 sm:$0xff]   ;;  %v25453_v31 = vld [vmem:[%s26247_s1 + $0x880] ss:$8 sps:$4 sm:$0xff]  }
0x11f8   : > { %16886 = vmatpush1.bf16.msra.mxu0 %v25369_v0  ;;  %16968 = vmatpush1.bf16.msra.mxu1 %v25372_v1  ;;  %v25458_v0 = vld [vmem:[%s26247_s1 + $0x894] ss:$8 sps:$4 sm:$0xff]   ;;  %v25456_v1 = vld [vmem:[%s26247_s1 + $0x890] ss:$8 sps:$4 sm:$0xff]  }
0x11f9   : > { %16887 = vmatprep.subr.bf16.mxu0 %v25377_v2  ;;  %16969 = vmatprep.subr.bf16.mxu1 %v25380_v44  ;;  %v25461_v2 = vld [vmem:[%s26247_s1 + $0x8a4] ss:$8 sps:$4 sm:$0xff]   ;;  %v25459_v44 = vld [vmem:[%s26247_s1 + $0x8a0] ss:$8 sps:$4 sm:$0xff]  }
0x11fc   : > { %16888 = vmatpush1.bf16.msra.mxu0 %v25375_v4  ;;  %16970 = vmatpush1.bf16.msra.mxu1 %v25378_v5  ;;  %v25464_v4 = vld [vmem:[%s26247_s1 + $0x8b4] ss:$8 sps:$4 sm:$0xff]   ;;  %v25462_v5 = vld [vmem:[%s26247_s1 + $0x8b0] ss:$8 sps:$4 sm:$0xff]  }
0x11fd   : > { %16889 = vmatprep.subr.bf16.mxu0 %v25383_v6  ;;  %16971 = vmatprep.subr.bf16.mxu1 %v25386_v24  ;;  %v25467_v6 = vld [vmem:[%s26247_s1 + $0x8c4] ss:$8 sps:$4 sm:$0xff]   ;;  %v25465_v24 = vld [vmem:[%s26247_s1 + $0x8c0] ss:$8 sps:$4 sm:$0xff]  }
0x1200   : > { %16890 = vmatpush1.bf16.msra.mxu0 %v25381_v8  ;;  %16972 = vmatpush1.bf16.msra.mxu1 %v25384_v10  ;;  %v25470_v8 = vld [vmem:[%s26247_s1 + $0x8d4] ss:$8 sps:$4 sm:$0xff]   ;;  %v25468_v10 = vld [vmem:[%s26247_s1 + $0x8d0] ss:$8 sps:$4 sm:$0xff]  }
0x1201   : > { %16891 = vmatprep.subr.bf16.mxu0 %v25389_v11  ;;  %16973 = vmatprep.subr.bf16.mxu1 %v25392_v12  ;;  %v25473_v11 = vld [vmem:[%s26247_s1 + $0x8e4] ss:$8 sps:$4 sm:$0xff]   ;;  %v25471_v12 = vld [vmem:[%s26247_s1 + $0x8e0] ss:$8 sps:$4 sm:$0xff]  }
0x1204   : > { %16892 = vmatpush1.bf16.msra.mxu0 %v25387_v15  ;;  %16974 = vmatpush1.bf16.msra.mxu1 %v25390_v16  ;;  %v25476_v15 = vld [vmem:[%s26247_s1 + $0x8f4] ss:$8 sps:$4 sm:$0xff]   ;;  %v25474_v16 = vld [vmem:[%s26247_s1 + $0x8f0] ss:$8 sps:$4 sm:$0xff]  }
0x1205   : > { %16893 = vmatprep.subr.bf16.mxu0 %v25395_v17  ;;  %16975 = vmatprep.subr.bf16.mxu1 %v25398_v18  ;;  %v25479_v17 = vld [vmem:[%s26247_s1 + $0x904] ss:$8 sps:$4 sm:$0xff]   ;;  %v28786_v18 = vld [vmem:[%s26815_s28 + $0x10] sm:$0xf] }
0x1208   : > { %16894 = vmatpush1.bf16.msra.mxu0 %v25393_v20  ;;  %16976 = vmatpush1.bf16.msra.mxu1 %v25396_v22  ;;  %v16175_v20 = vrot.slane %v28786_v18, %v26487_v25  ;;  %v16179_v22 = vrot.slane %v28786_v18, %v26490_v26 }
0x1209   : > { %16895 = vmatprep.subr.bf16.mxu0 %v25401_v21  ;;  %16977 = vmatprep.subr.bf16.mxu1 %v25404_v51  ;;  %v16187_v21 = vrot.slane %v28786_v18, %v26564_v55 }
0x120c   : > { %16896 = vmatpush1.bf16.msra.mxu0 %v25399_v23  ;;  %16978 = vmatpush1.bf16.msra.mxu1 %v25402_v19 }
0x120d   : > { %16897 = vmatprep.subr.bf16.mxu0 %v25407_v28  ;;  %16979 = vmatprep.subr.bf16.mxu1 %v25410_v29 }
0x1210   : > { %16898 = vmatpush1.bf16.msra.mxu0 %v25405_v30  ;;  %16980 = vmatpush1.bf16.msra.mxu1 %v25408_v63 }
0x1211   : > { %16899 = vmatprep.subr.bf16.mxu0 %v25413_v32  ;;  %16981 = vmatprep.subr.bf16.mxu1 %v25416_v57 }
0x1214   : > { %16900 = vmatpush1.bf16.msra.mxu0 %v25411_v60  ;;  %16982 = vmatpush1.bf16.msra.mxu1 %v25414_v33 }
0x1215   : > { %16901 = vmatprep.subr.bf16.mxu0 %v25419_v35  ;;  %16983 = vmatprep.subr.bf16.mxu1 %v25422_v36 }
0x1218   : > { %16902 = vmatpush1.bf16.msra.mxu0 %v25417_v3  ;;  %16984 = vmatpush1.bf16.msra.mxu1 %v25420_v37  ;;  %v25477_v3 = vld [vmem:[%s26247_s1 + $0x900] ss:$8 sps:$4 sm:$0xff]  }
0x1219   : > { %16903 = vmatprep.subr.bf16.mxu0 %v25425_v39  ;;  %16985 = vmatprep.subr.bf16.mxu1 %v25428_v13  ;;  %v25480_v13 = vld [vmem:[%s26247_s1 + $0x910] ss:$8 sps:$4 sm:$0xff]  }
0x121c   : > { %16904 = vmatpush1.bf16.msra.mxu0 %v25423_v9  ;;  %16986 = vmatpush1.bf16.msra.mxu1 %v25426_v40  ;;  %v25485_v9 = vld [vmem:[%s26247_s1 + $0x924] ss:$8 sps:$4 sm:$0xff]   ;;  %v25483_v40 = vld [vmem:[%s26247_s1 + $0x920] ss:$8 sps:$4 sm:$0xff]  }
0x121d   : > { %17403 = vmatprep.subr.bf16.mxu0 %v25431_v42  ;;  %v25486_v42 = vld [vmem:[%s26247_s1 + $0x930] ss:$8 sps:$4 sm:$0xff]  }
0x121f   : > { %16906 = vmatmul.mubr.bf16.vlgmr.msra.gmra.mrb[64].mxu0 %v16038_v43  ;;  %16988 = vmatmul.mubr.bf16.vlgmr.msra.gmra.mrb[68].mxu1 %v16038_v43  ;;  %v25489_v43 = vld [vmem:[%s26247_s1 + $0x940] ss:$8 sps:$4 sm:$0xff]  }
0x1220   : > { %17404 = vmatpush1.bf16.msra.mxu0 %v25429_v46  ;;  %v25491_v46 = vld [vmem:[%s26247_s1 + $0x944] ss:$8 sps:$4 sm:$0xff]  }
0x1221   : > { %17405 = vmatprep.subr.bf16.mxu0 %v25434_v45  ;;  %v25494_v45 = vld [vmem:[%s26247_s1 + $0x954] ss:$8 sps:$4 sm:$0xff]  }
0x1224   : > { %17406 = vmatpush1.bf16.msra.mxu0 %v25432_v47  ;;  %v25492_v47 = vld [vmem:[%s26247_s1 + $0x950] ss:$8 sps:$4 sm:$0xff]  }
0x1225   : > { %17407 = vmatprep.subr.bf16.mxu0 %v25437_v49  ;;  %v25497_v49 = vld [vmem:[%s26247_s1 + $0x964] ss:$8 sps:$4 sm:$0xff]  }
0x1228   : > { %17408 = vmatpush1.bf16.msra.mxu0 %v25435_v7  ;;  %v25495_v7 = vld [vmem:[%s26247_s1 + $0x960] ss:$8 sps:$4 sm:$0xff]  }
0x1229   : > { %17409 = vmatprep.subr.bf16.mxu0 %v25440_v48  ;;  %v25500_v48 = vld [vmem:[%s26247_s1 + $0x974] ss:$8 sps:$4 sm:$0xff]  }
0x122c   : > { %17410 = vmatpush1.bf16.msra.mxu0 %v25438_v14  ;;  %v25498_v14 = vld [vmem:[%s26247_s1 + $0x970] ss:$8 sps:$4 sm:$0xff]  }
0x122d   : > { %17411 = vmatprep.subr.bf16.mxu0 %v25443_v52  ;;  %v25503_v52 = vld [vmem:[%s26247_s1 + $0x984] ss:$8 sps:$4 sm:$0xff]  }
0x1230   : > { %17412 = vmatpush1.bf16.msra.mxu0 %v25441_v53  ;;  %v25501_v53 = vld [vmem:[%s26247_s1 + $0x980] ss:$8 sps:$4 sm:$0xff]  }
0x1231   : > { %17413 = vmatprep.subr.bf16.mxu0 %v25446_v56  ;;  %v25506_v56 = vld [vmem:[%s26247_s1 + $0x994] ss:$8 sps:$4 sm:$0xff]  }
0x1234   : > { %17414 = vmatpush1.bf16.msra.mxu0 %v25444_v27  ;;  %v25504_v27 = vld [vmem:[%s26247_s1 + $0x990] ss:$8 sps:$4 sm:$0xff]  }
0x1235   : > { %17415 = vmatprep.subr.bf16.mxu0 %v25449_v58  ;;  %v25509_v58 = vld [vmem:[%s26247_s1 + $0x9a4] ss:$8 sps:$4 sm:$0xff]  }
0x1238   : > { %17416 = vmatpush1.bf16.msra.mxu0 %v25447_v61  ;;  %v25507_v61 = vld [vmem:[%s26247_s1 + $0x9a0] ss:$8 sps:$4 sm:$0xff]  }
0x1239   : > { %17417 = vmatprep.subr.bf16.mxu0 %v25452_v59  ;;  %v25512_v59 = vld [vmem:[%s26247_s1 + $0x9b4] ss:$8 sps:$4 sm:$0xff]  }
0x123c   : > { %17418 = vmatpush1.bf16.msra.mxu0 %v25450_v50  ;;  %v25510_v50 = vld [vmem:[%s26247_s1 + $0x9b0] ss:$8 sps:$4 sm:$0xff]  }
0x123d   : > { %17419 = vmatprep.subr.bf16.mxu0 %v25455_v62  ;;  %v25515_v62 = vld [vmem:[%s26247_s1 + $0x9c4] ss:$8 sps:$4 sm:$0xff]  }
0x1240   : > { %17420 = vmatpush1.bf16.msra.mxu0 %v25453_v31  ;;  %v25513_v31 = vld [vmem:[%s26247_s1 + $0x9c0] ss:$8 sps:$4 sm:$0xff]  }
0x1241   : > { %17421 = vmatprep.subr.bf16.mxu0 %v25458_v0  ;;  %v25518_v0 = vld [vmem:[%s26247_s1 + $0x9d4] ss:$8 sps:$4 sm:$0xff]  }
0x1244   : > { %17422 = vmatpush1.bf16.msra.mxu0 %v25456_v1  ;;  %v25516_v1 = vld [vmem:[%s26247_s1 + $0x9d0] ss:$8 sps:$4 sm:$0xff]  }
0x1245   : > { %17423 = vmatprep.subr.bf16.mxu0 %v25461_v2  ;;  %v16183_v2 = vrot.slane %v28786_v18, %v26561_v54 }
0x1248   : > { %17424 = vmatpush1.bf16.msra.mxu0 %v25459_v44  ;;  %v25521_v44 = vld [vmem:[%s26247_s1 + $0x9e4] ss:$8 sps:$4 sm:$0xff]  }
0x1249   : > { %17425 = vmatprep.subr.bf16.mxu0 %v25464_v4  ;;  %v25519_v4 = vld [vmem:[%s26247_s1 + $0x9e0] ss:$8 sps:$4 sm:$0xff]  }
0x124c   : > { %17426 = vmatpush1.bf16.msra.mxu0 %v25462_v5 }
0x124d   : > { %17427 = vmatprep.subr.bf16.mxu0 %v25467_v6  ;;  %v25524_v6 = vld [vmem:[%s26247_s1 + $0x9f4] ss:$8 sps:$4 sm:$0xff]  }
0x1250   : > { %17428 = vmatpush1.bf16.msra.mxu0 %v25465_v24  ;;  %v25522_v24 = vld [vmem:[%s26247_s1 + $0x9f0] ss:$8 sps:$4 sm:$0xff]  }
0x1251   : > { %17429 = vmatprep.subr.bf16.mxu0 %v25470_v8 }
0x1254   : > { %17430 = vmatpush1.bf16.msra.mxu0 %v25468_v10 }
0x1255   : > { %17431 = vmatprep.subr.bf16.mxu0 %v25473_v11  ;;  %v21767_v11 = vld [vmem:[%s27047_s20 + $0x8] sm:$0x3] }
0x1256   : > { %v17080_v54 = vrot.slane %v21767_v11, %v26490_v26 }
0x1258   : > { %17432 = vmatpush1.bf16.msra.mxu0 %v25471_v12  ;;  %v17076_v12 = vrot.slane %v21767_v11, %v26487_v25 }
0x1259   : > { %17433 = vmatprep.subr.bf16.mxu0 %v25476_v15 }
0x125c   : > { %17434 = vmatpush1.bf16.msra.mxu0 %v25474_v16 }
0x125d   : > { %17444 = vmatprep.subr.bf16.mxu0 %v25479_v17 }
0x12f2   : > { %v16907_v51 = vpop.f32.mrb[64].mxu0  ;;  %v28794_v23 = vpop.f32.mrb[68].mxu1 }
0x12f3   : > { %v21913_v19 = vadd.f32 %v16907_v51, %v16175_v20  ;;  %v16909_v28 = vpop.f32.mrb[65].mxu0  ;;  %v16991_v29 = vpop.f32.mrb[69].mxu1  ;;  %v21915_v5 = vadd.f32 %v28794_v23, %v16183_v2 }
0x12f4   : > { %v21914_v30 = vadd.f32 %v16909_v28, %v16179_v22  ;;  %v21916_v63 = vadd.f32 %v16991_v29, %v16187_v21  ;;  %v16911_v32 = vpop.f32.mrb[66].mxu0  ;;  %v16993_v57 = vpop.f32.mrb[70].mxu1 }
0x12f5   : > { %v16996_v60 = vmax.f32 %v21913_v19, 0.0  ;;  %v16912_v33 = vpop.f32.mrb[67].mxu0  ;;  %v16994_v34 = vpop.f32.mrb[71].mxu1  ;;  %v16998_v8 = vmax.f32 %v21915_v5, 0.0 }
0x12f6   : > { %v16997_v35 = vmax.f32 %v21914_v30, 0.0  ;;  %v16999_v55 = vmax.f32 %v21916_v63, 0.0 }
0x12f7   : > { %v17000_v37 = vpack.c.bf16 %v16996_v60, %v16996_v60  ;;  %v17002_v10 = vpack.c.bf16 %v16998_v8, %v16998_v8 }
0x12f8   : > { %v17001_v36 = vpack.c.bf16 %v16997_v35, %v16997_v35  ;;  %v17003_v39 = vpack.c.bf16 %v16999_v55, %v16999_v55 }
0x12fa   : > { %17435 = vmatprep.mubr.bf16.mxu0 %v17001_v36 }
0x12fb   : > { %17436 = vmatmul.mubr.bf16.vlgmr.msra.gmra.mrb[68].mxu0 %v17000_v37 }
0x12fc   : > { %17445 = vmatpush1.bf16.msra.mxu0 %v25477_v3  ;;  %17476 = vmatprep.mubr.bf16.mxu0 %v17003_v39 }
0x12fd   : > { %17446 = vmatprep.subr.bf16.mxu0 %v25482_v38 }
0x1300   : > { %17447 = vmatpush1.bf16.msra.mxu0 %v25480_v13 }
0x1301   : > { %17448 = vmatprep.subr.bf16.mxu0 %v25485_v9 }
0x1304   : > { %17449 = vmatpush1.bf16.msra.mxu0 %v25483_v40 }
0x1305   : > { %17450 = vmatprep.subr.bf16.mxu0 %v25488_v41 }
0x1308   : > { %17451 = vmatpush1.bf16.msra.mxu0 %v25486_v42 }
0x1309   : > { %17452 = vmatprep.subr.bf16.mxu0 %v25491_v46 }
0x130c   : > { %17453 = vmatpush1.bf16.msra.mxu0 %v25489_v43 }
0x130d   : > { %17454 = vmatprep.subr.bf16.mxu0 %v25494_v45 }
0x1310   : > { %17455 = vmatpush1.bf16.msra.mxu0 %v25492_v47 }
0x1311   : > { %17456 = vmatprep.subr.bf16.mxu0 %v25497_v49 }
0x1314   : > { %17457 = vmatpush1.bf16.msra.mxu0 %v25495_v7 }
0x1315   : > { %17458 = vmatprep.subr.bf16.mxu0 %v25500_v48 }
0x1318   : > { %17459 = vmatpush1.bf16.msra.mxu0 %v25498_v14 }
0x1319   : > { %17460 = vmatprep.subr.bf16.mxu0 %v25503_v52 }
0x131c   : > { %17461 = vmatpush1.bf16.msra.mxu0 %v25501_v53 }
0x131d   : > { %17462 = vmatprep.subr.bf16.mxu0 %v25506_v56 }
0x1320   : > { %17463 = vmatpush1.bf16.msra.mxu0 %v25504_v27 }
0x1321   : > { %17464 = vmatprep.subr.bf16.mxu0 %v25509_v58 }
0x1324   : > { %17465 = vmatpush1.bf16.msra.mxu0 %v25507_v61 }
0x1325   : > { %17466 = vmatprep.subr.bf16.mxu0 %v25512_v59 }
0x1328   : > { %17467 = vmatpush1.bf16.msra.mxu0 %v25510_v50 }
0x1329   : > { %17468 = vmatprep.subr.bf16.mxu0 %v25515_v62 }
0x132c   : > { %17469 = vmatpush1.bf16.msra.mxu0 %v25513_v31 }
0x132d   : > { %17470 = vmatprep.subr.bf16.mxu0 %v25518_v0 }
0x1330   : > { %17471 = vmatpush1.bf16.msra.mxu0 %v25516_v1 }
0x1331   : > { %17472 = vmatprep.subr.bf16.mxu0 %v25521_v44 }
0x1334   : > { %17473 = vmatpush1.bf16.msra.mxu0 %v25519_v4 }
0x1335   : > { %17474 = vmatprep.subr.bf16.mxu0 %v25524_v6 }
0x1338   : > { %17475 = vmatpush1.bf16.msra.mxu0 %v25522_v24 }
0x133b   : > { %17477 = vmatmul.mubr.bf16.vlgmr.msra.gmra.mrb[68].mxu0 %v17002_v10 }
0x140e   : > { %v17478_v15 = vpop.f32.mrb[68].mxu0 }
0x140f   : > { %v21917_v16 = vadd.f32 %v17478_v15, %v17076_v12  ;;  %v17480_v17 = vpop.f32.mrb[69].mxu0 }
0x1410   : > { %v21918_v18 = vadd.f32 %v17480_v17, %v17080_v54  ;;  %v17482_v20 = vpop.f32.mrb[70].mxu0 }
0x1411   : > { %v17483_v22 = vpop.f32.mrb[71].mxu0 }
0x1412   : > { %v17487_v21 = vcombine.low %v21917_v16, %v21918_v18 }
0x1414   : > { %21832 = vst.sshfl [vmem:[%s27062_s6 + $0x10] sm:$0x33 pattern:$0x76325410] %v17487_v21 }
0x1415 PF: > { %s28919_s12 = sld [smem:[#allocation25_spill]]  ;;  %s28920_s30 = sld [smem:[#allocation22_spill]] }
0x1416   : > { %s28921_s24 = sld [smem:[#allocation26_spill]]  ;;  %s28922_s10 = smov %s25815_s11 }
0x141b   : > { %p26_p8 = scmp.ge.s32.totalorder %s28919_s12, 6  }
0x141c   : > { %s28923_s11 = smov %s28921_s24 }
0x141d   :  { %28 = sbr.rel (!%p26_p8) target bundleno = 15 (0xf), region = 185 }
0x1424   :  { %17519 = vsyncpa [#allocation3], 1 }
0x1425   :  { %17521 = vsyncpa [#allocation3 + $0x1], 1 }
0x1426   :  { %17522 = vsyncpa [#allocation5], 1 }
0x1427   :  { %17523 = vsyncpa [#allocation9], 1 }
0x1428   :  { %17525 = vsyncpa [#allocation9 + $0x1], 1 }
0x1429   :  { %17526 = vsyncpa [#allocation12], 1 }
0x142a   :  { %17528 = vsyncpa [#allocation12 + $0x1], 1 }

</bundles_post_ra>
